<compile_context>
chip_gen: v7x
topology: tpu7x:2x2x1
jax: 0.10.0
libtpu: 0.0.40
codegen_flags: <defaults>
</compile_context>

<pallas_src>
import functools

import jax
import jax.numpy as jnp
from jax import lax
from jax.experimental import pallas as pl
from jax.experimental.pallas import tpu as pltpu

CH = 128  # unified lane width: every channel dim (Cin / Cout) is zero-padded to 128


# ----------------------------------------------------------------------------
# In-kernel helpers
# ----------------------------------------------------------------------------
def _conv_taps_matmul(xp_ref, w_ref, b_ref, r0, rows, w, relu):
    """3x3 conv (pad already in xp_ref) over output rows [r0, r0+rows).

    xp_ref : (>=rows+2, >=w+2, CH) f32 zero-padded input scratch
    w_ref  : (9*CH, CH) bf16 im2col weights, rows ordered (ky, kx, cin)
    b_ref  : (1, CH) f32
    returns: (rows*w, CH) f32
    """
    taps = []
    for ky in range(3):
        for kx in range(3):
            t = xp_ref[pl.ds(r0 + ky, rows), pl.ds(kx, w), :]        # (rows, w, CH)
            taps.append(t.reshape(rows * w, CH).astype(jnp.bfloat16))
    patches = jnp.concatenate(taps, axis=-1)                          # (rows*w, 9*CH)
    out = jnp.dot(patches, w_ref[...], preferred_element_type=jnp.float32)
    out = out + b_ref[...]
    if relu:
        out = jnp.maximum(out, 0.0)
    return out


def _maxpool2x2(a, rows, w):
    """2x2 max-pool of (rows*w, CH) row-major activations -> (rows//2, w//2, CH)."""
    wo = w // 2
    a = a.reshape(rows * wo, 2, CH)
    a = jnp.maximum(a[:, 0, :], a[:, 1, :])          # pool along width
    a = a.reshape(rows // 2, 2 * wo, CH)
    a = jnp.maximum(a[:, :wo, :], a[:, wo:, :])      # pool along height
    return a                                         # (rows//2, wo, CH)


# ----------------------------------------------------------------------------
# Fused forward kernel (one grid step == one image)
# ----------------------------------------------------------------------------
def _fused_forward_kernel(x_ref,
                          w1_ref, b1_ref, w2_ref, b2_ref, w3_ref, b3_ref,
                          l1w_ref, l1b_ref, l2w_ref, l2b_ref,
                          l3w_ref, l3b_ref, l4w_ref, l4b_ref,
                          o_ref,
                          xpa_ref, xpb_ref, flat_ref,
                          *, H, W):
    bf16 = jnp.bfloat16
    f32 = jnp.float32
    H2, W2 = H // 2, W // 2
    H4, W4 = H // 4, W // 4

    # ---- conv1 (3x3, pad=1) + ReLU (+Dropout2d=id) + MaxPool2, row-chunked -------
    xpa_ref[...] = jnp.zeros_like(xpa_ref)                    # zero halo
    xpa_ref[pl.ds(1, H), pl.ds(1, W), :] = x_ref[0]           # interior
    xpb_ref[...] = jnp.zeros_like(xpb_ref)                    # zero halo for conv2
    for r0 in range(0, H, 4):                                 # 4 output rows / chunk
        h1 = _conv_taps_matmul(xpa_ref, w1_ref, b1_ref, r0, 4, W, relu=True)
        xpb_ref[pl.ds(1 + r0 // 2, 2), pl.ds(1, W2), :] = _maxpool2x2(h1, 4, W)

    # ---- conv2 + ReLU (+Dropout2d=id) + MaxPool2 ----------------------------------
    xpa_ref[...] = jnp.zeros_like(xpa_ref)                    # reuse as conv3 input
    h2 = _conv_taps_matmul(xpb_ref, w2_ref, b2_ref, 0, H2, W2, relu=True)
    xpa_ref[pl.ds(1, H4), pl.ds(1, W4), :] = _maxpool2x2(h2, H2, W2)

    # ---- conv3 (no ReLU, no pool) --------------------------------------------------
    h3 = _conv_taps_matmul(xpa_ref, w3_ref, b3_ref, 0, H4, W4, relu=False)  # (H4*W4, 128)

    # ---- Flatten (NHWC order; w_l1 rows were permuted at init to match) ------------
    for r in range(H4 * W4):
        flat_ref[:, pl.ds(r * CH, CH)] = h3[r:r + 1, :]       # aligned 128-lane windows
    flat = flat_ref[...].astype(bf16)                         # (1, H4*W4*128)

    # ---- MLP head: 3x (Linear+ReLU) (+Dropout=id) + Linear + Softmax(dim=1) --------
    a = jnp.dot(flat, l1w_ref[...], preferred_element_type=f32) + l1b_ref[...]
    a = jnp.maximum(a, 0.0).astype(bf16)
    a = jnp.dot(a, l2w_ref[...], preferred_element_type=f32) + l2b_ref[...]
    a = jnp.maximum(a, 0.0).astype(bf16)
    a = jnp.dot(a, l3w_ref[...], preferred_element_type=f32) + l3b_ref[...]
    a = jnp.maximum(a, 0.0).astype(bf16)
    logits = jnp.dot(a, l4w_ref[...], preferred_element_type=f32) + l4b_ref[...]

    m = jnp.max(logits, axis=1, keepdims=True)
    e = jnp.exp(logits - m)
    probs = e * pl.reciprocal(jnp.sum(e, axis=1, keepdims=True), approx=True)
    o_ref[0] = probs.astype(o_ref.dtype)


# ----------------------------------------------------------------------------
# Wrapper
# ----------------------------------------------------------------------------
def model_forward(x_nchw, kp):
    N, Cin, H, W = x_nchw.shape
    assert H % 4 == 0 and W % 4 == 0 and Cin <= CH
    num_classes = kp["l4_w"].shape[-1]

    # NCHW -> NHWC and pad channels to the unified 128-lane width (tiny one-time op).
    x = jnp.transpose(x_nchw, (0, 2, 3, 1))
    x = jnp.pad(x, ((0, 0), (0, 0), (0, 0), (0, CH - Cin)))

    args = (x,
            kp["c1_w"], kp["c1_b"], kp["c2_w"], kp["c2_b"], kp["c3_w"], kp["c3_b"],
            kp["l1_w"], kp["l1_b"], kp["l2_w"], kp["l2_b"],
            kp["l3_w"], kp["l3_b"], kp["l4_w"], kp["l4_b"])

    def resident(a):  # same block every grid step -> stays in VMEM, no re-DMA
        nd = a.ndim
        return pl.BlockSpec(a.shape, lambda n, _nd=nd: (0,) * _nd)

    out = pl.pallas_call(
        functools.partial(_fused_forward_kernel, H=H, W=W),
        out_shape=jax.ShapeDtypeStruct((N, 1, num_classes), jnp.float32),
        grid_spec=pltpu.PrefetchScalarGridSpec(
            num_scalar_prefetch=0,
            grid=(N,),
            in_specs=[pl.BlockSpec((1, H, W, CH), lambda n: (n, 0, 0, 0))]
                     + [resident(a) for a in args[1:]],
            out_specs=pl.BlockSpec((1, 1, num_classes), lambda n: (n, 0, 0)),
            scratch_shapes=[
                pltpu.VMEM((H + 2, W + 2, CH), jnp.float32),          # padded conv1/conv3 input
                pltpu.VMEM((H // 2 + 2, W // 2 + 2, CH), jnp.float32),  # padded conv2 input
                pltpu.VMEM((1, (H // 4) * (W // 4) * CH), jnp.float32),  # flattened features
            ]),
        compiler_params=pltpu.CompilerParams(
            dimension_semantics=("parallel",)),
    )(*args)
    return out.reshape(N, num_classes)


# ----------------------------------------------------------------------------
# Parameters: PyTorch-layout f32 params + one-time transform to kernel layout
# ----------------------------------------------------------------------------
def init_torch_params(key, input_channels, x_size, y_size, num_classes):
    ks = jax.random.split(key, 14)
    flat = 128 * (x_size // 4) * (y_size // 4)

    def conv_w(k, cout, cin):
        return jax.random.normal(k, (cout, cin, 3, 3), jnp.float32) / jnp.sqrt(9.0 * cin)

    def lin_w(k, fout, fin):
        return jax.random.normal(k, (fout, fin), jnp.float32) / jnp.sqrt(float(fin))

    def bias(k, n):
        return 0.02 * jax.random.normal(k, (n,), jnp.float32)

    return {
        "c1_w": conv_w(ks[0], 32, input_channels), "c1_b": bias(ks[1], 32),
        "c2_w": conv_w(ks[2], 64, 32),             "c2_b": bias(ks[3], 64),
        "c3_w": conv_w(ks[4], 128, 64),            "c3_b": bias(ks[5], 128),
        "l1_w": lin_w(ks[6], 512, flat),           "l1_b": bias(ks[7], 512),
        "l2_w": lin_w(ks[8], 256, 512),            "l2_b": bias(ks[9], 256),
        "l3_w": lin_w(ks[10], 128, 256),           "l3_b": bias(ks[11], 128),
        "l4_w": lin_w(ks[12], num_classes, 128),   "l4_b": bias(ks[13], num_classes),
    }


def to_kernel_params(tp, x_size, y_size):
    """One-time preprocessing: im2col weight layout, 128-lane padding, bf16 cast,
    and folding PyTorch's (C,H,W)-flatten permutation into the first Linear."""
    H4, W4 = x_size // 4, y_size // 4

    def conv_w(w_oihw):
        cout, cin = w_oihw.shape[0], w_oihw.shape[1]
        w = jnp.transpose(w_oihw, (2, 3, 1, 0))                      # (3,3,Cin,Cout)
        w = jnp.pad(w, ((0, 0), (0, 0), (0, CH - cin), (0, CH - cout)))
        return w.reshape(9 * CH, CH).astype(jnp.bfloat16)            # rows = (ky,kx,cin)

    def conv_b(b):
        return jnp.pad(b, (0, CH - b.shape[0])).reshape(1, CH).astype(jnp.float32)

    def lin_w(w_oi):
        return jnp.transpose(w_oi, (1, 0)).astype(jnp.bfloat16)      # (in, out)

    def lin_b(b):
        return b.reshape(1, -1).astype(jnp.float32)

    # Permute w_l1 rows from PyTorch (c, h, w) flatten order to NHWC (h, w, c) order.
    l1 = jnp.transpose(tp["l1_w"], (1, 0))                            # (flat, 512)
    l1 = l1.reshape(128, H4, W4, -1).transpose(1, 2, 0, 3).reshape(H4 * W4 * 128, -1)

    return {
        "c1_w": conv_w(tp["c1_w"]), "c1_b": conv_b(tp["c1_b"]),
        "c2_w": conv_w(tp["c2_w"]), "c2_b": conv_b(tp["c2_b"]),
        "c3_w": conv_w(tp["c3_w"]), "c3_b": conv_b(tp["c3_b"]),
        "l1_w": l1.astype(jnp.bfloat16), "l1_b": lin_b(tp["l1_b"]),
        "l2_w": lin_w(tp["l2_w"]),       "l2_b": lin_b(tp["l2_b"]),
        "l3_w": lin_w(tp["l3_w"]),       "l3_b": lin_b(tp["l3_b"]),
        "l4_w": lin_w(tp["l4_w"]),       "l4_b": lin_b(tp["l4_b"]),
    }


# ----------------------------------------------------------------------------
# Pure-JAX reference (f32, PyTorch semantics) for validation
# ----------------------------------------------------------------------------
def reference_forward(x_nchw, tp):
    x = jnp.transpose(x_nchw, (0, 2, 3, 1))

    def conv(x, w_oihw, b, relu):
        w = jnp.transpose(w_oihw, (2, 3, 1, 0))
        y = lax.conv_general_dilated(
            x, w, window_strides=(1, 1), padding="SAME",
            dimension_numbers=("NHWC", "HWIO", "NHWC")) + b
        return jnp.maximum(y, 0.0) if relu else y

    def pool(x):
        n, h, w, c = x.shape
        return x.reshape(n, h // 2, 2, w // 2, 2, c).max(axis=(2, 4))

    x = pool(conv(x, tp["c1_w"], tp["c1_b"], True))
    x = pool(conv(x, tp["c2_w"], tp["c2_b"], True))
    x = conv(x, tp["c3_w"], tp["c3_b"], False)
    x = jnp.transpose(x, (0, 3, 1, 2)).reshape(x.shape[0], -1)        # torch (C,H,W) flatten
    for wk, bk in (("l1_w", "l1_b"), ("l2_w", "l2_b"), ("l3_w", "l3_b")):
        x = jnp.maximum(x @ tp[wk].T + tp[bk], 0.0)
    x = x @ tp["l4_w"].T + tp["l4_b"]
    return jax.nn.softmax(x, axis=1)


if __name__ == "__main__":
    N, C, HS, WS, NUM_CLASSES = 2, 4, 16, 16, 10
    key = jax.random.PRNGKey(0)
    k_params, k_x = jax.random.split(key)

    torch_params = init_torch_params(k_params, C, HS, WS, NUM_CLASSES)
    kernel_params = to_kernel_params(torch_params, HS, WS)
    x = jax.random.normal(k_x, (N, C, HS, WS), jnp.float32)

    fwd = jax.jit(model_forward)
    out = jax.block_until_ready(fwd(x, kernel_params))
    assert out.shape == (N, NUM_CLASSES), out.shape
    assert bool(jnp.all(jnp.isfinite(out)))

    ref = reference_forward(x, torch_params)
    assert bool(jnp.allclose(out, ref, atol=5e-2)), (out, ref)

    print("KERNEL_OK")
</pallas_src>

<mosaic_0001>
module attributes {stable_mosaic.version = 11 : i64} {
  func.func @_fused_forward_kernel(%arg0: i32, %arg1: memref<1x16x16x128xf32, #tpu.memory_space<vmem>>, %arg2: memref<1152x128xbf16, #tpu.memory_space<vmem>>, %arg3: memref<1x128xf32, #tpu.memory_space<vmem>>, %arg4: memref<1152x128xbf16, #tpu.memory_space<vmem>>, %arg5: memref<1x128xf32, #tpu.memory_space<vmem>>, %arg6: memref<1152x128xbf16, #tpu.memory_space<vmem>>, %arg7: memref<1x128xf32, #tpu.memory_space<vmem>>, %arg8: memref<2048x512xbf16, #tpu.memory_space<vmem>>, %arg9: memref<1x512xf32, #tpu.memory_space<vmem>>, %arg10: memref<512x256xbf16, #tpu.memory_space<vmem>>, %arg11: memref<1x256xf32, #tpu.memory_space<vmem>>, %arg12: memref<256x128xbf16, #tpu.memory_space<vmem>>, %arg13: memref<1x128xf32, #tpu.memory_space<vmem>>, %arg14: memref<128x10xbf16, #tpu.memory_space<vmem>>, %arg15: memref<1x10xf32, #tpu.memory_space<vmem>>, %arg16: memref<1x1x10xf32, #tpu.memory_space<vmem>>, %arg17: memref<18x18x128xf32, #tpu.memory_space<vmem>>, %arg18: memref<10x10x128xf32, #tpu.memory_space<vmem>>, %arg19: memref<1x2048xf32, #tpu.memory_space<vmem>>) attributes {dimension_semantics = [#tpu.dimension_semantics<parallel>], iteration_bounds = array<i64: 2>, scalar_prefetch = 0 : i64, scratch_operands = 3 : i64, tpu.core_type = #tpu.core_type<tc>, window_params = [{transform_indices = @transform_0, window_bounds = array<i64: 1, 16, 16, 128>}, {pipeline_mode = #tpu.pipeline_mode<synchronous>, transform_indices = @transform_1, window_bounds = array<i64: 1152, 128>}, {pipeline_mode = #tpu.pipeline_mode<synchronous>, transform_indices = @transform_2, window_bounds = array<i64: 1, 128>}, {pipeline_mode = #tpu.pipeline_mode<synchronous>, transform_indices = @transform_3, window_bounds = array<i64: 1152, 128>}, {pipeline_mode = #tpu.pipeline_mode<synchronous>, transform_indices = @transform_4, window_bounds = array<i64: 1, 128>}, {pipeline_mode = #tpu.pipeline_mode<synchronous>, transform_indices = @transform_5, window_bounds = array<i64: 1152, 128>}, {pipeline_mode = #tpu.pipeline_mode<synchronous>, transform_indices = @transform_6, window_bounds = array<i64: 1, 128>}, {pipeline_mode = #tpu.pipeline_mode<synchronous>, transform_indices = @transform_7, window_bounds = array<i64: 2048, 512>}, {pipeline_mode = #tpu.pipeline_mode<synchronous>, transform_indices = @transform_8, window_bounds = array<i64: 1, 512>}, {pipeline_mode = #tpu.pipeline_mode<synchronous>, transform_indices = @transform_9, window_bounds = array<i64: 512, 256>}, {pipeline_mode = #tpu.pipeline_mode<synchronous>, transform_indices = @transform_10, window_bounds = array<i64: 1, 256>}, {pipeline_mode = #tpu.pipeline_mode<synchronous>, transform_indices = @transform_11, window_bounds = array<i64: 256, 128>}, {pipeline_mode = #tpu.pipeline_mode<synchronous>, transform_indices = @transform_12, window_bounds = array<i64: 1, 128>}, {pipeline_mode = #tpu.pipeline_mode<synchronous>, transform_indices = @transform_13, window_bounds = array<i64: 128, 10>}, {pipeline_mode = #tpu.pipeline_mode<synchronous>, transform_indices = @transform_14, window_bounds = array<i64: 1, 10>}, {transform_indices = @transform_15, window_bounds = array<i64: 1, 1, 10>}]} {
    %cst = arith.constant 0.000000e+00 : f32
    %0 = vector.broadcast %cst : f32 to vector<18x18x128xf32>
    %c0 = arith.constant 0 : index
    %c0_0 = arith.constant 0 : index
    %c0_1 = arith.constant 0 : index
    %1 = vector.load %arg17[%c0, %c0_0, %c0_1] : memref<18x18x128xf32, #tpu.memory_space<vmem>>, vector<18x18x128xf32>
    tpu.vector_store %arg17[%c0, %c0_0, %c0_1], %0 {strides = array<i32>} : memref<18x18x128xf32, #tpu.memory_space<vmem>>, vector<18x18x128xf32>,
    %c0_2 = arith.constant 0 : index
    %c0_3 = arith.constant 0 : index
    %c0_4 = arith.constant 0 : index
    %c0_5 = arith.constant 0 : index
    %2 = vector.load %arg1[%c0_2, %c0_3, %c0_4, %c0_5] : memref<1x16x16x128xf32, #tpu.memory_space<vmem>>, vector<1x16x16x128xf32>
    %3 = vector.shape_cast %2 : vector<1x16x16x128xf32> to vector<16x16x128xf32>
    %c1 = arith.constant 1 : index
    %c1_6 = arith.constant 1 : index
    %c0_7 = arith.constant 0 : index
    %4 = vector.load %arg17[%c1, %c1_6, %c0_7] : memref<18x18x128xf32, #tpu.memory_space<vmem>>, vector<16x16x128xf32>
    tpu.vector_store %arg17[%c1, %c1_6, %c0_7], %3 {strides = array<i32>} : memref<18x18x128xf32, #tpu.memory_space<vmem>>, vector<16x16x128xf32>,
    %cst_8 = arith.constant 0.000000e+00 : f32
    %5 = vector.broadcast %cst_8 : f32 to vector<10x10x128xf32>
    %c0_9 = arith.constant 0 : index
    %c0_10 = arith.constant 0 : index
    %c0_11 = arith.constant 0 : index
    %6 = vector.load %arg18[%c0_9, %c0_10, %c0_11] : memref<10x10x128xf32, #tpu.memory_space<vmem>>, vector<10x10x128xf32>
    tpu.vector_store %arg18[%c0_9, %c0_10, %c0_11], %5 {strides = array<i32>} : memref<10x10x128xf32, #tpu.memory_space<vmem>>, vector<10x10x128xf32>,
    %c0_12 = arith.constant 0 : index
    %c0_13 = arith.constant 0 : index
    %c0_14 = arith.constant 0 : index
    %7 = vector.load %arg17[%c0_12, %c0_13, %c0_14] : memref<18x18x128xf32, #tpu.memory_space<vmem>>, vector<4x16x128xf32>
    %8 = vector.shape_cast %7 : vector<4x16x128xf32> to vector<64x128xf32>
    %9 = arith.truncf %8 : vector<64x128xf32> to vector<64x128xbf16>
    %c0_15 = arith.constant 0 : index
    %c1_16 = arith.constant 1 : index
    %c0_17 = arith.constant 0 : index
    %10 = vector.load %arg17[%c0_15, %c1_16, %c0_17] : memref<18x18x128xf32, #tpu.memory_space<vmem>>, vector<4x16x128xf32>
    %11 = vector.shape_cast %10 : vector<4x16x128xf32> to vector<64x128xf32>
    %12 = arith.truncf %11 : vector<64x128xf32> to vector<64x128xbf16>
    %c0_18 = arith.constant 0 : index
    %c2 = arith.constant 2 : index
    %c0_19 = arith.constant 0 : index
    %13 = vector.load %arg17[%c0_18, %c2, %c0_19] : memref<18x18x128xf32, #tpu.memory_space<vmem>>, vector<4x16x128xf32>
    %14 = vector.shape_cast %13 : vector<4x16x128xf32> to vector<64x128xf32>
    %15 = arith.truncf %14 : vector<64x128xf32> to vector<64x128xbf16>
    %c1_20 = arith.constant 1 : index
    %c0_21 = arith.constant 0 : index
    %c0_22 = arith.constant 0 : index
    %16 = vector.load %arg17[%c1_20, %c0_21, %c0_22] : memref<18x18x128xf32, #tpu.memory_space<vmem>>, vector<4x16x128xf32>
    %17 = vector.shape_cast %16 : vector<4x16x128xf32> to vector<64x128xf32>
    %18 = arith.truncf %17 : vector<64x128xf32> to vector<64x128xbf16>
    %c1_23 = arith.constant 1 : index
    %c1_24 = arith.constant 1 : index
    %c0_25 = arith.constant 0 : index
    %19 = vector.load %arg17[%c1_23, %c1_24, %c0_25] : memref<18x18x128xf32, #tpu.memory_space<vmem>>, vector<4x16x128xf32>
    %20 = vector.shape_cast %19 : vector<4x16x128xf32> to vector<64x128xf32>
    %21 = arith.truncf %20 : vector<64x128xf32> to vector<64x128xbf16>
    %c1_26 = arith.constant 1 : index
    %c2_27 = arith.constant 2 : index
    %c0_28 = arith.constant 0 : index
    %22 = vector.load %arg17[%c1_26, %c2_27, %c0_28] : memref<18x18x128xf32, #tpu.memory_space<vmem>>, vector<4x16x128xf32>
    %23 = vector.shape_cast %22 : vector<4x16x128xf32> to vector<64x128xf32>
    %24 = arith.truncf %23 : vector<64x128xf32> to vector<64x128xbf16>
    %c2_29 = arith.constant 2 : index
    %c0_30 = arith.constant 0 : index
    %c0_31 = arith.constant 0 : index
    %25 = vector.load %arg17[%c2_29, %c0_30, %c0_31] : memref<18x18x128xf32, #tpu.memory_space<vmem>>, vector<4x16x128xf32>
    %26 = vector.shape_cast %25 : vector<4x16x128xf32> to vector<64x128xf32>
    %27 = arith.truncf %26 : vector<64x128xf32> to vector<64x128xbf16>
    %c2_32 = arith.constant 2 : index
    %c1_33 = arith.constant 1 : index
    %c0_34 = arith.constant 0 : index
    %28 = vector.load %arg17[%c2_32, %c1_33, %c0_34] : memref<18x18x128xf32, #tpu.memory_space<vmem>>, vector<4x16x128xf32>
    %29 = vector.shape_cast %28 : vector<4x16x128xf32> to vector<64x128xf32>
    %30 = arith.truncf %29 : vector<64x128xf32> to vector<64x128xbf16>
    %c2_35 = arith.constant 2 : index
    %c2_36 = arith.constant 2 : index
    %c0_37 = arith.constant 0 : index
    %31 = vector.load %arg17[%c2_35, %c2_36, %c0_37] : memref<18x18x128xf32, #tpu.memory_space<vmem>>, vector<4x16x128xf32>
    %32 = vector.shape_cast %31 : vector<4x16x128xf32> to vector<64x128xf32>
    %33 = arith.truncf %32 : vector<64x128xf32> to vector<64x128xbf16>
    %34 = tpu.concatenate %9, %12, %15, %18, %21, %24, %27, %30, %33 in 1 : vector<64x128xbf16>, vector<64x128xbf16>, vector<64x128xbf16>, vector<64x128xbf16>, vector<64x128xbf16>, vector<64x128xbf16>, vector<64x128xbf16>, vector<64x128xbf16>, vector<64x128xbf16> -> vector<64x1152xbf16>
    %c0_38 = arith.constant 0 : index
    %c0_39 = arith.constant 0 : index
    %35 = vector.load %arg2[%c0_38, %c0_39] : memref<1152x128xbf16, #tpu.memory_space<vmem>>, vector<1152x128xbf16>
    %cst_40 = arith.constant dense<0.000000e+00> : vector<64x128xf32>
    %36 = tpu.matmul %34, %35, %cst_40 {dimension_numbers = #tpu.dot_dimension_numbers<[1], [0], [0], [1], [0, 0, 1, 1], [], []>} : vector<64x1152xbf16>, vector<1152x128xbf16>, vector<64x128xf32> -> vector<64x128xf32>
    %c0_41 = arith.constant 0 : index
    %c0_42 = arith.constant 0 : index
    %37 = vector.load %arg3[%c0_41, %c0_42] : memref<1x128xf32, #tpu.memory_space<vmem>>, vector<1x128xf32>
    %38 = vector.broadcast %37 : vector<1x128xf32> to vector<64x128xf32>
    %39 = arith.addf %36, %38 : vector<64x128xf32>
    %cst_43 = arith.constant 0.000000e+00 : f32
    %40 = vector.broadcast %cst_43 : f32 to vector<64x128xf32>
    %41 = arith.maximumf %39, %40 : vector<64x128xf32>
    %42 = vector.shape_cast %41 : vector<64x128xf32> to vector<32x2x128xf32>
    %43 = vector.extract_strided_slice %42 {offsets = [0, 0, 0], sizes = [32, 1, 128], strides = [1, 1, 1]} : vector<32x2x128xf32> to vector<32x1x128xf32>
    %44 = vector.shape_cast %43 : vector<32x1x128xf32> to vector<32x128xf32>
    %45 = vector.extract_strided_slice %42 {offsets = [0, 1, 0], sizes = [32, 1, 128], strides = [1, 1, 1]} : vector<32x2x128xf32> to vector<32x1x128xf32>
    %46 = vector.shape_cast %45 : vector<32x1x128xf32> to vector<32x128xf32>
    %47 = arith.maximumf %44, %46 : vector<32x128xf32>
    %48 = vector.shape_cast %47 : vector<32x128xf32> to vector<2x16x128xf32>
    %49 = vector.extract_strided_slice %48 {offsets = [0, 0, 0], sizes = [2, 8, 128], strides = [1, 1, 1]} : vector<2x16x128xf32> to vector<2x8x128xf32>
    %50 = vector.extract_strided_slice %48 {offsets = [0, 8, 0], sizes = [2, 8, 128], strides = [1, 1, 1]} : vector<2x16x128xf32> to vector<2x8x128xf32>
    %51 = arith.maximumf %49, %50 : vector<2x8x128xf32>
    %c1_44 = arith.constant 1 : index
    %c1_45 = arith.constant 1 : index
    %c0_46 = arith.constant 0 : index
    %52 = vector.load %arg18[%c1_44, %c1_45, %c0_46] : memref<10x10x128xf32, #tpu.memory_space<vmem>>, vector<2x8x128xf32>
    tpu.vector_store %arg18[%c1_44, %c1_45, %c0_46], %51 {strides = array<i32>} : memref<10x10x128xf32, #tpu.memory_space<vmem>>, vector<2x8x128xf32>,
    %c4 = arith.constant 4 : index
    %c0_47 = arith.constant 0 : index
    %c0_48 = arith.constant 0 : index
    %53 = vector.load %arg17[%c4, %c0_47, %c0_48] : memref<18x18x128xf32, #tpu.memory_space<vmem>>, vector<4x16x128xf32>
    %54 = vector.shape_cast %53 : vector<4x16x128xf32> to vector<64x128xf32>
    %55 = arith.truncf %54 : vector<64x128xf32> to vector<64x128xbf16>
    %c4_49 = arith.constant 4 : index
    %c1_50 = arith.constant 1 : index
    %c0_51 = arith.constant 0 : index
    %56 = vector.load %arg17[%c4_49, %c1_50, %c0_51] : memref<18x18x128xf32, #tpu.memory_space<vmem>>, vector<4x16x128xf32>
    %57 = vector.shape_cast %56 : vector<4x16x128xf32> to vector<64x128xf32>
    %58 = arith.truncf %57 : vector<64x128xf32> to vector<64x128xbf16>
    %c4_52 = arith.constant 4 : index
    %c2_53 = arith.constant 2 : index
    %c0_54 = arith.constant 0 : index
    %59 = vector.load %arg17[%c4_52, %c2_53, %c0_54] : memref<18x18x128xf32, #tpu.memory_space<vmem>>, vector<4x16x128xf32>
    %60 = vector.shape_cast %59 : vector<4x16x128xf32> to vector<64x128xf32>
    %61 = arith.truncf %60 : vector<64x128xf32> to vector<64x128xbf16>
    %c5 = arith.constant 5 : index
    %c0_55 = arith.constant 0 : index
    %c0_56 = arith.constant 0 : index
    %62 = vector.load %arg17[%c5, %c0_55, %c0_56] : memref<18x18x128xf32, #tpu.memory_space<vmem>>, vector<4x16x128xf32>
    %63 = vector.shape_cast %62 : vector<4x16x128xf32> to vector<64x128xf32>
    %64 = arith.truncf %63 : vector<64x128xf32> to vector<64x128xbf16>
    %c5_57 = arith.constant 5 : index
    %c1_58 = arith.constant 1 : index
    %c0_59 = arith.constant 0 : index
    %65 = vector.load %arg17[%c5_57, %c1_58, %c0_59] : memref<18x18x128xf32, #tpu.memory_space<vmem>>, vector<4x16x128xf32>
    %66 = vector.shape_cast %65 : vector<4x16x128xf32> to vector<64x128xf32>
    %67 = arith.truncf %66 : vector<64x128xf32> to vector<64x128xbf16>
    %c5_60 = arith.constant 5 : index
    %c2_61 = arith.constant 2 : index
    %c0_62 = arith.constant 0 : index
    %68 = vector.load %arg17[%c5_60, %c2_61, %c0_62] : memref<18x18x128xf32, #tpu.memory_space<vmem>>, vector<4x16x128xf32>
    %69 = vector.shape_cast %68 : vector<4x16x128xf32> to vector<64x128xf32>
    %70 = arith.truncf %69 : vector<64x128xf32> to vector<64x128xbf16>
    %c6 = arith.constant 6 : index
    %c0_63 = arith.constant 0 : index
    %c0_64 = arith.constant 0 : index
    %71 = vector.load %arg17[%c6, %c0_63, %c0_64] : memref<18x18x128xf32, #tpu.memory_space<vmem>>, vector<4x16x128xf32>
    %72 = vector.shape_cast %71 : vector<4x16x128xf32> to vector<64x128xf32>
    %73 = arith.truncf %72 : vector<64x128xf32> to vector<64x128xbf16>
    %c6_65 = arith.constant 6 : index
    %c1_66 = arith.constant 1 : index
    %c0_67 = arith.constant 0 : index
    %74 = vector.load %arg17[%c6_65, %c1_66, %c0_67] : memref<18x18x128xf32, #tpu.memory_space<vmem>>, vector<4x16x128xf32>
    %75 = vector.shape_cast %74 : vector<4x16x128xf32> to vector<64x128xf32>
    %76 = arith.truncf %75 : vector<64x128xf32> to vector<64x128xbf16>
    %c6_68 = arith.constant 6 : index
    %c2_69 = arith.constant 2 : index
    %c0_70 = arith.constant 0 : index
    %77 = vector.load %arg17[%c6_68, %c2_69, %c0_70] : memref<18x18x128xf32, #tpu.memory_space<vmem>>, vector<4x16x128xf32>
    %78 = vector.shape_cast %77 : vector<4x16x128xf32> to vector<64x128xf32>
    %79 = arith.truncf %78 : vector<64x128xf32> to vector<64x128xbf16>
    %80 = tpu.concatenate %55, %58, %61, %64, %67, %70, %73, %76, %79 in 1 : vector<64x128xbf16>, vector<64x128xbf16>, vector<64x128xbf16>, vector<64x128xbf16>, vector<64x128xbf16>, vector<64x128xbf16>, vector<64x128xbf16>, vector<64x128xbf16>, vector<64x128xbf16> -> vector<64x1152xbf16>
    %c0_71 = arith.constant 0 : index
    %c0_72 = arith.constant 0 : index
    %81 = vector.load %arg2[%c0_71, %c0_72] : memref<1152x128xbf16, #tpu.memory_space<vmem>>, vector<1152x128xbf16>
    %cst_73 = arith.constant dense<0.000000e+00> : vector<64x128xf32>
    %82 = tpu.matmul %80, %81, %cst_73 {dimension_numbers = #tpu.dot_dimension_numbers<[1], [0], [0], [1], [0, 0, 1, 1], [], []>} : vector<64x1152xbf16>, vector<1152x128xbf16>, vector<64x128xf32> -> vector<64x128xf32>
    %c0_74 = arith.constant 0 : index
    %c0_75 = arith.constant 0 : index
    %83 = vector.load %arg3[%c0_74, %c0_75] : memref<1x128xf32, #tpu.memory_space<vmem>>, vector<1x128xf32>
    %84 = vector.broadcast %83 : vector<1x128xf32> to vector<64x128xf32>
    %85 = arith.addf %82, %84 : vector<64x128xf32>
    %cst_76 = arith.constant 0.000000e+00 : f32
    %86 = vector.broadcast %cst_76 : f32 to vector<64x128xf32>
    %87 = arith.maximumf %85, %86 : vector<64x128xf32>
    %88 = vector.shape_cast %87 : vector<64x128xf32> to vector<32x2x128xf32>
    %89 = vector.extract_strided_slice %88 {offsets = [0, 0, 0], sizes = [32, 1, 128], strides = [1, 1, 1]} : vector<32x2x128xf32> to vector<32x1x128xf32>
    %90 = vector.shape_cast %89 : vector<32x1x128xf32> to vector<32x128xf32>
    %91 = vector.extract_strided_slice %88 {offsets = [0, 1, 0], sizes = [32, 1, 128], strides = [1, 1, 1]} : vector<32x2x128xf32> to vector<32x1x128xf32>
    %92 = vector.shape_cast %91 : vector<32x1x128xf32> to vector<32x128xf32>
    %93 = arith.maximumf %90, %92 : vector<32x128xf32>
    %94 = vector.shape_cast %93 : vector<32x128xf32> to vector<2x16x128xf32>
    %95 = vector.extract_strided_slice %94 {offsets = [0, 0, 0], sizes = [2, 8, 128], strides = [1, 1, 1]} : vector<2x16x128xf32> to vector<2x8x128xf32>
    %96 = vector.extract_strided_slice %94 {offsets = [0, 8, 0], sizes = [2, 8, 128], strides = [1, 1, 1]} : vector<2x16x128xf32> to vector<2x8x128xf32>
    %97 = arith.maximumf %95, %96 : vector<2x8x128xf32>
    %c3 = arith.constant 3 : index
    %c1_77 = arith.constant 1 : index
    %c0_78 = arith.constant 0 : index
    %98 = vector.load %arg18[%c3, %c1_77, %c0_78] : memref<10x10x128xf32, #tpu.memory_space<vmem>>, vector<2x8x128xf32>
    tpu.vector_store %arg18[%c3, %c1_77, %c0_78], %97 {strides = array<i32>} : memref<10x10x128xf32, #tpu.memory_space<vmem>>, vector<2x8x128xf32>,
    %c8 = arith.constant 8 : index
    %c0_79 = arith.constant 0 : index
    %c0_80 = arith.constant 0 : index
    %99 = vector.load %arg17[%c8, %c0_79, %c0_80] : memref<18x18x128xf32, #tpu.memory_space<vmem>>, vector<4x16x128xf32>
    %100 = vector.shape_cast %99 : vector<4x16x128xf32> to vector<64x128xf32>
    %101 = arith.truncf %100 : vector<64x128xf32> to vector<64x128xbf16>
    %c8_81 = arith.constant 8 : index
    %c1_82 = arith.constant 1 : index
    %c0_83 = arith.constant 0 : index
    %102 = vector.load %arg17[%c8_81, %c1_82, %c0_83] : memref<18x18x128xf32, #tpu.memory_space<vmem>>, vector<4x16x128xf32>
    %103 = vector.shape_cast %102 : vector<4x16x128xf32> to vector<64x128xf32>
    %104 = arith.truncf %103 : vector<64x128xf32> to vector<64x128xbf16>
    %c8_84 = arith.constant 8 : index
    %c2_85 = arith.constant 2 : index
    %c0_86 = arith.constant 0 : index
    %105 = vector.load %arg17[%c8_84, %c2_85, %c0_86] : memref<18x18x128xf32, #tpu.memory_space<vmem>>, vector<4x16x128xf32>
    %106 = vector.shape_cast %105 : vector<4x16x128xf32> to vector<64x128xf32>
    %107 = arith.truncf %106 : vector<64x128xf32> to vector<64x128xbf16>
    %c9 = arith.constant 9 : index
    %c0_87 = arith.constant 0 : index
    %c0_88 = arith.constant 0 : index
    %108 = vector.load %arg17[%c9, %c0_87, %c0_88] : memref<18x18x128xf32, #tpu.memory_space<vmem>>, vector<4x16x128xf32>
    %109 = vector.shape_cast %108 : vector<4x16x128xf32> to vector<64x128xf32>
    %110 = arith.truncf %109 : vector<64x128xf32> to vector<64x128xbf16>
    %c9_89 = arith.constant 9 : index
    %c1_90 = arith.constant 1 : index
    %c0_91 = arith.constant 0 : index
    %111 = vector.load %arg17[%c9_89, %c1_90, %c0_91] : memref<18x18x128xf32, #tpu.memory_space<vmem>>, vector<4x16x128xf32>
    %112 = vector.shape_cast %111 : vector<4x16x128xf32> to vector<64x128xf32>
    %113 = arith.truncf %112 : vector<64x128xf32> to vector<64x128xbf16>
    %c9_92 = arith.constant 9 : index
    %c2_93 = arith.constant 2 : index
    %c0_94 = arith.constant 0 : index
    %114 = vector.load %arg17[%c9_92, %c2_93, %c0_94] : memref<18x18x128xf32, #tpu.memory_space<vmem>>, vector<4x16x128xf32>
    %115 = vector.shape_cast %114 : vector<4x16x128xf32> to vector<64x128xf32>
    %116 = arith.truncf %115 : vector<64x128xf32> to vector<64x128xbf16>
    %c10 = arith.constant 10 : index
    %c0_95 = arith.constant 0 : index
    %c0_96 = arith.constant 0 : index
    %117 = vector.load %arg17[%c10, %c0_95, %c0_96] : memref<18x18x128xf32, #tpu.memory_space<vmem>>, vector<4x16x128xf32>
    %118 = vector.shape_cast %117 : vector<4x16x128xf32> to vector<64x128xf32>
    %119 = arith.truncf %118 : vector<64x128xf32> to vector<64x128xbf16>
    %c10_97 = arith.constant 10 : index
    %c1_98 = arith.constant 1 : index
    %c0_99 = arith.constant 0 : index
    %120 = vector.load %arg17[%c10_97, %c1_98, %c0_99] : memref<18x18x128xf32, #tpu.memory_space<vmem>>, vector<4x16x128xf32>
    %121 = vector.shape_cast %120 : vector<4x16x128xf32> to vector<64x128xf32>
    %122 = arith.truncf %121 : vector<64x128xf32> to vector<64x128xbf16>
    %c10_100 = arith.constant 10 : index
    %c2_101 = arith.constant 2 : index
    %c0_102 = arith.constant 0 : index
    %123 = vector.load %arg17[%c10_100, %c2_101, %c0_102] : memref<18x18x128xf32, #tpu.memory_space<vmem>>, vector<4x16x128xf32>
    %124 = vector.shape_cast %123 : vector<4x16x128xf32> to vector<64x128xf32>
    %125 = arith.truncf %124 : vector<64x128xf32> to vector<64x128xbf16>
    %126 = tpu.concatenate %101, %104, %107, %110, %113, %116, %119, %122, %125 in 1 : vector<64x128xbf16>, vector<64x128xbf16>, vector<64x128xbf16>, vector<64x128xbf16>, vector<64x128xbf16>, vector<64x128xbf16>, vector<64x128xbf16>, vector<64x128xbf16>, vector<64x128xbf16> -> vector<64x1152xbf16>
    %c0_103 = arith.constant 0 : index
    %c0_104 = arith.constant 0 : index
    %127 = vector.load %arg2[%c0_103, %c0_104] : memref<1152x128xbf16, #tpu.memory_space<vmem>>, vector<1152x128xbf16>
    %cst_105 = arith.constant dense<0.000000e+00> : vector<64x128xf32>
    %128 = tpu.matmul %126, %127, %cst_105 {dimension_numbers = #tpu.dot_dimension_numbers<[1], [0], [0], [1], [0, 0, 1, 1], [], []>} : vector<64x1152xbf16>, vector<1152x128xbf16>, vector<64x128xf32> -> vector<64x128xf32>
    %c0_106 = arith.constant 0 : index
    %c0_107 = arith.constant 0 : index
    %129 = vector.load %arg3[%c0_106, %c0_107] : memref<1x128xf32, #tpu.memory_space<vmem>>, vector<1x128xf32>
    %130 = vector.broadcast %129 : vector<1x128xf32> to vector<64x128xf32>
    %131 = arith.addf %128, %130 : vector<64x128xf32>
    %cst_108 = arith.constant 0.000000e+00 : f32
    %132 = vector.broadcast %cst_108 : f32 to vector<64x128xf32>
    %133 = arith.maximumf %131, %132 : vector<64x128xf32>
    %134 = vector.shape_cast %133 : vector<64x128xf32> to vector<32x2x128xf32>
    %135 = vector.extract_strided_slice %134 {offsets = [0, 0, 0], sizes = [32, 1, 128], strides = [1, 1, 1]} : vector<32x2x128xf32> to vector<32x1x128xf32>
    %136 = vector.shape_cast %135 : vector<32x1x128xf32> to vector<32x128xf32>
    %137 = vector.extract_strided_slice %134 {offsets = [0, 1, 0], sizes = [32, 1, 128], strides = [1, 1, 1]} : vector<32x2x128xf32> to vector<32x1x128xf32>
    %138 = vector.shape_cast %137 : vector<32x1x128xf32> to vector<32x128xf32>
    %139 = arith.maximumf %136, %138 : vector<32x128xf32>
    %140 = vector.shape_cast %139 : vector<32x128xf32> to vector<2x16x128xf32>
    %141 = vector.extract_strided_slice %140 {offsets = [0, 0, 0], sizes = [2, 8, 128], strides = [1, 1, 1]} : vector<2x16x128xf32> to vector<2x8x128xf32>
    %142 = vector.extract_strided_slice %140 {offsets = [0, 8, 0], sizes = [2, 8, 128], strides = [1, 1, 1]} : vector<2x16x128xf32> to vector<2x8x128xf32>
    %143 = arith.maximumf %141, %142 : vector<2x8x128xf32>
    %c5_109 = arith.constant 5 : index
    %c1_110 = arith.constant 1 : index
    %c0_111 = arith.constant 0 : index
    %144 = vector.load %arg18[%c5_109, %c1_110, %c0_111] : memref<10x10x128xf32, #tpu.memory_space<vmem>>, vector<2x8x128xf32>
    tpu.vector_store %arg18[%c5_109, %c1_110, %c0_111], %143 {strides = array<i32>} : memref<10x10x128xf32, #tpu.memory_space<vmem>>, vector<2x8x128xf32>,
    %c12 = arith.constant 12 : index
    %c0_112 = arith.constant 0 : index
    %c0_113 = arith.constant 0 : index
    %145 = vector.load %arg17[%c12, %c0_112, %c0_113] : memref<18x18x128xf32, #tpu.memory_space<vmem>>, vector<4x16x128xf32>
    %146 = vector.shape_cast %145 : vector<4x16x128xf32> to vector<64x128xf32>
    %147 = arith.truncf %146 : vector<64x128xf32> to vector<64x128xbf16>
    %c12_114 = arith.constant 12 : index
    %c1_115 = arith.constant 1 : index
    %c0_116 = arith.constant 0 : index
    %148 = vector.load %arg17[%c12_114, %c1_115, %c0_116] : memref<18x18x128xf32, #tpu.memory_space<vmem>>, vector<4x16x128xf32>
    %149 = vector.shape_cast %148 : vector<4x16x128xf32> to vector<64x128xf32>
    %150 = arith.truncf %149 : vector<64x128xf32> to vector<64x128xbf16>
    %c12_117 = arith.constant 12 : index
    %c2_118 = arith.constant 2 : index
    %c0_119 = arith.constant 0 : index
    %151 = vector.load %arg17[%c12_117, %c2_118, %c0_119] : memref<18x18x128xf32, #tpu.memory_space<vmem>>, vector<4x16x128xf32>
    %152 = vector.shape_cast %151 : vector<4x16x128xf32> to vector<64x128xf32>
    %153 = arith.truncf %152 : vector<64x128xf32> to vector<64x128xbf16>
    %c13 = arith.constant 13 : index
    %c0_120 = arith.constant 0 : index
    %c0_121 = arith.constant 0 : index
    %154 = vector.load %arg17[%c13, %c0_120, %c0_121] : memref<18x18x128xf32, #tpu.memory_space<vmem>>, vector<4x16x128xf32>
    %155 = vector.shape_cast %154 : vector<4x16x128xf32> to vector<64x128xf32>
    %156 = arith.truncf %155 : vector<64x128xf32> to vector<64x128xbf16>
    %c13_122 = arith.constant 13 : index
    %c1_123 = arith.constant 1 : index
    %c0_124 = arith.constant 0 : index
    %157 = vector.load %arg17[%c13_122, %c1_123, %c0_124] : memref<18x18x128xf32, #tpu.memory_space<vmem>>, vector<4x16x128xf32>
    %158 = vector.shape_cast %157 : vector<4x16x128xf32> to vector<64x128xf32>
    %159 = arith.truncf %158 : vector<64x128xf32> to vector<64x128xbf16>
    %c13_125 = arith.constant 13 : index
    %c2_126 = arith.constant 2 : index
    %c0_127 = arith.constant 0 : index
    %160 = vector.load %arg17[%c13_125, %c2_126, %c0_127] : memref<18x18x128xf32, #tpu.memory_space<vmem>>, vector<4x16x128xf32>
    %161 = vector.shape_cast %160 : vector<4x16x128xf32> to vector<64x128xf32>
    %162 = arith.truncf %161 : vector<64x128xf32> to vector<64x128xbf16>
    %c14 = arith.constant 14 : index
    %c0_128 = arith.constant 0 : index
    %c0_129 = arith.constant 0 : index
    %163 = vector.load %arg17[%c14, %c0_128, %c0_129] : memref<18x18x128xf32, #tpu.memory_space<vmem>>, vector<4x16x128xf32>
    %164 = vector.shape_cast %163 : vector<4x16x128xf32> to vector<64x128xf32>
    %165 = arith.truncf %164 : vector<64x128xf32> to vector<64x128xbf16>
    %c14_130 = arith.constant 14 : index
    %c1_131 = arith.constant 1 : index
    %c0_132 = arith.constant 0 : index
    %166 = vector.load %arg17[%c14_130, %c1_131, %c0_132] : memref<18x18x128xf32, #tpu.memory_space<vmem>>, vector<4x16x128xf32>
    %167 = vector.shape_cast %166 : vector<4x16x128xf32> to vector<64x128xf32>
    %168 = arith.truncf %167 : vector<64x128xf32> to vector<64x128xbf16>
    %c14_133 = arith.constant 14 : index
    %c2_134 = arith.constant 2 : index
    %c0_135 = arith.constant 0 : index
    %169 = vector.load %arg17[%c14_133, %c2_134, %c0_135] : memref<18x18x128xf32, #tpu.memory_space<vmem>>, vector<4x16x128xf32>
    %170 = vector.shape_cast %169 : vector<4x16x128xf32> to vector<64x128xf32>
    %171 = arith.truncf %170 : vector<64x128xf32> to vector<64x128xbf16>
    %172 = tpu.concatenate %147, %150, %153, %156, %159, %162, %165, %168, %171 in 1 : vector<64x128xbf16>, vector<64x128xbf16>, vector<64x128xbf16>, vector<64x128xbf16>, vector<64x128xbf16>, vector<64x128xbf16>, vector<64x128xbf16>, vector<64x128xbf16>, vector<64x128xbf16> -> vector<64x1152xbf16>
    %c0_136 = arith.constant 0 : index
    %c0_137 = arith.constant 0 : index
    %173 = vector.load %arg2[%c0_136, %c0_137] : memref<1152x128xbf16, #tpu.memory_space<vmem>>, vector<1152x128xbf16>
    %cst_138 = arith.constant dense<0.000000e+00> : vector<64x128xf32>
    %174 = tpu.matmul %172, %173, %cst_138 {dimension_numbers = #tpu.dot_dimension_numbers<[1], [0], [0], [1], [0, 0, 1, 1], [], []>} : vector<64x1152xbf16>, vector<1152x128xbf16>, vector<64x128xf32> -> vector<64x128xf32>
    %c0_139 = arith.constant 0 : index
    %c0_140 = arith.constant 0 : index
    %175 = vector.load %arg3[%c0_139, %c0_140] : memref<1x128xf32, #tpu.memory_space<vmem>>, vector<1x128xf32>
    %176 = vector.broadcast %175 : vector<1x128xf32> to vector<64x128xf32>
    %177 = arith.addf %174, %176 : vector<64x128xf32>
    %cst_141 = arith.constant 0.000000e+00 : f32
    %178 = vector.broadcast %cst_141 : f32 to vector<64x128xf32>
    %179 = arith.maximumf %177, %178 : vector<64x128xf32>
    %180 = vector.shape_cast %179 : vector<64x128xf32> to vector<32x2x128xf32>
    %181 = vector.extract_strided_slice %180 {offsets = [0, 0, 0], sizes = [32, 1, 128], strides = [1, 1, 1]} : vector<32x2x128xf32> to vector<32x1x128xf32>
    %182 = vector.shape_cast %181 : vector<32x1x128xf32> to vector<32x128xf32>
    %183 = vector.extract_strided_slice %180 {offsets = [0, 1, 0], sizes = [32, 1, 128], strides = [1, 1, 1]} : vector<32x2x128xf32> to vector<32x1x128xf32>
    %184 = vector.shape_cast %183 : vector<32x1x128xf32> to vector<32x128xf32>
    %185 = arith.maximumf %182, %184 : vector<32x128xf32>
    %186 = vector.shape_cast %185 : vector<32x128xf32> to vector<2x16x128xf32>
    %187 = vector.extract_strided_slice %186 {offsets = [0, 0, 0], sizes = [2, 8, 128], strides = [1, 1, 1]} : vector<2x16x128xf32> to vector<2x8x128xf32>
    %188 = vector.extract_strided_slice %186 {offsets = [0, 8, 0], sizes = [2, 8, 128], strides = [1, 1, 1]} : vector<2x16x128xf32> to vector<2x8x128xf32>
    %189 = arith.maximumf %187, %188 : vector<2x8x128xf32>
    %c7 = arith.constant 7 : index
    %c1_142 = arith.constant 1 : index
    %c0_143 = arith.constant 0 : index
    %190 = vector.load %arg18[%c7, %c1_142, %c0_143] : memref<10x10x128xf32, #tpu.memory_space<vmem>>, vector<2x8x128xf32>
    tpu.vector_store %arg18[%c7, %c1_142, %c0_143], %189 {strides = array<i32>} : memref<10x10x128xf32, #tpu.memory_space<vmem>>, vector<2x8x128xf32>,
    %cst_144 = arith.constant 0.000000e+00 : f32
    %191 = vector.broadcast %cst_144 : f32 to vector<18x18x128xf32>
    %c0_145 = arith.constant 0 : index
    %c0_146 = arith.constant 0 : index
    %c0_147 = arith.constant 0 : index
    %192 = vector.load %arg17[%c0_145, %c0_146, %c0_147] : memref<18x18x128xf32, #tpu.memory_space<vmem>>, vector<18x18x128xf32>
    tpu.vector_store %arg17[%c0_145, %c0_146, %c0_147], %191 {strides = array<i32>} : memref<18x18x128xf32, #tpu.memory_space<vmem>>, vector<18x18x128xf32>,
    %c0_148 = arith.constant 0 : index
    %c0_149 = arith.constant 0 : index
    %c0_150 = arith.constant 0 : index
    %193 = vector.load %arg18[%c0_148, %c0_149, %c0_150] : memref<10x10x128xf32, #tpu.memory_space<vmem>>, vector<8x8x128xf32>
    %194 = vector.shape_cast %193 : vector<8x8x128xf32> to vector<64x128xf32>
    %195 = arith.truncf %194 : vector<64x128xf32> to vector<64x128xbf16>
    %c0_151 = arith.constant 0 : index
    %c1_152 = arith.constant 1 : index
    %c0_153 = arith.constant 0 : index
    %196 = vector.load %arg18[%c0_151, %c1_152, %c0_153] : memref<10x10x128xf32, #tpu.memory_space<vmem>>, vector<8x8x128xf32>
    %197 = vector.shape_cast %196 : vector<8x8x128xf32> to vector<64x128xf32>
    %198 = arith.truncf %197 : vector<64x128xf32> to vector<64x128xbf16>
    %c0_154 = arith.constant 0 : index
    %c2_155 = arith.constant 2 : index
    %c0_156 = arith.constant 0 : index
    %199 = vector.load %arg18[%c0_154, %c2_155, %c0_156] : memref<10x10x128xf32, #tpu.memory_space<vmem>>, vector<8x8x128xf32>
    %200 = vector.shape_cast %199 : vector<8x8x128xf32> to vector<64x128xf32>
    %201 = arith.truncf %200 : vector<64x128xf32> to vector<64x128xbf16>
    %c1_157 = arith.constant 1 : index
    %c0_158 = arith.constant 0 : index
    %c0_159 = arith.constant 0 : index
    %202 = vector.load %arg18[%c1_157, %c0_158, %c0_159] : memref<10x10x128xf32, #tpu.memory_space<vmem>>, vector<8x8x128xf32>
    %203 = vector.shape_cast %202 : vector<8x8x128xf32> to vector<64x128xf32>
    %204 = arith.truncf %203 : vector<64x128xf32> to vector<64x128xbf16>
    %c1_160 = arith.constant 1 : index
    %c1_161 = arith.constant 1 : index
    %c0_162 = arith.constant 0 : index
    %205 = vector.load %arg18[%c1_160, %c1_161, %c0_162] : memref<10x10x128xf32, #tpu.memory_space<vmem>>, vector<8x8x128xf32>
    %206 = vector.shape_cast %205 : vector<8x8x128xf32> to vector<64x128xf32>
    %207 = arith.truncf %206 : vector<64x128xf32> to vector<64x128xbf16>
    %c1_163 = arith.constant 1 : index
    %c2_164 = arith.constant 2 : index
    %c0_165 = arith.constant 0 : index
    %208 = vector.load %arg18[%c1_163, %c2_164, %c0_165] : memref<10x10x128xf32, #tpu.memory_space<vmem>>, vector<8x8x128xf32>
    %209 = vector.shape_cast %208 : vector<8x8x128xf32> to vector<64x128xf32>
    %210 = arith.truncf %209 : vector<64x128xf32> to vector<64x128xbf16>
    %c2_166 = arith.constant 2 : index
    %c0_167 = arith.constant 0 : index
    %c0_168 = arith.constant 0 : index
    %211 = vector.load %arg18[%c2_166, %c0_167, %c0_168] : memref<10x10x128xf32, #tpu.memory_space<vmem>>, vector<8x8x128xf32>
    %212 = vector.shape_cast %211 : vector<8x8x128xf32> to vector<64x128xf32>
    %213 = arith.truncf %212 : vector<64x128xf32> to vector<64x128xbf16>
    %c2_169 = arith.constant 2 : index
    %c1_170 = arith.constant 1 : index
    %c0_171 = arith.constant 0 : index
    %214 = vector.load %arg18[%c2_169, %c1_170, %c0_171] : memref<10x10x128xf32, #tpu.memory_space<vmem>>, vector<8x8x128xf32>
    %215 = vector.shape_cast %214 : vector<8x8x128xf32> to vector<64x128xf32>
    %216 = arith.truncf %215 : vector<64x128xf32> to vector<64x128xbf16>
    %c2_172 = arith.constant 2 : index
    %c2_173 = arith.constant 2 : index
    %c0_174 = arith.constant 0 : index
    %217 = vector.load %arg18[%c2_172, %c2_173, %c0_174] : memref<10x10x128xf32, #tpu.memory_space<vmem>>, vector<8x8x128xf32>
    %218 = vector.shape_cast %217 : vector<8x8x128xf32> to vector<64x128xf32>
    %219 = arith.truncf %218 : vector<64x128xf32> to vector<64x128xbf16>
    %220 = tpu.concatenate %195, %198, %201, %204, %207, %210, %213, %216, %219 in 1 : vector<64x128xbf16>, vector<64x128xbf16>, vector<64x128xbf16>, vector<64x128xbf16>, vector<64x128xbf16>, vector<64x128xbf16>, vector<64x128xbf16>, vector<64x128xbf16>, vector<64x128xbf16> -> vector<64x1152xbf16>
    %c0_175 = arith.constant 0 : index
    %c0_176 = arith.constant 0 : index
    %221 = vector.load %arg4[%c0_175, %c0_176] : memref<1152x128xbf16, #tpu.memory_space<vmem>>, vector<1152x128xbf16>
    %cst_177 = arith.constant dense<0.000000e+00> : vector<64x128xf32>
    %222 = tpu.matmul %220, %221, %cst_177 {dimension_numbers = #tpu.dot_dimension_numbers<[1], [0], [0], [1], [0, 0, 1, 1], [], []>} : vector<64x1152xbf16>, vector<1152x128xbf16>, vector<64x128xf32> -> vector<64x128xf32>
    %c0_178 = arith.constant 0 : index
    %c0_179 = arith.constant 0 : index
    %223 = vector.load %arg5[%c0_178, %c0_179] : memref<1x128xf32, #tpu.memory_space<vmem>>, vector<1x128xf32>
    %224 = vector.broadcast %223 : vector<1x128xf32> to vector<64x128xf32>
    %225 = arith.addf %222, %224 : vector<64x128xf32>
    %cst_180 = arith.constant 0.000000e+00 : f32
    %226 = vector.broadcast %cst_180 : f32 to vector<64x128xf32>
    %227 = arith.maximumf %225, %226 : vector<64x128xf32>
    %228 = vector.shape_cast %227 : vector<64x128xf32> to vector<32x2x128xf32>
    %229 = vector.extract_strided_slice %228 {offsets = [0, 0, 0], sizes = [32, 1, 128], strides = [1, 1, 1]} : vector<32x2x128xf32> to vector<32x1x128xf32>
    %230 = vector.shape_cast %229 : vector<32x1x128xf32> to vector<32x128xf32>
    %231 = vector.extract_strided_slice %228 {offsets = [0, 1, 0], sizes = [32, 1, 128], strides = [1, 1, 1]} : vector<32x2x128xf32> to vector<32x1x128xf32>
    %232 = vector.shape_cast %231 : vector<32x1x128xf32> to vector<32x128xf32>
    %233 = arith.maximumf %230, %232 : vector<32x128xf32>
    %234 = vector.shape_cast %233 : vector<32x128xf32> to vector<4x8x128xf32>
    %235 = vector.extract_strided_slice %234 {offsets = [0, 0, 0], sizes = [4, 4, 128], strides = [1, 1, 1]} : vector<4x8x128xf32> to vector<4x4x128xf32>
    %236 = vector.extract_strided_slice %234 {offsets = [0, 4, 0], sizes = [4, 4, 128], strides = [1, 1, 1]} : vector<4x8x128xf32> to vector<4x4x128xf32>
    %237 = arith.maximumf %235, %236 : vector<4x4x128xf32>
    %c1_181 = arith.constant 1 : index
    %c1_182 = arith.constant 1 : index
    %c0_183 = arith.constant 0 : index
    %238 = vector.load %arg17[%c1_181, %c1_182, %c0_183] : memref<18x18x128xf32, #tpu.memory_space<vmem>>, vector<4x4x128xf32>
    tpu.vector_store %arg17[%c1_181, %c1_182, %c0_183], %237 {strides = array<i32>} : memref<18x18x128xf32, #tpu.memory_space<vmem>>, vector<4x4x128xf32>,
    %c0_184 = arith.constant 0 : index
    %c0_185 = arith.constant 0 : index
    %c0_186 = arith.constant 0 : index
    %239 = vector.load %arg17[%c0_184, %c0_185, %c0_186] : memref<18x18x128xf32, #tpu.memory_space<vmem>>, vector<4x4x128xf32>
    %240 = vector.shape_cast %239 : vector<4x4x128xf32> to vector<16x128xf32>
    %241 = arith.truncf %240 : vector<16x128xf32> to vector<16x128xbf16>
    %c0_187 = arith.constant 0 : index
    %c1_188 = arith.constant 1 : index
    %c0_189 = arith.constant 0 : index
    %242 = vector.load %arg17[%c0_187, %c1_188, %c0_189] : memref<18x18x128xf32, #tpu.memory_space<vmem>>, vector<4x4x128xf32>
    %243 = vector.shape_cast %242 : vector<4x4x128xf32> to vector<16x128xf32>
    %244 = arith.truncf %243 : vector<16x128xf32> to vector<16x128xbf16>
    %c0_190 = arith.constant 0 : index
    %c2_191 = arith.constant 2 : index
    %c0_192 = arith.constant 0 : index
    %245 = vector.load %arg17[%c0_190, %c2_191, %c0_192] : memref<18x18x128xf32, #tpu.memory_space<vmem>>, vector<4x4x128xf32>
    %246 = vector.shape_cast %245 : vector<4x4x128xf32> to vector<16x128xf32>
    %247 = arith.truncf %246 : vector<16x128xf32> to vector<16x128xbf16>
    %c1_193 = arith.constant 1 : index
    %c0_194 = arith.constant 0 : index
    %c0_195 = arith.constant 0 : index
    %248 = vector.load %arg17[%c1_193, %c0_194, %c0_195] : memref<18x18x128xf32, #tpu.memory_space<vmem>>, vector<4x4x128xf32>
    %249 = vector.shape_cast %248 : vector<4x4x128xf32> to vector<16x128xf32>
    %250 = arith.truncf %249 : vector<16x128xf32> to vector<16x128xbf16>
    %c1_196 = arith.constant 1 : index
    %c1_197 = arith.constant 1 : index
    %c0_198 = arith.constant 0 : index
    %251 = vector.load %arg17[%c1_196, %c1_197, %c0_198] : memref<18x18x128xf32, #tpu.memory_space<vmem>>, vector<4x4x128xf32>
    %252 = vector.shape_cast %251 : vector<4x4x128xf32> to vector<16x128xf32>
    %253 = arith.truncf %252 : vector<16x128xf32> to vector<16x128xbf16>
    %c1_199 = arith.constant 1 : index
    %c2_200 = arith.constant 2 : index
    %c0_201 = arith.constant 0 : index
    %254 = vector.load %arg17[%c1_199, %c2_200, %c0_201] : memref<18x18x128xf32, #tpu.memory_space<vmem>>, vector<4x4x128xf32>
    %255 = vector.shape_cast %254 : vector<4x4x128xf32> to vector<16x128xf32>
    %256 = arith.truncf %255 : vector<16x128xf32> to vector<16x128xbf16>
    %c2_202 = arith.constant 2 : index
    %c0_203 = arith.constant 0 : index
    %c0_204 = arith.constant 0 : index
    %257 = vector.load %arg17[%c2_202, %c0_203, %c0_204] : memref<18x18x128xf32, #tpu.memory_space<vmem>>, vector<4x4x128xf32>
    %258 = vector.shape_cast %257 : vector<4x4x128xf32> to vector<16x128xf32>
    %259 = arith.truncf %258 : vector<16x128xf32> to vector<16x128xbf16>
    %c2_205 = arith.constant 2 : index
    %c1_206 = arith.constant 1 : index
    %c0_207 = arith.constant 0 : index
    %260 = vector.load %arg17[%c2_205, %c1_206, %c0_207] : memref<18x18x128xf32, #tpu.memory_space<vmem>>, vector<4x4x128xf32>
    %261 = vector.shape_cast %260 : vector<4x4x128xf32> to vector<16x128xf32>
    %262 = arith.truncf %261 : vector<16x128xf32> to vector<16x128xbf16>
    %c2_208 = arith.constant 2 : index
    %c2_209 = arith.constant 2 : index
    %c0_210 = arith.constant 0 : index
    %263 = vector.load %arg17[%c2_208, %c2_209, %c0_210] : memref<18x18x128xf32, #tpu.memory_space<vmem>>, vector<4x4x128xf32>
    %264 = vector.shape_cast %263 : vector<4x4x128xf32> to vector<16x128xf32>
    %265 = arith.truncf %264 : vector<16x128xf32> to vector<16x128xbf16>
    %266 = tpu.concatenate %241, %244, %247, %250, %253, %256, %259, %262, %265 in 1 : vector<16x128xbf16>, vector<16x128xbf16>, vector<16x128xbf16>, vector<16x128xbf16>, vector<16x128xbf16>, vector<16x128xbf16>, vector<16x128xbf16>, vector<16x128xbf16>, vector<16x128xbf16> -> vector<16x1152xbf16>
    %c0_211 = arith.constant 0 : index
    %c0_212 = arith.constant 0 : index
    %267 = vector.load %arg6[%c0_211, %c0_212] : memref<1152x128xbf16, #tpu.memory_space<vmem>>, vector<1152x128xbf16>
    %cst_213 = arith.constant dense<0.000000e+00> : vector<16x128xf32>
    %268 = tpu.matmul %266, %267, %cst_213 {dimension_numbers = #tpu.dot_dimension_numbers<[1], [0], [0], [1], [0, 0, 1, 1], [], []>} : vector<16x1152xbf16>, vector<1152x128xbf16>, vector<16x128xf32> -> vector<16x128xf32>
    %c0_214 = arith.constant 0 : index
    %c0_215 = arith.constant 0 : index
    %269 = vector.load %arg7[%c0_214, %c0_215] : memref<1x128xf32, #tpu.memory_space<vmem>>, vector<1x128xf32>
    %270 = vector.broadcast %269 : vector<1x128xf32> to vector<16x128xf32>
    %271 = arith.addf %268, %270 : vector<16x128xf32>
    %272 = vector.extract_strided_slice %271 {offsets = [0, 0], sizes = [1, 128], strides = [1, 1]} : vector<16x128xf32> to vector<1x128xf32>
    %c0_216 = arith.constant 0 : index
    %c0_217 = arith.constant 0 : index
    %273 = vector.load %arg19[%c0_216, %c0_217] : memref<1x2048xf32, #tpu.memory_space<vmem>>, vector<1x128xf32>
    tpu.vector_store %arg19[%c0_216, %c0_217], %272 {strides = array<i32>} : memref<1x2048xf32, #tpu.memory_space<vmem>>, vector<1x128xf32>,
    %274 = vector.extract_strided_slice %271 {offsets = [1, 0], sizes = [1, 128], strides = [1, 1]} : vector<16x128xf32> to vector<1x128xf32>
    %c0_218 = arith.constant 0 : index
    %c128 = arith.constant 128 : index
    %275 = vector.load %arg19[%c0_218, %c128] : memref<1x2048xf32, #tpu.memory_space<vmem>>, vector<1x128xf32>
    tpu.vector_store %arg19[%c0_218, %c128], %274 {strides = array<i32>} : memref<1x2048xf32, #tpu.memory_space<vmem>>, vector<1x128xf32>,
    %276 = vector.extract_strided_slice %271 {offsets = [2, 0], sizes = [1, 128], strides = [1, 1]} : vector<16x128xf32> to vector<1x128xf32>
    %c0_219 = arith.constant 0 : index
    %c256 = arith.constant 256 : index
    %277 = vector.load %arg19[%c0_219, %c256] : memref<1x2048xf32, #tpu.memory_space<vmem>>, vector<1x128xf32>
    tpu.vector_store %arg19[%c0_219, %c256], %276 {strides = array<i32>} : memref<1x2048xf32, #tpu.memory_space<vmem>>, vector<1x128xf32>,
    %278 = vector.extract_strided_slice %271 {offsets = [3, 0], sizes = [1, 128], strides = [1, 1]} : vector<16x128xf32> to vector<1x128xf32>
    %c0_220 = arith.constant 0 : index
    %c384 = arith.constant 384 : index
    %279 = vector.load %arg19[%c0_220, %c384] : memref<1x2048xf32, #tpu.memory_space<vmem>>, vector<1x128xf32>
    tpu.vector_store %arg19[%c0_220, %c384], %278 {strides = array<i32>} : memref<1x2048xf32, #tpu.memory_space<vmem>>, vector<1x128xf32>,
    %280 = vector.extract_strided_slice %271 {offsets = [4, 0], sizes = [1, 128], strides = [1, 1]} : vector<16x128xf32> to vector<1x128xf32>
    %c0_221 = arith.constant 0 : index
    %c512 = arith.constant 512 : index
    %281 = vector.load %arg19[%c0_221, %c512] : memref<1x2048xf32, #tpu.memory_space<vmem>>, vector<1x128xf32>
    tpu.vector_store %arg19[%c0_221, %c512], %280 {strides = array<i32>} : memref<1x2048xf32, #tpu.memory_space<vmem>>, vector<1x128xf32>,
    %282 = vector.extract_strided_slice %271 {offsets = [5, 0], sizes = [1, 128], strides = [1, 1]} : vector<16x128xf32> to vector<1x128xf32>
    %c0_222 = arith.constant 0 : index
    %c640 = arith.constant 640 : index
    %283 = vector.load %arg19[%c0_222, %c640] : memref<1x2048xf32, #tpu.memory_space<vmem>>, vector<1x128xf32>
    tpu.vector_store %arg19[%c0_222, %c640], %282 {strides = array<i32>} : memref<1x2048xf32, #tpu.memory_space<vmem>>, vector<1x128xf32>,
    %284 = vector.extract_strided_slice %271 {offsets = [6, 0], sizes = [1, 128], strides = [1, 1]} : vector<16x128xf32> to vector<1x128xf32>
    %c0_223 = arith.constant 0 : index
    %c768 = arith.constant 768 : index
    %285 = vector.load %arg19[%c0_223, %c768] : memref<1x2048xf32, #tpu.memory_space<vmem>>, vector<1x128xf32>
    tpu.vector_store %arg19[%c0_223, %c768], %284 {strides = array<i32>} : memref<1x2048xf32, #tpu.memory_space<vmem>>, vector<1x128xf32>,
    %286 = vector.extract_strided_slice %271 {offsets = [7, 0], sizes = [1, 128], strides = [1, 1]} : vector<16x128xf32> to vector<1x128xf32>
    %c0_224 = arith.constant 0 : index
    %c896 = arith.constant 896 : index
    %287 = vector.load %arg19[%c0_224, %c896] : memref<1x2048xf32, #tpu.memory_space<vmem>>, vector<1x128xf32>
    tpu.vector_store %arg19[%c0_224, %c896], %286 {strides = array<i32>} : memref<1x2048xf32, #tpu.memory_space<vmem>>, vector<1x128xf32>,
    %288 = vector.extract_strided_slice %271 {offsets = [8, 0], sizes = [1, 128], strides = [1, 1]} : vector<16x128xf32> to vector<1x128xf32>
    %c0_225 = arith.constant 0 : index
    %c1024 = arith.constant 1024 : index
    %289 = vector.load %arg19[%c0_225, %c1024] : memref<1x2048xf32, #tpu.memory_space<vmem>>, vector<1x128xf32>
    tpu.vector_store %arg19[%c0_225, %c1024], %288 {strides = array<i32>} : memref<1x2048xf32, #tpu.memory_space<vmem>>, vector<1x128xf32>,
    %290 = vector.extract_strided_slice %271 {offsets = [9, 0], sizes = [1, 128], strides = [1, 1]} : vector<16x128xf32> to vector<1x128xf32>
    %c0_226 = arith.constant 0 : index
    %c1152 = arith.constant 1152 : index
    %291 = vector.load %arg19[%c0_226, %c1152] : memref<1x2048xf32, #tpu.memory_space<vmem>>, vector<1x128xf32>
    tpu.vector_store %arg19[%c0_226, %c1152], %290 {strides = array<i32>} : memref<1x2048xf32, #tpu.memory_space<vmem>>, vector<1x128xf32>,
    %292 = vector.extract_strided_slice %271 {offsets = [10, 0], sizes = [1, 128], strides = [1, 1]} : vector<16x128xf32> to vector<1x128xf32>
    %c0_227 = arith.constant 0 : index
    %c1280 = arith.constant 1280 : index
    %293 = vector.load %arg19[%c0_227, %c1280] : memref<1x2048xf32, #tpu.memory_space<vmem>>, vector<1x128xf32>
    tpu.vector_store %arg19[%c0_227, %c1280], %292 {strides = array<i32>} : memref<1x2048xf32, #tpu.memory_space<vmem>>, vector<1x128xf32>,
    %294 = vector.extract_strided_slice %271 {offsets = [11, 0], sizes = [1, 128], strides = [1, 1]} : vector<16x128xf32> to vector<1x128xf32>
    %c0_228 = arith.constant 0 : index
    %c1408 = arith.constant 1408 : index
    %295 = vector.load %arg19[%c0_228, %c1408] : memref<1x2048xf32, #tpu.memory_space<vmem>>, vector<1x128xf32>
    tpu.vector_store %arg19[%c0_228, %c1408], %294 {strides = array<i32>} : memref<1x2048xf32, #tpu.memory_space<vmem>>, vector<1x128xf32>,
    %296 = vector.extract_strided_slice %271 {offsets = [12, 0], sizes = [1, 128], strides = [1, 1]} : vector<16x128xf32> to vector<1x128xf32>
    %c0_229 = arith.constant 0 : index
    %c1536 = arith.constant 1536 : index
    %297 = vector.load %arg19[%c0_229, %c1536] : memref<1x2048xf32, #tpu.memory_space<vmem>>, vector<1x128xf32>
    tpu.vector_store %arg19[%c0_229, %c1536], %296 {strides = array<i32>} : memref<1x2048xf32, #tpu.memory_space<vmem>>, vector<1x128xf32>,
    %298 = vector.extract_strided_slice %271 {offsets = [13, 0], sizes = [1, 128], strides = [1, 1]} : vector<16x128xf32> to vector<1x128xf32>
    %c0_230 = arith.constant 0 : index
    %c1664 = arith.constant 1664 : index
    %299 = vector.load %arg19[%c0_230, %c1664] : memref<1x2048xf32, #tpu.memory_space<vmem>>, vector<1x128xf32>
    tpu.vector_store %arg19[%c0_230, %c1664], %298 {strides = array<i32>} : memref<1x2048xf32, #tpu.memory_space<vmem>>, vector<1x128xf32>,
    %300 = vector.extract_strided_slice %271 {offsets = [14, 0], sizes = [1, 128], strides = [1, 1]} : vector<16x128xf32> to vector<1x128xf32>
    %c0_231 = arith.constant 0 : index
    %c1792 = arith.constant 1792 : index
    %301 = vector.load %arg19[%c0_231, %c1792] : memref<1x2048xf32, #tpu.memory_space<vmem>>, vector<1x128xf32>
    tpu.vector_store %arg19[%c0_231, %c1792], %300 {strides = array<i32>} : memref<1x2048xf32, #tpu.memory_space<vmem>>, vector<1x128xf32>,
    %302 = vector.extract_strided_slice %271 {offsets = [15, 0], sizes = [1, 128], strides = [1, 1]} : vector<16x128xf32> to vector<1x128xf32>
    %c0_232 = arith.constant 0 : index
    %c1920 = arith.constant 1920 : index
    %303 = vector.load %arg19[%c0_232, %c1920] : memref<1x2048xf32, #tpu.memory_space<vmem>>, vector<1x128xf32>
    tpu.vector_store %arg19[%c0_232, %c1920], %302 {strides = array<i32>} : memref<1x2048xf32, #tpu.memory_space<vmem>>, vector<1x128xf32>,
    %c0_233 = arith.constant 0 : index
    %c0_234 = arith.constant 0 : index
    %304 = vector.load %arg19[%c0_233, %c0_234] : memref<1x2048xf32, #tpu.memory_space<vmem>>, vector<1x2048xf32>
    %305 = arith.truncf %304 : vector<1x2048xf32> to vector<1x2048xbf16>
    %c0_235 = arith.constant 0 : index
    %c0_236 = arith.constant 0 : index
    %306 = vector.load %arg8[%c0_235, %c0_236] : memref<2048x512xbf16, #tpu.memory_space<vmem>>, vector<2048x512xbf16>
    %cst_237 = arith.constant dense<0.000000e+00> : vector<1x512xf32>
    %307 = tpu.matmul %305, %306, %cst_237 {dimension_numbers = #tpu.dot_dimension_numbers<[1], [0], [0], [1], [0, 0, 1, 1], [], []>} : vector<1x2048xbf16>, vector<2048x512xbf16>, vector<1x512xf32> -> vector<1x512xf32>
    %c0_238 = arith.constant 0 : index
    %c0_239 = arith.constant 0 : index
    %308 = vector.load %arg9[%c0_238, %c0_239] : memref<1x512xf32, #tpu.memory_space<vmem>>, vector<1x512xf32>
    %309 = arith.addf %307, %308 : vector<1x512xf32>
    %cst_240 = arith.constant 0.000000e+00 : f32
    %310 = vector.broadcast %cst_240 : f32 to vector<1x512xf32>
    %311 = arith.maximumf %309, %310 : vector<1x512xf32>
    %312 = arith.truncf %311 : vector<1x512xf32> to vector<1x512xbf16>
    %c0_241 = arith.constant 0 : index
    %c0_242 = arith.constant 0 : index
    %313 = vector.load %arg10[%c0_241, %c0_242] : memref<512x256xbf16, #tpu.memory_space<vmem>>, vector<512x256xbf16>
    %cst_243 = arith.constant dense<0.000000e+00> : vector<1x256xf32>
    %314 = tpu.matmul %312, %313, %cst_243 {dimension_numbers = #tpu.dot_dimension_numbers<[1], [0], [0], [1], [0, 0, 1, 1], [], []>} : vector<1x512xbf16>, vector<512x256xbf16>, vector<1x256xf32> -> vector<1x256xf32>
    %c0_244 = arith.constant 0 : index
    %c0_245 = arith.constant 0 : index
    %315 = vector.load %arg11[%c0_244, %c0_245] : memref<1x256xf32, #tpu.memory_space<vmem>>, vector<1x256xf32>
    %316 = arith.addf %314, %315 : vector<1x256xf32>
    %cst_246 = arith.constant 0.000000e+00 : f32
    %317 = vector.broadcast %cst_246 : f32 to vector<1x256xf32>
    %318 = arith.maximumf %316, %317 : vector<1x256xf32>
    %319 = arith.truncf %318 : vector<1x256xf32> to vector<1x256xbf16>
    %c0_247 = arith.constant 0 : index
    %c0_248 = arith.constant 0 : index
    %320 = vector.load %arg12[%c0_247, %c0_248] : memref<256x128xbf16, #tpu.memory_space<vmem>>, vector<256x128xbf16>
    %cst_249 = arith.constant dense<0.000000e+00> : vector<1x128xf32>
    %321 = tpu.matmul %319, %320, %cst_249 {dimension_numbers = #tpu.dot_dimension_numbers<[1], [0], [0], [1], [0, 0, 1, 1], [], []>} : vector<1x256xbf16>, vector<256x128xbf16>, vector<1x128xf32> -> vector<1x128xf32>
    %c0_250 = arith.constant 0 : index
    %c0_251 = arith.constant 0 : index
    %322 = vector.load %arg13[%c0_250, %c0_251] : memref<1x128xf32, #tpu.memory_space<vmem>>, vector<1x128xf32>
    %323 = arith.addf %321, %322 : vector<1x128xf32>
    %cst_252 = arith.constant 0.000000e+00 : f32
    %324 = vector.broadcast %cst_252 : f32 to vector<1x128xf32>
    %325 = arith.maximumf %323, %324 : vector<1x128xf32>
    %326 = arith.truncf %325 : vector<1x128xf32> to vector<1x128xbf16>
    %c0_253 = arith.constant 0 : index
    %c0_254 = arith.constant 0 : index
    %327 = vector.load %arg14[%c0_253, %c0_254] : memref<128x10xbf16, #tpu.memory_space<vmem>>, vector<128x10xbf16>
    %cst_255 = arith.constant dense<0.000000e+00> : vector<1x10xf32>
    %328 = tpu.matmul %326, %327, %cst_255 {dimension_numbers = #tpu.dot_dimension_numbers<[1], [0], [0], [1], [0, 0, 1, 1], [], []>} : vector<1x128xbf16>, vector<128x10xbf16>, vector<1x10xf32> -> vector<1x10xf32>
    %c0_256 = arith.constant 0 : index
    %c0_257 = arith.constant 0 : index
    %329 = vector.load %arg15[%c0_256, %c0_257] : memref<1x10xf32, #tpu.memory_space<vmem>>, vector<1x10xf32>
    %330 = arith.addf %328, %329 : vector<1x10xf32>
    %cst_258 = arith.constant dense<0xFF800000> : vector<1xf32>
    %331 = vector.multi_reduction <maximumf>, %330, %cst_258 [1] : vector<1x10xf32> to vector<1xf32>
    %332 = vector.shape_cast %331 : vector<1xf32> to vector<1x1xf32>
    %333 = vector.broadcast %332 : vector<1x1xf32> to vector<1x10xf32>
    %334 = arith.subf %330, %333 : vector<1x10xf32>
    %335 = math.exp %334 : vector<1x10xf32>
    %cst_259 = arith.constant dense<0.000000e+00> : vector<1xf32>
    %336 = vector.multi_reduction <add>, %335, %cst_259 [1] : vector<1x10xf32> to vector<1xf32>
    %337 = vector.shape_cast %336 : vector<1xf32> to vector<1x1xf32>
    %338 = tpu.reciprocal %337 {approx = true} : vector<1x1xf32> -> vector<1x1xf32>
    %339 = vector.broadcast %338 : vector<1x1xf32> to vector<1x10xf32>
    %340 = arith.mulf %335, %339 : vector<1x10xf32>
    %c0_260 = arith.constant 0 : index
    %c0_261 = arith.constant 0 : index
    %c0_262 = arith.constant 0 : index
    %341 = vector.load %arg16[%c0_260, %c0_261, %c0_262] : memref<1x1x10xf32, #tpu.memory_space<vmem>>, vector<1x1x10xf32>
    %342 = vector.shape_cast %341 : vector<1x1x10xf32> to vector<1x10xf32>
    %343 = vector.shape_cast %340 : vector<1x10xf32> to vector<1x1x10xf32>
    tpu.vector_store %arg16[%c0_260, %c0_261, %c0_262], %343 {strides = array<i32>} : memref<1x1x10xf32, #tpu.memory_space<vmem>>, vector<1x1x10xf32>,
    return
  }
  func.func @transform_0(%arg0: i32) -> (i32, i32, i32, i32) {
    %c0_i32 = arith.constant 0 : i32
    %c0_i32_0 = arith.constant 0 : i32
    %c0_i32_1 = arith.constant 0 : i32
    %c0_i32_2 = arith.constant 0 : i32
    return %arg0, %c0_i32, %c0_i32_0, %c0_i32_1 : i32, i32, i32, i32
  }
  func.func @transform_1(%arg0: i32) -> (i32, i32) {
    %c0_i32 = arith.constant 0 : i32
    %c0_i32_0 = arith.constant 0 : i32
    %c0_i32_1 = arith.constant 0 : i32
    return %c0_i32, %c0_i32_0 : i32, i32
  }
  func.func @transform_2(%arg0: i32) -> (i32, i32) {
    %c0_i32 = arith.constant 0 : i32
    %c0_i32_0 = arith.constant 0 : i32
    %c0_i32_1 = arith.constant 0 : i32
    return %c0_i32, %c0_i32_0 : i32, i32
  }
  func.func @transform_3(%arg0: i32) -> (i32, i32) {
    %c0_i32 = arith.constant 0 : i32
    %c0_i32_0 = arith.constant 0 : i32
    %c0_i32_1 = arith.constant 0 : i32
    return %c0_i32, %c0_i32_0 : i32, i32
  }
  func.func @transform_4(%arg0: i32) -> (i32, i32) {
    %c0_i32 = arith.constant 0 : i32
    %c0_i32_0 = arith.constant 0 : i32
    %c0_i32_1 = arith.constant 0 : i32
    return %c0_i32, %c0_i32_0 : i32, i32
  }
  func.func @transform_5(%arg0: i32) -> (i32, i32) {
    %c0_i32 = arith.constant 0 : i32
    %c0_i32_0 = arith.constant 0 : i32
    %c0_i32_1 = arith.constant 0 : i32
    return %c0_i32, %c0_i32_0 : i32, i32
  }
  func.func @transform_6(%arg0: i32) -> (i32, i32) {
    %c0_i32 = arith.constant 0 : i32
    %c0_i32_0 = arith.constant 0 : i32
    %c0_i32_1 = arith.constant 0 : i32
    return %c0_i32, %c0_i32_0 : i32, i32
  }
  func.func @transform_7(%arg0: i32) -> (i32, i32) {
    %c0_i32 = arith.constant 0 : i32
    %c0_i32_0 = arith.constant 0 : i32
    %c0_i32_1 = arith.constant 0 : i32
    return %c0_i32, %c0_i32_0 : i32, i32
  }
  func.func @transform_8(%arg0: i32) -> (i32, i32) {
    %c0_i32 = arith.constant 0 : i32
    %c0_i32_0 = arith.constant 0 : i32
    %c0_i32_1 = arith.constant 0 : i32
    return %c0_i32, %c0_i32_0 : i32, i32
  }
  func.func @transform_9(%arg0: i32) -> (i32, i32) {
    %c0_i32 = arith.constant 0 : i32
    %c0_i32_0 = arith.constant 0 : i32
    %c0_i32_1 = arith.constant 0 : i32
    return %c0_i32, %c0_i32_0 : i32, i32
  }
  func.func @transform_10(%arg0: i32) -> (i32, i32) {
    %c0_i32 = arith.constant 0 : i32
    %c0_i32_0 = arith.constant 0 : i32
    %c0_i32_1 = arith.constant 0 : i32
    return %c0_i32, %c0_i32_0 : i32, i32
  }
  func.func @transform_11(%arg0: i32) -> (i32, i32) {
    %c0_i32 = arith.constant 0 : i32
    %c0_i32_0 = arith.constant 0 : i32
    %c0_i32_1 = arith.constant 0 : i32
    return %c0_i32, %c0_i32_0 : i32, i32
  }
  func.func @transform_12(%arg0: i32) -> (i32, i32) {
    %c0_i32 = arith.constant 0 : i32
    %c0_i32_0 = arith.constant 0 : i32
    %c0_i32_1 = arith.constant 0 : i32
    return %c0_i32, %c0_i32_0 : i32, i32
  }
  func.func @transform_13(%arg0: i32) -> (i32, i32) {
    %c0_i32 = arith.constant 0 : i32
    %c0_i32_0 = arith.constant 0 : i32
    %c0_i32_1 = arith.constant 0 : i32
    return %c0_i32, %c0_i32_0 : i32, i32
  }
  func.func @transform_14(%arg0: i32) -> (i32, i32) {
    %c0_i32 = arith.constant 0 : i32
    %c0_i32_0 = arith.constant 0 : i32
    %c0_i32_1 = arith.constant 0 : i32
    return %c0_i32, %c0_i32_0 : i32, i32
  }
  func.func @transform_15(%arg0: i32) -> (i32, i32, i32) {
    %c0_i32 = arith.constant 0 : i32
    %c0_i32_0 = arith.constant 0 : i32
    %c0_i32_1 = arith.constant 0 : i32
    return %arg0, %c0_i32, %c0_i32_0 : i32, i32, i32
  }
}

</mosaic_0001>

<bundles_post_ra>
// kernel: model_forward.1
= control target key start
LH: loop header
LB: loop body
LE: loop exit
PB: predicated region body
PF: predicated region fallthrough
CT: control target
= control target key end

     0   :  { %s20301_s0 = inlined_call_operand.vmem [shape: f32[2,16,16,128], index: 0, kind: input, shape index: {}]   ;;  %s20302_s1 = inlined_call_operand.hbm [shape: bf16[1152,128], index: 1, kind: input, shape index: {}]   ;;  %s20303_s2 = inlined_call_operand.hbm [shape: f32[1,128], index: 2, kind: input, shape index: {}]   ;;  %s20304_s3 = inlined_call_operand.hbm [shape: bf16[1152,128], index: 3, kind: input, shape index: {}]   ;;  %s20305_s4 = inlined_call_operand.hbm [shape: f32[1,128], index: 4, kind: input, shape index: {}]   ;;  %s20306_s5 = inlined_call_operand.hbm [shape: bf16[1152,128], index: 5, kind: input, shape index: {}]   ;;  %s20307_s6 = inlined_call_operand.hbm [shape: f32[1,128], index: 6, kind: input, shape index: {}]   ;;  %s20308_s7 = inlined_call_operand.hbm [shape: bf16[2048,512], index: 7, kind: input, shape index: {}]   ;;  %s20309_s8 = inlined_call_operand.hbm [shape: f32[1,512], index: 8, kind: input, shape index: {}]   ;;  %s20310_s9 = inlined_call_operand.hbm [shape: bf16[512,256], index: 9, kind: input, shape index: {}]   ;;  %s20311_s10 = inlined_call_operand.hbm [shape: f32[1,256], index: 10, kind: input, shape index: {}]   ;;  %s20312_s11 = inlined_call_operand.hbm [shape: bf16[256,128], index: 11, kind: input, shape index: {}]   ;;  %s20313_s12 = inlined_call_operand.hbm [shape: f32[1,128], index: 12, kind: input, shape index: {}]   ;;  %s20314_s13 = inlined_call_operand.vmem [shape: bf16[128,10], index: 13, kind: input, shape index: {}]   ;;  %s20315_s14 = inlined_call_operand.hbm [shape: f32[1,10], index: 14, kind: input, shape index: {}]   ;;  %s20316_s15 = inlined_call_operand.hbm [shape: f32[2,1,10], index: 15, kind: output, shape index: {}]  }
   0x1   :  { %20332 = sst [smem:[#allocation43_spill]] %s20303_s2 }
   0x2   :  { %20333 = sst [smem:[#allocation44_spill]] %s20305_s4 }
   0x3   :  { %20334 = sst [smem:[#allocation45_spill]] %s20307_s6 }
   0x4   :  { %20335 = sst [smem:[#allocation46_spill]] %s20309_s8 }
   0x5   :  { %20336 = sst [smem:[#allocation47_spill]] %s20316_s15 }
   0x6   :  { %20 = vsyncpa [#allocation6], 0 }
   0x7   :  { %21 = vsyncpa [#allocation9], 0 }
   0x8   :  { %22 = vsyncpa [#allocation12], 0 }
   0x9   :  { %23 = vsyncpa [#allocation15], 0 }
   0xa   :  { %24 = vsyncpa [#allocation18], 0 }
   0xb   :  { %25 = vsyncpa [#allocation21], 0 }
   0xc   :  { %26 = vsyncpa [#allocation24], 0 }
   0xd   :  { %27 = vsyncpa [#allocation7], 0 }
   0xe   :  { %29 = vsyncpa [#allocation7 + $0x1], 0  ;;  %s18500_s18 = smov 0   ;;  %s18502_s19 = smov 0  }
   0xf   :  { %s18504_s20 = smov 0   ;;  %s18506_s21 = smov 0  }
  0x10 LB: > { %20337 = sst [smem:[#allocation35_spill]] %s18381_s18  ;;  %s18521_s22 = sadd.s32 4294967295, %s18393_s21   ;;  %s18393_s21 = sphi %s18506_s21, %s20381_s21   ;;  %s18389_s20 = sphi %s18504_s20, %s20384_s20   ;;  %s18385_s19 = sphi %s18502_s19, %s20383_s19   ;;  %s18381_s18 = sphi %s18500_s18, %s20382_s18  }
  0x11   : > { %20338 = sst [smem:[#allocation36_spill]] %s18385_s19  ;;  %s13957_s23 = sadd.s32 4294967294, %s18393_s21  }
  0x12   : > { %20339 = sst [smem:[#allocation37_spill]] %s18389_s20  ;;  %s18525_s24 = sadd.s32 1, %s18393_s21  }
  0x13   : > { %20340 = sst [smem:[#allocation38_spill]] %s18393_s21  ;;  %s362_s25 = sadd.s32 1, %s18389_s20 }
  0x14   : > { %20341 = sst [smem:[#allocation39_spill]] %s18525_s24  ;;  %s359_s26 = ssub.s32 %s18393_s21, %s18525_s24 }
  0x15   : > { %p372_p0 = scmp.ne.s32.totalorder %s18389_s20, %s18385_s19  ;;  %p360_p1 = scmp.eq.s32.totalorder %s359_s26, 0 }
  0x16   : > { %p373_p2 = scmp.eq.s32.totalorder %s18521_s22, 1  ;;  %p378_p3 = scmp.ne.s32.totalorder %s18385_s19, %s18381_s18 }
  0x17   : > { %p379_p4 = scmp.eq.s32.totalorder %s13957_s23, 1  ;;  %p13958_p7 = scmp.ge.s32.totalorder %s18393_s21, 1 }
  0x18   : > { %s18536_s27 = scalar_select %p360_p1, %s18389_s20, %s362_s25  }
  0x19   : > { %p18538_p5 = por %p373_p2, %p372_p0  ;;  %p18542_p6 = por %p379_p4, %p378_p3 }
  0x1a   : > { %20342 = sst [smem:[#allocation40_spill]] %s18536_s27  ;;  %p386_p8 = scmp.lt.s32.totalorder %s18393_s21, 3 }
  0x1b   : > { %s20343_s28 = scalar_select %p18538_p5, 1, 0 }
  0x1c   : > { %s20345_s29 = scalar_select %p18542_p6, 1, 0 }
  0x1d   : > { %20344 = sst [smem:[#allocation41_spill]] %s20343_s28  ;;  %p20324_p9 = scmp.eq.s32.totalorder %s18521_s22, 0 }
  0x1e   : > { %20346 = sst [smem:[#allocation42_spill]] %s20345_s29  ;;  %p18549_p10 = pnand %p13958_p7, %p386_p8 }
  0x1f   : > { %s18395_s16 = smov [#allocation8]   ;;  %s18396_s23 = smov [#allocation11]  }
  0x20   : > { %s20347_s30 = scalar_select %p18549_p10, 1, 0 }
  0x21   : > { %s412_s17 = sshll.u32 %s18395_s16, 4  ;;  %p16459_p11 = pneg %p18549_p10  ;;  %s413_s17 = int_to_ptr.vmem [resolvable:$true] %s412_s17 }
  0x22   : > { %s436_s25 = sshll.u32 %s18396_s23, 4  ;;  %s18397_s27 = smov [#allocation14]   ;;  %s18561_s25 = int_to_ptr.vmem [resolvable:$true] %s436_s25 }
  0x23   : > { %p18557_p12 = pnand %p20324_p9, %p16459_p11  ;;  %s460_s20 = sshll.u32 %s18397_s27, 4  ;;  %s18563_s20 = int_to_ptr.vmem [resolvable:$true] %s460_s20 }
  0x24   : > { %s20349_s2 = sld [smem:[#allocation43_spill]] }
  0x25   : > { %p18573_p0 = pneg %p18557_p12 }
  0x2a   : > { %s17939_s16 = scalar_lea.hbm %s20349_s2, 16 }
  0x2b   : > { %p17940_p13 = scmp.ne.s32.totalorder %s20349_s2, %s17939_s16  ;;  %p17946_p3 = scmp.lt.u32.totalorder %s17939_s16, %s20349_s2 }
  0x2d   : > { %p17942_p1 = pnand %p18573_p0, %p17940_p13 }
  0x2f   : > { %p17943_p2 = pneg %p17942_p1 }
  0x31   : > { %p17948_p4 = pnand %p17946_p3, %p17943_p2 }
  0x33   : > { %17951 = shalt.err (!%p17948_p4)
}
  0x34   : > { %s17952_s24 = scalar_lea.vmem %s413_s17, 16  ;;  %s17959_s18 = scalar_lea.vmem %s413_s17, 32 }
  0x35   : > { %p17953_p7 = scmp.ne.s32.totalorder %s413_s17, %s17952_s24  ;;  %p17960_p9 = scmp.lt.s32.totalorder %s413_s17, %s413_s17 }
  0x36   : > { %p17961_p6 = scmp.lt.s32.totalorder %s17959_s18, %s17952_s24 }
  0x37   : > { %p17955_p8 = pnand %p17953_p7, %p18573_p0 }
  0x38   : > { %p17962_p5 = por %p17961_p6, %p17960_p9 }
  0x39   : > { %p17956_p11 = pneg %p17955_p8 }
  0x3b   : > { %p17963_p10 = pnand %p17962_p5, %p17956_p11 }
  0x3d   : > { %17966 = shalt.err (!%p17963_p10)
}
  0x3e   : > { %16465 = dma.hbm_to_vmem [thread:$0]  (!%p18557_p12), %s20349_s2, 16, %s413_s17, [#allocation9]  }
  0x3f   : > { %s20351_s4 = sld [smem:[#allocation44_spill]] }
  0x45   : > { %s17967_s27 = scalar_lea.hbm %s20351_s4, 16 }
  0x46   : > { %p17968_p13 = scmp.ne.s32.totalorder %s20351_s4, %s17967_s27  ;;  %p17974_p5 = scmp.lt.u32.totalorder %s17967_s27, %s20351_s4 }
  0x48   : > { %p17970_p1 = pnand %p17968_p13, %p18573_p0 }
  0x4a   : > { %p17971_p6 = pneg %p17970_p1 }
  0x4c   : > { %p17976_p9 = pnand %p17974_p5, %p17971_p6 }
  0x4e   : > { %17979 = shalt.err (!%p17976_p9)
}
  0x4f   : > { %s17980_s17 = scalar_lea.vmem %s18561_s25, 16  ;;  %s17987_s19 = scalar_lea.vmem %s18561_s25, 32 }
  0x50   : > { %p17981_p10 = scmp.ne.s32.totalorder %s18561_s25, %s17980_s17  ;;  %p17988_p4 = scmp.lt.s32.totalorder %s18561_s25, %s18561_s25 }
  0x51   : > { %p17989_p7 = scmp.lt.s32.totalorder %s17987_s19, %s17980_s17 }
  0x52   : > { %p17983_p2 = pnand %p17981_p10, %p18573_p0 }
  0x53   : > { %p17990_p8 = por %p17989_p7, %p17988_p4 }
  0x54   : > { %p17984_p3 = pneg %p17983_p2 }
  0x56   : > { %p17991_p11 = pnand %p17990_p8, %p17984_p3 }
  0x58   : > { %17994 = shalt.err (!%p17991_p11)
}
  0x59   : > { %16471 = dma.hbm_to_vmem [thread:$0]  (!%p18557_p12), %s20351_s4, 16, %s18561_s25, [#allocation12]  }
  0x5a   : > { %s20352_s6 = sld [smem:[#allocation45_spill]] }
  0x60   : > { %s17995_s16 = scalar_lea.hbm %s20352_s6, 16 }
  0x61   : > { %p17996_p13 = scmp.ne.s32.totalorder %s20352_s6, %s17995_s16  ;;  %p18002_p5 = scmp.lt.u32.totalorder %s17995_s16, %s20352_s6 }
  0x63   : > { %p17998_p1 = pnand %p17996_p13, %p18573_p0 }
  0x65   : > { %p17999_p6 = pneg %p17998_p1 }
  0x67   : > { %p18004_p9 = pnand %p18002_p5, %p17999_p6 }
  0x69   : > { %18007 = shalt.err (!%p18004_p9)
}
  0x6a   : > { %s18008_s25 = scalar_lea.vmem %s18563_s20, 16  ;;  %s18015_s19 = scalar_lea.vmem %s18563_s20, 32 }
  0x6b   : > { %p18009_p10 = scmp.ne.s32.totalorder %s18563_s20, %s18008_s25  ;;  %p18016_p4 = scmp.lt.s32.totalorder %s18563_s20, %s18563_s20 }
  0x6c   : > { %p18017_p7 = scmp.lt.s32.totalorder %s18015_s19, %s18008_s25 }
  0x6d   : > { %p18011_p2 = pnand %p18009_p10, %p18573_p0 }
  0x6e   : > { %p18018_p8 = por %p18017_p7, %p18016_p4 }
  0x6f   : > { %p18012_p3 = pneg %p18011_p2 }
  0x71   : > { %p18019_p11 = pnand %p18018_p8, %p18012_p3 }
  0x73   : > { %18022 = shalt.err (!%p18019_p11)
}
  0x74   : > { %16477 = dma.hbm_to_vmem [thread:$0]  (!%p18557_p12), %s20352_s6, 16, %s18563_s20, [#allocation15]  }
  0x75   : > { %s18398_s29 = smov [#allocation17]   ;;  %s18399_s16 = smov [#allocation20]  }
  0x76   : > { %s484_s15 = sshll.u32 %s18398_s29, 4  ;;  %s508_s27 = sshll.u32 %s18399_s16, 4  ;;  %s485_s15 = int_to_ptr.vmem [resolvable:$true] %s484_s15  ;;  %s509_s27 = int_to_ptr.vmem [resolvable:$true] %s508_s27 }
  0x77   : > { %s20353_s8 = sld [smem:[#allocation46_spill]] }
  0x7d   : > { %s18023_s17 = scalar_lea.hbm %s20353_s8, 64 }
  0x7e   : > { %p18024_p13 = scmp.ne.s32.totalorder %s20353_s8, %s18023_s17  ;;  %p18030_p5 = scmp.lt.u32.totalorder %s18023_s17, %s20353_s8 }
  0x80   : > { %p18026_p1 = pnand %p18024_p13, %p18573_p0 }
  0x82   : > { %p18027_p6 = pneg %p18026_p1 }
  0x84   : > { %p18032_p9 = pnand %p18030_p5, %p18027_p6 }
  0x86   : > { %18035 = shalt.err (!%p18032_p9)
}
  0x87   : > { %s18036_s20 = scalar_lea.vmem %s485_s15, 64  ;;  %p18044_p4 = scmp.lt.s32.totalorder %s485_s15, %s485_s15 }
  0x88   : > { %p18037_p10 = scmp.ne.s32.totalorder %s485_s15, %s18036_s20  ;;  %p18045_p7 = scmp.lt.s32.totalorder %s18036_s20, %s18036_s20 }
  0x8a   : > { %p18039_p2 = pnand %p18037_p10, %p18573_p0  ;;  %p18046_p8 = por %p18045_p7, %p18044_p4 }
  0x8c   : > { %p18040_p3 = pneg %p18039_p2 }
  0x8e   : > { %p18047_p11 = pnand %p18046_p8, %p18040_p3 }
  0x90   : > { %18050 = shalt.err (!%p18047_p11)
}
  0x91   : > { %16483 = dma.hbm_to_vmem [thread:$0]  (!%p18557_p12), %s20353_s8, 64, %s485_s15, [#allocation18]  }
  0x92   : > { %s18051_s24 = scalar_lea.hbm %s20311_s10, 32 }
  0x93   : > { %p18052_p13 = scmp.ne.s32.totalorder %s20311_s10, %s18051_s24  ;;  %p18058_p5 = scmp.lt.u32.totalorder %s18051_s24, %s20311_s10 }
  0x95   : > { %p18054_p1 = pnand %p18052_p13, %p18573_p0 }
  0x97   : > { %p18055_p6 = pneg %p18054_p1 }
  0x99   : > { %p18060_p9 = pnand %p18058_p5, %p18055_p6 }
  0x9b   : > { %18063 = shalt.err (!%p18060_p9)
}
  0x9c   : > { %s18064_s28 = scalar_lea.vmem %s509_s27, 32  ;;  %p18072_p4 = scmp.lt.s32.totalorder %s509_s27, %s509_s27 }
  0x9d   : > { %p18065_p10 = scmp.ne.s32.totalorder %s509_s27, %s18064_s28  ;;  %p18073_p7 = scmp.lt.s32.totalorder %s18064_s28, %s18064_s28 }
  0x9f   : > { %p18067_p2 = pnand %p18065_p10, %p18573_p0  ;;  %p18074_p8 = por %p18073_p7, %p18072_p4 }
  0xa1   : > { %p18068_p3 = pneg %p18067_p2 }
  0xa3   : > { %p18075_p11 = pnand %p18074_p8, %p18068_p3 }
  0xa5   : > { %18078 = shalt.err (!%p18075_p11)
}
  0xa6   : > { %16489 = dma.hbm_to_vmem [thread:$0]  (!%p18557_p12), %s20311_s10, 32, %s509_s27, [#allocation21]  }
  0xa7   : > { %s18400_s21 = smov [#allocation23]   ;;  %s18401_s2 = smov [#allocation5]  }
  0xa8   : > { %s532_s29 = sshll.u32 %s18400_s21, 4  ;;  %s398_s16 = sshll.u32 %s18401_s2, 4  ;;  %s533_s29 = int_to_ptr.vmem [resolvable:$true] %s532_s29  ;;  %s399_s16 = int_to_ptr.vmem [resolvable:$true] %s398_s16 }
  0xa9   : > { %s18079_s17 = scalar_lea.hbm %s20313_s12, 16 }
  0xaa   : > { %p18080_p13 = scmp.ne.s32.totalorder %s20313_s12, %s18079_s17  ;;  %p18086_p5 = scmp.lt.u32.totalorder %s18079_s17, %s20313_s12 }
  0xac   : > { %p18082_p1 = pnand %p18080_p13, %p18573_p0 }
  0xae   : > { %p18083_p6 = pneg %p18082_p1 }
  0xb0   : > { %p18088_p9 = pnand %p18086_p5, %p18083_p6 }
  0xb2   : > { %18091 = shalt.err (!%p18088_p9)
}
  0xb3   : > { %s18092_s27 = scalar_lea.vmem %s533_s29, 16  ;;  %s18099_s20 = scalar_lea.vmem %s533_s29, 32 }
  0xb4   : > { %p18093_p10 = scmp.ne.s32.totalorder %s533_s29, %s18092_s27  ;;  %p18100_p4 = scmp.lt.s32.totalorder %s533_s29, %s533_s29 }
  0xb5   : > { %p18101_p7 = scmp.lt.s32.totalorder %s18099_s20, %s18092_s27 }
  0xb6   : > { %p18095_p2 = pnand %p18093_p10, %p18573_p0 }
  0xb7   : > { %p18102_p8 = por %p18101_p7, %p18100_p4 }
  0xb8   : > { %p18096_p3 = pneg %p18095_p2 }
  0xba   : > { %p18103_p11 = pnand %p18102_p8, %p18096_p3 }
  0xbc   : > { %18106 = shalt.err (!%p18103_p11)
}
  0xbd   : > { %16495 = dma.hbm_to_vmem [thread:$0]  (!%p18557_p12), %s20313_s12, 16, %s533_s29, [#allocation24]  }
  0xbe   : > { %s18107_s17 = scalar_lea.hbm %s20302_s1, 9216 }
  0xbf   : > { %p18108_p13 = scmp.ne.s32.totalorder %s20302_s1, %s18107_s17  ;;  %p18114_p5 = scmp.lt.u32.totalorder %s18107_s17, %s20302_s1 }
  0xc1   : > { %p18110_p1 = pnand %p18108_p13, %p18573_p0 }
  0xc3   : > { %p18111_p6 = pneg %p18110_p1 }
  0xc5   : > { %p18116_p9 = pnand %p18114_p5, %p18111_p6 }
  0xc7   : > { %18119 = shalt.err (!%p18116_p9)
}
  0xc8   : > { %s18120_s27 = scalar_lea.vmem %s399_s16, 9216  ;;  %p18128_p4 = scmp.lt.s32.totalorder %s399_s16, %s399_s16 }
  0xc9   : > { %p18121_p10 = scmp.ne.s32.totalorder %s399_s16, %s18120_s27  ;;  %p18129_p7 = scmp.lt.s32.totalorder %s18120_s27, %s18120_s27 }
  0xcb   : > { %p18123_p2 = pnand %p18121_p10, %p18573_p0  ;;  %p18130_p8 = por %p18129_p7, %p18128_p4 }
  0xcd   : > { %p18124_p3 = pneg %p18123_p2 }
  0xcf   : > { %p18131_p11 = pnand %p18130_p8, %p18124_p3 }
  0xd1   : > { %18134 = shalt.err (!%p18131_p11)
}
  0xd2   : > { %s20330_s29 = smov 64   ;;  %s20331_s20 = smov 4  }
  0xd3   : > { %16462 = dma.hbm_to_vmem [thread:$0]  (!%p18557_p12), %s20302_s1, 9216, %s399_s16, [#allocation6], %s20330_s29, %s20330_s29, %s20331_s20  }
  0xd4   : > { %s18404_s24 = smov [#allocation10]   ;;  %s18405_s17 = smov [#allocation13]  }
  0xd5   : > { %s422_s18 = sshll.u32 %s18404_s24, 4  ;;  %s446_s25 = sshll.u32 %s18405_s17, 4  ;;  %s423_s18 = int_to_ptr.vmem [resolvable:$true] %s422_s18  ;;  %s447_s25 = int_to_ptr.vmem [resolvable:$true] %s446_s25 }
  0xd6   : > { %s18135_s15 = scalar_lea.hbm %s20304_s3, 9216 }
  0xd7   : > { %p18136_p13 = scmp.ne.s32.totalorder %s20304_s3, %s18135_s15  ;;  %p18142_p5 = scmp.lt.u32.totalorder %s18135_s15, %s20304_s3 }
  0xd9   : > { %p18138_p1 = pnand %p18136_p13, %p18573_p0 }
  0xdb   : > { %p18139_p6 = pneg %p18138_p1 }
  0xdd   : > { %p18144_p9 = pnand %p18142_p5, %p18139_p6 }
  0xdf   : > { %18147 = shalt.err (!%p18144_p9)
}
  0xe0   : > { %s18148_s16 = scalar_lea.vmem %s423_s18, 9216  ;;  %p18156_p4 = scmp.lt.s32.totalorder %s423_s18, %s423_s18 }
  0xe1   : > { %p18149_p10 = scmp.ne.s32.totalorder %s423_s18, %s18148_s16  ;;  %p18157_p7 = scmp.lt.s32.totalorder %s18148_s16, %s18148_s16 }
  0xe3   : > { %p18151_p2 = pnand %p18149_p10, %p18573_p0  ;;  %p18158_p8 = por %p18157_p7, %p18156_p4 }
  0xe5   : > { %p18152_p3 = pneg %p18151_p2 }
  0xe7   : > { %p18159_p11 = pnand %p18158_p8, %p18152_p3 }
  0xe9   : > { %18162 = shalt.err (!%p18159_p11)
}
  0xea   : > { %16468 = dma.hbm_to_vmem [thread:$0]  (!%p18557_p12), %s20304_s3, 9216, %s423_s18, [#allocation9], %s20330_s29, %s20330_s29, %s20331_s20  }
  0xeb   : > { %s18163_s2 = scalar_lea.hbm %s20306_s5, 9216 }
  0xec   : > { %p18164_p13 = scmp.ne.s32.totalorder %s20306_s5, %s18163_s2  ;;  %p18170_p5 = scmp.lt.u32.totalorder %s18163_s2, %s20306_s5 }
  0xee   : > { %p18166_p1 = pnand %p18164_p13, %p18573_p0 }
  0xf0   : > { %p18167_p6 = pneg %p18166_p1 }
  0xf2   : > { %p18172_p9 = pnand %p18170_p5, %p18167_p6 }
  0xf4   : > { %18175 = shalt.err (!%p18172_p9)
}
  0xf5   : > { %s18176_s15 = scalar_lea.vmem %s447_s25, 9216  ;;  %p18184_p4 = scmp.lt.s32.totalorder %s447_s25, %s447_s25 }
  0xf6   : > { %p18177_p10 = scmp.ne.s32.totalorder %s447_s25, %s18176_s15  ;;  %p18185_p7 = scmp.lt.s32.totalorder %s18176_s15, %s18176_s15 }
  0xf8   : > { %p18179_p2 = pnand %p18177_p10, %p18573_p0  ;;  %p18186_p8 = por %p18185_p7, %p18184_p4 }
  0xfa   : > { %p18180_p3 = pneg %p18179_p2 }
  0xfc   : > { %p18187_p11 = pnand %p18186_p8, %p18180_p3 }
  0xfe   : > { %18190 = shalt.err (!%p18187_p11)
}
  0xff   : > { %16474 = dma.hbm_to_vmem [thread:$0]  (!%p18557_p12), %s20306_s5, 9216, %s447_s25, [#allocation12], %s20330_s29, %s20330_s29, %s20331_s20  }
 0x100   : > { %s18406_s16 = smov [#allocation16]   ;;  %s18191_s21 = scalar_lea.hbm %s20308_s7, 65536 }
 0x101   : > { %s470_s4 = sshll.u32 %s18406_s16, 4  ;;  %p18192_p13 = scmp.ne.s32.totalorder %s20308_s7, %s18191_s21  ;;  %s471_s4 = int_to_ptr.vmem [resolvable:$true] %s470_s4 }
 0x102   : > { %p18198_p5 = scmp.lt.u32.totalorder %s18191_s21, %s20308_s7 }
 0x103   : > { %p18194_p1 = pnand %p18192_p13, %p18573_p0 }
 0x105   : > { %p18195_p6 = pneg %p18194_p1 }
 0x107   : > { %p18200_p9 = pnand %p18198_p5, %p18195_p6 }
 0x109   : > { %18203 = shalt.err (!%p18200_p9)
}
 0x10a   : > { %s18204_s25 = scalar_lea.vmem %s471_s4, 65536  ;;  %p18212_p4 = scmp.lt.s32.totalorder %s471_s4, %s471_s4 }
 0x10b   : > { %p18205_p10 = scmp.ne.s32.totalorder %s471_s4, %s18204_s25  ;;  %p18213_p7 = scmp.lt.s32.totalorder %s18204_s25, %s18204_s25 }
 0x10d   : > { %p18207_p2 = pnand %p18205_p10, %p18573_p0  ;;  %p18214_p8 = por %p18213_p7, %p18212_p4 }
 0x10f   : > { %p18208_p3 = pneg %p18207_p2 }
 0x111   : > { %p18215_p11 = pnand %p18214_p8, %p18208_p3 }
 0x113   : > { %18218 = shalt.err (!%p18215_p11)
}
 0x114   : > { %s18407_s28 = smov 256   ;;  %s18408_s15 = smov 16  }
 0x115   : > { %16480 = dma.hbm_to_vmem [thread:$0]  (!%p18557_p12), %s20308_s7, 65536, %s471_s4, [#allocation15], %s18407_s28, %s18407_s28, %s18408_s15  }
 0x116   : > { %s18409_s16 = smov [#allocation19]   ;;  %s18219_s2 = scalar_lea.hbm %s20310_s9, 8192 }
 0x117   : > { %s494_s6 = sshll.u32 %s18409_s16, 4  ;;  %p18220_p13 = scmp.ne.s32.totalorder %s20310_s9, %s18219_s2  ;;  %s495_s6 = int_to_ptr.vmem [resolvable:$true] %s494_s6 }
 0x118   : > { %p18226_p5 = scmp.lt.u32.totalorder %s18219_s2, %s20310_s9 }
 0x119   : > { %p18222_p1 = pnand %p18220_p13, %p18573_p0 }
 0x11b   : > { %p18223_p6 = pneg %p18222_p1 }
 0x11d   : > { %p18228_p9 = pnand %p18226_p5, %p18223_p6 }
 0x11f   : > { %18231 = shalt.err (!%p18228_p9)
}
 0x120   : > { %s18232_s4 = scalar_lea.vmem %s495_s6, 8192  ;;  %p18240_p4 = scmp.lt.s32.totalorder %s495_s6, %s495_s6 }
 0x121   : > { %p18233_p10 = scmp.ne.s32.totalorder %s495_s6, %s18232_s4  ;;  %p18241_p7 = scmp.lt.s32.totalorder %s18232_s4, %s18232_s4 }
 0x123   : > { %p18235_p2 = pnand %p18233_p10, %p18573_p0  ;;  %p18242_p8 = por %p18241_p7, %p18240_p4 }
 0x125   : > { %p18236_p3 = pneg %p18235_p2 }
 0x127   : > { %p18243_p11 = pnand %p18242_p8, %p18236_p3 }
 0x129   : > { %18246 = shalt.err (!%p18243_p11)
}
 0x12a   : > { %s18410_s28 = smov 128   ;;  %s18411_s15 = smov 8  }
 0x12b   : > { %16486 = dma.hbm_to_vmem [thread:$0]  (!%p18557_p12), %s20310_s9, 8192, %s495_s6, [#allocation18], %s18410_s28, %s18410_s28, %s18411_s15  }
 0x12c   : > { %s18412_s16 = smov [#allocation22]   ;;  %s18413_s21 = smov [#allocation25]  }
 0x12d   : > { %s518_s8 = sshll.u32 %s18412_s16, 4  ;;  %s546_s2 = sshll.u32 %s18413_s21, 4  ;;  %s519_s8 = int_to_ptr.vmem [resolvable:$true] %s518_s8  ;;  %s547_s2 = int_to_ptr.vmem [resolvable:$true] %s546_s2 }
 0x12e   : > { %s18247_s19 = scalar_lea.hbm %s20312_s11, 2048 }
 0x12f   : > { %p18248_p13 = scmp.ne.s32.totalorder %s20312_s11, %s18247_s19  ;;  %p18254_p5 = scmp.lt.u32.totalorder %s18247_s19, %s20312_s11 }
 0x131   : > { %p18250_p1 = pnand %p18248_p13, %p18573_p0 }
 0x133   : > { %p18251_p6 = pneg %p18250_p1 }
 0x135   : > { %p18256_p9 = pnand %p18254_p5, %p18251_p6 }
 0x137   : > { %18259 = shalt.err (!%p18256_p9)
}
 0x138   : > { %s18260_s6 = scalar_lea.vmem %s519_s8, 2048  ;;  %p18268_p4 = scmp.lt.s32.totalorder %s519_s8, %s519_s8 }
 0x139   : > { %p18261_p10 = scmp.ne.s32.totalorder %s519_s8, %s18260_s6  ;;  %p18269_p7 = scmp.lt.s32.totalorder %s18260_s6, %s18260_s6 }
 0x13b   : > { %p18263_p2 = pnand %p18261_p10, %p18573_p0  ;;  %p18270_p8 = por %p18269_p7, %p18268_p4 }
 0x13d   : > { %p18264_p3 = pneg %p18263_p2 }
 0x13f   : > { %p18271_p11 = pnand %p18270_p8, %p18264_p3 }
 0x141   : > { %18274 = shalt.err (!%p18271_p11)
}
 0x142   : > { %s20354_s28 = smov 4   ;;  %s20355_s15 = smov 64  }
 0x143   : > { %16492 = dma.hbm_to_vmem [thread:$0]  (!%p18557_p12), %s20312_s11, 2048, %s519_s8, [#allocation21], %s20355_s15, %s20355_s15, %s20354_s28  }
 0x144   : > { %s18275_s16 = scalar_lea.hbm %s20315_s14, 16 }
 0x145   : > { %p18276_p13 = scmp.ne.s32.totalorder %s20315_s14, %s18275_s16  ;;  %p18282_p5 = scmp.lt.u32.totalorder %s18275_s16, %s20315_s14 }
 0x147   : > { %p18278_p1 = pnand %p18276_p13, %p18573_p0 }
 0x149   : > { %p18279_p6 = pneg %p18278_p1 }
 0x14b   : > { %p18284_p9 = pnand %p18282_p5, %p18279_p6 }
 0x14d   : > { %18287 = shalt.err (!%p18284_p9)
}
 0x14e   : > { %s18288_s25 = scalar_lea.vmem %s547_s2, 16  ;;  %s18295_s8 = scalar_lea.vmem %s547_s2, 32 }
 0x14f   : > { %p18289_p10 = scmp.ne.s32.totalorder %s547_s2, %s18288_s25  ;;  %p18296_p4 = scmp.lt.s32.totalorder %s547_s2, %s547_s2 }
 0x150   : > { %p18297_p7 = scmp.lt.s32.totalorder %s18295_s8, %s18288_s25 }
 0x151   : > { %p18291_p2 = pnand %p18289_p10, %p18573_p0 }
 0x152   : > { %p18298_p8 = por %p18297_p7, %p18296_p4 }
 0x153   : > { %p18292_p3 = pneg %p18291_p2 }
 0x155   : > { %p18299_p11 = pnand %p18298_p8, %p18292_p3 }
 0x157   : > { %18302 = shalt.err (!%p18299_p11)
}
 0x158   : > { %16498 = dma.hbm_to_vmem [thread:$0]  (!%p18557_p12), %s20315_s14, 16, %s547_s2, [#allocation24]  }
 0x159   : > { %p20356_p13 = scmp.ne.s32.totalorder %s20347_s30, 0 }
 0x15a   : > { %p20357_p1 = scmp.eq.s32.totalorder (!%p20356_p13), %s18521_s22, 0 }
 0x15b   : > { %567 = sbr.rel (%p20356_p13) target bundleno = 3331 (0xd03), region = 80 }
 0x162   : > { %18348 = dma.done.wait (%p20357_p1), [#allocation6], 9216   ;;  %p20358_p0 = pmov %p20357_p1 }
 0x164   : > { %18350 = vsyncadd (%p20358_p0), [#allocation6], 4294958080  ;;  %p20359_p6 = pmov %p20358_p0 }
 0x165   : > { %p20360_p5 = pmov %p20358_p0 }
 0x166   : > { %18352 = dma.done.wait (%p20359_p6), [#allocation9], 9232  }
 0x167   : > { %18354 = vsyncadd (%p20360_p5), [#allocation9], 4294958064  ;;  %p20361_p9 = pmov %p20358_p0 }
 0x168   : > { %p20362_p12 = pmov %p20358_p0 }
 0x169   : > { %18356 = dma.done.wait (%p20361_p9), [#allocation12], 9232  }
 0x16a   : > { %18358 = vsyncadd (%p20362_p12), [#allocation12], 4294958064  ;;  %p20363_p10 = pmov %p20358_p0 }
 0x16b   : > { %p20364_p2 = pmov %p20358_p0 }
 0x16c   : > { %18360 = dma.done.wait (%p20363_p10), [#allocation15], 65552  }
 0x16d   : > { %18362 = vsyncadd (%p20364_p2), [#allocation15], 4294901744  ;;  %p20365_p3 = pmov %p20358_p0 }
 0x16e   : > { %p20366_p4 = pmov %p20358_p0 }
 0x16f   : > { %18364 = dma.done.wait (%p20365_p3), [#allocation18], 8256  }
 0x170   : > { %18366 = vsyncadd (%p20366_p4), [#allocation18], 4294959040  ;;  %p20367_p7 = pmov %p20358_p0 }
 0x171   : > { %p20368_p8 = pmov %p20358_p0 }
 0x172   : > { %18368 = dma.done.wait (%p20367_p7), [#allocation21], 2080  }
 0x173   : > { %18370 = vsyncadd (%p20368_p8), [#allocation21], 4294965216  ;;  %p20369_p11 = pmov %p20358_p0 }
 0x174   : > { %p20370_p13 = pmov %p20358_p0 }
 0x175   : > { %18372 = dma.done.wait (%p20369_p11), [#allocation24], 32  }
 0x176   : > { %18374 = vsyncadd (%p20370_p13), [#allocation24], 4294967264  ;;  %v18414_v0 = vmov 0.0   ;;  %v16585_v1 = vld [vmem:[#allocation5 + $0x40] sm:$0xff]   ;;  %v16587_v3 = vld [vmem:[#allocation5 + $0x48] sm:$0xff]   ;;  %p662_p1 = scmp.lt.s32.totalorder %s18521_s22, 1 }
 0x177   : > { %668 = vst [vmem:[#allocation2] sm:$0xff] %v18414_v0  ;;  %669 = vst [vmem:[#allocation2 + $0x8] sm:$0xff] %v18414_v0  ;;  %v16586_v2 = vld [vmem:[#allocation5] sm:$0xff]   ;;  %15191 = vmatprep.subr.bf16.mxu1 %v16585_v1  ;;  %v16588_v4 = vld [vmem:[#allocation5 + $0x8] sm:$0xff]   ;;  %v18415_v39 = vmov 0.0|0.0   ;;  %vm2232_vm0 = vcmask 1041409  }
 0x178   : > { %670 = vst [vmem:[#allocation2 + $0x10] sm:$0x3] %v18414_v0  ;;  %671 = vst [vmem:[#allocation2 + $0x18] sm:$0xff] %v18414_v0  ;;  %15192 = vmatpush3.bf16.msra.mxu1 %v16586_v2  ;;  %v16589_v5 = vld [vmem:[#allocation5 + $0x50] sm:$0xff]   ;;  %v16591_v7 = vld [vmem:[#allocation5 + $0x58] sm:$0xff]   ;;  %s663_s30 = scalar_select %p662_p1, %s18521_s22, 1 }
 0x179   : > { %672 = vst [vmem:[#allocation2 + $0x20] sm:$0xff] %v18414_v0  ;;  %673 = vst [vmem:[#allocation2 + $0x28] sm:$0x3] %v18414_v0  ;;  %15193 = vmatprep.subr.bf16.mxu1 %v16587_v3  ;;  %v16590_v6 = vld [vmem:[#allocation5 + $0x10] sm:$0xff]   ;;  %v16592_v8 = vld [vmem:[#allocation5 + $0x18] sm:$0xff]   ;;  %vm2234_vm1 = vcmask 1042434  }
 0x17a   : > { %674 = vst [vmem:[#allocation2 + $0x30] sm:$0xff] %v18414_v0  ;;  %675 = vst [vmem:[#allocation2 + $0x38] sm:$0xff] %v18414_v0  ;;  %v16593_v9 = vld [vmem:[#allocation5 + $0x60] sm:$0xff]   ;;  %v16595_v11 = vld [vmem:[#allocation5 + $0x68] sm:$0xff]   ;;  %s15190_s26 = sshll.u32 %s663_s30, 8  ;;  %vm2236_vm2 = vcmask 1043459  }
 0x17b   : > { %676 = vst [vmem:[#allocation2 + $0x40] sm:$0x3] %v18414_v0  ;;  %677 = vst [vmem:[#allocation2 + $0x48] sm:$0xff] %v18414_v0  ;;  %v16594_v10 = vld [vmem:[#allocation5 + $0x20] sm:$0xff]   ;;  %v16596_v17 = vld [vmem:[#allocation5 + $0x28] sm:$0xff]   ;;  %s18945_s28 = scalar_lea.vmem %s20301_s0, %s15190_s26  ;;  %vm2238_vm3 = vcmask 1044484  }
 0x17c   : > { %678 = vst [vmem:[#allocation2 + $0x50] sm:$0xff] %v18414_v0  ;;  %679 = vst [vmem:[#allocation2 + $0x58] sm:$0x3] %v18414_v0  ;;  %15194 = vmatpush3.bf16.msra.mxu1 %v16588_v4  ;;  %v16597_v18 = vld [vmem:[#allocation5 + $0x70] sm:$0xff]   ;;  %v16603_v19 = vld [vmem:[#allocation5 + $0x140] sm:$0xff]   ;;  %vm2240_vm4 = vcmask 1045509  }
 0x17d   : > { %680 = vst [vmem:[#allocation2 + $0x60] sm:$0xff] %v18414_v0  ;;  %681 = vst [vmem:[#allocation2 + $0x68] sm:$0xff] %v18414_v0  ;;  %15195 = vmatprep.subr.bf16.mxu1 %v16589_v5  ;;  %v16604_v20 = vld [vmem:[#allocation5 + $0x100] sm:$0xff]   ;;  %v16598_v21 = vld [vmem:[#allocation5 + $0x30] sm:$0xff]   ;;  %15271 = vmatprep.subr.bf16.mxu0 %v16603_v19  ;;  %vm2242_vm5 = vcmask 1046534   ;;  %vm2244_vm6 = vcmask 1047559  }
 0x17e   : > { %682 = vst [vmem:[#allocation2 + $0x70] sm:$0x3] %v18414_v0  ;;  %683 = vst [vmem:[#allocation2 + $0x78] sm:$0xff] %v18414_v0  ;;  %v819_v12 = vld [vmem:[#allocation2 + $0x1] sm:$0xff]  ;;  %v16599_v22 = vld [vmem:[#allocation5 + $0x78] sm:$0xff]   ;;  %15272 = vmatpush3.bf16.msra.mxu0 %v16604_v20  ;;  %vm18417_vm7 = vmmov 0  }
 0x17f   : > { %684 = vst [vmem:[#allocation2 + $0x80] sm:$0xff] %v18414_v0  ;;  %685 = vst [vmem:[#allocation2 + $0x88] sm:$0x3] %v18414_v0  ;;  %v820_v13 = vld [vmem:[#allocation2 + $0x9] sm:$0xff]  ;;  %v722_v24 = vld [vmem:[%s18945_s28] sm:$0xff]  ;;  %vm13750_vm9 = vcmask 73728  }
 0x180   : > { %686 = vst [vmem:[#allocation2 + $0x90] sm:$0xff] %v18414_v0  ;;  %687 = vst [vmem:[#allocation2 + $0x98] sm:$0xff] %v18414_v0  ;;  %15196 = vmatpush3.bf16.msra.mxu1 %v16590_v6  ;;  %v18935_v14 = vld [vmem:[#allocation2 + $0xa] sm:$0xff]  ;;  %v827_v15 = vpack.c.bf16 %v820_v13, %v819_v12  ;;  %v18938_v16 = vld [vmem:[#allocation2 + $0x2] sm:$0xff]  ;;  %s20373_s23 = sld [smem:[#allocation36_spill]]  ;;  %s20374_s2 = sld [smem:[#allocation41_spill]] }
 0x181   : > { %688 = vst [vmem:[#allocation2 + $0xa0] sm:$0x3] %v18414_v0  ;;  %689 = vst [vmem:[#allocation2 + $0xa8] sm:$0xff] %v18414_v0  ;;  %15197 = vmatprep.subr.bf16.mxu1 %v16591_v7  ;;  %v16607_v23 = vld [vmem:[#allocation5 + $0x148] sm:$0xff]   ;;  %v16600_v27 = vld [vmem:[#allocation5 + $0x38] sm:$0xff]   ;;  %v839_v20 = vpack.c.bf16 %v18935_v14, %v18938_v16  ;;  %s15187_s15 = sshll.u32 %s18521_s22, 4 }
 0x182   : > { %690 = vst [vmem:[#allocation2 + $0xb0] sm:$0xff] %v18414_v0  ;;  %691 = vst [vmem:[#allocation2 + $0xb8] sm:$0x3] %v18414_v0  ;;  %1531 = vmatprep.mubr.bf16.mxu1 %v827_v15  ;;  %v723_v25 = vld [vmem:[%s18945_s28 + $0x8] sm:$0xff]  ;;  %15273 = vmatprep.subr.bf16.mxu0 %v16607_v23  ;;  %v16601_v28 = vld [vmem:[#allocation5 + $0xc0] sm:$0xff]   ;;  %s20375_s16 = sld [smem:[#allocation47_spill]] }
 0x183   : > { %692 = vst [vmem:[#allocation2 + $0xc0] sm:$0xff] %v18414_v0  ;;  %693 = vst [vmem:[#allocation2 + $0xc8] sm:$0xff] %v18414_v0  ;;  %v16608_v26 = vld [vmem:[#allocation5 + $0x108] sm:$0xff]   ;;  %v16611_v29 = vld [vmem:[#allocation5 + $0x150] sm:$0xff]   ;;  %v18949_v32 = vpack.c.bf16 %v723_v25, %v722_v24  ;;  %s18419_s22 = smov [#allocation26]  }
 0x184   : > { %694 = vst [vmem:[#allocation2 + $0xd0] sm:$0x3] %v18414_v0  ;;  %695 = vst [vmem:[#allocation2 + $0xd8] sm:$0xff] %v18414_v0  ;;  %15198 = vmatpush3.bf16.msra.mxu1 %v16592_v8  ;;  %15274 = vmatpush3.bf16.msra.mxu0 %v16608_v26  ;;  %v16612_v30 = vld [vmem:[#allocation5 + $0x110] sm:$0xff]   ;;  %v16602_v31 = vld [vmem:[#allocation5 + $0x80] sm:$0xff]   ;;  %s18307_s19 = sshll.u32 %s18419_s22, 4  ;;  %s18308_s19 = int_to_ptr.vmem [resolvable:$false] %s18307_s19 }
 0x185   : > { %696 = vst [vmem:[#allocation2 + $0xe0] sm:$0xff] %v18414_v0  ;;  %697 = vst [vmem:[#allocation2 + $0xe8] sm:$0x3] %v18414_v0  ;;  %15199 = vmatprep.subr.bf16.mxu1 %v16593_v9  ;;  %15275 = vmatprep.subr.bf16.mxu0 %v16611_v29  ;;  %v16605_v33 = vld [vmem:[#allocation5 + $0xc8] sm:$0xff]   ;;  %v16615_v37 = vld [vmem:[#allocation5 + $0x158] sm:$0xff]   ;;  %s18309_s25 = scalar_lea.vmem %s18308_s19, 32 }
 0x186   : > { %698 = vst [vmem:[#allocation2 + $0xf0] sm:$0xff] %v18414_v0  ;;  %699 = vst [vmem:[#allocation2 + $0xf8] sm:$0xff] %v18414_v0  ;;  %v16606_v34 = vld [vmem:[#allocation5 + $0x88] sm:$0xff]   ;;  %v724_v38 = vld [vmem:[%s18945_s28 + $0x10] sm:$0xff]  ;;  %p20376_p6 = scmp.ne.s32.totalorder %s20374_s2, 0 }
 0x187   : > { %700 = vst [vmem:[#allocation2 + $0x100] sm:$0x3] %v18414_v0  ;;  %701 = vst [vmem:[#allocation2 + $0x108] sm:$0xff] %v18414_v0  ;;  %v725_v40 = vld [vmem:[%s18945_s28 + $0x18] sm:$0xff]  ;;  %v16609_v42 = vld [vmem:[#allocation5 + $0xd0] sm:$0xff]  }
 0x188   : > { %702 = vst [vmem:[#allocation2 + $0x110] sm:$0xff] %v18414_v0  ;;  %703 = vst [vmem:[#allocation2 + $0x118] sm:$0x3] %v18414_v0  ;;  %15200 = vmatpush3.bf16.msra.mxu1 %v16594_v10  ;;  %15276 = vmatpush3.bf16.msra.mxu0 %v16612_v30  ;;  %v16616_v41 = vld [vmem:[#allocation5 + $0x118] sm:$0xff]   ;;  %v16610_v43 = vld [vmem:[#allocation5 + $0x90] sm:$0xff]   ;;  %v18956_v46 = vpack.c.bf16 %v725_v40, %v724_v38  ;;  %s20258_s21 = scalar_lea.hbm %s20375_s16, %s15187_s15 }
 0x189   : > { %704 = vst [vmem:[#allocation2 + $0x120] sm:$0xff] %v18414_v0  ;;  %705 = vst [vmem:[#allocation2 + $0x128] sm:$0xff] %v18414_v0  ;;  %15201 = vmatprep.subr.bf16.mxu1 %v16595_v11  ;;  %15277 = vmatprep.subr.bf16.mxu0 %v16615_v37  ;;  %v16619_v45 = vld [vmem:[#allocation5 + $0x160] sm:$0xff]   ;;  %v16613_v48 = vld [vmem:[#allocation5 + $0xd8] sm:$0xff]  }
 0x18a   : > { %706 = vst [vmem:[#allocation2 + $0x130] sm:$0x3] %v18414_v0  ;;  %707 = vst [vmem:[#allocation2 + $0x138] sm:$0xff] %v18414_v0  ;;  %v16620_v47 = vld [vmem:[#allocation5 + $0x120] sm:$0xff]   ;;  %v16614_v49 = vld [vmem:[#allocation5 + $0x98] sm:$0xff]  }
 0x18b   : > { %708 = vst [vmem:[#allocation2 + $0x140] sm:$0xff] %v18414_v0  ;;  %709 = vst [vmem:[#allocation2 + $0x148] sm:$0x3] %v18414_v0  ;;  %v16617_v52 = vld [vmem:[#allocation5 + $0xe0] sm:$0xff]   ;;  %v16623_v53 = vld [vmem:[#allocation5 + $0x168] sm:$0xff]  }
 0x18c   : > { %710 = vst [vmem:[#allocation2 + $0x150] sm:$0xff] %v18414_v0  ;;  %711 = vst [vmem:[#allocation2 + $0x158] sm:$0xff] %v18414_v0  ;;  %15202 = vmatpush3.bf16.msra.mxu1 %v16596_v17  ;;  %15278 = vmatpush3.bf16.msra.mxu0 %v16616_v41  ;;  %v726_v54 = vld [vmem:[%s18945_s28 + $0x20] sm:$0xff]  ;;  %v727_v55 = vld [vmem:[%s18945_s28 + $0x28] sm:$0xff] }
 0x18d   : > { %712 = vst [vmem:[#allocation2 + $0x160] sm:$0x3] %v18414_v0  ;;  %713 = vst [vmem:[#allocation2 + $0x168] sm:$0xff] %v18414_v0  ;;  %15203 = vmatprep.subr.bf16.mxu1 %v16597_v18  ;;  %15279 = vmatprep.subr.bf16.mxu0 %v16619_v45  ;;  %v16624_v56 = vld [vmem:[#allocation5 + $0x128] sm:$0xff]   ;;  %v16618_v57 = vld [vmem:[#allocation5 + $0xa0] sm:$0xff]   ;;  %v18964_v60 = vpack.c.bf16 %v727_v55, %v726_v54 }
 0x18e   : > { %714 = vst [vmem:[#allocation2 + $0x170] sm:$0xff] %v18414_v0  ;;  %715 = vst [vmem:[#allocation2 + $0x178] sm:$0x3] %v18414_v0  ;;  %v16621_v59 = vld [vmem:[#allocation5 + $0xe8] sm:$0xff]   ;;  %v16627_v61 = vld [vmem:[#allocation5 + $0x170] sm:$0xff]  }
 0x18f   : > { %716 = vst [vmem:[#allocation2 + $0x180] sm:$0xff] %v18414_v0  ;;  %717 = vst [vmem:[#allocation2 + $0x188] sm:$0xff] %v18414_v0  ;;  %v16628_v62 = vld [vmem:[#allocation5 + $0x130] sm:$0xff]   ;;  %v16622_v63 = vld [vmem:[#allocation5 + $0xa8] sm:$0xff]  }
 0x190   : > { %718 = vst [vmem:[#allocation2 + $0x190] sm:$0x3] %v18414_v0  ;;  %719 = vst [vmem:[#allocation2 + $0x198] sm:$0xff] %v18414_v0  ;;  %15204 = vmatpush3.bf16.msra.mxu1 %v16598_v21  ;;  %15280 = vmatpush3.bf16.msra.mxu0 %v16620_v47  ;;  %v16625_v1 = vld [vmem:[#allocation5 + $0xf0] sm:$0xff]   ;;  %v16631_v4 = vld [vmem:[#allocation5 + $0x178] sm:$0xff]  }
 0x191   : > { %720 = vst [vmem:[#allocation2 + $0x1a0] sm:$0xff] %v18414_v0  ;;  %721 = vst [vmem:[#allocation2 + $0x1a8] sm:$0x3] %v18414_v0  ;;  %15205 = vmatprep.subr.bf16.mxu1 %v16599_v22  ;;  %15281 = vmatprep.subr.bf16.mxu0 %v16623_v53  ;;  %v16632_v5 = vld [vmem:[#allocation5 + $0x138] sm:$0xff]   ;;  %v16626_v7 = vld [vmem:[#allocation5 + $0xb0] sm:$0xff]  }
 0x192   : > { %787 = vst [vmem:[#allocation3] sm:$0xff] %v18414_v0  ;;  %788 = vst [vmem:[#allocation3 + $0x8] sm:$0x3] %v18414_v0  ;;  %v16629_v10 = vld [vmem:[#allocation5 + $0xf8] sm:$0xff]   ;;  %v16635_v12 = vld [vmem:[#allocation5 + $0x200] sm:$0xff]  }
 0x193   : > { %789 = vst [vmem:[#allocation3 + $0x10] sm:$0xff] %v18414_v0  ;;  %790 = vst [vmem:[#allocation3 + $0x18] sm:$0x3] %v18414_v0  ;;  %v16630_v13 = vld [vmem:[#allocation5 + $0xb8] sm:$0xff]   ;;  %v16638_v15 = vld [vmem:[#allocation5 + $0x208] sm:$0xff]  }
 0x194   : > { %791 = vst [vmem:[#allocation3 + $0x20] sm:$0xff] %v18414_v0  ;;  %792 = vst [vmem:[#allocation3 + $0x28] sm:$0x3] %v18414_v0  ;;  %15206 = vmatpush3.bf16.msra.mxu1 %v16600_v27  ;;  %15282 = vmatpush3.bf16.msra.mxu0 %v16624_v56  ;;  %v16633_v17 = vld [vmem:[#allocation5 + $0x1c0] sm:$0xff]   ;;  %v16636_v23 = vld [vmem:[#allocation5 + $0x1c8] sm:$0xff]  }
 0x195   : > { %793 = vst [vmem:[#allocation3 + $0x30] sm:$0xff] %v18414_v0  ;;  %794 = vst [vmem:[#allocation3 + $0x38] sm:$0x3] %v18414_v0  ;;  %15231 = vmatprep.subr.bf16.mxu1 %v16601_v28  ;;  %15283 = vmatprep.subr.bf16.mxu0 %v16627_v61  ;;  %v16634_v21 = vld [vmem:[#allocation5 + $0x180] sm:$0xff]   ;;  %v16644_v14 = vld [vmem:[#allocation5 + $0x218] sm:$0xff]  }
 0x196   : > { %795 = vst [vmem:[#allocation3 + $0x40] sm:$0xff] %v18414_v0  ;;  %796 = vst [vmem:[#allocation3 + $0x48] sm:$0x3] %v18414_v0  ;;  %v16639_v16 = vld [vmem:[#allocation5 + $0x1d0] sm:$0xff]   ;;  %v16642_v30 = vld [vmem:[#allocation5 + $0x1d8] sm:$0xff]  }
 0x197   : > { %797 = vst [vmem:[#allocation3 + $0x50] sm:$0xff] %v18414_v0  ;;  %798 = vst [vmem:[#allocation3 + $0x58] sm:$0x3] %v18414_v0  ;;  %1532 = vmatmul.mubr.bf16.vlgmr.msra.gmra.mrb[0].mxu1 %v18415_v39  ;;  %v16640_v29 = vld [vmem:[#allocation5 + $0x190] sm:$0xff]   ;;  %v16646_v37 = vld [vmem:[#allocation5 + $0x1a0] sm:$0xff]  }
 0x198   : > { %799 = vst [vmem:[#allocation3 + $0x60] sm:$0xff] %v18414_v0  ;;  %800 = vst [vmem:[#allocation3 + $0x68] sm:$0x3] %v18414_v0  ;;  %15232 = vmatpush3.bf16.msra.mxu1 %v16602_v31  ;;  %1539 = vmatprep.mubr.bf16.mxu1 %v18949_v32  ;;  %v16647_v31 = vld [vmem:[#allocation5 + $0x220] sm:$0xff]   ;;  %v16648_v39 = vld [vmem:[#allocation5 + $0x1e8] sm:$0xff]  }
 0x199   : > { %801 = vst [vmem:[#allocation3 + $0x70] sm:$0xff] %v18414_v0  ;;  %802 = vst [vmem:[#allocation3 + $0x78] sm:$0x3] %v18414_v0  ;;  %15233 = vmatprep.subr.bf16.mxu1 %v16605_v33  ;;  %15284 = vmatpush3.bf16.msra.mxu0 %v16628_v62  ;;  %v729_v33 = vld [vmem:[%s18945_s28 + $0x38] sm:$0xff]  ;;  %v16663_v56 = vld [vmem:[#allocation5 + $0xc8] sm:$0xff]  }
 0x19a   : > { %803 = vst [vmem:[#allocation3 + $0x80] sm:$0xff] %v18414_v0  ;;  %804 = vst [vmem:[#allocation3 + $0x88] sm:$0x3] %v18414_v0  ;;  %15285 = vmatprep.subr.bf16.mxu0 %v16631_v4  ;;  %v16654_v53 = vld [vmem:[#allocation5 + $0x1f8] sm:$0xff]   ;;  %v16664_v61 = vld [vmem:[#allocation5 + $0x88] sm:$0xff]  }
 0x19b   : > { %805 = vst [vmem:[#allocation3 + $0x90] sm:$0xff] %v18414_v0  ;;  %806 = vst [vmem:[#allocation3 + $0x98] sm:$0x3] %v18414_v0  ;;  %v16667_v62 = vld [vmem:[#allocation5 + $0xd0] sm:$0xff]   ;;  %v731_v4 = vld [vmem:[%s18945_s28 + $0x48] sm:$0xff] }
 0x19c   : > { %6598 = vst [vmem:[#allocation2 + $0x10] sm:$0x3] %v18414_v0  ;;  %6596 = vst [vmem:[#allocation2] sm:$0xff] %v18414_v0  ;;  %15234 = vmatpush3.bf16.msra.mxu1 %v16606_v34  ;;  %v16650_v34 = vld [vmem:[#allocation5 + $0x228] sm:$0xff]  }
 0x19d   : > { %6597 = vst [vmem:[#allocation2 + $0x8] sm:$0xff] %v18414_v0  ;;  %755 = vst [vmem:[#allocation2 + $0x19] sm:$0xff] %v722_v24  ;;  %15235 = vmatprep.subr.bf16.mxu1 %v16609_v42  ;;  %15286 = vmatpush3.bf16.msra.mxu0 %v16632_v5  ;;  %v16641_v24 = vld [vmem:[#allocation5 + $0x210] sm:$0xff]  }
 0x19e   : > { %756 = vst [vmem:[#allocation2 + $0x21] sm:$0xff] %v723_v25  ;;  %757 = vst [vmem:[#allocation2 + $0x31] sm:$0xff] %v724_v38  ;;  %16179 = vmatprep.subr.bf16.mxu0 %v16635_v12  ;;  %v16637_v25 = vld [vmem:[#allocation5 + $0x188] sm:$0xff]   ;;  %v16653_v38 = vld [vmem:[#allocation5 + $0x230] sm:$0xff]  }
 0x19f   : > { %758 = vst [vmem:[#allocation2 + $0x39] sm:$0xff] %v725_v40  ;;  %759 = vst [vmem:[#allocation2 + $0x49] sm:$0xff] %v726_v54  ;;  %v16656_v40 = vld [vmem:[#allocation5 + $0x238] sm:$0xff]   ;;  %v16666_v5 = vld [vmem:[#allocation5 + $0x10] sm:$0xff]  }
 0x1a0   : > { %15236 = vmatpush3.bf16.msra.mxu1 %v16610_v43  ;;  %760 = vst [vmem:[#allocation2 + $0x51] sm:$0xff] %v727_v55  ;;  %762 = vst [vmem:[#allocation2 + $0x69] sm:$0xff] %v729_v33  ;;  %v16655_v54 = vld [vmem:[#allocation5 + $0x1b8] sm:$0xff]   ;;  %v16660_v55 = vld [vmem:[#allocation5 + $0x80] sm:$0xff]  }
 0x1a1   : > { %15237 = vmatprep.subr.bf16.mxu1 %v16613_v48  ;;  %v16649_v48 = vld [vmem:[#allocation5 + $0x1a8] sm:$0xff]   ;;  %764 = vst [vmem:[#allocation2 + $0x81] sm:$0xff] %v731_v4 }
 0x1a4   : > { %v809_v35 = vld [vmem:[#allocation2 + $0x18] sm:$0xff]  ;;  %15238 = vmatpush3.bf16.msra.mxu1 %v16614_v49 }
 0x1a5   : > { %v810_v36 = vld [vmem:[#allocation2 + $0x20] sm:$0xff]  ;;  %v811_v50 = vld [vmem:[#allocation2 + $0x30] sm:$0xff]  ;;  %15239 = vmatprep.subr.bf16.mxu1 %v16617_v52 }
 0x1a6   : > { %v18954_v44 = vpack.c.bf16 %v810_v36, %v809_v35  ;;  %v812_v51 = vld [vmem:[#allocation2 + $0x38] sm:$0xff]  ;;  %v813_v2 = vld [vmem:[#allocation2 + $0x48] sm:$0xff]  ;;  %v16645_v36 = vld [vmem:[#allocation5 + $0x1e0] sm:$0xff]  }
 0x1a7   : > { %v18962_v58 = vpack.c.bf16 %v812_v51, %v811_v50  ;;  %v814_v3 = vld [vmem:[#allocation2 + $0x50] sm:$0xff]  ;;  %v867_v8 = vld [vmem:[#allocation2 + $0x1a] sm:$0xff]  ;;  %v868_v9 = vld [vmem:[#allocation2 + $0x22] sm:$0xff] }
 0x1a8   : > { %1540 = vmatmul.mubr.bf16.gmra.mrb[4].mxu1 %v18954_v44  ;;  %v18968_v6 = vpack.c.bf16 %v814_v3, %v813_v2  ;;  %v875_v11 = vpack.c.bf16 %v868_v9, %v867_v8  ;;  %6599 = vst [vmem:[#allocation2 + $0x18] sm:$0xff] %v18414_v0  ;;  %6600 = vst [vmem:[#allocation2 + $0x20] sm:$0xff] %v18414_v0  ;;  %v869_v18 = vld [vmem:[#allocation2 + $0x32] sm:$0xff]  ;;  %v870_v19 = vld [vmem:[#allocation2 + $0x3a] sm:$0xff] }
 0x1a9   : > { %1547 = vmatprep.mubr.bf16.mxu1 %v18956_v46  ;;  %15240 = vmatpush3.bf16.msra.mxu1 %v16618_v57  ;;  %6601 = vst [vmem:[#allocation2 + $0x28] sm:$0x3] %v18414_v0  ;;  %v18978_v22 = vpack.c.bf16 %v870_v19, %v869_v18  ;;  %6602 = vst [vmem:[#allocation2 + $0x30] sm:$0xff] %v18414_v0  ;;  %v871_v26 = vld [vmem:[#allocation2 + $0x4a] sm:$0xff]  ;;  %v872_v27 = vld [vmem:[#allocation2 + $0x52] sm:$0xff] }
 0x1aa   : > { %15241 = vmatprep.subr.bf16.mxu1 %v16621_v59  ;;  %1661 = vmatprep.mubr.bf16.mxu0 %v875_v11  ;;  %6603 = vst [vmem:[#allocation2 + $0x38] sm:$0xff] %v18414_v0  ;;  %6604 = vst [vmem:[#allocation2 + $0x40] sm:$0x3] %v18414_v0  ;;  %v18987_v28 = vpack.c.bf16 %v872_v27, %v871_v26  ;;  %v16643_v35 = vld [vmem:[#allocation5 + $0x198] sm:$0xff]   ;;  %v874_v45 = vld [vmem:[#allocation2 + $0x6a] sm:$0xff] }
 0x1ab   : > { %1662 = vmatmul.mubr.bf16.vlgmr.msra.gmra.mrb[0].mxu0 %v18949_v32  ;;  %6605 = vst [vmem:[#allocation2 + $0x48] sm:$0xff] %v18414_v0  ;;  %6607 = vst [vmem:[#allocation2 + $0x58] sm:$0x3] %v18414_v0  ;;  %v728_v32 = vld [vmem:[%s18945_s28 + $0x30] sm:$0xff]  ;;  %v16659_v51 = vld [vmem:[#allocation5 + $0xc0] sm:$0xff]  }
 0x1ac   : > { %16180 = vmatpush3.bf16.msra.mxu0 %v16635_v12  ;;  %1669 = vmatprep.mubr.bf16.mxu0 %v18978_v22  ;;  %6606 = vst [vmem:[#allocation2 + $0x50] sm:$0xff] %v18414_v0  ;;  %761 = vst [vmem:[#allocation2 + $0x61] sm:$0xff] %v728_v32  ;;  %v18999_v47 = vpack.c.bf16 %v729_v33, %v728_v32  ;;  %v16651_v50 = vld [vmem:[#allocation5 + $0x1f0] sm:$0xff]   ;;  %v16658_v57 = vld [vmem:[#allocation5] sm:$0xff]  }
 0x1ad   : > { %15242 = vmatpush3.bf16.msra.mxu1 %v16622_v63  ;;  %16181 = vmatprep.subr.bf16.mxu0 %v16638_v15  ;;  %6610 = vst [vmem:[#allocation2 + $0x70] sm:$0x3] %v18414_v0  ;;  %v16652_v52 = vld [vmem:[#allocation5 + $0x1b0] sm:$0xff]   ;;  %v16661_v59 = vld [vmem:[#allocation5 + $0x48] sm:$0xff]   ;;  %v16671_v2 = vld [vmem:[#allocation5 + $0xd8] sm:$0xff]  }
 0x1ae   : > { %15243 = vmatprep.subr.bf16.mxu1 %v16625_v1  ;;  %v16665_v63 = vld [vmem:[#allocation5 + $0x50] sm:$0xff]   ;;  %v730_v3 = vld [vmem:[%s18945_s28 + $0x40] sm:$0xff]  ;;  %v16670_v8 = vld [vmem:[#allocation5 + $0x18] sm:$0xff]  }
 0x1af   : > { %v16668_v1 = vld [vmem:[#allocation5 + $0x90] sm:$0xff]   ;;  %763 = vst [vmem:[#allocation2 + $0x79] sm:$0xff] %v730_v3  ;;  %v16675_v9 = vld [vmem:[#allocation5 + $0xe0] sm:$0xff]   ;;  %v16687_v26 = vld [vmem:[#allocation5 + $0xf8] sm:$0xff]  }
 0x1b0   : > { %1548 = vmatmul.mubr.bf16.gmra.mrb[8].mxu1 %v18962_v58  ;;  %16182 = vmatpush3.bf16.msra.mxu0 %v16638_v15  ;;  %v16674_v12 = vld [vmem:[#allocation5 + $0x20] sm:$0xff]   ;;  %v16682_v27 = vld [vmem:[#allocation5 + $0x30] sm:$0xff]  }
 0x1b1   : > { %1555 = vmatprep.mubr.bf16.mxu1 %v18964_v60  ;;  %15244 = vmatpush3.bf16.msra.mxu1 %v16626_v7  ;;  %v16669_v7 = vld [vmem:[#allocation5 + $0x58] sm:$0xff]   ;;  %v911_v15 = vld [vmem:[#allocation2 + $0x82] sm:$0xff] }
 0x1b2   : > { %15245 = vmatprep.subr.bf16.mxu1 %v16629_v10  ;;  %16183 = vmatprep.subr.bf16.mxu0 %v16641_v24  ;;  %v16676_v10 = vld [vmem:[#allocation5 + $0xa0] sm:$0xff]  }
 0x1b3   : > { %1670 = vmatmul.mubr.bf16.gmra.mrb[4].mxu0 %v18956_v46  ;;  %v849_v41 = vld [vmem:[#allocation2 + $0x60] sm:$0xff]  ;;  %v850_v42 = vld [vmem:[#allocation2 + $0x68] sm:$0xff] }
 0x1b4   : > { %16184 = vmatpush3.bf16.msra.mxu0 %v16641_v24  ;;  %1677 = vmatprep.mubr.bf16.mxu0 %v18987_v28  ;;  %v873_v43 = vld [vmem:[#allocation2 + $0x62] sm:$0xff]  ;;  %v16683_v24 = vld [vmem:[#allocation5 + $0xf0] sm:$0xff]  }
 0x1b5   : > { %15246 = vmatpush3.bf16.msra.mxu1 %v16630_v13  ;;  %16185 = vmatprep.subr.bf16.mxu0 %v16644_v14  ;;  %6608 = vst [vmem:[#allocation2 + $0x60] sm:$0xff] %v18414_v0  ;;  %v19002_v49 = vpack.c.bf16 %v874_v45, %v873_v43  ;;  %6609 = vst [vmem:[#allocation2 + $0x68] sm:$0xff] %v18414_v0  ;;  %v16657_v0 = vld [vmem:[#allocation5 + $0x40] sm:$0xff]   ;;  %v16700_v43 = vld [vmem:[#allocation5 + $0x190] sm:$0xff]  }
 0x1b6   : > { %15311 = vmatprep.subr.bf16.mxu1 %v16633_v17  ;;  %v910_v13 = vld [vmem:[#allocation2 + $0x7a] sm:$0xff] }
 0x1b7   : > { %v886_v17 = vld [vmem:[#allocation2 + $0x78] sm:$0xff]  ;;  %v19020_v18 = vpack.c.bf16 %v911_v15, %v910_v13  ;;  %v887_v19 = vld [vmem:[#allocation2 + $0x80] sm:$0xff]  ;;  %v16714_v13 = vld [vmem:[#allocation5 + $0x130] sm:$0xff]  }
 0x1b8   : > { %1556 = vmatmul.mubr.bf16.gmra.mrb[12].mxu1 %v18968_v6  ;;  %16186 = vmatpush3.bf16.msra.mxu0 %v16644_v14  ;;  %v16681_v14 = vld [vmem:[#allocation5 + $0x70] sm:$0xff]   ;;  %v16689_v32 = vld [vmem:[#allocation5 + $0x140] sm:$0xff]  }
 0x1b9   : > { %1596 = vmatprep.mubr.bf16.mxu1 %v18954_v44  ;;  %16187 = vmatprep.subr.bf16.mxu0 %v16647_v31  ;;  %v18997_v44 = vpack.c.bf16 %v850_v42, %v849_v41  ;;  %v16692_v33 = vld [vmem:[#allocation5 + $0x180] sm:$0xff]   ;;  %v16699_v41 = vld [vmem:[#allocation5 + $0x1d0] sm:$0xff]  }
 0x1ba   : > { %v16697_v42 = vld [vmem:[#allocation5 + $0x150] sm:$0xff]  }
 0x1bb   : > { %1678 = vmatmul.mubr.bf16.gmra.mrb[8].mxu0 %v18964_v60  ;;  %v16716_v15 = vld [vmem:[#allocation5 + $0x1b0] sm:$0xff]  }
 0x1bc   : > { %16188 = vmatpush3.bf16.msra.mxu0 %v16647_v31  ;;  %1685 = vmatprep.mubr.bf16.mxu0 %v19002_v49  ;;  %v16686_v31 = vld [vmem:[#allocation5 + $0x38] sm:$0xff]  }
 0x1bd   : > { %16189 = vmatprep.subr.bf16.mxu0 %v16650_v34 }
 0x1c0   : > { %1597 = vmatmul.mubr.bf16.vlgmr.msra.gmra.mrb[16].mxu1 %v839_v20  ;;  %16190 = vmatpush3.bf16.msra.mxu0 %v16650_v34  ;;  %v19022_v20 = vld [vmem:[#allocation2 + $0x90] sm:$0xff] }
 0x1c1   : > { %15312 = vmatpush3.bf16.msra.mxu1 %v16634_v21  ;;  %1604 = vmatprep.mubr.bf16.mxu1 %v18962_v58  ;;  %6613 = vst [vmem:[#allocation2 + $0x88] sm:$0x3] %v19022_v20  ;;  %6611 = vst [vmem:[#allocation2 + $0x78] sm:$0xff] %v19022_v20  ;;  %v19026_v21 = vpack.c.bf16 %v731_v4, %v730_v3  ;;  %v732_v34 = vld [vmem:[%s18945_s28 + $0x50] sm:$0xff]  ;;  %v16711_v4 = vld [vmem:[#allocation5 + $0x1e8] sm:$0xff]  }
 0x1c2   : > { %15313 = vmatprep.subr.bf16.mxu1 %v16636_v23  ;;  %16191 = vmatprep.subr.bf16.mxu0 %v16653_v38  ;;  %6612 = vst [vmem:[#allocation2 + $0x80] sm:$0xff] %v19022_v20  ;;  %v19029_v23 = vpack.c.bf16 %v887_v19, %v886_v17  ;;  %765 = vst [vmem:[#allocation2 + $0x91] sm:$0xff] %v732_v34  ;;  %v16719_v17 = vld [vmem:[#allocation5 + $0x1f8] sm:$0xff]  }
 0x1c3   : > { %1686 = vmatmul.mubr.bf16.gmra.mrb[12].mxu0 %v18999_v47 }
 0x1c4   : > { %16192 = vmatpush3.bf16.msra.mxu0 %v16653_v38  ;;  %16195 = vmatprep.mubr.bf16.mxu0 %v18978_v22  ;;  %v16693_v38 = vld [vmem:[#allocation5 + $0x148] sm:$0xff]  }
 0x1c5   : > { %15314 = vmatpush3.bf16.msra.mxu1 %v16637_v25  ;;  %16193 = vmatprep.subr.bf16.mxu0 %v16656_v40  ;;  %v16678_v25 = vld [vmem:[#allocation5 + $0x28] sm:$0xff]  }
 0x1c6   : > { %15315 = vmatprep.subr.bf16.mxu1 %v16639_v16  ;;  %v16684_v16 = vld [vmem:[#allocation5 + $0xb0] sm:$0xff]  }
 0x1c8   : > { %1605 = vmatmul.mubr.bf16.gmra.mrb[20].mxu1 %v875_v11  ;;  %16194 = vmatpush3.bf16.msra.mxu0 %v16656_v40  ;;  %v16679_v11 = vld [vmem:[#allocation5 + $0xe8] sm:$0xff]  }
 0x1c9   : > { %15316 = vmatpush3.bf16.msra.mxu1 %v16640_v29  ;;  %1612 = vmatprep.mubr.bf16.mxu1 %v18968_v6  ;;  %v16688_v29 = vld [vmem:[#allocation5 + $0xb8] sm:$0xff]   ;;  %v16694_v40 = vld [vmem:[#allocation5 + $0x108] sm:$0xff]   ;;  %v2298_v45 = vld [vmem:[#allocation2 + $0x90] sm:$0xff] }
 0x1ca   : > { %15317 = vmatprep.subr.bf16.mxu1 %v16642_v30  ;;  %15403 = vmatprep.subr.bf16.mxu0 %v16659_v51  ;;  %v16691_v30 = vld [vmem:[#allocation5 + $0x1c0] sm:$0xff]   ;;  %v735_v51 = vld [vmem:[%s18945_s28 + $0x68] sm:$0xff] }
 0x1cb   : > { %16196 = vmatmul.mubr.bf16.vlgmr.msra.gmra.mrb[16].mxu0 %v18987_v28  ;;  %768 = vst [vmem:[#allocation2 + $0xb1] sm:$0xff] %v735_v51 }
 0x1cc   : > { %15404 = vmatpush3.bf16.msra.mxu0 %v16660_v55  ;;  %16199 = vmatprep.mubr.bf16.mxu0 %v19002_v49  ;;  %v16702_v55 = vld [vmem:[#allocation5 + $0x118] sm:$0xff]  }
 0x1cd   : > { %15318 = vmatpush3.bf16.msra.mxu1 %v16643_v35  ;;  %15405 = vmatprep.subr.bf16.mxu0 %v16663_v56  ;;  %v733_v35 = vld [vmem:[%s18945_s28 + $0x58] sm:$0xff] }
 0x1ce   : > { %15319 = vmatprep.subr.bf16.mxu1 %v16645_v36  ;;  %v16695_v36 = vld [vmem:[#allocation5 + $0x1c8] sm:$0xff]   ;;  %766 = vst [vmem:[#allocation2 + $0x99] sm:$0xff] %v733_v35  ;;  %v16704_v56 = vld [vmem:[#allocation5 + $0x198] sm:$0xff]  }
 0x1d0   : > { %1613 = vmatmul.mubr.bf16.gmra.mrb[24].mxu1 %v18978_v22  ;;  %15406 = vmatpush3.bf16.msra.mxu0 %v16664_v61  ;;  %v16680_v22 = vld [vmem:[#allocation5 + $0xa8] sm:$0xff]   ;;  %v16708_v61 = vld [vmem:[#allocation5 + $0x1a0] sm:$0xff]  }
 0x1d1   : > { %15320 = vmatpush3.bf16.msra.mxu1 %v16646_v37  ;;  %1620 = vmatprep.mubr.bf16.mxu1 %v18997_v44  ;;  %v16690_v37 = vld [vmem:[#allocation5 + $0x100] sm:$0xff]  }
 0x1d2   : > { %15321 = vmatprep.subr.bf16.mxu1 %v16648_v39  ;;  %15407 = vmatprep.subr.bf16.mxu0 %v16667_v62  ;;  %v16696_v39 = vld [vmem:[#allocation5 + $0x188] sm:$0xff]  }
 0x1d3   : > { %16200 = vmatmul.mubr.bf16.gmra.mrb[20].mxu0 %v19020_v18 }
 0x1d4   : > { %15408 = vmatpush3.bf16.msra.mxu0 %v16668_v1  ;;  %3049 = vmatprep.mubr.bf16.mxu0 %v19029_v23 }
 0x1d5   : > { %15322 = vmatpush3.bf16.msra.mxu1 %v16649_v48  ;;  %15409 = vmatprep.subr.bf16.mxu0 %v16671_v2  ;;  %v16709_v2 = vld [vmem:[#allocation5 + $0x168] sm:$0xff]  }
 0x1d6   : > { %15323 = vmatprep.subr.bf16.mxu1 %v16651_v50  ;;  %v734_v50 = vld [vmem:[%s18945_s28 + $0x60] sm:$0xff] }
 0x1d7   : > { %767 = vst [vmem:[#allocation2 + $0xa9] sm:$0xff] %v734_v50 }
 0x1d8   : > { %1621 = vmatmul.mubr.bf16.gmra.mrb[28].mxu1 %v18987_v28  ;;  %v16685_v28 = vld [vmem:[#allocation5 + $0x78] sm:$0xff]  }
 0x1d9   : > { %15324 = vmatpush3.bf16.msra.mxu1 %v16652_v52  ;;  %1726 = vmatprep.mubr.bf16.mxu1 %v18956_v46  ;;  %v16662_v46 = vld [vmem:[#allocation5 + $0x8] sm:$0xff]   ;;  %v19047_v52 = vpack.c.bf16 %v733_v35, %v732_v34 }
 0x1da   : > { %15325 = vmatprep.subr.bf16.mxu1 %v16654_v53  ;;  %v2287_v53 = vld [vmem:[#allocation2 + $0x92] sm:$0xff] }
 0x1db   : > { %6614 = vst [vmem:[#allocation2 + $0x90] sm:$0xff] %v19022_v20 }
 0x1dd   : > { %15326 = vmatpush3.bf16.msra.mxu1 %v16655_v54  ;;  %v2288_v54 = vld [vmem:[#allocation2 + $0x9a] sm:$0xff] }
 0x1de   : > { %15363 = vmatprep.subr.bf16.mxu1 %v16657_v0  ;;  %v16701_v0 = vld [vmem:[#allocation5 + $0x158] sm:$0xff]   ;;  %6616 = vst [vmem:[#allocation2 + $0xa0] sm:$0x3] %v19022_v20  ;;  %v2300_v62 = vld [vmem:[#allocation2 + $0xa8] sm:$0xff]  ;;  %v19055_v1 = vpack.c.bf16 %v2288_v54, %v2287_v53 }
 0x1df   : > { %v16742_v54 = vld [vmem:[#allocation5 + $0x238] sm:$0xff]  }
 0x1e0   : > { %1727 = vmatmul.mubr.bf16.vlgmr.msra.gmra.mrb[32].mxu1 %v18962_v58  ;;  %v16672_v58 = vld [vmem:[#allocation5 + $0x98] sm:$0xff]  }
 0x1e1   : > { %15364 = vmatpush3.bf16.msra.mxu1 %v16658_v57  ;;  %1734 = vmatprep.mubr.bf16.mxu1 %v18964_v60  ;;  %v16673_v60 = vld [vmem:[#allocation5 + $0x60] sm:$0xff]  }
 0x1e2   : > { %15365 = vmatprep.subr.bf16.mxu1 %v16661_v59  ;;  %15410 = vmatpush3.bf16.msra.mxu0 %v16672_v58  ;;  %v16707_v57 = vld [vmem:[#allocation5 + $0x1e0] sm:$0xff]   ;;  %v19065_v58 = vld [vmem:[%s18945_s28 + $0x78] sm:$0xff] }
 0x1e3   : > { %15411 = vmatprep.subr.bf16.mxu0 %v16675_v9  ;;  %v16705_v59 = vld [vmem:[#allocation5 + $0x160] sm:$0xff]   ;;  %770 = vst [vmem:[#allocation2 + $0xc9] sm:$0xff] %v19065_v58  ;;  %v2289_v9 = vld [vmem:[#allocation2 + $0xaa] sm:$0xff] }
 0x1e4   : > { %6617 = vst [vmem:[#allocation2 + $0xa8] sm:$0xff] %v19022_v20 }
 0x1e5   : > { %15366 = vmatpush3.bf16.msra.mxu1 %v16662_v46  ;;  %v16706_v46 = vld [vmem:[#allocation5 + $0x120] sm:$0xff]  }
 0x1e6   : > { %15367 = vmatprep.subr.bf16.mxu1 %v16665_v63  ;;  %15412 = vmatpush3.bf16.msra.mxu0 %v16676_v10  ;;  %v2301_v63 = vld [vmem:[#allocation2 + $0xb0] sm:$0xff] }
 0x1e7   : > { %15413 = vmatprep.subr.bf16.mxu0 %v16679_v11  ;;  %v19057_v3 = vpack.c.bf16 %v2301_v63, %v2300_v62  ;;  %v16715_v10 = vld [vmem:[#allocation5 + $0x1f0] sm:$0xff]   ;;  %v16710_v11 = vld [vmem:[#allocation5 + $0x128] sm:$0xff]   ;;  %v16746_v62 = vld [vmem:[#allocation5 + $0x80] sm:$0xff]  }
 0x1e8   : > { %1735 = vmatmul.mubr.bf16.gmra.mrb[36].mxu1 %v18968_v6  ;;  %v16677_v6 = vld [vmem:[#allocation5 + $0x68] sm:$0xff]   ;;  %v16748_v63 = vld [vmem:[#allocation5 + $0x100] sm:$0xff]  }
 0x1e9   : > { %15368 = vmatpush3.bf16.msra.mxu1 %v16666_v5  ;;  %1742 = vmatprep.mubr.bf16.mxu1 %v18999_v47  ;;  %v19060_v5 = vld [vmem:[%s18945_s28 + $0x70] sm:$0xff] }
 0x1ea   : > { %15369 = vmatprep.subr.bf16.mxu1 %v16669_v7  ;;  %15414 = vmatpush3.bf16.msra.mxu0 %v16680_v22  ;;  %v19062_v7 = vpack.c.bf16 %v735_v51, %v734_v50  ;;  %769 = vst [vmem:[#allocation2 + $0xc1] sm:$0xff] %v19060_v5  ;;  %v19091_v34 = vpack.c.bf16 %v19065_v58, %v19060_v5  ;;  %v16739_v50 = vld [vmem:[#allocation5 + $0x230] sm:$0xff]  }
 0x1eb   : > { %15415 = vmatprep.subr.bf16.mxu0 %v16683_v24  ;;  %v740_v5 = vld [vmem:[%s18945_s28 + $0x90] sm:$0xff] }
 0x1ec   : > { %v16754_v58 = vld [vmem:[#allocation5 + $0x90] sm:$0xff]   ;;  %773 = vst [vmem:[#allocation2 + $0xf1] sm:$0xff] %v740_v5 }
 0x1ed   : > { %15370 = vmatpush3.bf16.msra.mxu1 %v16670_v8  ;;  %v16712_v8 = vld [vmem:[#allocation5 + $0x1a8] sm:$0xff]  }
 0x1ee   : > { %15371 = vmatprep.subr.bf16.mxu1 %v16673_v60  ;;  %15416 = vmatpush3.bf16.msra.mxu0 %v16684_v16  ;;  %v2290_v60 = vld [vmem:[#allocation2 + $0xb2] sm:$0xff] }
 0x1ef   : > { %15417 = vmatprep.subr.bf16.mxu0 %v16687_v26  ;;  %6618 = vst [vmem:[#allocation2 + $0xb0] sm:$0xff] %v19022_v20  ;;  %6619 = vst [vmem:[#allocation2 + $0xb8] sm:$0x3] %v19022_v20  ;;  %v19076_v22 = vpack.c.bf16 %v2290_v60, %v2289_v9  ;;  %v16718_v16 = vld [vmem:[#allocation5 + $0x138] sm:$0xff]   ;;  %v16721_v26 = vld [vmem:[#allocation5 + $0x200] sm:$0xff]  }
 0x1f0   : > { %1743 = vmatmul.mubr.bf16.gmra.mrb[40].mxu1 %v18997_v44  ;;  %v16755_v9 = vld [vmem:[#allocation5 + $0x150] sm:$0xff]  }
 0x1f1   : > { %15372 = vmatpush3.bf16.msra.mxu1 %v16674_v12  ;;  %1750 = vmatprep.mubr.bf16.mxu1 %v19026_v21  ;;  %v16713_v12 = vld [vmem:[#allocation5 + $0x170] sm:$0xff]   ;;  %v2302_v19 = vld [vmem:[#allocation2 + $0xc0] sm:$0xff] }
 0x1f2   : > { %15373 = vmatprep.subr.bf16.mxu1 %v16677_v6  ;;  %15418 = vmatpush3.bf16.msra.mxu0 %v16688_v29  ;;  %v2303_v6 = vld [vmem:[#allocation2 + $0xc8] sm:$0xff]  ;;  %v16756_v60 = vld [vmem:[#allocation5 + $0x110] sm:$0xff]  }
 0x1f3   : > { %15483 = vmatprep.subr.bf16.mxu0 %v16691_v30  ;;  %v19078_v24 = vpack.c.bf16 %v2303_v6, %v2302_v19  ;;  %v16725_v29 = vld [vmem:[#allocation5 + $0x48] sm:$0xff]   ;;  %v16727_v30 = vld [vmem:[#allocation5 + $0x210] sm:$0xff]   ;;  %v16763_v6 = vld [vmem:[#allocation5 + $0x160] sm:$0xff]  }
 0x1f4   : > { %v2326_v35 = vld [vmem:[#allocation2 + $0xc2] sm:$0xff]  ;;  %v3709_v19 = vld [vmem:[#allocation2 + $0xf0] sm:$0xff] }
 0x1f5   : > { %15374 = vmatpush3.bf16.msra.mxu1 %v16678_v25  ;;  %3050 = vmatmul.mubr.bf16.vlgmr.msra.gmra.mrb[24].mxu0 %v19002_v49  ;;  %v16703_v49 = vld [vmem:[#allocation5 + $0x1d8] sm:$0xff]   ;;  %6620 = vst [vmem:[#allocation2 + $0xc0] sm:$0xff] %v19022_v20 }
 0x1f6   : > { %15375 = vmatprep.subr.bf16.mxu1 %v16681_v14  ;;  %15484 = vmatpush3.bf16.msra.mxu0 %v16692_v33  ;;  %v16720_v25 = vld [vmem:[#allocation5 + $0x1b8] sm:$0xff]   ;;  %v16722_v14 = vld [vmem:[#allocation5 + $0x40] sm:$0xff]  }
 0x1f7   : > { %15485 = vmatprep.subr.bf16.mxu0 %v16695_v36  ;;  %v16730_v33 = vld [vmem:[#allocation5 + $0x218] sm:$0xff]   ;;  %v2327_v36 = vld [vmem:[#allocation2 + $0xca] sm:$0xff] }
 0x1f8   : > { %1751 = vmatmul.mubr.bf16.gmra.mrb[44].mxu1 %v19029_v23  ;;  %6621 = vst [vmem:[#allocation2 + $0xc8] sm:$0xff] %v19022_v20  ;;  %6622 = vst [vmem:[#allocation2 + $0xd0] sm:$0x3] %v19022_v20 }
 0x1f9   : > { %15376 = vmatpush3.bf16.msra.mxu1 %v16682_v27  ;;  %2984 = vmatprep.mubr.bf16.mxu1 %v18999_v47  ;;  %v2299_v47 = vld [vmem:[#allocation2 + $0x98] sm:$0xff]  ;;  %v16724_v27 = vld [vmem:[#allocation5 + $0x208] sm:$0xff]  }
 0x1fa   : > { %15377 = vmatprep.subr.bf16.mxu1 %v16685_v28  ;;  %15486 = vmatpush3.bf16.msra.mxu0 %v16696_v39  ;;  %v19042_v48 = vpack.c.bf16 %v2299_v47, %v2298_v45  ;;  %6615 = vst [vmem:[#allocation2 + $0x98] sm:$0xff] %v19022_v20  ;;  %v16723_v28 = vld [vmem:[#allocation5] sm:$0xff]   ;;  %v739_v39 = vld [vmem:[%s18945_s28 + $0x88] sm:$0xff] }
 0x1fb   : > { %15487 = vmatprep.subr.bf16.mxu0 %v16699_v41  ;;  %772 = vst [vmem:[#allocation2 + $0xe1] sm:$0xff] %v739_v39  ;;  %v16734_v41 = vld [vmem:[#allocation5 + $0x60] sm:$0xff]  }
 0x1fc   : > { %3057 = vmatprep.mubr.bf16.mxu0 %v19042_v48  ;;  %v16735_v45 = vld [vmem:[#allocation5 + $0x20] sm:$0xff]  }
 0x1fd   : > { %15378 = vmatpush3.bf16.msra.mxu1 %v16686_v31  ;;  %3058 = vmatmul.mubr.bf16.gmra.mrb[28].mxu0 %v19020_v18  ;;  %v16728_v31 = vld [vmem:[#allocation5 + $0x50] sm:$0xff]  }
 0x1fe   : > { %15443 = vmatprep.subr.bf16.mxu1 %v16689_v32  ;;  %15488 = vmatpush3.bf16.msra.mxu0 %v16700_v43  ;;  %v16729_v32 = vld [vmem:[#allocation5 + $0x10] sm:$0xff]   ;;  %v16736_v43 = vld [vmem:[#allocation5 + $0x228] sm:$0xff]  }
 0x1ff   : > { %15489 = vmatprep.subr.bf16.mxu0 %v16703_v49  ;;  %3065 = vmatprep.mubr.bf16.mxu0 %v19057_v3  ;;  %v16738_v49 = vld [vmem:[#allocation5 + $0x28] sm:$0xff]  }
 0x200   : > { %2985 = vmatmul.mubr.bf16.vlgmr.msra.gmra.mrb[48].mxu1 %v18997_v44  ;;  %v16698_v44 = vld [vmem:[#allocation5 + $0x110] sm:$0xff]  }
 0x201   : > { %15444 = vmatpush3.bf16.msra.mxu1 %v16690_v37  ;;  %2992 = vmatprep.mubr.bf16.mxu1 %v19026_v21  ;;  %v16733_v37 = vld [vmem:[#allocation5 + $0x220] sm:$0xff]  }
 0x202   : > { %15445 = vmatprep.subr.bf16.mxu1 %v16693_v38  ;;  %15490 = vmatpush3.bf16.msra.mxu0 %v16704_v56  ;;  %v738_v38 = vld [vmem:[%s18945_s28 + $0x80] sm:$0xff] }
 0x203   : > { %15491 = vmatprep.subr.bf16.mxu0 %v16707_v57  ;;  %771 = vst [vmem:[#allocation2 + $0xd9] sm:$0xff] %v738_v38  ;;  %v19104_v47 = vpack.c.bf16 %v739_v39, %v738_v38  ;;  %v16744_v57 = vld [vmem:[#allocation5 + $0x38] sm:$0xff]  }
 0x204   : > { %v16775_v38 = vld [vmem:[#allocation5 + $0x178] sm:$0xff]  }
 0x205   : > { %15446 = vmatpush3.bf16.msra.mxu1 %v16694_v40  ;;  %3066 = vmatmul.mubr.bf16.gmra.mrb[32].mxu0 %v19055_v1  ;;  %v16732_v40 = vld [vmem:[#allocation5 + $0x18] sm:$0xff]  }
 0x206   : > { %15447 = vmatprep.subr.bf16.mxu1 %v16697_v42  ;;  %15492 = vmatpush3.bf16.msra.mxu0 %v16708_v61  ;;  %v19102_v42 = vpack.c.bf16 %v2327_v36, %v2326_v35  ;;  %v16745_v61 = vld [vmem:[#allocation5 + $0xc0] sm:$0xff]   ;;  %v16773_v36 = vld [vmem:[#allocation5 + $0xf8] sm:$0xff]  }
 0x207   : > { %15493 = vmatprep.subr.bf16.mxu0 %v16711_v4  ;;  %3073 = vmatprep.mubr.bf16.mxu0 %v19078_v24  ;;  %v16753_v4 = vld [vmem:[#allocation5 + $0xd0] sm:$0xff]   ;;  %v16776_v39 = vld [vmem:[#allocation5 + $0x138] sm:$0xff]  }
 0x208   : > { %2993 = vmatmul.mubr.bf16.gmra.mrb[52].mxu1 %v19029_v23  ;;  %v16717_v23 = vld [vmem:[#allocation5 + $0x178] sm:$0xff]  }
 0x209   : > { %15448 = vmatpush3.bf16.msra.mxu1 %v16698_v44  ;;  %3000 = vmatprep.mubr.bf16.mxu1 %v19047_v52 }
 0x20a   : > { %15449 = vmatprep.subr.bf16.mxu1 %v16701_v0  ;;  %15494 = vmatpush3.bf16.msra.mxu0 %v16712_v8  ;;  %v2339_v51 = vld [vmem:[#allocation2 + $0xd8] sm:$0xff]  ;;  %v2340_v44 = vld [vmem:[#allocation2 + $0xe0] sm:$0xff]  ;;  %v16741_v0 = vld [vmem:[#allocation5 + $0x30] sm:$0xff]  }
 0x20b   : > { %15495 = vmatprep.subr.bf16.mxu0 %v16715_v10  ;;  %v2344_v53 = vpack.c.bf16 %v2340_v44, %v2339_v51  ;;  %v2363_v56 = vld [vmem:[#allocation2 + $0xda] sm:$0xff]  ;;  %v16781_v51 = vld [vmem:[#allocation5 + $0x188] sm:$0xff]  }
 0x20c   : > { %6623 = vst [vmem:[#allocation2 + $0xd8] sm:$0xff] %v19022_v20  ;;  %v16757_v10 = vld [vmem:[#allocation5 + $0xd8] sm:$0xff]  }
 0x20d   : > { %15450 = vmatpush3.bf16.msra.mxu1 %v16702_v55  ;;  %3074 = vmatmul.mubr.bf16.gmra.mrb[36].mxu0 %v19076_v22  ;;  %v16743_v55 = vld [vmem:[#allocation5 + $0x78] sm:$0xff]  }
 0x20e   : > { %15451 = vmatprep.subr.bf16.mxu1 %v16705_v59  ;;  %15496 = vmatpush3.bf16.msra.mxu0 %v16716_v15  ;;  %v2364_v59 = vld [vmem:[#allocation2 + $0xe2] sm:$0xff]  ;;  %v16760_v15 = vld [vmem:[#allocation5 + $0x118] sm:$0xff]  }
 0x20f   : > { %15497 = vmatprep.subr.bf16.mxu0 %v16719_v17  ;;  %3179 = vmatprep.mubr.bf16.mxu0 %v19047_v52  ;;  %6624 = vst [vmem:[#allocation2 + $0xe0] sm:$0xff] %v19022_v20  ;;  %6625 = vst [vmem:[#allocation2 + $0xe8] sm:$0x3] %v19022_v20  ;;  %v16752_v20 = vld [vmem:[#allocation5 + $0x108] sm:$0xff]   ;;  %v19122_v8 = vpack.c.bf16 %v2364_v59, %v2363_v56  ;;  %v16761_v17 = vld [vmem:[#allocation5 + $0xe0] sm:$0xff]  }
 0x210   : > { %3001 = vmatmul.mubr.bf16.gmra.mrb[56].mxu1 %v19042_v48  ;;  %v16786_v56 = vld [vmem:[#allocation5 + $0x1d8] sm:$0xff]   ;;  %v744_v59 = vld [vmem:[%s18945_s28 + $0xb0] sm:$0xff] }
 0x211   : > { %15452 = vmatpush3.bf16.msra.mxu1 %v16706_v46  ;;  %3008 = vmatprep.mubr.bf16.mxu1 %v19062_v7  ;;  %v16747_v46 = vld [vmem:[#allocation5 + $0x140] sm:$0xff]  }
 0x212   : > { %15453 = vmatprep.subr.bf16.mxu1 %v16709_v2  ;;  %15498 = vmatpush3.bf16.msra.mxu0 %v16720_v25  ;;  %v16750_v2 = vld [vmem:[#allocation5 + $0x88] sm:$0xff]  }
 0x213   : > { %15535 = vmatprep.subr.bf16.mxu0 %v16722_v14  ;;  %v743_v25 = vld [vmem:[%s18945_s28 + $0xa8] sm:$0xff]  ;;  %v16764_v14 = vld [vmem:[#allocation5 + $0x120] sm:$0xff]  }
 0x214   : > { %776 = vst [vmem:[#allocation2 + $0x111] sm:$0xff] %v743_v25 }
 0x215   : > { %15454 = vmatpush3.bf16.msra.mxu1 %v16710_v11  ;;  %3180 = vmatmul.mubr.bf16.vlgmr.msra.gmra.mrb[40].mxu0 %v19042_v48  ;;  %v16737_v48 = vld [vmem:[#allocation5 + $0x68] sm:$0xff]   ;;  %v16758_v11 = vld [vmem:[#allocation5 + $0x98] sm:$0xff]  }
 0x216   : > { %15455 = vmatprep.subr.bf16.mxu1 %v16713_v12  ;;  %15536 = vmatpush3.bf16.msra.mxu0 %v16723_v28 }
 0x217   : > { %3187 = vmatprep.mubr.bf16.mxu0 %v19062_v7  ;;  %15537 = vmatprep.subr.bf16.mxu0 %v16725_v29  ;;  %v16767_v29 = vld [vmem:[#allocation5 + $0x168] sm:$0xff]  }
 0x218   : > { %3009 = vmatmul.mubr.bf16.gmra.mrb[60].mxu1 %v19057_v3 }
 0x219   : > { %15456 = vmatpush3.bf16.msra.mxu1 %v16714_v13  ;;  %3114 = vmatprep.mubr.bf16.mxu1 %v19020_v18  ;;  %v16726_v18 = vld [vmem:[#allocation5 + $0x8] sm:$0xff]   ;;  %v16759_v13 = vld [vmem:[#allocation5 + $0x158] sm:$0xff]  }
 0x21a   : > { %15457 = vmatprep.subr.bf16.mxu1 %v16717_v23  ;;  %15538 = vmatpush3.bf16.msra.mxu0 %v16726_v18  ;;  %v16769_v18 = vld [vmem:[#allocation5 + $0xf0] sm:$0xff]  }
 0x21b   : > { %15539 = vmatprep.subr.bf16.mxu0 %v16728_v31  ;;  %v16770_v31 = vld [vmem:[#allocation5 + $0xb0] sm:$0xff]  }
 0x21d   : > { %15458 = vmatpush3.bf16.msra.mxu1 %v16718_v16  ;;  %3188 = vmatmul.mubr.bf16.gmra.mrb[44].mxu0 %v19057_v3  ;;  %v16751_v3 = vld [vmem:[#allocation5 + $0x148] sm:$0xff]  }
 0x21e   : > { %16203 = vmatprep.subr.bf16.mxu1 %v16721_v26  ;;  %15540 = vmatpush3.bf16.msra.mxu0 %v16729_v32 }
 0x21f   : > { %3195 = vmatprep.mubr.bf16.mxu0 %v19091_v34 }
 0x220   : > { %3115 = vmatmul.mubr.bf16.vlgmr.msra.gmra.mrb[64].mxu1 %v19026_v21  ;;  %v16731_v21 = vld [vmem:[#allocation5 + $0x58] sm:$0xff]  }
 0x221   : > { %16204 = vmatpush3.bf16.msra.mxu1 %v16721_v26  ;;  %3122 = vmatprep.mubr.bf16.mxu1 %v19055_v1  ;;  %v16765_v26 = vld [vmem:[#allocation5 + $0xe8] sm:$0xff]  }
 0x222   : > { %16205 = vmatprep.subr.bf16.mxu1 %v16724_v27  ;;  %15541 = vmatprep.subr.bf16.mxu0 %v16731_v21  ;;  %v16771_v21 = vld [vmem:[#allocation5 + $0x170] sm:$0xff]  }
 0x223   : > { %15542 = vmatpush3.bf16.msra.mxu0 %v16732_v40  ;;  %v16777_v40 = vld [vmem:[#allocation5 + $0x1c0] sm:$0xff]  }
 0x224   : > { %15543 = vmatprep.subr.bf16.mxu0 %v16734_v41 }
 0x225   : > { %16206 = vmatpush3.bf16.msra.mxu1 %v16724_v27  ;;  %3196 = vmatmul.mubr.bf16.gmra.mrb[48].mxu0 %v19078_v24  ;;  %v16766_v27 = vld [vmem:[#allocation5 + $0xa8] sm:$0xff]  }
 0x226   : > { %16207 = vmatprep.subr.bf16.mxu1 %v16727_v30  ;;  %3203 = vmatprep.mubr.bf16.mxu0 %v19104_v47 }
 0x227   : > { %15544 = vmatpush3.bf16.msra.mxu0 %v16735_v45  ;;  %v16779_v45 = vld [vmem:[#allocation5 + $0x200] sm:$0xff]  }
 0x228   : > { %3123 = vmatmul.mubr.bf16.gmra.mrb[68].mxu1 %v19047_v52  ;;  %15545 = vmatprep.subr.bf16.mxu0 %v16737_v48  ;;  %v16740_v52 = vld [vmem:[#allocation5 + $0x70] sm:$0xff]   ;;  %v19140_v48 = vld [vmem:[#allocation2 + $0x120] sm:$0xff] }
 0x229   : > { %16208 = vmatpush3.bf16.msra.mxu1 %v16727_v30  ;;  %3130 = vmatprep.mubr.bf16.mxu1 %v19076_v22  ;;  %v16768_v30 = vld [vmem:[#allocation5 + $0x128] sm:$0xff]   ;;  %777 = vst [vmem:[#allocation2 + $0x121] sm:$0xff] %v744_v59 }
 0x22a   : > { %16209 = vmatprep.subr.bf16.mxu1 %v16730_v33 }
 0x22b   : > { %15546 = vmatpush3.bf16.msra.mxu0 %v16738_v49  ;;  %v16778_v49 = vld [vmem:[#allocation5 + $0x180] sm:$0xff]  }
 0x22c   : > { %15547 = vmatprep.subr.bf16.mxu0 %v16740_v52  ;;  %v16782_v52 = vld [vmem:[#allocation5 + $0x208] sm:$0xff]  }
 0x22d   : > { %16210 = vmatpush3.bf16.msra.mxu1 %v16730_v33  ;;  %3204 = vmatmul.mubr.bf16.gmra.mrb[52].mxu0 %v2344_v53 }
 0x22e   : > { %16211 = vmatprep.subr.bf16.mxu1 %v16733_v37  ;;  %4430 = vmatprep.mubr.bf16.mxu0 %v19091_v34 }
 0x22f   : > { %15548 = vmatpush3.bf16.msra.mxu0 %v16741_v0  ;;  %v3771_v0 = vld [vmem:[#allocation2 + $0x112] sm:$0xff] }
 0x230   : > { %3131 = vmatmul.mubr.bf16.gmra.mrb[72].mxu1 %v19062_v7  ;;  %15549 = vmatprep.subr.bf16.mxu0 %v16743_v55  ;;  %v741_v7 = vld [vmem:[%s18945_s28 + $0x98] sm:$0xff]  ;;  %6631 = vst [vmem:[#allocation2 + $0x118] sm:$0x3] %v19140_v48  ;;  %v16784_v55 = vld [vmem:[#allocation5 + $0x190] sm:$0xff]  }
 0x231   : > { %16212 = vmatpush3.bf16.msra.mxu1 %v16733_v37  ;;  %3138 = vmatprep.mubr.bf16.mxu1 %v19102_v42  ;;  %774 = vst [vmem:[#allocation2 + $0xf9] sm:$0xff] %v741_v7  ;;  %v19124_v12 = vpack.c.bf16 %v741_v7, %v740_v5  ;;  %v16774_v37 = vld [vmem:[#allocation5 + $0xb8] sm:$0xff]  }
 0x232   : > { %16213 = vmatprep.subr.bf16.mxu1 %v16736_v43 }
 0x233   : > { %15550 = vmatpush3.bf16.msra.mxu0 %v16744_v57 }
 0x234   : > { %15615 = vmatprep.subr.bf16.mxu0 %v16747_v46  ;;  %v16789_v46 = vld [vmem:[#allocation5 + $0x1e0] sm:$0xff]  }
 0x235   : > { %16214 = vmatpush3.bf16.msra.mxu1 %v16736_v43 }
 0x236   : > { %16215 = vmatprep.subr.bf16.mxu1 %v16739_v50  ;;  %4431 = vmatmul.mubr.bf16.vlgmr.msra.gmra.mrb[56].mxu0 %v19078_v24  ;;  %v742_v24 = vld [vmem:[%s18945_s28 + $0xa0] sm:$0xff] }
 0x237   : > { %15616 = vmatpush3.bf16.msra.mxu0 %v16748_v63  ;;  %4438 = vmatprep.mubr.bf16.mxu0 %v19104_v47  ;;  %775 = vst [vmem:[#allocation2 + $0x109] sm:$0xff] %v742_v24  ;;  %v19132_v28 = vpack.c.bf16 %v743_v25, %v742_v24  ;;  %v16791_v63 = vld [vmem:[#allocation5 + $0x220] sm:$0xff]   ;;  %v16800_v25 = vld [vmem:[#allocation5 + $0x238] sm:$0xff]  }
 0x238   : > { %3139 = vmatmul.mubr.bf16.gmra.mrb[76].mxu1 %v19091_v34  ;;  %15617 = vmatprep.subr.bf16.mxu0 %v16751_v3  ;;  %v3710_v23 = vld [vmem:[#allocation2 + $0xf8] sm:$0xff]  ;;  %v16772_v34 = vld [vmem:[#allocation5 + $0x130] sm:$0xff]   ;;  %v16794_v3 = vld [vmem:[#allocation5 + $0x228] sm:$0xff]  }
 0x239   : > { %16216 = vmatpush3.bf16.msra.mxu1 %v16739_v50  ;;  %16219 = vmatprep.mubr.bf16.mxu1 %v19055_v1  ;;  %v16749_v1 = vld [vmem:[#allocation5 + $0xc8] sm:$0xff]   ;;  %v19130_v16 = vpack.c.bf16 %v3710_v23, %v3709_v19  ;;  %v3768_v41 = vld [vmem:[#allocation2 + $0xf2] sm:$0xff]  ;;  %v3769_v43 = vld [vmem:[#allocation2 + $0xfa] sm:$0xff] }
 0x23a   : > { %16217 = vmatprep.subr.bf16.mxu1 %v16742_v54  ;;  %6626 = vst [vmem:[#allocation2 + $0xf0] sm:$0xff] %v19140_v48  ;;  %6627 = vst [vmem:[#allocation2 + $0xf8] sm:$0xff] %v19140_v48  ;;  %v16780_v50 = vld [vmem:[#allocation5 + $0x1c8] sm:$0xff]   ;;  %v19145_v44 = vpack.c.bf16 %v3769_v43, %v3768_v41  ;;  %v16796_v19 = vld [vmem:[#allocation5 + $0x1b0] sm:$0xff]  }
 0x23b   : > { %15618 = vmatpush3.bf16.msra.mxu0 %v16752_v20  ;;  %6628 = vst [vmem:[#allocation2 + $0x100] sm:$0x3] %v19140_v48  ;;  %v3748_v20 = vld [vmem:[#allocation2 + $0x120] sm:$0xff]  ;;  %v16798_v23 = vld [vmem:[#allocation5 + $0x1f8] sm:$0xff]   ;;  %v16810_v41 = vld [vmem:[#allocation5 + $0x10] sm:$0xff]  }
 0x23c   : > { %15619 = vmatprep.subr.bf16.mxu0 %v16755_v9  ;;  %v16811_v43 = vld [vmem:[#allocation5 + $0xd0] sm:$0xff]  }
 0x23d   : > { %16218 = vmatpush3.bf16.msra.mxu1 %v16742_v54 }
 0x23e   : > { %15575 = vmatprep.subr.bf16.mxu1 %v16745_v61  ;;  %4439 = vmatmul.mubr.bf16.gmra.mrb[60].mxu0 %v2344_v53  ;;  %v3711_v32 = vld [vmem:[#allocation2 + $0x108] sm:$0xff]  ;;  %v3712_v33 = vld [vmem:[#allocation2 + $0x110] sm:$0xff]  ;;  %v745_v61 = vld [vmem:[%s18945_s28 + $0xb8] sm:$0xff] }
 0x23f   : > { %15620 = vmatpush3.bf16.msra.mxu0 %v16756_v60  ;;  %4446 = vmatprep.mubr.bf16.mxu0 %v19124_v12  ;;  %v19136_v35 = vpack.c.bf16 %v3712_v33, %v3711_v32  ;;  %v3770_v54 = vld [vmem:[#allocation2 + $0x10a] sm:$0xff]  ;;  %778 = vst [vmem:[#allocation2 + $0x129] sm:$0xff] %v745_v61  ;;  %v16804_v33 = vld [vmem:[#allocation5 + $0x80] sm:$0xff]  }
 0x240   : > { %16220 = vmatmul.mubr.bf16.vlgmr.msra.gmra.mrb[80].mxu1 %v19076_v22  ;;  %v16762_v22 = vld [vmem:[#allocation5 + $0xa0] sm:$0xff]   ;;  %15621 = vmatprep.subr.bf16.mxu0 %v16759_v13  ;;  %6629 = vst [vmem:[#allocation2 + $0x108] sm:$0xff] %v19140_v48  ;;  %6630 = vst [vmem:[#allocation2 + $0x110] sm:$0xff] %v19140_v48  ;;  %v19154_v57 = vpack.c.bf16 %v3771_v0, %v3770_v54  ;;  %v16795_v60 = vld [vmem:[#allocation5 + $0x1f0] sm:$0xff]  }
 0x241   : > { %15576 = vmatpush3.bf16.msra.mxu1 %v16746_v62  ;;  %16223 = vmatprep.mubr.bf16.mxu1 %v19102_v42  ;;  %v16787_v62 = vld [vmem:[#allocation5 + $0x198] sm:$0xff]   ;;  %v16797_v13 = vld [vmem:[#allocation5 + $0x230] sm:$0xff]  }
 0x242   : > { %15577 = vmatprep.subr.bf16.mxu1 %v16749_v1  ;;  %v16790_v1 = vld [vmem:[#allocation5 + $0x1a0] sm:$0xff]   ;;  %v16814_v54 = vld [vmem:[#allocation5 + $0x18] sm:$0xff]  }
 0x243   : > { %15622 = vmatpush3.bf16.msra.mxu0 %v16760_v15  ;;  %v16815_v0 = vld [vmem:[#allocation5 + $0xd8] sm:$0xff]  }
 0x244   : > { %15623 = vmatprep.subr.bf16.mxu0 %v16763_v6 }
 0x245   : > { %15578 = vmatpush3.bf16.msra.mxu1 %v16750_v2  ;;  %v16792_v2 = vld [vmem:[#allocation5 + $0x1e8] sm:$0xff]  }
 0x246   : > { %15579 = vmatprep.subr.bf16.mxu1 %v16753_v4  ;;  %4447 = vmatmul.mubr.bf16.gmra.mrb[64].mxu0 %v19130_v16  ;;  %v3749_v4 = vld [vmem:[#allocation2 + $0x128] sm:$0xff] }
 0x247   : > { %15624 = vmatpush3.bf16.msra.mxu0 %v16764_v14  ;;  %4454 = vmatprep.mubr.bf16.mxu0 %v19132_v28  ;;  %v3772_v5 = vld [vmem:[#allocation2 + $0x122] sm:$0xff]  ;;  %v3773_v7 = vld [vmem:[#allocation2 + $0x12a] sm:$0xff]  ;;  %v16799_v14 = vld [vmem:[#allocation5 + $0x1b8] sm:$0xff]  }
 0x248   : > { %16224 = vmatmul.mubr.bf16.gmra.mrb[84].mxu1 %v19122_v8  ;;  %15625 = vmatprep.subr.bf16.mxu0 %v16767_v29  ;;  %v19165_v9 = vpack.c.bf16 %v3773_v7, %v3772_v5  ;;  %6632 = vst [vmem:[#allocation2 + $0x120] sm:$0xff] %v19140_v48  ;;  %6633 = vst [vmem:[#allocation2 + $0x128] sm:$0xff] %v19140_v48  ;;  %v16802_v29 = vld [vmem:[#allocation5] sm:$0xff]   ;;  %v16821_v5 = vld [vmem:[#allocation5 + $0x68] sm:$0xff]  }
 0x249   : > { %15580 = vmatpush3.bf16.msra.mxu1 %v16754_v58  ;;  %4495 = vmatprep.mubr.bf16.mxu1 %v2344_v53  ;;  %v16783_v53 = vld [vmem:[#allocation5 + $0x1d0] sm:$0xff]   ;;  %v16793_v58 = vld [vmem:[#allocation5 + $0x1a8] sm:$0xff]   ;;  %6634 = vst [vmem:[#allocation2 + $0x130] sm:$0x3] %v19140_v48 }
 0x24a   : > { %15581 = vmatprep.subr.bf16.mxu1 %v16757_v10 }
 0x24b   : > { %15626 = vmatpush3.bf16.msra.mxu0 %v16768_v30 }
 0x24c   : > { %15627 = vmatprep.subr.bf16.mxu0 %v16771_v21 }
 0x24d   : > { %15582 = vmatpush3.bf16.msra.mxu1 %v16758_v11 }
 0x24e   : > { %15583 = vmatprep.subr.bf16.mxu1 %v16761_v17  ;;  %4455 = vmatmul.mubr.bf16.gmra.mrb[68].mxu0 %v19136_v35 }
 0x24f   : > { %15628 = vmatpush3.bf16.msra.mxu0 %v16772_v34  ;;  %4560 = vmatprep.mubr.bf16.mxu0 %v19122_v8 }
 0x250   : > { %15629 = vmatprep.subr.bf16.mxu0 %v16775_v38  ;;  %v16808_v38 = vld [vmem:[#allocation5 + $0x88] sm:$0xff]  }
 0x251   : > { %15584 = vmatpush3.bf16.msra.mxu1 %v16762_v22  ;;  %v19175_v22 = vpack.c.bf16 %v745_v61, %v744_v59 }
 0x252   : > { %15585 = vmatprep.subr.bf16.mxu1 %v16765_v26  ;;  %v16801_v26 = vld [vmem:[#allocation5 + $0x40] sm:$0xff]  }
 0x253   : > { %15630 = vmatpush3.bf16.msra.mxu0 %v16776_v39  ;;  %v16809_v39 = vld [vmem:[#allocation5 + $0x50] sm:$0xff]  }
 0x254   : > { %16227 = vmatprep.subr.bf16.mxu0 %v16779_v45 }
 0x255   : > { %15586 = vmatpush3.bf16.msra.mxu1 %v16766_v27 }
 0x256   : > { %15587 = vmatprep.subr.bf16.mxu1 %v16769_v18  ;;  %4561 = vmatmul.mubr.bf16.vlgmr.msra.gmra.mrb[72].mxu0 %v19104_v47  ;;  %v16788_v47 = vld [vmem:[#allocation5 + $0x218] sm:$0xff]   ;;  %v16803_v18 = vld [vmem:[#allocation5 + $0xc0] sm:$0xff]  }
 0x257   : > { %16228 = vmatpush3.bf16.msra.mxu0 %v16779_v45  ;;  %4568 = vmatprep.mubr.bf16.mxu0 %v19145_v44  ;;  %v746_v45 = vld [vmem:[%s18945_s28 + $0xc0] sm:$0xff] }
 0x258   : > { %16229 = vmatprep.subr.bf16.mxu0 %v16782_v52  ;;  %779 = vst [vmem:[#allocation2 + $0x139] sm:$0xff] %v746_v45 }
 0x259   : > { %15588 = vmatpush3.bf16.msra.mxu1 %v16770_v31 }
 0x25a   : > { %15589 = vmatprep.subr.bf16.mxu1 %v16773_v36  ;;  %v16806_v36 = vld [vmem:[#allocation5 + $0x8] sm:$0xff]  }
 0x25b   : > { %16230 = vmatpush3.bf16.msra.mxu0 %v16782_v52  ;;  %v16813_v52 = vld [vmem:[#allocation5 + $0x58] sm:$0xff]  }
 0x25d   : > { %15590 = vmatpush3.bf16.msra.mxu1 %v16774_v37  ;;  %v16807_v37 = vld [vmem:[#allocation5 + $0xc8] sm:$0xff]  }
 0x25e   : > { %15655 = vmatprep.subr.bf16.mxu1 %v16777_v40  ;;  %4569 = vmatmul.mubr.bf16.gmra.mrb[76].mxu0 %v19124_v12 }
 0x25f   : > { %4576 = vmatprep.mubr.bf16.mxu0 %v19154_v57  ;;  %v3785_v61 = vld [vmem:[#allocation2 + $0x138] sm:$0xff] }
 0x260   : > { %4496 = vmatmul.mubr.bf16.vlgmr.msra.gmra.mrb[88].mxu1 %v19102_v42  ;;  %v16785_v42 = vld [vmem:[#allocation5 + $0x210] sm:$0xff]  }
 0x261   : > { %15656 = vmatpush3.bf16.msra.mxu1 %v16778_v49  ;;  %4503 = vmatprep.mubr.bf16.mxu1 %v19130_v16 }
 0x262   : > { %15657 = vmatprep.subr.bf16.mxu1 %v16780_v50  ;;  %16231 = vmatprep.subr.bf16.mxu0 %v16785_v42 }
 0x263   : > { %16232 = vmatpush3.bf16.msra.mxu0 %v16785_v42  ;;  %v16816_v42 = vld [vmem:[#allocation5 + $0x98] sm:$0xff]  }
 0x264   : > { %16233 = vmatprep.subr.bf16.mxu0 %v16788_v47 }
 0x265   : > { %15658 = vmatpush3.bf16.msra.mxu1 %v16781_v51 }
 0x266   : > { %15659 = vmatprep.subr.bf16.mxu1 %v16783_v53  ;;  %4577 = vmatmul.mubr.bf16.gmra.mrb[80].mxu0 %v19132_v28 }
 0x267   : > { %16234 = vmatpush3.bf16.msra.mxu0 %v16788_v47  ;;  %4584 = vmatprep.mubr.bf16.mxu0 %v19165_v9  ;;  %v16818_v47 = vld [vmem:[#allocation5 + $0x20] sm:$0xff]  }
 0x268   : > { %4504 = vmatmul.mubr.bf16.gmra.mrb[92].mxu1 %v19122_v8  ;;  %16235 = vmatprep.subr.bf16.mxu0 %v16791_v63  ;;  %v19163_v8 = vpack.c.bf16 %v3749_v4, %v3748_v20  ;;  %v16820_v20 = vld [vmem:[#allocation5 + $0xa0] sm:$0xff]  }
 0x269   : > { %15660 = vmatpush3.bf16.msra.mxu1 %v16784_v55  ;;  %4511 = vmatprep.mubr.bf16.mxu1 %v19136_v35  ;;  %v16817_v55 = vld [vmem:[#allocation5 + $0x60] sm:$0xff]  }
 0x26a   : > { %15661 = vmatprep.subr.bf16.mxu1 %v16786_v56  ;;  %v15207_v10 = vpop.f32.mrb[0].mxu1 }
 0x26b   : > { %16236 = vmatpush3.bf16.msra.mxu0 %v16791_v63  ;;  %v15208_v11 = vpop.f32.mrb[1].mxu1 }
 0x26c   : > { %16237 = vmatprep.subr.bf16.mxu0 %v16794_v3  ;;  %v19173_v15 = vadd.f32 %v15208_v11, %v15207_v10  ;;  %v15210_v17 = vpop.f32.mrb[2].mxu1 }
 0x26d   : > { %15662 = vmatpush3.bf16.msra.mxu1 %v16787_v62  ;;  %v15211_v6 = vpop.f32.mrb[3].mxu1 }
 0x26e   : > { %15663 = vmatprep.subr.bf16.mxu1 %v16789_v46  ;;  %v19177_v24 = vadd.f32 %v15211_v6, %v15210_v17  ;;  %4585 = vmatmul.mubr.bf16.gmra.mrb[84].mxu0 %v19175_v22  ;;  %v16822_v17 = vld [vmem:[#allocation5 + $0x28] sm:$0xff]   ;;  %v19210_v6 = vld [vmem:[#allocation8] ss:$0 sm:$0xff] }
 0x26f   : > { %16238 = vmatpush3.bf16.msra.mxu0 %v16794_v3  ;;  %16243 = vmatprep.mubr.bf16.mxu0 %v19145_v44 }
 0x270   : > { %4512 = vmatmul.mubr.bf16.gmra.mrb[96].mxu1 %v19145_v44  ;;  %16239 = vmatprep.subr.bf16.mxu0 %v16797_v13 }
 0x271   : > { %15664 = vmatpush3.bf16.msra.mxu1 %v16790_v1  ;;  %4519 = vmatprep.mubr.bf16.mxu1 %v19163_v8 }
 0x272   : > { %15665 = vmatprep.subr.bf16.mxu1 %v16792_v2 }
 0x273   : > { %16240 = vmatpush3.bf16.msra.mxu0 %v16797_v13 }
 0x274   : > { %16241 = vmatprep.subr.bf16.mxu0 %v16800_v25 }
 0x275   : > { %15666 = vmatpush3.bf16.msra.mxu1 %v16793_v58 }
 0x276   : > { %15667 = vmatprep.subr.bf16.mxu1 %v16795_v60 }
 0x277   : > { %16242 = vmatpush3.bf16.msra.mxu0 %v16800_v25  ;;  %v16824_v25 = vld [vmem:[#allocation5 + $0xa8] sm:$0xff]  }
 0x278   : > { %4520 = vmatmul.mubr.bf16.gmra.mrb[100].mxu1 %v19154_v57  ;;  %15747 = vmatprep.subr.bf16.mxu0 %v16803_v18  ;;  %v16826_v18 = vld [vmem:[#allocation5 + $0x30] sm:$0xff]  }
 0x279   : > { %15668 = vmatpush3.bf16.msra.mxu1 %v16796_v19  ;;  %4625 = vmatprep.mubr.bf16.mxu1 %v19124_v12  ;;  %v16805_v12 = vld [vmem:[#allocation5 + $0x48] sm:$0xff]  }
 0x27a   : > { %15669 = vmatprep.subr.bf16.mxu1 %v16798_v23  ;;  %16244 = vmatmul.mubr.bf16.vlgmr.msra.gmra.mrb[88].mxu0 %v19154_v57  ;;  %v16819_v57 = vld [vmem:[#allocation5 + $0xe0] sm:$0xff]   ;;  %v16823_v23 = vld [vmem:[#allocation5 + $0xe8] sm:$0xff]  }
 0x27b   : > { %v15213_v27 = vpop.f32.mrb[4].mxu1  ;;  %15748 = vmatpush3.bf16.msra.mxu0 %v16804_v33  ;;  %16247 = vmatprep.mubr.bf16.mxu0 %v19165_v9 }
 0x27c   : > { %v15214_v30 = vpop.f32.mrb[5].mxu1  ;;  %15749 = vmatprep.subr.bf16.mxu0 %v16807_v37 }
 0x27d   : > { %v19183_v31 = vadd.f32 %v15214_v30, %v15213_v27  ;;  %v15216_v32 = vpop.f32.mrb[6].mxu1  ;;  %15670 = vmatpush3.bf16.msra.mxu1 %v16799_v14 }
 0x27e   : > { %v15217_v21 = vpop.f32.mrb[7].mxu1  ;;  %15707 = vmatprep.subr.bf16.mxu1 %v16801_v26  ;;  %v15287_v59 = vpop.f32.mrb[0].mxu0  ;;  %v16825_v26 = vld [vmem:[#allocation5 + $0x70] sm:$0xff]  }
 0x27f   : > { %v19185_v34 = vadd.f32 %v15217_v21, %v15216_v32  ;;  %15750 = vmatpush3.bf16.msra.mxu0 %v16808_v38  ;;  %v15288_v1 = vpop.f32.mrb[1].mxu0  ;;  %v16827_v32 = vld [vmem:[#allocation5 + $0xf0] sm:$0xff]   ;;  %v1534_v21 = vadd.f32 %v19173_v15, %v19210_v6  ;;  %v16831_v15 = vld [vmem:[#allocation5 + $0xf8] sm:$0xff]  }
 0x280   : > { %4626 = vmatmul.mubr.bf16.vlgmr.msra.gmra.mrb[104].mxu1 %v19130_v16  ;;  %v747_v16 = vld [vmem:[%s18945_s28 + $0xc8] sm:$0xff]  ;;  %15751 = vmatprep.subr.bf16.mxu0 %v16811_v43  ;;  %v15289_v7 = vadd.f32 %v15288_v1, %v15287_v59  ;;  %v15290_v58 = vpop.f32.mrb[2].mxu0  ;;  %v16835_v59 = vld [vmem:[#allocation5 + $0x1c0] sm:$0xff]  }
 0x281   : > { %15708 = vmatpush3.bf16.msra.mxu1 %v16802_v29  ;;  %4633 = vmatprep.mubr.bf16.mxu1 %v19132_v28  ;;  %v16812_v28 = vld [vmem:[#allocation5 + $0x90] sm:$0xff]   ;;  %780 = vst [vmem:[#allocation2 + $0x141] sm:$0xff] %v747_v16  ;;  %v19206_v10 = vpack.c.bf16 %v747_v16, %v746_v45  ;;  %v15291_v11 = vpop.f32.mrb[3].mxu0  ;;  %v1537_v45 = vadd.f32 %v19177_v24, %v19210_v6  ;;  %v16833_v24 = vld [vmem:[#allocation5 + $0x140] sm:$0xff]  }
 0x282   : > { %15709 = vmatprep.subr.bf16.mxu1 %v16805_v12  ;;  %v15292_v19 = vadd.f32 %v15291_v11, %v15290_v58  ;;  %v1545_v58 = vadd.f32 %v19185_v34, %v19210_v6  ;;  %v16841_v34 = vld [vmem:[#allocation5 + $0x150] sm:$0xff]  }
 0x283   : > { %v15219_v40 = vpop.f32.mrb[8].mxu1  ;;  %15752 = vmatpush3.bf16.msra.mxu0 %v16812_v28 }
 0x284   : > { %v15220_v49 = vpop.f32.mrb[9].mxu1  ;;  %15753 = vmatprep.subr.bf16.mxu0 %v16815_v0 }
 0x285   : > { %v19193_v50 = vadd.f32 %v15220_v49, %v15219_v40  ;;  %v15222_v51 = vpop.f32.mrb[10].mxu1  ;;  %15710 = vmatpush3.bf16.msra.mxu1 %v16806_v36  ;;  %v16828_v40 = vld [vmem:[#allocation5 + $0xb0] sm:$0xff]  }
 0x286   : > { %v15223_v44 = vpop.f32.mrb[11].mxu1  ;;  %15711 = vmatprep.subr.bf16.mxu1 %v16809_v39  ;;  %v15293_v29 = vpop.f32.mrb[4].mxu0 }
 0x287   : > { %v19195_v53 = vadd.f32 %v15223_v44, %v15222_v51  ;;  %15754 = vmatpush3.bf16.msra.mxu0 %v16816_v42  ;;  %v15294_v33 = vpop.f32.mrb[5].mxu0  ;;  %v16830_v51 = vld [vmem:[#allocation5 + $0x38] sm:$0xff]  }
 0x288   : > { %4634 = vmatmul.mubr.bf16.gmra.mrb[108].mxu1 %v19136_v35  ;;  %v3809_v46 = vld [vmem:[#allocation2 + $0x13a] sm:$0xff]  ;;  %v3810_v63 = vld [vmem:[#allocation2 + $0x142] sm:$0xff]  ;;  %15755 = vmatprep.subr.bf16.mxu0 %v16819_v57  ;;  %v15295_v37 = vadd.f32 %v15294_v33, %v15293_v29  ;;  %v15296_v38 = vpop.f32.mrb[6].mxu0 }
 0x289   : > { %15712 = vmatpush3.bf16.msra.mxu1 %v16810_v41  ;;  %4641 = vmatprep.mubr.bf16.mxu1 %v19175_v22  ;;  %v3786_v35 = vld [vmem:[#allocation2 + $0x140] sm:$0xff]  ;;  %v19201_v4 = vpack.c.bf16 %v3810_v63, %v3809_v46  ;;  %6635 = vst [vmem:[#allocation2 + $0x138] sm:$0xff] %v19140_v48  ;;  %6637 = vst [vmem:[#allocation2 + $0x148] sm:$0x3] %v19140_v48  ;;  %v16829_v41 = vld [vmem:[#allocation5 + $0x78] sm:$0xff]   ;;  %v15297_v43 = vpop.f32.mrb[7].mxu0  ;;  %v1542_v46 = vadd.f32 %v19183_v31, %v19210_v6 }
 0x28a   : > { %15713 = vmatprep.subr.bf16.mxu1 %v16813_v52  ;;  %6636 = vst [vmem:[#allocation2 + $0x140] sm:$0xff] %v19140_v48  ;;  %v19214_v14 = vpack.c.bf16 %v3786_v35, %v3785_v61  ;;  %v15298_v28 = vadd.f32 %v15297_v43, %v15296_v38  ;;  %v16845_v43 = vld [vmem:[#allocation5 + $0x158] sm:$0xff]  }
 0x28b   : > { %v15225_v56 = vpop.f32.mrb[12].mxu1  ;;  %16248 = vmatmul.mubr.bf16.gmra.mrb[92].mxu0 %v19201_v4 }
 0x28c   : > { %v15226_v62 = vpop.f32.mrb[13].mxu1  ;;  %15756 = vmatpush3.bf16.msra.mxu0 %v16820_v20  ;;  %5941 = vmatprep.mubr.bf16.mxu0 %v19214_v14  ;;  %v16836_v20 = vld [vmem:[#allocation5 + $0x180] sm:$0xff]  }
 0x28d   : > { %v19199_v2 = vadd.f32 %v15226_v62, %v15225_v56  ;;  %v15228_v3 = vpop.f32.mrb[14].mxu1  ;;  %15714 = vmatpush3.bf16.msra.mxu1 %v16814_v54  ;;  %15757 = vmatprep.subr.bf16.mxu0 %v16823_v23  ;;  %v16832_v54 = vld [vmem:[#allocation5 + $0xb8] sm:$0xff]  }
 0x28e   : > { %v15229_v60 = vpop.f32.mrb[15].mxu1  ;;  %15715 = vmatprep.subr.bf16.mxu1 %v16817_v55  ;;  %v16834_v55 = vld [vmem:[#allocation5 + $0x100] sm:$0xff]   ;;  %v15299_v56 = vpop.f32.mrb[8].mxu0  ;;  %v749_v62 = vld [vmem:[%s18945_s28 + $0xd8] sm:$0xff] }
 0x28f   : > { %v19208_v13 = vadd.f32 %v15229_v60, %v15228_v3  ;;  %v15300_v61 = vpop.f32.mrb[9].mxu0  ;;  %782 = vst [vmem:[#allocation2 + $0x159] sm:$0xff] %v749_v62 }
 0x290   : > { %4642 = vmatmul.mubr.bf16.gmra.mrb[112].mxu1 %v19163_v8  ;;  %15758 = vmatpush3.bf16.msra.mxu0 %v16824_v25  ;;  %v19232_v1 = vadd.f32 %v15300_v61, %v15299_v56  ;;  %v15302_v35 = vpop.f32.mrb[10].mxu0  ;;  %v16848_v56 = vld [vmem:[#allocation5 + $0x198] sm:$0xff]   ;;  %v16850_v61 = vld [vmem:[#allocation5 + $0x120] sm:$0xff]  }
 0x291   : > { %15716 = vmatpush3.bf16.msra.mxu1 %v16818_v47  ;;  %4649 = vmatprep.mubr.bf16.mxu1 %v19206_v10  ;;  %v748_v47 = vld [vmem:[%s18945_s28 + $0xd0] sm:$0xff] }
 0x292   : > { %15717 = vmatprep.subr.bf16.mxu1 %v16821_v5  ;;  %15759 = vmatprep.subr.bf16.mxu0 %v16827_v32  ;;  %781 = vst [vmem:[#allocation2 + $0x151] sm:$0xff] %v748_v47  ;;  %v16837_v5 = vld [vmem:[#allocation5 + $0x148] sm:$0xff]   ;;  %v19247_v38 = vpack.c.bf16 %v749_v62, %v748_v47  ;;  %v16849_v47 = vld [vmem:[#allocation5 + $0x160] sm:$0xff]  }
 0x293   : > { %v15247_v27 = vpop.f32.mrb[16].mxu1 }
 0x294   : > { %v15248_v30 = vpop.f32.mrb[17].mxu1  ;;  %15760 = vmatpush3.bf16.msra.mxu0 %v16828_v40  ;;  %v751_v40 = vld [vmem:[%s18945_s28 + $0xe8] sm:$0xff] }
 0x295   : > { %v15249_v12 = vadd.f32 %v15248_v30, %v15247_v27  ;;  %v15250_v36 = vpop.f32.mrb[18].mxu1  ;;  %15718 = vmatpush3.bf16.msra.mxu1 %v16822_v17  ;;  %15761 = vmatprep.subr.bf16.mxu0 %v16831_v15  ;;  %v16838_v17 = vld [vmem:[#allocation5 + $0x108] sm:$0xff]   ;;  %v16842_v30 = vld [vmem:[#allocation5 + $0x110] sm:$0xff]   ;;  %784 = vst [vmem:[#allocation2 + $0x171] sm:$0xff] %v751_v40 }
 0x296   : > { %v15251_v39 = vpop.f32.mrb[19].mxu1  ;;  %15719 = vmatprep.subr.bf16.mxu1 %v16825_v26  ;;  %v16840_v26 = vld [vmem:[#allocation5 + $0x188] sm:$0xff]   ;;  %v5180_v15 = vld [vmem:[#allocation2 + $0x15a] sm:$0xff] }
 0x297   : > { %v1599_v49 = vadd.f32 %v15249_v12, %v1534_v21  ;;  %v15252_v16 = vadd.f32 %v15251_v39, %v15250_v36  ;;  %v1550_v21 = vadd.f32 %v19193_v50, %v19210_v6  ;;  %v750_v39 = vld [vmem:[%s18945_s28 + $0xe0] sm:$0xff]  ;;  %6640 = vst [vmem:[#allocation2 + $0x160] sm:$0x3] %v19140_v48 }
 0x298   : > { %4650 = vmatmul.mubr.bf16.gmra.mrb[116].mxu1 %v19214_v14  ;;  %15762 = vmatpush3.bf16.msra.mxu0 %v16832_v54  ;;  %783 = vst [vmem:[#allocation2 + $0x169] sm:$0xff] %v750_v39  ;;  %v16847_v54 = vld [vmem:[#allocation5 + $0x1d8] sm:$0xff]  }
 0x299   : > { %v1602_v44 = vadd.f32 %v15252_v16, %v1537_v45  ;;  %v19223_v52 = vadd.f32 %v15289_v7, %v1599_v49  ;;  %15720 = vmatpush3.bf16.msra.mxu1 %v16826_v18  ;;  %5876 = vmatprep.mubr.bf16.mxu1 %v19175_v22  ;;  %v15303_v7 = vpop.f32.mrb[11].mxu0  ;;  %v16843_v18 = vld [vmem:[#allocation5 + $0x1d0] sm:$0xff]   ;;  %v5191_v33 = vld [vmem:[#allocation2 + $0x158] sm:$0xff]  ;;  %v1553_v45 = vadd.f32 %v19195_v53, %v19210_v6 }
 0x29a   : > { %15721 = vmatprep.subr.bf16.mxu1 %v16829_v41  ;;  %v15304_v31 = vadd.f32 %v15303_v7, %v15302_v35  ;;  %15827 = vmatprep.subr.bf16.mxu0 %v16835_v59  ;;  %v15305_v16 = vpop.f32.mrb[12].mxu0 }
 0x29b   : > { %v19226_v0 = vadd.f32 %v15292_v19, %v1602_v44  ;;  %v15253_v42 = vpop.f32.mrb[20].mxu1  ;;  %v16839_v19 = vld [vmem:[#allocation5 + $0x1c8] sm:$0xff]   ;;  %5942 = vmatmul.mubr.bf16.vlgmr.msra.gmra.mrb[96].mxu0 %v19165_v9  ;;  %v15306_v44 = vpop.f32.mrb[13].mxu0 }
 0x29c   : > { %v15254_v57 = vpop.f32.mrb[21].mxu1  ;;  %15828 = vmatpush3.bf16.msra.mxu0 %v16836_v20  ;;  %v16852_v20 = vld [vmem:[#allocation5 + $0x1a0] sm:$0xff]  }
 0x29d   : > { %v15255_v22 = vadd.f32 %v15254_v57, %v15253_v42  ;;  %v15256_v63 = vpop.f32.mrb[22].mxu1  ;;  %15722 = vmatpush3.bf16.msra.mxu1 %v16830_v51  ;;  %15829 = vmatprep.subr.bf16.mxu0 %v16839_v19  ;;  %v16846_v51 = vld [vmem:[#allocation5 + $0x118] sm:$0xff]   ;;  %v15307_v42 = vadd.f32 %v15306_v44, %v15305_v16  ;;  %v16854_v19 = vld [vmem:[#allocation5 + $0x128] sm:$0xff]  }
 0x29e   : > { %v15257_v3 = vpop.f32.mrb[23].mxu1  ;;  %15787 = vmatprep.subr.bf16.mxu1 %v16833_v24 }
 0x29f   : > { %v1607_v60 = vadd.f32 %v15255_v22, %v1542_v46  ;;  %v15258_v11 = vadd.f32 %v15257_v3, %v15256_v63  ;;  %v16851_v46 = vld [vmem:[#allocation5 + $0x1e0] sm:$0xff]   ;;  %v1558_v22 = vadd.f32 %v19199_v2, %v19210_v6  ;;  %v5192_v35 = vld [vmem:[#allocation2 + $0x168] sm:$0xff]  ;;  %v5193_v3 = vld [vmem:[#allocation2 + $0x170] sm:$0xff] }
 0x2a0   : > { %5877 = vmatmul.mubr.bf16.vlgmr.msra.gmra.mrb[120].mxu1 %v19163_v8  ;;  %v5190_v8 = vld [vmem:[#allocation2 + $0x150] sm:$0xff]  ;;  %15830 = vmatpush3.bf16.msra.mxu0 %v16840_v26  ;;  %v19275_v26 = vpack.c.bf16 %v751_v40, %v750_v39  ;;  %v19295_v40 = vld [vmem:[#allocation2 + $0x198] sm:$0xff] }
 0x2a1   : > { %v1610_v23 = vadd.f32 %v15258_v11, %v1545_v58  ;;  %v19237_v25 = vadd.f32 %v15295_v37, %v1607_v60  ;;  %15788 = vmatpush3.bf16.msra.mxu1 %v16834_v55  ;;  %5884 = vmatprep.mubr.bf16.mxu1 %v19206_v10  ;;  %v19245_v9 = vpack.c.bf16 %v5191_v33, %v5190_v8  ;;  %v16844_v37 = vld [vmem:[#allocation5 + $0x190] sm:$0xff]   ;;  %v15308_v55 = vpop.f32.mrb[14].mxu0  ;;  %v16853_v11 = vld [vmem:[#allocation5 + $0x168] sm:$0xff]  }
 0x2a2   : > { %15789 = vmatprep.subr.bf16.mxu1 %v16837_v5  ;;  %15831 = vmatprep.subr.bf16.mxu0 %v16843_v18  ;;  %v1844_v5 = vlaneseq  ;;  %v19267_v58 = vpack.c.bf16 %v5193_v3, %v5192_v35  ;;  %v16855_v8 = vld [vmem:[#allocation5 + $0x1e8] sm:$0xff]   ;;  %v18416_v18 = vmov 1983009808   ;;  %v16864_v3 = vld [vmem:[#allocation5 + $0x1b8] sm:$0xff]  }
 0x2a3   : > { %v19241_v27 = vadd.f32 %v15298_v28, %v1610_v23  ;;  %v15259_v29 = vpop.f32.mrb[24].mxu1  ;;  %5949 = vmatprep.mubr.bf16.mxu0 %v19245_v9  ;;  %v5179_v28 = vld [vmem:[#allocation2 + $0x152] sm:$0xff] }
 0x2a4   : > { %v15260_v32 = vpop.f32.mrb[25].mxu1  ;;  %6638 = vst [vmem:[#allocation2 + $0x150] sm:$0xff] %v19140_v48  ;;  %6639 = vst [vmem:[#allocation2 + $0x158] sm:$0xff] %v19140_v48  ;;  %5950 = vmatmul.mubr.bf16.gmra.mrb[100].mxu0 %v19201_v4  ;;  %v19269_v60 = vpack.c.bf16 %v5180_v15, %v5179_v28  ;;  %v19290_v33 = vshrl.u32 %v1844_v5, 7  ;;  %v16858_v15 = vld [vmem:[#allocation5 + $0x130] sm:$0xff]   ;;  %vm20100_vm8 = vcmp.lt.s32.totalorder %v1844_v5, 128 }
 0x2a5   : > { %v15261_v12 = vadd.f32 %v15260_v32, %v15259_v29  ;;  %v15262_v36 = vpop.f32.mrb[26].mxu1  ;;  %15790 = vmatpush3.bf16.msra.mxu1 %v16838_v17  ;;  %15832 = vmatpush3.bf16.msra.mxu0 %v16844_v37  ;;  %v1561_v17 = vadd.f32 %v19208_v13, %v19210_v6  ;;  %v19281_v29 = vld [vmem:[%s18945_s28 + $0xf8] sm:$0xff]  ;;  %v1842_v32 = vunpack.c.l.s4 %v18416_v18  ;;  %v16857_v37 = vld [vmem:[#allocation5 + $0x170] sm:$0xff]  }
 0x2a6   : > { %v15263_v41 = vpop.f32.mrb[27].mxu1  ;;  %15791 = vmatprep.subr.bf16.mxu1 %v16841_v34  ;;  %15833 = vmatprep.subr.bf16.mxu0 %v16847_v54  ;;  %v19278_v34 = vld [vmem:[%s18945_s28 + $0xf0] sm:$0xff]  ;;  %786 = vst [vmem:[#allocation2 + $0x189] sm:$0xff] %v19281_v29  ;;  %s660_s28 = sand.u32 1, %s20373_s23  }
 0x2a7   : > { %v1615_v49 = vadd.f32 %v15261_v12, %v1550_v21  ;;  %v15264_v50 = vadd.f32 %v15263_v41, %v15262_v36  ;;  %5957 = vmatprep.mubr.bf16.mxu0 %v19267_v58  ;;  %785 = vst [vmem:[#allocation2 + $0x181] sm:$0xff] %v19278_v34  ;;  %v5181_v12 = vld [vmem:[#allocation2 + $0x16a] sm:$0xff]  ;;  %v5182_v36 = vld [vmem:[#allocation2 + $0x172] sm:$0xff]  ;;  %v1843_v28 = vunpack.c.0.s8 %v1842_v32  ;;  %s661_s29 = scalar_lea.vmem [#allocation26], %s660_s28  ;;  %s13764_s24 = scalar_lea.sflag [#allocation7], %s660_s28 }
 0x2a8   : > { %5885 = vmatmul.mubr.bf16.gmra.mrb[124].mxu1 %v19214_v14  ;;  %v15309_v14 = vpop.f32.mrb[15].mxu0  ;;  %6641 = vst [vmem:[#allocation2 + $0x168] sm:$0xff] %v19295_v40  ;;  %6642 = vst [vmem:[#allocation2 + $0x170] sm:$0xff] %v19295_v40  ;;  %v16860_v54 = vld [vmem:[#allocation5 + $0x1b0] sm:$0xff]   ;;  %s13776_s20 = sshll.u32 %s661_s29, 4  ;;  %s20260_s20 = int_to_ptr.vmem [resolvable:$true] %s13776_s20 }
 0x2a9   : > { %v1618_v53 = vadd.f32 %v15264_v50, %v1553_v45  ;;  %v19259_v24 = vadd.f32 %v19232_v1, %v1615_v49  ;;  %15792 = vmatpush3.bf16.msra.mxu1 %v16842_v30  ;;  %5892 = vmatprep.mubr.bf16.mxu1 %v19247_v38  ;;  %v15310_v48 = vadd.f32 %v15309_v14, %v15308_v55  ;;  %v19273_v23 = vpop.f32.mrb[16].mxu0  ;;  %v16856_v45 = vld [vmem:[#allocation5 + $0x1a8] sm:$0xff]   ;;  %v16859_v50 = vld [vmem:[#allocation5 + $0x1f0] sm:$0xff]   ;;  %s18303_s17 = scalar_lea.vmem %s20260_s20, 16  ;;  %p18310_p12 = scmp.lt.s32.totalorder %s20260_s20, %s18308_s19 }
 0x2aa   : > { %15793 = vmatprep.subr.bf16.mxu1 %v16845_v43  ;;  %15834 = vmatpush3.bf16.msra.mxu0 %v16848_v56  ;;  %v1793_v30 = vpop.f32.mrb[17].mxu0  ;;  %6643 = vst [vmem:[#allocation2 + $0x178] sm:$0x3] %v19295_v40  ;;  %p18304_p0 = scmp.ne.s32.totalorder %s20260_s20, %s18303_s17  ;;  %p18311_p10 = scmp.lt.s32.totalorder %s18309_s25, %s18303_s17 }
 0x2ab   : > { %v19263_v57 = vadd.f32 %v15304_v31, %v1618_v53  ;;  %v15265_v59 = vpop.f32.mrb[28].mxu1  ;;  %15835 = vmatprep.subr.bf16.mxu0 %v16851_v46  ;;  %v19292_v21 = vpop.f32.mrb[18].mxu0  ;;  %v16861_v53 = vld [vmem:[#allocation5 + $0x178] sm:$0xff]  }
 0x2ac   : > { %v15266_v62 = vpop.f32.mrb[29].mxu1  ;;  %5958 = vmatmul.mubr.bf16.gmra.mrb[104].mxu0 %v19269_v60  ;;  %v1796_v39 = vpop.f32.mrb[19].mxu0  ;;  %p18305_p5 = pnand %p18304_p0, %p20376_p6  ;;  %p18312_p2 = por %p18311_p10, %p18310_p12 }
 0x2ad   : > { %v15267_v63 = vadd.f32 %v15266_v62, %v15265_v59  ;;  %v15268_v1 = vpop.f32.mrb[30].mxu1  ;;  %15794 = vmatpush3.bf16.msra.mxu1 %v16846_v51  ;;  %v19310_v62 = vsub.s32 %v1843_v28, %v19290_v33 }
 0x2ae   : > { %v15269_v7 = vpop.f32.mrb[31].mxu1  ;;  %15795 = vmatprep.subr.bf16.mxu1 %v16849_v47  ;;  %15836 = vmatpush3.bf16.msra.mxu0 %v16852_v20  ;;  %v5194_v56 = vld [vmem:[#allocation2 + $0x180] sm:$0xff]  ;;  %v5195_v14 = vld [vmem:[#allocation2 + $0x188] sm:$0xff]  ;;  %v19304_v47 = vpack.c.bf16 %v5182_v36, %v5181_v12  ;;  %v19322_v36 = vsub.s32 0, %v19290_v33  ;;  %p18306_p9 = pneg %p18305_p5 }
 0x2af   : > { %v1623_v2 = vadd.f32 %v15267_v63, %v1558_v22  ;;  %v15270_v31 = vadd.f32 %v15269_v7, %v15268_v1  ;;  %15837 = vmatprep.subr.bf16.mxu0 %v16855_v8  ;;  %v19307_v59 = vpack.c.bf16 %v5195_v14, %v5194_v56  ;;  %v16863_v22 = vld [vmem:[#allocation5 + $0x1f8] sm:$0xff]   ;;  %v16866_v7 = vld [vmem:[#allocation10 + $0x40] sm:$0xff]  }
 0x2b0   : > { %5893 = vmatmul.mubr.bf16.gmra.mrb[128].mxu1 %v19245_v9  ;;  %p18313_p3 = pnand %p18312_p2, %p18306_p9 }
 0x2b1   : > { %v1626_v13 = vadd.f32 %v15270_v31, %v1561_v17  ;;  %v19287_v6 = vadd.f32 %v15307_v42, %v1623_v2  ;;  %15796 = vmatpush3.bf16.msra.mxu1 %v16850_v61  ;;  %5900 = vmatprep.mubr.bf16.mxu1 %v19275_v26 }
 0x2b2   : > { %15797 = vmatprep.subr.bf16.mxu1 %v16853_v11  ;;  %15838 = vmatpush3.bf16.msra.mxu0 %v16856_v45 }
 0x2b3   : > { %v19300_v41 = vadd.f32 %v15310_v48, %v1626_v13  ;;  %v15327_v43 = vpop.f32.mrb[32].mxu1  ;;  %15839 = vmatprep.subr.bf16.mxu0 %v16859_v50  ;;  %v16862_v48 = vld [vmem:[#allocation5 + $0x138] sm:$0xff]   ;;  %5965 = vmatprep.mubr.bf16.mxu0 %v19307_v59  ;;  %v16869_v50 = vld [vmem:[#allocation10 + $0x48] sm:$0xff]  }
 0x2b4   : > { %v15328_v49 = vpop.f32.mrb[33].mxu1  ;;  %5966 = vmatmul.mubr.bf16.gmra.mrb[108].mxu0 %v19304_v47 }
 0x2b5   : > { %v15329_v16 = vadd.f32 %v15328_v49, %v15327_v43  ;;  %v15330_v51 = vpop.f32.mrb[34].mxu1  ;;  %15798 = vmatpush3.bf16.msra.mxu1 %v16854_v19  ;;  %6071 = vmatprep.mubr.bf16.mxu0 %v19247_v38  ;;  %v16867_v19 = vld [vmem:[#allocation5 + $0x208] sm:$0xff]  }
 0x2b6   : > { %v15331_v44 = vpop.f32.mrb[35].mxu1  ;;  %15799 = vmatprep.subr.bf16.mxu1 %v16857_v37  ;;  %15840 = vmatpush3.bf16.msra.mxu0 %v16860_v54  ;;  %v19329_v54 = vpop.f32.mrb[20].mxu0 }
 0x2b7   : > { %v15332_v42 = vadd.f32 %v15331_v44, %v15330_v51  ;;  %v1729_v55 = vadd.f32 %v15329_v16, %v19223_v52  ;;  %v16865_v52 = vld [vmem:[#allocation5 + $0x200] sm:$0xff]   ;;  %15841 = vmatprep.subr.bf16.mxu0 %v16863_v22  ;;  %v16870_v16 = vld [vmem:[#allocation5 + $0x210] sm:$0xff]   ;;  %v5236_v51 = vpack.c.bf16 %v19295_v40, %v19295_v40  ;;  %v1809_v14 = vpop.f32.mrb[21].mxu0 }
 0x2b8   : > { %5901 = vmatmul.mubr.bf16.gmra.mrb[132].mxu1 %v19267_v58 }
 0x2b9   : > { %v1794_v61 = vadd.f32 %v1793_v30, %v1729_v55  ;;  %15800 = vmatpush3.bf16.msra.mxu1 %v16858_v15  ;;  %v1732_v46 = vadd.f32 %v15332_v42, %v19226_v0  ;;  %6006 = vmatprep.mubr.bf16.mxu1 %v19201_v4 }
 0x2ba   : > { %15801 = vmatprep.subr.bf16.mxu1 %v16861_v53  ;;  %15842 = vmatpush3.bf16.msra.mxu0 %v16864_v3 }
 0x2bb   : > { %v1824_v63 = vmax.f32 %v1794_v61, 0.0  ;;  %v1797_v1 = vadd.f32 %v1796_v39, %v1732_v46  ;;  %v15333_v35 = vpop.f32.mrb[36].mxu1  ;;  %v16868_v39 = vld [vmem:[#allocation10] sm:$0xff]   ;;  %15879 = vmatprep.subr.bf16.mxu0 %v16866_v7  ;;  %v19338_v61 = vpack.c.bf16 %v19281_v29, %v19278_v34  ;;  %v16873_v29 = vld [vmem:[#allocation5 + $0x218] sm:$0xff]  }
 0x2bc   : > { %v15334_v20 = vpop.f32.mrb[37].mxu1 }
 0x2bd   : > { %v1840_v11 = vcombine.high %v1824_v63, %v1824_v63  ;;  %v1847_v0 = vrot.slane %v1824_v63, %v19310_v62  ;;  %v1825_v17 = vmax.f32 %v1797_v1, 0.0  ;;  %v15335_v4 = vadd.f32 %v15334_v20, %v15333_v35  ;;  %v15336_v2 = vpop.f32.mrb[38].mxu1  ;;  %15802 = vmatpush3.bf16.msra.mxu1 %v16862_v48  ;;  %6072 = vmatmul.mubr.bf16.vlgmr.msra.gmra.mrb[112].mxu0 %v19245_v9  ;;  %v16872_v48 = vld [vmem:[#allocation10 + $0x50] sm:$0xff]   ;;  %v19342_v1 = vpop.f32.mrb[22].mxu0 }
 0x2be   : > { %v15337_v31 = vpop.f32.mrb[39].mxu1  ;;  %16251 = vmatprep.subr.bf16.mxu1 %v16865_v52  ;;  %15880 = vmatpush3.bf16.msra.mxu0 %v16868_v39  ;;  %v19348_v34 = vpop.f32.mrb[23].mxu0 }
 0x2bf   : > { %v1854_v8 = vrot.slane %v1840_v11, %v19310_v62  ;;  %v1855_v30 = vcombine.high %v1847_v0, %v1847_v0  ;;  %v14062_v13 = vrot.slane %v1847_v0, 9  ;;  %v1857_v18 = vcombine.high %v1825_v17, %v1825_v17  ;;  %6079 = vmatprep.mubr.bf16.mxu0 %v19275_v26  ;;  %15881 = vmatprep.subr.bf16.mxu0 %v16869_v50 }
 0x2c0   : > { %v1864_v32 = vrot.slane %v1825_v17, %v19310_v62  ;;  %v1737_v12 = vadd.f32 %v15335_v4, %v19237_v25  ;;  %v15338_v37 = vadd.f32 %v15337_v31, %v15336_v2  ;;  %6007 = vmatmul.mubr.bf16.vlgmr.msra.gmra.mrb[136].mxu1 %v19206_v10  ;;  %v16871_v10 = vld [vmem:[#allocation10 + $0x8] sm:$0xff]  }
 0x2c1   : > { %v1856_v43 = vcombine.high %v1854_v8, %v1854_v8  ;;  %v14063_v45 = vrot.slane %v1855_v30, 9  ;;  %v14064_v49 = vrot.slane %v1854_v8, 9  ;;  %16252 = vmatpush3.bf16.msra.mxu1 %v16865_v52  ;;  %v1871_v25 = vrot.slane %v1857_v18, %v19310_v62  ;;  %6014 = vmatprep.mubr.bf16.mxu1 %v19269_v60  ;;  %v16874_v18 = vld [vmem:[#allocation10 + $0x10] sm:$0xff]  }
 0x2c2   : > { %v1872_v28 = vcombine.high %v1864_v32, %v1864_v32  ;;  %v14066_v15 = vrot.slane %v1864_v32, 9  ;;  %v1802_v44 = vadd.f32 %v19273_v23, %v1737_v12  ;;  %16253 = vmatprep.subr.bf16.mxu1 %v16867_v19  ;;  %v19332_v42 = vmax.f32 %v1847_v0, %v14062_v13  ;;  %15882 = vmatpush3.bf16.msra.mxu0 %v16871_v10  ;;  %v19374_v10 = vld [vmem:[#allocation2 + $0x18a] sm:$0xff] }
 0x2c3   : > { %v14065_v53 = vrot.slane %v1856_v43, 9  ;;  %v1740_v55 = vadd.f32 %v15338_v37, %v19241_v27  ;;  %v15339_v56 = vpop.f32.mrb[40].mxu1  ;;  %v19340_v23 = vmax.f32 %v1855_v30, %v14063_v45  ;;  %v1873_v46 = vcombine.high %v1871_v25, %v1871_v25  ;;  %15883 = vmatprep.subr.bf16.mxu0 %v16872_v48  ;;  %v16877_v48 = vld [vmem:[#allocation10 + $0x18] sm:$0xff]   ;;  %6646 = vst [vmem:[#allocation2 + $0x190] sm:$0x3] %v19295_v40 }
 0x2c4   : > { %v14067_v22 = vrot.slane %v1872_v28, 9  ;;  %v14068_v52 = vrot.slane %v1871_v25, 9  ;;  %v15340_v63 = vpop.f32.mrb[41].mxu1  ;;  %v19345_v27 = vmax.f32 %v1854_v8, %v14064_v49  ;;  %v1826_v9 = vmax.f32 %v1802_v44, 0.0  ;;  %v19372_v44 = vld [vmem:[#allocation2 + $0x182] sm:$0xff] }
 0x2c5   : > { %v1805_v35 = vadd.f32 %v19292_v21, %v1740_v55  ;;  %v15341_v3 = vadd.f32 %v15340_v63, %v15339_v56  ;;  %v15342_v20 = vpop.f32.mrb[42].mxu1  ;;  %16254 = vmatpush3.bf16.msra.mxu1 %v16867_v19  ;;  %v19350_v7 = vmax.f32 %v1856_v43, %v14065_v53  ;;  %v14069_v11 = vrot.slane %v1873_v46, 9  ;;  %v16875_v43 = vld [vmem:[#allocation10 + $0x58] sm:$0xff]   ;;  %6080 = vmatmul.mubr.bf16.gmra.mrb[116].mxu0 %v19267_v58 }
 0x2c6   : > { %v19352_v0 = vmax.f32 %v1864_v32, %v14066_v15  ;;  %v19354_v17 = vmax.f32 %v1872_v28, %v14067_v22  ;;  %v15343_v4 = vpop.f32.mrb[43].mxu1  ;;  %16255 = vmatprep.subr.bf16.mxu1 %v16870_v16  ;;  %v1874_v2 = vcombine.high %v1826_v9, %v1826_v9  ;;  %v1881_v31 = vrot.slane %v1826_v9, %v19310_v62 }
 0x2c7   : > { %v1827_v21 = vmax.f32 %v1805_v35, 0.0  ;;  %v15344_v8 = vadd.f32 %v15343_v4, %v15342_v20  ;;  %v19357_v30 = vmax.f32 %v1871_v25, %v14068_v52  ;;  %v19359_v19 = vmax.f32 %v1873_v46, %v14069_v11  ;;  %15884 = vmatpush3.bf16.msra.mxu0 %v16874_v18  ;;  %6087 = vmatprep.mubr.bf16.mxu0 %v19338_v61  ;;  %v16878_v4 = vld [vmem:[#allocation10 + $0x60] sm:$0xff]  }
 0x2c8   : > { %v1745_v13 = vadd.f32 %v15341_v3, %v19259_v24  ;;  %6015 = vmatmul.mubr.bf16.gmra.mrb[140].mxu1 %v19247_v38  ;;  %v1888_v32 = vrot.slane %v1874_v2, %v19310_v62  ;;  %v1889_v12 = vcombine.high %v1881_v31, %v1881_v31  ;;  %v14070_v37 = vrot.slane %v1881_v31, 9  ;;  %v16876_v38 = vld [vmem:[#allocation5 + $0x220] sm:$0xff]   ;;  %6644 = vst [vmem:[#allocation2 + $0x180] sm:$0xff] %v19295_v40 }
 0x2c9   : > { %v1891_v39 = vcombine.high %v1827_v21, %v1827_v21  ;;  %16256 = vmatpush3.bf16.msra.mxu1 %v16870_v16  ;;  %v1898_v45 = vrot.slane %v1827_v21, %v19310_v62  ;;  %v19366_v50 = vadd.f32 %v15344_v8, %v19263_v57  ;;  %6022 = vmatprep.mubr.bf16.mxu1 %v19304_v47 }
 0x2ca   : > { %v1810_v49 = vadd.f32 %v1809_v14, %v1745_v13  ;;  %16257 = vmatprep.subr.bf16.mxu1 %v16873_v29  ;;  %v1890_v24 = vcombine.high %v1888_v32, %v1888_v32  ;;  %v14071_v25 = vrot.slane %v1889_v12, 9  ;;  %v14072_v28 = vrot.slane %v1888_v32, 9  ;;  %6645 = vst [vmem:[#allocation2 + $0x188] sm:$0xff] %v19295_v40  ;;  %15885 = vmatprep.subr.bf16.mxu0 %v16875_v43 }
 0x2cb   : > { %v2112_v15 = vmax.f32 %v1881_v31, %v14070_v37  ;;  %v19370_v16 = vpop.f32.mrb[44].mxu1  ;;  %v1905_v57 = vrot.slane %v1891_v39, %v19310_v62  ;;  %v1906_v53 = vcombine.high %v1898_v45, %v1898_v45  ;;  %v14074_v55 = vrot.slane %v1898_v45, 9  ;;  %15886 = vmatpush3.bf16.msra.mxu0 %v16877_v48  ;;  %v19393_v37 = vpop.f32.mrb[24].mxu0 }
 0x2cc   : > { %v1828_v56 = vmax.f32 %v1810_v49, 0.0  ;;  %v19377_v14 = vpop.f32.mrb[45].mxu1  ;;  %v14073_v58 = vrot.slane %v1890_v24, 9  ;;  %v2113_v46 = vmax.f32 %v1889_v12, %v14071_v25  ;;  %v2114_v22 = vmax.f32 %v1888_v32, %v14072_v28  ;;  %v16879_v32 = vld [vmem:[#allocation5 + $0x228] sm:$0xff]   ;;  %15887 = vmatprep.subr.bf16.mxu0 %v16878_v4 }
 0x2cd   : > { %v2136_v52 = vmax.f32 %v19332_v42, %v2112_v15  ;;  %v19384_v63 = vpop.f32.mrb[46].mxu1  ;;  %16258 = vmatpush3.bf16.msra.mxu1 %v16873_v29  ;;  %v1907_v9 = vcombine.high %v1905_v57, %v1905_v57  ;;  %v14075_v35 = vrot.slane %v1906_v53, 9  ;;  %v14076_v3 = vrot.slane %v1905_v57, 9  ;;  %v16880_v12 = vld [vmem:[#allocation10 + $0x20] sm:$0xff]   ;;  %v16881_v49 = vld [vmem:[#allocation10 + $0x68] sm:$0xff]   ;;  %6088 = vmatmul.mubr.bf16.gmra.mrb[120].mxu0 %v19307_v59 }
 0x2ce   : > { %v2116_v20 = vmax.f32 %v1898_v45, %v14074_v55  ;;  %v19386_v11 = vpop.f32.mrb[47].mxu1  ;;  %16259 = vmatprep.subr.bf16.mxu1 %v16876_v38  ;;  %v2115_v2 = vmax.f32 %v1890_v24, %v14073_v58  ;;  %v2137_v31 = vmax.f32 %v19340_v23, %v2113_v46  ;;  %v2138_v21 = vmax.f32 %v19345_v27, %v2114_v22  ;;  %v19398_v45 = vpop.f32.mrb[25].mxu0 }
 0x2cf   : > { %v2171_v42 = vrot.slane %v2136_v52, %v19322_v36  ;;  %v14077_v8 = vrot.slane %v1907_v9, 9  ;;  %v2117_v13 = vmax.f32 %v1906_v53, %v14075_v35  ;;  %v2118_v29 = vmax.f32 %v1905_v57, %v14076_v3  ;;  %v19403_v28 = vpop.f32.mrb[26].mxu0  ;;  %15888 = vmatpush3.bf16.msra.mxu0 %v16880_v12  ;;  %v16883_v3 = vld [vmem:[#allocation10 + $0x28] sm:$0xff]  }
 0x2d0   : > { %v2140_v18 = vmax.f32 %v19352_v0, %v2116_v20  ;;  %6023 = vmatmul.mubr.bf16.gmra.mrb[144].mxu1 %v19275_v26  ;;  %v2139_v39 = vmax.f32 %v19350_v7, %v2115_v2  ;;  %v2175_v23 = vrot.slane %v2137_v31, %v19322_v36  ;;  %v2179_v27 = vrot.slane %v2138_v21, %v19322_v36  ;;  %v16882_v7 = vld [vmem:[#allocation5 + $0x230] sm:$0xff]  }
 0x2d1   : > { %v1908_v43 = vcombine.high %v1828_v56, %v1828_v56  ;;  %16260 = vmatpush3.bf16.msra.mxu1 %v16876_v38  ;;  %v2119_v24 = vmax.f32 %v1907_v9, %v14077_v8  ;;  %v2141_v0 = vmax.f32 %v19354_v17, %v2117_v13  ;;  %v2142_v26 = vmax.f32 %v19357_v30, %v2118_v29  ;;  %v19410_v17 = vpop.f32.mrb[27].mxu0  ;;  %v16884_v20 = vld [vmem:[#allocation10 + $0x70] sm:$0xff]  }
 0x2d2   : > { %v2187_v25 = vrot.slane %v2140_v18, %v19322_v36  ;;  %v2183_v15 = vrot.slane %v2139_v39, %v19322_v36  ;;  %v2233_v57 = vsel %vm2232_vm0, %v2175_v23, %v2171_v42  ;;  %v1915_v38 = vrot.slane %v1828_v56, %v19310_v62  ;;  %16261 = vmatprep.subr.bf16.mxu1 %v16879_v32  ;;  %v19429_v23 = vld [vmem:[#allocation8] ss:$0 sm:$0xff] }
 0x2d3   : > { %v1922_v53 = vrot.slane %v1908_v43, %v19310_v62  ;;  %v15379_v55 = vpop.f32.mrb[48].mxu1  ;;  %v2235_v30 = vsel %vm2234_vm1, %v2179_v27, %v2233_v57  ;;  %v2143_v48 = vmax.f32 %v19359_v19, %v2119_v24  ;;  %v2191_v58 = vrot.slane %v2141_v0, %v19322_v36  ;;  %15889 = vmatprep.subr.bf16.mxu0 %v16881_v49  ;;  %v5244_v0 = vld [vmem:[#allocation2 + $0x1a1] sm:$0xff]  ;;  %v16886_v57 = vld [vmem:[#allocation10 + $0x30] sm:$0xff]  }
 0x2d4   : > { %v2195_v46 = vrot.slane %v2142_v26, %v19322_v36  ;;  %v15380_v22 = vpop.f32.mrb[49].mxu1  ;;  %v2237_v52 = vsel %vm2236_vm2, %v2183_v15, %v2235_v30  ;;  %v1923_v56 = vcombine.high %v1915_v38, %v1915_v38  ;;  %v14078_v35 = vrot.slane %v1915_v38, 9  ;;  %15890 = vmatpush3.bf16.msra.mxu0 %v16883_v3  ;;  %v19442_v26 = vpop.f32.mrb[28].mxu0 }
 0x2d5   : > { %v1924_v9 = vcombine.high %v1922_v53, %v1922_v53  ;;  %v15382_v59 = vpop.f32.mrb[50].mxu1  ;;  %16262 = vmatpush3.bf16.msra.mxu1 %v16879_v32  ;;  %v2199_v4 = vrot.slane %v2143_v48, %v19322_v36  ;;  %v2239_v19 = vsel %vm2238_vm3, %v2187_v25, %v2237_v52  ;;  %v14080_v2 = vrot.slane %v1922_v53, 9  ;;  %15891 = vmatprep.subr.bf16.mxu0 %v16884_v20 }
 0x2d6   : > { %v1813_v31 = vadd.f32 %v19348_v34, %v19366_v50  ;;  %v15383_v21 = vpop.f32.mrb[51].mxu1  ;;  %16263 = vmatprep.subr.bf16.mxu1 %v16882_v7  ;;  %v2241_v42 = vsel %vm2240_vm4, %v2191_v58, %v2239_v19  ;;  %v14079_v8 = vrot.slane %v1923_v56, 9  ;;  %v19422_v29 = vmax.f32 %v1915_v38, %v14078_v35  ;;  %v19431_v34 = vld [vmem:[#allocation2 + $0x199] sm:$0xff]  ;;  %v15426_v38 = vpop.f32.mrb[29].mxu0 }
 0x2d7   : > { %v14081_v13 = vrot.slane %v1924_v9, 9  ;;  %v2243_v18 = vsel %vm2242_vm5, %v2195_v46, %v2241_v42  ;;  %v19425_v32 = vmax.f32 %v1922_v53, %v14080_v2  ;;  %v15347_v39 = vadd.f32 %v19377_v14, %v19370_v16  ;;  %v16885_v50 = vld [vmem:[#allocation5 + $0x238] sm:$0xff]   ;;  %v19456_v46 = vpop.f32.mrb[30].mxu0 }
 0x2d8   : > { %v1829_v12 = vmax.f32 %v1813_v31, 0.0  ;;  %v19434_v27 = vsel %vm2244_vm6, %v2199_v4, %v2243_v18  ;;  %v19436_v43 = vmax.f32 %v1923_v56, %v14079_v8  ;;  %v15350_v24 = vadd.f32 %v19386_v11, %v19384_v63  ;;  %v19447_v53 = vld [vmem:[#allocation2 + $0x19a] sm:$0xff]  ;;  %15892 = vmatpush3.bf16.msra.mxu0 %v16886_v57 }
 0x2d9   : > { %v19438_v49 = vmax.f32 %v1924_v9, %v14081_v13  ;;  %2256 = vst [vmem:[#allocation3 + $0x11] sm:$0xff] %v19434_v27  ;;  %v1753_v25 = vadd.f32 %v15347_v39, %v19287_v6  ;;  %v15381_v15 = vadd.f32 %v15380_v22, %v15379_v55  ;;  %16264 = vmatpush3.bf16.msra.mxu1 %v16882_v7  ;;  %v16887_v6 = vld [vmem:[#allocation10 + $0x78] sm:$0xff]   ;;  %v19458_v7 = vld [vmem:[#allocation2 + $0x1a2] sm:$0xff]  ;;  %6647 = vst [vmem:[#allocation2 + $0x198] sm:$0xff] %v19295_v40 }
 0x2da   : > { %v1925_v16 = vcombine.high %v1829_v12, %v1829_v12  ;;  %v1932_v14 = vrot.slane %v1829_v12, %v19310_v62  ;;  %v1756_v30 = vadd.f32 %v15350_v24, %v19300_v41  ;;  %v15384_v63 = vadd.f32 %v15383_v21, %v15382_v59  ;;  %16265 = vmatprep.subr.bf16.mxu1 %v16885_v50 }
 0x2db   : > { %v15421_v11 = vadd.f32 %v19398_v45, %v19393_v37  ;;  %v19454_v48 = vpack.c.bf16 %v19374_v10, %v19372_v44  ;;  %v15385_v58 = vpop.f32.mrb[52].mxu1  ;;  %v1818_v52 = vadd.f32 %v19329_v54, %v1753_v25  ;;  %v19463_v45 = vpop.f32.mrb[31].mxu0  ;;  %v16889_v44 = vld [vmem:[#allocation10 + $0xc0] sm:$0xff]   ;;  %6648 = vst [vmem:[#allocation2 + $0x1a0] sm:$0xff] %v19295_v40  ;;  %6649 = vst [vmem:[#allocation2 + $0x1a8] sm:$0x3] %v19295_v40  ;;  %15893 = vmatprep.subr.bf16.mxu0 %v16887_v6 }
 0x2dc   : > { %v1939_v55 = vrot.slane %v1925_v16, %v19310_v62  ;;  %v1940_v41 = vcombine.high %v1932_v14, %v1932_v14  ;;  %v14082_v22 = vrot.slane %v1932_v14, 9  ;;  %v15386_v37 = vpop.f32.mrb[53].mxu1  ;;  %v1821_v10 = vadd.f32 %v19342_v1, %v1756_v30  ;;  %v19498_v30 = vpop.f32.mrb[32].mxu0  ;;  %v16891_v6 = vld [vmem:[#allocation10 + $0xc8] sm:$0xff]  }
 0x2dd   : > { %v2987_v56 = vadd.f32 %v15381_v15, %v19429_v23  ;;  %v2990_v9 = vadd.f32 %v15384_v63, %v19429_v23  ;;  %6030 = vmatprep.mubr.bf16.mxu1 %v19454_v48  ;;  %v15424_v54 = vadd.f32 %v19410_v17, %v19403_v28  ;;  %v15388_v35 = vpop.f32.mrb[54].mxu1  ;;  %v1830_v1 = vmax.f32 %v1818_v52, 0.0  ;;  %16266 = vmatpush3.bf16.msra.mxu1 %v16885_v50  ;;  %v16890_v15 = vld [vmem:[#allocation10 + $0x80] sm:$0xff]  }
 0x2de   : > { %v1941_v59 = vcombine.high %v1939_v55, %v1939_v55  ;;  %v14083_v3 = vrot.slane %v1940_v41, 9  ;;  %v14084_v20 = vrot.slane %v1939_v55, 9  ;;  %v19473_v4 = vmax.f32 %v1932_v14, %v14082_v22  ;;  %6031 = vmatmul.mubr.bf16.gmra.mrb[148].mxu1 %v19338_v61  ;;  %v15389_v19 = vpop.f32.mrb[55].mxu1  ;;  %v16888_v61 = vld [vmem:[#allocation10 + $0x38] sm:$0xff]   ;;  %15919 = vmatprep.subr.bf16.mxu1 %v16889_v44 }
 0x2df   : > { %v1831_v2 = vmax.f32 %v1821_v10, 0.0  ;;  %v19476_v31 = vadd.f32 %v15421_v11, %v2987_v56  ;;  %v19478_v21 = vadd.f32 %v15424_v54, %v2990_v9  ;;  %16267 = vmatprep.mubr.bf16.mxu1 %v19269_v60  ;;  %v5248_v8 = vpack.c.bf16 %v5244_v0, %v19431_v34  ;;  %15894 = vmatpush3.bf16.msra.mxu0 %v16888_v61 }
 0x2e0   : > { %v14085_v28 = vrot.slane %v1941_v59, 9  ;;  %v19481_v17 = vmax.f32 %v1940_v41, %v14083_v3  ;;  %v19483_v42 = vmax.f32 %v1939_v55, %v14084_v20  ;;  %v1942_v13 = vcombine.high %v1830_v1, %v1830_v1  ;;  %v19504_v55 = vpop.f32.mrb[33].mxu0 }
 0x2e1   : > { %v1949_v18 = vrot.slane %v1830_v1, %v19310_v62  ;;  %v1959_v12 = vcombine.high %v1831_v2, %v1831_v2  ;;  %v1966_v39 = vrot.slane %v1831_v2, %v19310_v62  ;;  %6095 = vmatprep.mubr.bf16.mxu0 %v5248_v8  ;;  %v15387_v60 = vadd.f32 %v15386_v37, %v15385_v58  ;;  %v15434_v44 = vpop.f32.mrb[34].mxu0  ;;  %v16892_v2 = vld [vmem:[#allocation10 + $0x88] sm:$0xff]  }
 0x2e2   : > { %v19488_v24 = vmax.f32 %v1941_v59, %v14085_v28  ;;  %v15390_v50 = vadd.f32 %v15389_v19, %v15388_v35  ;;  %v15427_v16 = vadd.f32 %v15426_v38, %v19442_v26  ;;  %v1956_v14 = vrot.slane %v1942_v13, %v19310_v62  ;;  %6096 = vmatmul.mubr.bf16.gmra.mrb[124].mxu0 %v5236_v51  ;;  %v15435_v59 = vpop.f32.mrb[35].mxu0 }
 0x2e3   : > { %v1957_v25 = vcombine.high %v1949_v18, %v1949_v18  ;;  %v14086_v34 = vrot.slane %v1949_v18, 9  ;;  %v1973_v0 = vrot.slane %v1959_v12, %v19310_v62  ;;  %v19496_v57 = vpop.f32.mrb[56].mxu1  ;;  %v1974_v63 = vcombine.high %v1966_v39, %v1966_v39 }
 0x2e4   : > { %v14090_v11 = vrot.slane %v1966_v39, 9  ;;  %v2995_v58 = vadd.f32 %v15387_v60, %v19429_v23  ;;  %v19502_v26 = vadd.f32 %v15390_v50, %v19429_v23  ;;  %v15392_v38 = vpop.f32.mrb[57].mxu1  ;;  %v1958_v41 = vcombine.high %v1956_v14, %v1956_v14 }
 0x2e5   : > { %v14087_v22 = vrot.slane %v1957_v25, 9  ;;  %v14088_v51 = vrot.slane %v1956_v14, 9  ;;  %v2128_v52 = vmax.f32 %v1949_v18, %v14086_v34  ;;  %v15394_v37 = vpop.f32.mrb[58].mxu1  ;;  %v1975_v10 = vcombine.high %v1973_v0, %v1973_v0  ;;  %v16893_v18 = vld [vmem:[#allocation10 + $0xd0] sm:$0xff]   ;;  %v19516_v34 = vld [vmem:[#allocation3 + $0x10] sm:$0xff] }
 0x2e6   : > { %v14091_v56 = vrot.slane %v1974_v63, 9  ;;  %v14092_v9 = vrot.slane %v1973_v0, 9  ;;  %v2132_v54 = vmax.f32 %v1966_v39, %v14090_v11  ;;  %16268 = vmatmul.mubr.bf16.vlgmr.msra.gmra.mrb[152].mxu1 %v19304_v47  ;;  %v15395_v35 = vpop.f32.mrb[59].mxu1  ;;  %v14089_v3 = vrot.slane %v1958_v41, 9 }
 0x2e7   : > { %v2129_v20 = vmax.f32 %v1957_v25, %v14087_v22  ;;  %v2130_v19 = vmax.f32 %v1956_v14, %v14088_v51  ;;  %v2144_v1 = vmax.f32 %v19422_v29, %v2128_v52  ;;  %15920 = vmatpush3.bf16.msra.mxu1 %v16890_v15  ;;  %16271 = vmatprep.mubr.bf16.mxu1 %v19454_v48  ;;  %v14093_v28 = vrot.slane %v1975_v10, 9  ;;  %v6662_v25 = vld [vmem:[#allocation3 + $0x1] sm:$0xff]  ;;  %v15437_v52 = vpop.f32.mrb[36].mxu0 }
 0x2e8   : > { %v2133_v8 = vmax.f32 %v1974_v63, %v14091_v56  ;;  %v2134_v61 = vmax.f32 %v1973_v0, %v14092_v9  ;;  %v2148_v13 = vmax.f32 %v19473_v4, %v2132_v54  ;;  %15921 = vmatprep.subr.bf16.mxu1 %v16891_v6  ;;  %v2131_v12 = vmax.f32 %v1958_v41, %v14089_v3  ;;  %v16895_v41 = vld [vmem:[#allocation10 + $0xd8] sm:$0xff]   ;;  %v15438_v3 = vpop.f32.mrb[37].mxu0 }
 0x2e9   : > { %v2145_v47 = vmax.f32 %v19436_v43, %v2129_v20  ;;  %v2146_v39 = vmax.f32 %v19425_v32, %v2130_v19  ;;  %v2203_v60 = vrot.slane %v2144_v1, %v19322_v36  ;;  %v2135_v50 = vmax.f32 %v1975_v10, %v14093_v28  ;;  %v16894_v32 = vld [vmem:[#allocation10 + $0x90] sm:$0xff]   ;;  %v16896_v9 = vld [vmem:[#allocation10 + $0x98] sm:$0xff]   ;;  %v15440_v1 = vpop.f32.mrb[38].mxu0 }
 0x2ea   : > { %v2149_v29 = vmax.f32 %v19481_v17, %v2133_v8  ;;  %v2150_v14 = vmax.f32 %v19483_v42, %v2134_v61  ;;  %v2219_v48 = vrot.slane %v2148_v13, %v19322_v36  ;;  %v2147_v4 = vmax.f32 %v19438_v49, %v2131_v12  ;;  %v16898_v13 = vld [vmem:[#allocation10 + $0xa0] sm:$0xff]  }
 0x2eb   : > { %v2207_v0 = vrot.slane %v2145_v47, %v19322_v36  ;;  %v2211_v43 = vrot.slane %v2146_v39, %v19322_v36  ;;  %v19521_v15 = vadd.f32 %v15427_v16, %v2995_v58  ;;  %15922 = vmatpush3.bf16.msra.mxu1 %v16892_v2  ;;  %v15397_v63 = vpop.f32.mrb[60].mxu1  ;;  %v2151_v17 = vmax.f32 %v19488_v24, %v2135_v50  ;;  %v16897_v2 = vld [vmem:[#allocation10 + $0xe0] sm:$0xff]   ;;  %v16899_v39 = vld [vmem:[#allocation10 + $0xe8] sm:$0xff]  }
 0x2ec   : > { %v2223_v42 = vrot.slane %v2149_v29, %v19322_v36  ;;  %v2227_v11 = vrot.slane %v2150_v14, %v19322_v36  ;;  %v15430_v6 = vadd.f32 %v19463_v45, %v19456_v46  ;;  %15923 = vmatprep.subr.bf16.mxu1 %v16893_v18  ;;  %v15398_v49 = vpop.f32.mrb[61].mxu1  ;;  %v2215_v22 = vrot.slane %v2147_v4, %v19322_v36  ;;  %v16900_v4 = vld [vmem:[#allocation10 + $0xa8] sm:$0xff]  }
 0x2ed   : > { %v2246_v16 = vsel %vm2232_vm0, %v2207_v0, %v2203_v60  ;;  %v6670_v58 = vpack.c.bf16 %v19434_v27, %v6662_v25  ;;  %v6658_v51 = vpack.c.bf16 %v19516_v34, %v19295_v40  ;;  %v15400_v24 = vpop.f32.mrb[62].mxu1  ;;  %v2231_v56 = vrot.slane %v2151_v17, %v19322_v36 }
 0x2ee   : > { %v2247_v10 = vsel %vm2234_vm1, %v2211_v43, %v2246_v16  ;;  %v19536_v46 = vadd.f32 %v15430_v6, %v19502_v26  ;;  %v15393_v45 = vadd.f32 %v15392_v38, %v19496_v57  ;;  %v15401_v54 = vpop.f32.mrb[63].mxu1  ;;  %v15396_v27 = vadd.f32 %v15395_v35, %v15394_v37  ;;  %v15441_v38 = vpop.f32.mrb[39].mxu0  ;;  %v16902_v16 = vld [vmem:[#allocation10 + $0xb0] sm:$0xff]  }
 0x2ef   : > { %v2248_v20 = vsel %vm2236_vm2, %v2215_v22, %v2247_v10  ;;  %7374 = vmatprep.mubr.bf16.mxu0 %v6670_v58  ;;  %v15433_v40 = vadd.f32 %v19504_v55, %v19498_v30  ;;  %v15436_v19 = vadd.f32 %v15435_v59, %v15434_v44  ;;  %v5260_v57 = vpack.c.bf16 %v19458_v7, %v19447_v53  ;;  %v15499_v25 = vpop.f32.mrb[40].mxu0 }
 0x2f0   : > { %v2249_v28 = vsel %vm2238_vm3, %v2219_v48, %v2248_v20  ;;  %7375 = vmatmul.mubr.bf16.vlgmr.msra.gmra.mrb[128].mxu0 %v6658_v51  ;;  %v3003_v26 = vadd.f32 %v15393_v45, %v19429_v23  ;;  %15924 = vmatpush3.bf16.msra.mxu1 %v16894_v32  ;;  %v3006_v37 = vadd.f32 %v15396_v27, %v19429_v23  ;;  %v15500_v43 = vpop.f32.mrb[41].mxu0 }
 0x2f1   : > { %v2250_v8 = vsel %vm2240_vm4, %v2223_v42, %v2249_v28  ;;  %v15399_v35 = vadd.f32 %v15398_v49, %v15397_v63  ;;  %15925 = vmatprep.subr.bf16.mxu1 %v16895_v41  ;;  %v15402_v30 = vadd.f32 %v15401_v54, %v15400_v24  ;;  %16272 = vmatmul.mubr.bf16.gmra.mrb[156].mxu1 %v5260_v57  ;;  %v15502_v17 = vpop.f32.mrb[42].mxu0  ;;  %v16901_v42 = vld [vmem:[#allocation10 + $0xf0] sm:$0xff]  }
 0x2f2   : > { %v2251_v55 = vsel %vm2242_vm5, %v2227_v11, %v2250_v8  ;;  %v19549_v44 = vadd.f32 %v15433_v40, %v3003_v26  ;;  %v15439_v59 = vadd.f32 %v15438_v3, %v15437_v52  ;;  %v15442_v61 = vadd.f32 %v15441_v38, %v15440_v1  ;;  %v15503_v11 = vpop.f32.mrb[43].mxu0  ;;  %v16903_v52 = vld [vmem:[#allocation10 + $0xf8] sm:$0xff]   ;;  %v6674_v1 = vld [vmem:[#allocation3 + $0x2] sm:$0xff] }
 0x2f3   : > { %v2252_v18 = vsel %vm2244_vm6, %v2231_v56, %v2251_v55  ;;  %v19552_v53 = vadd.f32 %v15436_v19, %v3006_v37  ;;  %v3011_v7 = vadd.f32 %v15399_v35, %v19429_v23  ;;  %v3014_v12 = vadd.f32 %v15402_v30, %v19429_v23  ;;  %v15459_v47 = vpop.f32.mrb[64].mxu1  ;;  %v15505_v45 = vpop.f32.mrb[44].mxu0  ;;  %v16904_v3 = vld [vmem:[#allocation10 + $0xb8] sm:$0xff]  }
 0x2f4   : > { %2257 = vst [vmem:[#allocation3 + $0x21] sm:$0xff] %v2252_v18  ;;  %15926 = vmatpush3.bf16.msra.mxu1 %v16896_v9  ;;  %v15460_v60 = vpop.f32.mrb[65].mxu1  ;;  %v15501_v23 = vadd.f32 %v15500_v43, %v15499_v25  ;;  %v15504_v49 = vadd.f32 %v15503_v11, %v15502_v17  ;;  %v15506_v9 = vpop.f32.mrb[45].mxu0 }
 0x2f5   : > { %v19556_v50 = vadd.f32 %v15439_v59, %v3011_v7  ;;  %v19558_v29 = vadd.f32 %v15442_v61, %v3014_v12  ;;  %15927 = vmatprep.subr.bf16.mxu1 %v16897_v2  ;;  %v15461_v14 = vadd.f32 %v15460_v60, %v15459_v47  ;;  %v15462_v48 = vpop.f32.mrb[66].mxu1  ;;  %v15507_v27 = vadd.f32 %v15506_v9, %v15505_v45  ;;  %v15508_v40 = vpop.f32.mrb[46].mxu0 }
 0x2f6   : > { %v15463_v0 = vpop.f32.mrb[67].mxu1  ;;  %v15509_v19 = vpop.f32.mrb[47].mxu0 }
 0x2f7   : > { %v3117_v32 = vadd.f32 %v15461_v14, %v19476_v31  ;;  %v15464_v63 = vadd.f32 %v15463_v0, %v15462_v48  ;;  %v15510_v28 = vadd.f32 %v15509_v19, %v15508_v40 }
 0x2f8   : > { %15928 = vmatpush3.bf16.msra.mxu1 %v16898_v13  ;;  %v15511_v30 = vpop.f32.mrb[48].mxu0 }
 0x2f9   : > { %15929 = vmatprep.subr.bf16.mxu1 %v16899_v39  ;;  %v3120_v6 = vadd.f32 %v15464_v63, %v19478_v21  ;;  %v19562_v41 = vadd.f32 %v15501_v23, %v3117_v32  ;;  %v15512_v59 = vpop.f32.mrb[49].mxu0 }
 0x2fa   : > { %v15513_v18 = vadd.f32 %v15512_v59, %v15511_v30  ;;  %v15514_v7 = vpop.f32.mrb[50].mxu0 }
 0x2fb   : > { %v19564_v22 = vld [vmem:[#allocation3 + $0x20] sm:$0xff]  ;;  %v15465_v58 = vpop.f32.mrb[68].mxu1  ;;  %v19566_v51 = vadd.f32 %v15504_v49, %v3120_v6  ;;  %v15515_v12 = vpop.f32.mrb[51].mxu0 }
 0x2fc   : > { %v6694_v31 = vpack.c.bf16 %v19564_v22, %v19516_v34  ;;  %15930 = vmatpush3.bf16.msra.mxu1 %v16900_v4  ;;  %v15466_v24 = vpop.f32.mrb[69].mxu1  ;;  %v6675_v34 = vld [vmem:[#allocation3 + $0x12] sm:$0xff]  ;;  %v15516_v47 = vadd.f32 %v15515_v12, %v15514_v7 }
 0x2fd   : > { %15931 = vmatprep.subr.bf16.mxu1 %v16901_v42  ;;  %v15467_v10 = vadd.f32 %v15466_v24, %v15465_v58  ;;  %v15468_v56 = vpop.f32.mrb[70].mxu1  ;;  %v6682_v37 = vpack.c.bf16 %v6675_v34, %v6674_v1 }
 0x2fe   : > { %7439 = vmatprep.mubr.bf16.mxu1 %v6694_v31  ;;  %v15469_v21 = vpop.f32.mrb[71].mxu1 }
 0x2ff   : > { %v3125_v54 = vadd.f32 %v15467_v10, %v19521_v15  ;;  %v15470_v20 = vadd.f32 %v15469_v21, %v15468_v56 }
 0x300   : > { %15932 = vmatpush3.bf16.msra.mxu1 %v16902_v16  ;;  %v15517_v0 = vpop.f32.mrb[52].mxu0 }
 0x301   : > { %15933 = vmatprep.subr.bf16.mxu1 %v16903_v52  ;;  %v3128_v2 = vadd.f32 %v15470_v20, %v19536_v46  ;;  %v3190_v26 = vadd.f32 %v15507_v27, %v3125_v54  ;;  %v15518_v32 = vpop.f32.mrb[53].mxu0 }
 0x302   : > { %v15519_v23 = vadd.f32 %v15518_v32, %v15517_v0  ;;  %v15520_v17 = vpop.f32.mrb[54].mxu0 }
 0x303   : > { %v15471_v57 = vpop.f32.mrb[72].mxu1  ;;  %v3193_v38 = vadd.f32 %v15510_v28, %v3128_v2  ;;  %v15521_v42 = vpop.f32.mrb[55].mxu0 }
 0x304   : > { %15934 = vmatpush3.bf16.msra.mxu1 %v16904_v3  ;;  %v15472_v8 = vpop.f32.mrb[73].mxu1  ;;  %v15522_v11 = vadd.f32 %v15521_v42, %v15520_v17 }
 0x305   : > { %v15473_v35 = vadd.f32 %v15472_v8, %v15471_v57  ;;  %v15474_v15 = vpop.f32.mrb[74].mxu1 }
 0x306   : > { %v15475_v55 = vpop.f32.mrb[75].mxu1 }
 0x307   : > { %7440 = vmatmul.mubr.bf16.vlgmr.msra.gmra.mrb[160].mxu1 %v6682_v37  ;;  %v3133_v61 = vadd.f32 %v15473_v35, %v19549_v44  ;;  %v15476_v13 = vadd.f32 %v15475_v55, %v15474_v15 }
 0x309   : > { %v3136_v46 = vadd.f32 %v15476_v13, %v19552_v53  ;;  %v19574_v39 = vadd.f32 %v15513_v18, %v3133_v61  ;;  %v15551_v10 = vpop.f32.mrb[56].mxu0 }
 0x30a   : > { %v15552_v21 = vpop.f32.mrb[57].mxu0 }
 0x30b   : > { %v15477_v60 = vpop.f32.mrb[76].mxu1  ;;  %v19576_v14 = vadd.f32 %v15516_v47, %v3136_v46  ;;  %v19588_v3 = vpop.f32.mrb[58].mxu0 }
 0x30c   : > { %v15478_v48 = vpop.f32.mrb[77].mxu1  ;;  %v19591_v19 = vpop.f32.mrb[59].mxu0 }
 0x30d   : > { %v15479_v25 = vadd.f32 %v15478_v48, %v15477_v60  ;;  %v15480_v4 = vpop.f32.mrb[78].mxu1 }
 0x30e   : > { %v15481_v43 = vpop.f32.mrb[79].mxu1 }
 0x30f   : > { %v3141_v44 = vadd.f32 %v15479_v25, %v19556_v50  ;;  %v15482_v63 = vadd.f32 %v15481_v43, %v15480_v4 }
 0x311   : > { %v3144_v53 = vadd.f32 %v15482_v63, %v19558_v29  ;;  %v19580_v6 = vadd.f32 %v15519_v23, %v3141_v44  ;;  %v19586_v29 = vadd.f32 %v15552_v21, %v15551_v10  ;;  %v19597_v47 = vpop.f32.mrb[60].mxu0 }
 0x312   : > { %v19602_v43 = vpop.f32.mrb[61].mxu0 }
 0x313   : > { %v16221_v49 = vpop.f32.mrb[80].mxu1  ;;  %v19582_v16 = vadd.f32 %v15522_v11, %v3144_v53  ;;  %v19604_v17 = vpop.f32.mrb[62].mxu0 }
 0x314   : > { %v3255_v58 = vadd.f32 %v16221_v49, %v3190_v26  ;;  %v3246_v31 = vpop.f32.mrb[81].mxu1 }
 0x315   : > { %v3247_v24 = vadd.f32 %v3246_v31, %v19562_v41  ;;  %v16222_v52 = vpop.f32.mrb[82].mxu1 }
 0x316   : > { %v3279_v56 = vmax.f32 %v3255_v58, 0.0  ;;  %v3258_v50 = vadd.f32 %v16222_v52, %v3193_v38  ;;  %v3249_v45 = vpop.f32.mrb[83].mxu1  ;;  %v19606_v58 = vpop.f32.mrb[63].mxu0 }
 0x317   : > { %v3277_v9 = vmax.f32 %v3247_v24, 0.0  ;;  %v3250_v54 = vadd.f32 %v3249_v45, %v19566_v51 }
 0x318   : > { %v3327_v20 = vcombine.high %v3279_v56, %v3279_v56  ;;  %v3334_v27 = vrot.slane %v3279_v56, %v19310_v62  ;;  %v3280_v40 = vmax.f32 %v3258_v50, 0.0 }
 0x319   : > { %v3293_v41 = vcombine.high %v3277_v9, %v3277_v9  ;;  %v3300_v1 = vrot.slane %v3277_v9, %v19310_v62  ;;  %v3278_v34 = vmax.f32 %v3250_v54, 0.0 }
 0x31a   : > { %v3341_v2 = vrot.slane %v3327_v20, %v19310_v62  ;;  %v3342_v28 = vcombine.high %v3334_v27, %v3334_v27  ;;  %v14175_v26 = vrot.slane %v3334_v27, 9  ;;  %v3344_v57 = vcombine.high %v3280_v40, %v3280_v40 }
 0x31b   : > { %v3307_v51 = vrot.slane %v3293_v41, %v19310_v62  ;;  %v3308_v38 = vcombine.high %v3300_v1, %v3300_v1  ;;  %v14167_v8 = vrot.slane %v3300_v1, 9  ;;  %v3351_v37 = vrot.slane %v3280_v40, %v19310_v62  ;;  %v16225_v35 = vpop.f32.mrb[84].mxu1 }
 0x31c   : > { %v3343_v15 = vcombine.high %v3341_v2, %v3341_v2  ;;  %v14176_v30 = vrot.slane %v3342_v28, 9  ;;  %v14177_v55 = vrot.slane %v3341_v2, 9  ;;  %v3565_v59 = vmax.f32 %v3334_v27, %v14175_v26  ;;  %v3262_v61 = vpop.f32.mrb[85].mxu1 }
 0x31d   : > { %v3309_v13 = vcombine.high %v3307_v51, %v3307_v51  ;;  %v14168_v18 = vrot.slane %v3308_v38, 9  ;;  %v14169_v7 = vrot.slane %v3307_v51, 9  ;;  %v3557_v12 = vmax.f32 %v3300_v1, %v14167_v8  ;;  %v16226_v46 = vpop.f32.mrb[86].mxu1 }
 0x31e   : > { %v14178_v60 = vrot.slane %v3343_v15, 9  ;;  %v3566_v48 = vmax.f32 %v3342_v28, %v14176_v30  ;;  %v3567_v25 = vmax.f32 %v3341_v2, %v14177_v55  ;;  %v3358_v4 = vrot.slane %v3344_v57, %v19310_v62  ;;  %v19600_v0 = vpop.f32.mrb[87].mxu1 }
 0x31f   : > { %v14170_v32 = vrot.slane %v3309_v13, 9  ;;  %v3558_v44 = vmax.f32 %v3308_v38, %v14168_v18  ;;  %v3559_v63 = vmax.f32 %v3307_v51, %v14169_v7  ;;  %v3589_v23 = vmax.f32 %v3557_v12, %v3565_v59  ;;  %v19616_v38 = vpop.f32.mrb[64].mxu0 }
 0x320   : > { %v3568_v42 = vmax.f32 %v3343_v15, %v14178_v60  ;;  %v3359_v53 = vcombine.high %v3351_v37, %v3351_v37  ;;  %v3360_v11 = vcombine.high %v3358_v4, %v3358_v4  ;;  %v14179_v49 = vrot.slane %v3351_v37, 9  ;;  %v19620_v55 = vpop.f32.mrb[65].mxu0 }
 0x321   : > { %v3560_v31 = vmax.f32 %v3309_v13, %v14170_v32  ;;  %v3590_v24 = vmax.f32 %v3558_v44, %v3566_v48  ;;  %v3591_v52 = vmax.f32 %v3559_v63, %v3567_v25  ;;  %v3624_v10 = vrot.slane %v3589_v23, %v19322_v36  ;;  %v19623_v7 = vpop.f32.mrb[66].mxu0 }
 0x322   : > { %v14180_v56 = vrot.slane %v3359_v53, 9  ;;  %v14181_v50 = vrot.slane %v3358_v4, 9  ;;  %v14182_v45 = vrot.slane %v3360_v11, 9  ;;  %v3569_v21 = vmax.f32 %v3351_v37, %v14179_v49  ;;  %v19626_v48 = vpop.f32.mrb[67].mxu0 }
 0x323   : > { %v3592_v9 = vmax.f32 %v3560_v31, %v3568_v42  ;;  %v3628_v54 = vrot.slane %v3590_v24, %v19322_v36  ;;  %v3632_v20 = vrot.slane %v3591_v52, %v19322_v36  ;;  %v3310_v27 = vcombine.high %v3278_v34, %v3278_v34 }
 0x324   : > { %v3570_v40 = vmax.f32 %v3359_v53, %v14180_v56  ;;  %v3571_v41 = vmax.f32 %v3358_v4, %v14181_v50  ;;  %v3572_v1 = vmax.f32 %v3360_v11, %v14182_v45  ;;  %v3317_v2 = vrot.slane %v3278_v34, %v19310_v62  ;;  %v19634_v45 = vpop.f32.mrb[68].mxu0 }
 0x325   : > { %v3636_v28 = vrot.slane %v3592_v9, %v19322_v36  ;;  %v3685_v26 = vsel %vm2232_vm0, %v3628_v54, %v3624_v10  ;;  %v3324_v57 = vrot.slane %v3310_v27, %v19310_v62  ;;  %v3271_v51 = vadd.f32 %v16225_v35, %v19580_v6  ;;  %v19638_v27 = vpop.f32.mrb[69].mxu0 }
 0x326   : > { %v3686_v8 = vsel %vm2234_vm1, %v3632_v20, %v3685_v26  ;;  %v3325_v37 = vcombine.high %v3317_v2, %v3317_v2  ;;  %v14171_v15 = vrot.slane %v3317_v2, 9  ;;  %v3263_v30 = vadd.f32 %v3262_v61, %v19574_v39 }
 0x327   : > { %v3326_v59 = vcombine.high %v3324_v57, %v3324_v57  ;;  %v14173_v34 = vrot.slane %v3324_v57, 9  ;;  %v3687_v13 = vsel %vm2236_vm2, %v3636_v28, %v3686_v8  ;;  %v3283_v18 = vmax.f32 %v3271_v51, 0.0 }
 0x328   : > { %v14172_v12 = vrot.slane %v3325_v37, 9  ;;  %v3561_v60 = vmax.f32 %v3317_v2, %v14171_v15  ;;  %v3281_v6 = vmax.f32 %v3263_v30, 0.0  ;;  %v3274_v35 = vadd.f32 %v16226_v46, %v19582_v16 }
 0x329   : > { %v14174_v25 = vrot.slane %v3326_v59, 9  ;;  %v3563_v4 = vmax.f32 %v3324_v57, %v14173_v34  ;;  %v3395_v32 = vcombine.high %v3283_v18, %v3283_v18  ;;  %v3402_v39 = vrot.slane %v3283_v18, %v19310_v62 }
 0x32a   : > { %v3562_v61 = vmax.f32 %v3325_v37, %v14172_v12  ;;  %v3593_v44 = vmax.f32 %v3561_v60, %v3569_v21  ;;  %v3361_v63 = vcombine.high %v3281_v6, %v3281_v6  ;;  %v3368_v23 = vrot.slane %v3281_v6, %v19310_v62 }
 0x32b   : > { %v3564_v42 = vmax.f32 %v3326_v59, %v14174_v25  ;;  %v3595_v53 = vmax.f32 %v3563_v4, %v3571_v41  ;;  %v3409_v11 = vrot.slane %v3395_v32, %v19310_v62  ;;  %v3410_v49 = vcombine.high %v3402_v39, %v3402_v39 }
 0x32c   : > { %v3594_v31 = vmax.f32 %v3562_v61, %v3570_v40  ;;  %v3640_v16 = vrot.slane %v3593_v44, %v19322_v36  ;;  %v14191_v46 = vrot.slane %v3402_v39, 9  ;;  %v3375_v24 = vrot.slane %v3361_v63, %v19310_v62 }
 0x32d   : > { %v3596_v52 = vmax.f32 %v3564_v42, %v3572_v1  ;;  %v3648_v10 = vrot.slane %v3595_v53, %v19322_v36  ;;  %v3411_v56 = vcombine.high %v3409_v11, %v3409_v11  ;;  %v14192_v50 = vrot.slane %v3410_v49, 9  ;;  %v19641_v1 = vpop.f32.mrb[70].mxu0 }
 0x32e   : > { %v3644_v21 = vrot.slane %v3594_v31, %v19322_v36  ;;  %v3688_v9 = vsel %vm2238_vm3, %v3640_v16, %v3687_v13  ;;  %v14193_v54 = vrot.slane %v3409_v11, 9  ;;  %v3581_v20 = vmax.f32 %v3402_v39, %v14191_v46  ;;  %v19644_v37 = vpop.f32.mrb[71].mxu0 }
 0x32f   : > { %v3652_v40 = vrot.slane %v3596_v52, %v19322_v36  ;;  %v14194_v41 = vrot.slane %v3411_v56, 9  ;;  %v3582_v2 = vmax.f32 %v3410_v49, %v14192_v50  ;;  %v3376_v28 = vcombine.high %v3368_v23, %v3368_v23  ;;  %v19664_v31 = vpop.f32.mrb[72].mxu0 }
 0x330   : > { %v3689_v26 = vsel %vm2240_vm4, %v3644_v21, %v3688_v9  ;;  %v3583_v57 = vmax.f32 %v3409_v11, %v14193_v54  ;;  %v3377_v51 = vcombine.high %v3375_v24, %v3375_v24  ;;  %v14183_v8 = vrot.slane %v3368_v23, 9  ;;  %v19668_v46 = vpop.f32.mrb[73].mxu0 }
 0x331   : > { %v3690_v15 = vsel %vm2242_vm5, %v3648_v10, %v3689_v26  ;;  %v3584_v30 = vmax.f32 %v3411_v56, %v14194_v41  ;;  %v14184_v59 = vrot.slane %v3376_v28, 9  ;;  %v14185_v34 = vrot.slane %v3375_v24, 9  ;;  %v19672_v50 = vpop.f32.mrb[74].mxu0 }
 0x332   : > { %v19648_v13 = vsel %vm2244_vm6, %v3652_v40, %v3690_v15  ;;  %v14186_v18 = vrot.slane %v3377_v51, 9  ;;  %v3573_v12 = vmax.f32 %v3368_v23, %v14183_v8  ;;  %v3284_v60 = vmax.f32 %v3274_v35, 0.0  ;;  %v19675_v40 = vpop.f32.mrb[75].mxu0 }
 0x333   : > { %3702 = vst [vmem:[#allocation3 + $0x31] sm:$0xff] %v19648_v13  ;;  %v3574_v6 = vmax.f32 %v3376_v28, %v14184_v59  ;;  %v3575_v25 = vmax.f32 %v3375_v24, %v14185_v34  ;;  %v3266_v4 = vadd.f32 %v19600_v0, %v19576_v14  ;;  %v19655_v32 = vadd.f32 %v19591_v19, %v19588_v3  ;;  %v19657_v39 = vpop.f32.mrb[88].mxu1 }
 0x334   : > { %v3576_v61 = vmax.f32 %v3377_v51, %v14186_v18  ;;  %v3597_v44 = vmax.f32 %v3573_v12, %v3581_v20  ;;  %v3412_v63 = vcombine.high %v3284_v60, %v3284_v60  ;;  %v3419_v42 = vrot.slane %v3284_v60, %v19310_v62  ;;  %v19660_v23 = vpop.f32.mrb[89].mxu1 }
 0x335   : > { %v3598_v35 = vmax.f32 %v3574_v6, %v3582_v2  ;;  %v3599_v53 = vmax.f32 %v3575_v25, %v3583_v57  ;;  %v3282_v11 = vmax.f32 %v3266_v4, 0.0  ;;  %v19662_v49 = vpop.f32.mrb[90].mxu1  ;;  %v15559_v25 = vadd.f32 %v19602_v43, %v19597_v47 }
 0x336   : > { %v3600_v14 = vmax.f32 %v3576_v61, %v3584_v30  ;;  %v3656_v3 = vrot.slane %v3597_v44, %v19322_v36  ;;  %v3426_v19 = vrot.slane %v3412_v63, %v19310_v62  ;;  %v3427_v0 = vcombine.high %v3419_v42, %v3419_v42  ;;  %v15595_v16 = vpop.f32.mrb[91].mxu1 }
 0x337   : > { %v3660_v24 = vrot.slane %v3598_v35, %v19322_v36  ;;  %v3664_v52 = vrot.slane %v3599_v53, %v19322_v36  ;;  %v14195_v10 = vrot.slane %v3419_v42, 9  ;;  %v3378_v56 = vcombine.high %v3282_v11, %v3282_v11 }
 0x338   : > { %v3668_v21 = vrot.slane %v3600_v14, %v19322_v36  ;;  %v3428_v9 = vcombine.high %v3426_v19, %v3426_v19  ;;  %v14196_v54 = vrot.slane %v3427_v0, 9  ;;  %v14197_v20 = vrot.slane %v3426_v19, 9  ;;  %v19686_v14 = vld [vmem:[#allocation8] ss:$0 sm:$0xff] }
 0x339   : > { %v3692_v41 = vsel %vm2232_vm0, %v3660_v24, %v3656_v3  ;;  %v3585_v2 = vmax.f32 %v3419_v42, %v14195_v10  ;;  %v3385_v28 = vrot.slane %v3282_v11, %v19310_v62  ;;  %v3392_v26 = vrot.slane %v3378_v56, %v19310_v62  ;;  %v15637_v11 = vpop.f32.mrb[76].mxu0 }
 0x33a   : > { %v3693_v57 = vsel %vm2234_vm1, %v3664_v52, %v3692_v41  ;;  %v14198_v51 = vrot.slane %v3428_v9, 9  ;;  %v3586_v8 = vmax.f32 %v3427_v0, %v14196_v54  ;;  %v3587_v15 = vmax.f32 %v3426_v19, %v14197_v20  ;;  %v19694_v10 = vld [vmem:[#allocation3 + $0x30] sm:$0xff]  ;;  %v6664_v41 = vld [vmem:[#allocation3 + $0x21] sm:$0xff] }
 0x33b   : > { %v3393_v30 = vcombine.high %v3385_v28, %v3385_v28  ;;  %v3394_v59 = vcombine.high %v3392_v26, %v3392_v26  ;;  %v14187_v34 = vrot.slane %v3385_v28, 9  ;;  %v14189_v18 = vrot.slane %v3392_v26, 9  ;;  %v15597_v12 = vpop.f32.mrb[92].mxu1 }
 0x33c   : > { %v3588_v60 = vmax.f32 %v3428_v9, %v14198_v51  ;;  %v3694_v6 = vsel %vm2236_vm2, %v3668_v21, %v3693_v57  ;;  %v15562_v4 = vadd.f32 %v19606_v58, %v19604_v17  ;;  %v15598_v61 = vpop.f32.mrb[93].mxu1  ;;  %v4433_v3 = vadd.f32 %v19686_v14, %v19586_v29  ;;  %v15638_v17 = vpop.f32.mrb[77].mxu0 }
 0x33d   : > { %v14188_v44 = vrot.slane %v3393_v30, 9  ;;  %v14190_v63 = vrot.slane %v3394_v59, 9  ;;  %v3577_v42 = vmax.f32 %v3385_v28, %v14187_v34  ;;  %v3579_v35 = vmax.f32 %v3392_v26, %v14189_v18  ;;  %v15600_v53 = vpop.f32.mrb[94].mxu1  ;;  %v15640_v56 = vpop.f32.mrb[78].mxu0 }
 0x33e   : > { %v15565_v19 = vadd.f32 %v19620_v55, %v19616_v38  ;;  %v15568_v47 = vadd.f32 %v19626_v48, %v19623_v7  ;;  %v15601_v43 = vpop.f32.mrb[95].mxu1  ;;  %v4436_v21 = vadd.f32 %v19686_v14, %v19655_v32  ;;  %v4441_v29 = vadd.f32 %v19686_v14, %v15559_v25  ;;  %v15641_v7 = vpop.f32.mrb[79].mxu0 }
 0x33f   : > { %v3578_v58 = vmax.f32 %v3393_v30, %v14188_v44  ;;  %v3580_v0 = vmax.f32 %v3394_v59, %v14190_v63  ;;  %v3601_v24 = vmax.f32 %v3577_v42, %v3585_v2  ;;  %v3603_v52 = vmax.f32 %v3579_v35, %v3587_v15  ;;  %v15643_v18 = vpop.f32.mrb[80].mxu0 }
 0x340   : > { %v15571_v38 = vadd.f32 %v19638_v27, %v19634_v45  ;;  %v15574_v55 = vadd.f32 %v19644_v37, %v19641_v1  ;;  %v4444_v20 = vadd.f32 %v19686_v14, %v15562_v4  ;;  %v4449_v32 = vadd.f32 %v19686_v14, %v15565_v19  ;;  %v15644_v25 = vpop.f32.mrb[81].mxu0 }
 0x341   : > { %v3602_v48 = vmax.f32 %v3578_v58, %v3586_v8  ;;  %v3604_v9 = vmax.f32 %v3580_v0, %v3588_v60  ;;  %v3672_v54 = vrot.slane %v3601_v24, %v19322_v36  ;;  %v3680_v2 = vrot.slane %v3603_v52, %v19322_v36 }
 0x342   : > { %v15593_v28 = vadd.f32 %v19660_v23, %v19657_v39  ;;  %v15596_v45 = vadd.f32 %v15595_v16, %v19662_v49  ;;  %v15633_v26 = vadd.f32 %v19668_v46, %v19664_v31  ;;  %v6671_v15 = vpack.c.bf16 %v19648_v13, %v6664_v41 }
 0x343   : > { %v3676_v27 = vrot.slane %v3602_v48, %v19322_v36  ;;  %v3684_v1 = vrot.slane %v3604_v9, %v19322_v36  ;;  %v3695_v37 = vsel %vm2238_vm3, %v3672_v54, %v3694_v6  ;;  %v15603_v57 = vpop.f32.mrb[96].mxu1  ;;  %v6659_v30 = vpack.c.bf16 %v19694_v10, %v19564_v22 }
 0x344   : > { %v4498_v51 = vadd.f32 %v15593_v28, %v4433_v3  ;;  %v4501_v8 = vadd.f32 %v15596_v45, %v4436_v21  ;;  %v15604_v39 = vpop.f32.mrb[97].mxu1  ;;  %v15636_v49 = vadd.f32 %v19675_v40, %v19672_v50  ;;  %v15599_v16 = vadd.f32 %v15598_v61, %v15597_v12  ;;  %7382 = vmatprep.mubr.bf16.mxu0 %v6671_v15  ;;  %v15646_v40 = vpop.f32.mrb[82].mxu0  ;;  %v6676_v45 = vld [vmem:[#allocation3 + $0x22] sm:$0xff] }
 0x345   : > { %v3696_v23 = vsel %vm2240_vm4, %v3676_v27, %v3695_v37  ;;  %v15602_v59 = vadd.f32 %v15601_v43, %v15600_v53  ;;  %v15606_v34 = vpop.f32.mrb[98].mxu1  ;;  %v4452_v46 = vadd.f32 %v19686_v14, %v15568_v47  ;;  %v15639_v13 = vadd.f32 %v15638_v17, %v15637_v11  ;;  %7383 = vmatmul.mubr.bf16.gmra.mrb[132].mxu0 %v6659_v30  ;;  %v15647_v35 = vpop.f32.mrb[83].mxu0  ;;  %v6677_v17 = vld [vmem:[#allocation3 + $0x32] sm:$0xff] }
 0x346   : > { %v3697_v31 = vsel %vm2242_vm5, %v3680_v2, %v3696_v23  ;;  %v4563_v60 = vadd.f32 %v15633_v26, %v4498_v51  ;;  %v15607_v6 = vpop.f32.mrb[99].mxu1  ;;  %v4566_v4 = vadd.f32 %v15636_v49, %v4501_v8  ;;  %v4506_v44 = vadd.f32 %v15599_v16, %v4441_v29  ;;  %v15649_v29 = vpop.f32.mrb[84].mxu0 }
 0x347   : > { %v19724_v22 = vsel %vm2244_vm6, %v3684_v1, %v3697_v31  ;;  %v4509_v50 = vadd.f32 %v15602_v59, %v4444_v20  ;;  %v15642_v12 = vadd.f32 %v15641_v7, %v15640_v56  ;;  %v15605_v61 = vadd.f32 %v15604_v39, %v15603_v57  ;;  %v15650_v48 = vpop.f32.mrb[85].mxu0  ;;  %v16905_v59 = vld [vmem:[#allocation10 + $0x140] sm:$0xff]  }
 0x348   : > { %3703 = vst [vmem:[#allocation3 + $0x41] sm:$0xff] %v19724_v22  ;;  %v15608_v63 = vadd.f32 %v15607_v6, %v15606_v34  ;;  %v15645_v42 = vadd.f32 %v15644_v25, %v15643_v18  ;;  %v19727_v53 = vadd.f32 %v15639_v13, %v4506_v44  ;;  %v15648_v11 = vadd.f32 %v15647_v35, %v15646_v40  ;;  %v16906_v31 = vld [vmem:[#allocation10 + $0x100] sm:$0xff]   ;;  %v16907_v44 = vld [vmem:[#allocation10 + $0x148] sm:$0xff]  }
 0x349   : > { %v19729_v3 = vadd.f32 %v15642_v12, %v4509_v50  ;;  %v4514_v19 = vadd.f32 %v15605_v61, %v4449_v32  ;;  %v4457_v52 = vadd.f32 %v19686_v14, %v15571_v38  ;;  %v4460_v9 = vadd.f32 %v19686_v14, %v15574_v55  ;;  %v15652_v32 = vpop.f32.mrb[86].mxu0  ;;  %15959 = vmatprep.subr.bf16.mxu0 %v16905_v59 }
 0x34a   : > { %v4517_v47 = vadd.f32 %v15608_v63, %v4452_v46  ;;  %v15651_v2 = vadd.f32 %v15650_v48, %v15649_v29  ;;  %v15653_v27 = vpop.f32.mrb[87].mxu0  ;;  %v6683_v1 = vpack.c.bf16 %v6677_v17, %v6676_v45  ;;  %15960 = vmatpush3.bf16.msra.mxu0 %v16906_v31  ;;  %v16909_v17 = vld [vmem:[#allocation10 + $0x150] sm:$0xff]   ;;  %v16910_v29 = vld [vmem:[#allocation10 + $0x1c0] sm:$0xff]   ;;  %v16916_v31 = vld [vmem:[#allocation10 + $0x188] sm:$0xff]  }
 0x34b   : > { %v15609_v43 = vpop.f32.mrb[100].mxu1  ;;  %v19731_v58 = vadd.f32 %v15645_v42, %v4514_v19  ;;  %v15654_v26 = vadd.f32 %v15653_v27, %v15652_v32  ;;  %15961 = vmatprep.subr.bf16.mxu0 %v16907_v44  ;;  %15999 = vmatprep.subr.bf16.mxu1 %v16910_v29 }
 0x34c   : > { %v19733_v0 = vadd.f32 %v15648_v11, %v4517_v47  ;;  %v15610_v24 = vpop.f32.mrb[101].mxu1 }
 0x34d   : > { %v15611_v56 = vadd.f32 %v15610_v24, %v15609_v43  ;;  %v15612_v21 = vpop.f32.mrb[102].mxu1  ;;  %v16245_v15 = vpop.f32.mrb[88].mxu0 }
 0x34e   : > { %v15613_v7 = vpop.f32.mrb[103].mxu1  ;;  %v4692_v39 = vpop.f32.mrb[89].mxu0 }
 0x34f   : > { %v19737_v54 = vld [vmem:[#allocation3 + $0x40] sm:$0xff]  ;;  %v4522_v20 = vadd.f32 %v15611_v56, %v4457_v52  ;;  %v15614_v41 = vadd.f32 %v15613_v7, %v15612_v21  ;;  %v16246_v49 = vpop.f32.mrb[90].mxu0 }
 0x350   : > { %v6695_v28 = vpack.c.bf16 %v19737_v54, %v19694_v10  ;;  %v4695_v16 = vpop.f32.mrb[91].mxu0  ;;  %v16911_v7 = vld [vmem:[#allocation10 + $0x110] sm:$0xff]  }
 0x351   : > { %v4525_v38 = vadd.f32 %v15614_v41, %v4460_v9  ;;  %v19741_v37 = vadd.f32 %v15651_v2, %v4522_v20  ;;  %v16912_v2 = vld [vmem:[#allocation10 + $0x180] sm:$0xff]  }
 0x352   : > { %7447 = vmatprep.mubr.bf16.mxu1 %v6695_v28  ;;  %16000 = vmatpush3.bf16.msra.mxu1 %v16912_v2 }
 0x353   : > { %7448 = vmatmul.mubr.bf16.gmra.mrb[164].mxu1 %v6683_v1  ;;  %v19743_v57 = vadd.f32 %v15654_v26, %v4525_v38  ;;  %v15671_v14 = vpop.f32.mrb[104].mxu1  ;;  %v16913_v26 = vld [vmem:[#allocation10 + $0x158] sm:$0xff]  }
 0x354   : > { %v15672_v55 = vpop.f32.mrb[105].mxu1 }
 0x355   : > { %v15673_v51 = vadd.f32 %v15672_v55, %v15671_v14  ;;  %v15674_v8 = vpop.f32.mrb[106].mxu1 }
 0x356   : > { %v15675_v30 = vpop.f32.mrb[107].mxu1 }
 0x357   : > { %v15676_v23 = vadd.f32 %v15675_v30, %v15674_v8  ;;  %v4628_v10 = vadd.f32 %v15673_v51, %v4563_v60  ;;  %v16908_v60 = vld [vmem:[#allocation10 + $0x108] sm:$0xff]  }
 0x358   : > { %15962 = vmatpush3.bf16.msra.mxu0 %v16908_v60 }
 0x359   : > { %v4693_v34 = vadd.f32 %v4692_v39, %v4628_v10  ;;  %v4631_v18 = vadd.f32 %v15676_v23, %v4566_v4  ;;  %15963 = vmatprep.subr.bf16.mxu0 %v16909_v17  ;;  %v16915_v39 = vld [vmem:[#allocation10 + $0x118] sm:$0xff]  }
 0x35b   : > { %v4723_v46 = vmax.f32 %v4693_v34, 0.0  ;;  %v4696_v13 = vadd.f32 %v4695_v16, %v4631_v18  ;;  %v15677_v6 = vpop.f32.mrb[108].mxu1 }
 0x35c   : > { %v15678_v25 = vpop.f32.mrb[109].mxu1  ;;  %15964 = vmatpush3.bf16.msra.mxu0 %v16911_v7 }
 0x35d   : > { %v4739_v50 = vcombine.high %v4723_v46, %v4723_v46  ;;  %v4746_v40 = vrot.slane %v4723_v46, %v19310_v62  ;;  %v4724_v12 = vmax.f32 %v4696_v13, 0.0  ;;  %v15679_v61 = vadd.f32 %v15678_v25, %v15677_v6  ;;  %v15680_v63 = vpop.f32.mrb[110].mxu1  ;;  %15965 = vmatprep.subr.bf16.mxu0 %v16913_v26  ;;  %v16923_v26 = vld [vmem:[#allocation10 + $0x128] sm:$0xff]  }
 0x35e   : > { %v15681_v42 = vpop.f32.mrb[111].mxu1  ;;  %v19753_v38 = vpop.f32.mrb[92].mxu0 }
 0x35f   : > { %v4753_v35 = vrot.slane %v4739_v50, %v19310_v62  ;;  %v4754_v4 = vcombine.high %v4746_v40, %v4746_v40  ;;  %v4756_v11 = vcombine.high %v4724_v12, %v4724_v12  ;;  %v4763_v19 = vrot.slane %v4724_v12, %v19310_v62  ;;  %v4708_v30 = vpop.f32.mrb[93].mxu0 }
 0x360   : > { %v4636_v47 = vadd.f32 %v15679_v61, %v19727_v53  ;;  %v15682_v43 = vadd.f32 %v15681_v42, %v15680_v63  ;;  %v14272_v52 = vrot.slane %v4746_v40, 9  ;;  %v19763_v18 = vpop.f32.mrb[94].mxu0  ;;  %15966 = vmatpush3.bf16.msra.mxu0 %v16915_v39  ;;  %v16917_v61 = vld [vmem:[#allocation10 + $0x160] sm:$0xff]   ;;  %v16925_v39 = vld [vmem:[#allocation10 + $0x170] sm:$0xff]  }
 0x361   : > { %v4755_v24 = vcombine.high %v4753_v35, %v4753_v35  ;;  %v14273_v56 = vrot.slane %v4754_v4, 9  ;;  %v14274_v21 = vrot.slane %v4753_v35, 9  ;;  %v4770_v48 = vrot.slane %v4756_v11, %v19310_v62  ;;  %v19766_v25 = vpop.f32.mrb[95].mxu0  ;;  %v16919_v11 = vld [vmem:[#allocation10 + $0x120] sm:$0xff]   ;;  %15967 = vmatprep.subr.bf16.mxu0 %v16917_v61  ;;  %v16927_v61 = vld [vmem:[#allocation10 + $0x130] sm:$0xff]  }
 0x362   : > { %v4771_v9 = vcombine.high %v4763_v19, %v4763_v19  ;;  %v14276_v20 = vrot.slane %v4763_v19, 9  ;;  %v4701_v41 = vadd.f32 %v16245_v15, %v4636_v47  ;;  %v4639_v32 = vadd.f32 %v15682_v43, %v19729_v3  ;;  %v16914_v3 = vld [vmem:[#allocation10 + $0x1c8] sm:$0xff]  }
 0x363   : > { %v15683_v28 = vpop.f32.mrb[112].mxu1  ;;  %v14275_v53 = vrot.slane %v4755_v24, 9  ;;  %v19751_v45 = vcombine.high %v4770_v48, %v4770_v48  ;;  %v19755_v14 = vmax.f32 %v4746_v40, %v14272_v52  ;;  %v19757_v23 = vmax.f32 %v4754_v4, %v14273_v56  ;;  %16001 = vmatprep.subr.bf16.mxu1 %v16914_v3  ;;  %v16918_v4 = vld [vmem:[#allocation10 + $0x1d0] sm:$0xff]   ;;  %v16924_v3 = vld [vmem:[#allocation10 + $0x198] sm:$0xff]  }
 0x364   : > { %v14277_v27 = vrot.slane %v4771_v9, 9  ;;  %v15684_v1 = vpop.f32.mrb[113].mxu1  ;;  %v4725_v55 = vmax.f32 %v4701_v41, 0.0  ;;  %v4704_v51 = vadd.f32 %v16246_v49, %v4639_v32  ;;  %v19759_v10 = vmax.f32 %v4753_v35, %v14274_v21  ;;  %16002 = vmatpush3.bf16.msra.mxu1 %v16916_v31  ;;  %15968 = vmatpush3.bf16.msra.mxu0 %v16919_v11 }
 0x365   : > { %v15685_v8 = vadd.f32 %v15684_v1, %v15683_v28  ;;  %v15686_v15 = vpop.f32.mrb[114].mxu1  ;;  %v14278_v16 = vrot.slane %v4770_v48, 9  ;;  %v19761_v59 = vmax.f32 %v4763_v19, %v14276_v20  ;;  %v19768_v44 = vmax.f32 %v4755_v24, %v14275_v53  ;;  %v16920_v24 = vld [vmem:[#allocation10 + $0x190] sm:$0xff]   ;;  %16003 = vmatprep.subr.bf16.mxu1 %v16918_v4  ;;  %v16922_v1 = vld [vmem:[#allocation10 + $0x1d8] sm:$0xff]   ;;  %v16930_v4 = vld [vmem:[#allocation10 + $0x1e8] sm:$0xff]  }
 0x366   : > { %v15687_v34 = vpop.f32.mrb[115].mxu1  ;;  %v4773_v46 = vcombine.high %v4725_v55, %v4725_v55  ;;  %v4780_v49 = vrot.slane %v4725_v55, %v19310_v62  ;;  %v4726_v13 = vmax.f32 %v4704_v51, 0.0  ;;  %v14279_v50 = vrot.slane %v19751_v45, 9 }
 0x367   : > { %v15688_v6 = vadd.f32 %v15687_v34, %v15686_v15  ;;  %v19771_v40 = vmax.f32 %v4771_v9, %v14277_v27  ;;  %v4644_v12 = vadd.f32 %v15685_v8, %v19731_v58  ;;  %v19775_v19 = vmax.f32 %v4770_v48, %v14278_v16  ;;  %v16926_v16 = vld [vmem:[#allocation10 + $0x1e0] sm:$0xff]  }
 0x368   : > { %v4787_v63 = vrot.slane %v4773_v46, %v19310_v62  ;;  %v4788_v60 = vcombine.high %v4780_v49, %v4780_v49  ;;  %v14280_v42 = vrot.slane %v4780_v49, 9  ;;  %v4790_v35 = vcombine.high %v4726_v13, %v4726_v13  ;;  %16004 = vmatpush3.bf16.msra.mxu1 %v16920_v24  ;;  %v16931_v24 = vld [vmem:[#allocation10 + $0x138] sm:$0xff]  }
 0x369   : > { %v4797_v47 = vrot.slane %v4726_v13, %v19310_v62  ;;  %v4709_v43 = vadd.f32 %v4708_v30, %v4644_v12  ;;  %v19779_v17 = vadd.f32 %v15688_v6, %v19733_v0  ;;  %v16921_v0 = vld [vmem:[#allocation10 + $0x168] sm:$0xff]   ;;  %16005 = vmatprep.subr.bf16.mxu1 %v16922_v1  ;;  %v5010_v11 = vmax.f32 %v19751_v45, %v14279_v50 }
 0x36a   : > { %v4789_v58 = vcombine.high %v4787_v63, %v4787_v63  ;;  %v14281_v52 = vrot.slane %v4788_v60, 9  ;;  %v14282_v56 = vrot.slane %v4787_v63, 9  ;;  %v5011_v21 = vmax.f32 %v4780_v49, %v14280_v42  ;;  %15969 = vmatprep.subr.bf16.mxu0 %v16921_v0 }
 0x36b   : > { %v19781_v29 = vpop.f32.mrb[116].mxu1  ;;  %v4804_v7 = vrot.slane %v4790_v35, %v19310_v62  ;;  %v4805_v48 = vcombine.high %v4797_v47, %v4797_v47  ;;  %v14284_v9 = vrot.slane %v4797_v47, 9  ;;  %v4727_v20 = vmax.f32 %v4709_v43, 0.0  ;;  %15970 = vmatpush3.bf16.msra.mxu0 %v16923_v26 }
 0x36c   : > { %v19784_v41 = vpop.f32.mrb[117].mxu1  ;;  %v14283_v2 = vrot.slane %v4789_v58, 9  ;;  %v5012_v32 = vmax.f32 %v4788_v60, %v14281_v52  ;;  %v5013_v28 = vmax.f32 %v4787_v63, %v14282_v56  ;;  %v5035_v53 = vmax.f32 %v19755_v14, %v5011_v21  ;;  %16006 = vmatpush3.bf16.msra.mxu1 %v16924_v3  ;;  %v16928_v63 = vld [vmem:[#allocation10 + $0x1a0] sm:$0xff]   ;;  %v16929_v60 = vld [vmem:[#allocation10 + $0x178] sm:$0xff]   ;;  %15971 = vmatprep.subr.bf16.mxu0 %v16925_v39 }
 0x36d   : > { %v19787_v27 = vpop.f32.mrb[118].mxu1  ;;  %v4806_v55 = vcombine.high %v4804_v7, %v4804_v7  ;;  %v14285_v51 = vrot.slane %v4805_v48, 9  ;;  %v14286_v8 = vrot.slane %v4804_v7, 9  ;;  %v5015_v15 = vmax.f32 %v4797_v47, %v14284_v9  ;;  %16007 = vmatprep.subr.bf16.mxu1 %v16926_v16 }
 0x36e   : > { %v19789_v30 = vpop.f32.mrb[119].mxu1  ;;  %v5014_v34 = vmax.f32 %v4789_v58, %v14283_v2  ;;  %v5036_v31 = vmax.f32 %v19757_v23, %v5012_v32  ;;  %v5037_v46 = vmax.f32 %v19759_v10, %v5013_v28  ;;  %v5070_v14 = vrot.slane %v5035_v53, %v19322_v36 }
 0x36f   : > { %v14287_v49 = vrot.slane %v4806_v55, 9  ;;  %v5016_v13 = vmax.f32 %v4805_v48, %v14285_v51  ;;  %v5017_v6 = vmax.f32 %v4804_v7, %v14286_v8  ;;  %v5039_v12 = vmax.f32 %v19761_v59, %v5015_v15  ;;  %v16932_v7 = vld [vmem:[#allocation10 + $0x1a8] sm:$0xff]   ;;  %15972 = vmatpush3.bf16.msra.mxu0 %v16927_v61 }
 0x370   : > { %v5038_v42 = vmax.f32 %v19768_v44, %v5014_v34  ;;  %v5074_v35 = vrot.slane %v5036_v31, %v19322_v36  ;;  %v5078_v23 = vrot.slane %v5037_v46, %v19322_v36  ;;  %v4807_v10 = vcombine.high %v4727_v20, %v4727_v20  ;;  %16008 = vmatpush3.bf16.msra.mxu1 %v16928_v63  ;;  %v16933_v63 = vld [vmem:[#allocation10 + $0x1f0] sm:$0xff]  }
 0x371   : > { %v5018_v47 = vmax.f32 %v4806_v55, %v14287_v49  ;;  %v5040_v59 = vmax.f32 %v19771_v40, %v5016_v13  ;;  %v5041_v43 = vmax.f32 %v19775_v19, %v5017_v6  ;;  %v4814_v52 = vrot.slane %v4727_v20, %v19310_v62  ;;  %v15763_v20 = vpop.f32.mrb[96].mxu0  ;;  %15973 = vmatprep.subr.bf16.mxu0 %v16929_v60  ;;  %v16935_v60 = vld [vmem:[#allocation10 + $0x1b0] sm:$0xff]  }
 0x372   : > { %v5082_v44 = vrot.slane %v5038_v42, %v19322_v36  ;;  %v5131_v58 = vsel %vm2232_vm0, %v5074_v35, %v5070_v14  ;;  %v4821_v56 = vrot.slane %v4807_v10, %v19310_v62  ;;  %v5086_v50 = vrot.slane %v5039_v12, %v19322_v36  ;;  %v15764_v8 = vpop.f32.mrb[97].mxu0  ;;  %16009 = vmatprep.subr.bf16.mxu1 %v16930_v4  ;;  %v19834_v35 = vld [vmem:[#allocation8] ss:$0 sm:$0xff] }
 0x373   : > { %v15723_v21 = vpop.f32.mrb[120].mxu1  ;;  %v5132_v48 = vsel %vm2234_vm1, %v5078_v23, %v5131_v58  ;;  %v5042_v45 = vmax.f32 %v5010_v11, %v5018_v47  ;;  %v5090_v40 = vrot.slane %v5040_v59, %v19322_v36  ;;  %v4822_v0 = vcombine.high %v4814_v52, %v4814_v52  ;;  %v15766_v34 = vpop.f32.mrb[98].mxu0  ;;  %15974 = vmatpush3.bf16.msra.mxu0 %v16931_v24  ;;  %v16936_v10 = vld [vmem:[#allocation10 + $0x1f8] sm:$0xff]  }
 0x374   : > { %v15724_v19 = vpop.f32.mrb[121].mxu1  ;;  %v5133_v9 = vsel %vm2236_vm2, %v5082_v44, %v5132_v48  ;;  %v4823_v2 = vcombine.high %v4821_v56, %v4821_v56  ;;  %v14288_v32 = vrot.slane %v4814_v52, 9  ;;  %v5094_v53 = vrot.slane %v5041_v43, %v19322_v36  ;;  %v15767_v13 = vpop.f32.mrb[99].mxu0  ;;  %16010 = vmatpush3.bf16.msra.mxu1 %v16932_v7  ;;  %v16938_v59 = vld [vmem:[#allocation10 + $0x1b8] sm:$0xff]  }
 0x375   : > { %v15726_v28 = vpop.f32.mrb[122].mxu1  ;;  %v5134_v1 = vsel %vm2238_vm3, %v5086_v50, %v5133_v9  ;;  %v14290_v26 = vrot.slane %v4821_v56, 9  ;;  %v4712_v55 = vadd.f32 %v19766_v25, %v19779_v17  ;;  %v5098_v15 = vrot.slane %v5042_v45, %v19322_v36  ;;  %v16934_v25 = vld [vmem:[#allocation10 + $0x200] sm:$0xff]   ;;  %16011 = vmatprep.subr.bf16.mxu1 %v16933_v63 }
 0x376   : > { %v15727_v51 = vpop.f32.mrb[123].mxu1  ;;  %v5135_v3 = vsel %vm2240_vm4, %v5090_v40, %v5134_v1  ;;  %v14289_v39 = vrot.slane %v4822_v0, 9  ;;  %v14291_v16 = vrot.slane %v4823_v2, 9  ;;  %v19818_v46 = vmax.f32 %v4814_v52, %v14288_v32  ;;  %16275 = vmatprep.subr.bf16.mxu0 %v16934_v25 }
 0x377   : > { %v5136_v31 = vsel %vm2242_vm5, %v5094_v53, %v5135_v3  ;;  %v4728_v14 = vmax.f32 %v4712_v55, 0.0  ;;  %v15691_v49 = vadd.f32 %v19784_v41, %v19781_v29  ;;  %v19827_v12 = vmax.f32 %v4821_v56, %v14290_v26  ;;  %v15769_v48 = vpop.f32.mrb[100].mxu0 }
 0x378   : > { %v19823_v17 = vsel %vm2244_vm6, %v5098_v15, %v5136_v31  ;;  %v19825_v6 = vmax.f32 %v4822_v0, %v14289_v39  ;;  %v15694_v61 = vadd.f32 %v19789_v30, %v19787_v27  ;;  %v15725_v23 = vadd.f32 %v15724_v19, %v15723_v21  ;;  %16012 = vmatpush3.bf16.msra.mxu1 %v16935_v60  ;;  %v15770_v0 = vpop.f32.mrb[101].mxu0 }
 0x379   : > { %5148 = vst [vmem:[#allocation3 + $0x51] sm:$0xff] %v19823_v17  ;;  %v4824_v42 = vcombine.high %v4728_v14, %v4728_v14  ;;  %v4831_v29 = vrot.slane %v4728_v14, %v19310_v62  ;;  %v4652_v41 = vadd.f32 %v15691_v49, %v19741_v37  ;;  %v15728_v11 = vadd.f32 %v15727_v51, %v15726_v28 }
 0x37a   : > { %v4655_v4 = vadd.f32 %v15694_v61, %v19743_v57  ;;  %v15765_v47 = vadd.f32 %v15764_v8, %v15763_v20  ;;  %v15768_v27 = vadd.f32 %v15767_v13, %v15766_v34  ;;  %v5879_v56 = vadd.f32 %v15725_v23, %v19834_v35  ;;  %16013 = vmatprep.subr.bf16.mxu1 %v16936_v10  ;;  %v15772_v20 = vpop.f32.mrb[102].mxu0 }
 0x37b   : > { %v15729_v30 = vpop.f32.mrb[124].mxu1  ;;  %v4838_v43 = vrot.slane %v4824_v42, %v19310_v62  ;;  %v4839_v24 = vcombine.high %v4831_v29, %v4831_v29  ;;  %v14292_v44 = vrot.slane %v4831_v29, 9  ;;  %v4717_v58 = vadd.f32 %v19753_v38, %v4652_v41 }
 0x37c   : > { %v15730_v37 = vpop.f32.mrb[125].mxu1  ;;  %v4720_v52 = vadd.f32 %v19763_v18, %v4655_v4  ;;  %v5882_v21 = vadd.f32 %v15728_v11, %v19834_v35  ;;  %v19842_v45 = vmax.f32 %v4823_v2, %v14291_v16  ;;  %v19844_v28 = vadd.f32 %v15765_v47, %v5879_v56  ;;  %v15773_v2 = vpop.f32.mrb[103].mxu0  ;;  %16014 = vmatpush3.bf16.msra.mxu1 %v16938_v59 }
 0x37d   : > { %v15731_v57 = vadd.f32 %v15730_v37, %v15729_v30  ;;  %v15732_v7 = vpop.f32.mrb[126].mxu1  ;;  %v4840_v50 = vcombine.high %v4838_v43, %v4838_v43  ;;  %v14293_v40 = vrot.slane %v4839_v24, 9  ;;  %v14294_v19 = vrot.slane %v4838_v43, 9 }
 0x37e   : > { %v15733_v9 = vpop.f32.mrb[127].mxu1  ;;  %v4729_v38 = vmax.f32 %v4717_v58, 0.0  ;;  %v4730_v32 = vmax.f32 %v4720_v52, 0.0  ;;  %v19846_v18 = vadd.f32 %v15768_v27, %v5882_v21  ;;  %v5023_v1 = vmax.f32 %v4831_v29, %v14292_v44 }
 0x37f   : > { %v14295_v53 = vrot.slane %v4840_v50, 9  ;;  %v5024_v26 = vmax.f32 %v4839_v24, %v14293_v40  ;;  %v5887_v55 = vadd.f32 %v15731_v57, %v19834_v35  ;;  %v5025_v39 = vmax.f32 %v4838_v43, %v14294_v19  ;;  %v15775_v27 = vpop.f32.mrb[104].mxu0 }
 0x380   : > { %v4841_v51 = vcombine.high %v4729_v38, %v4729_v38  ;;  %v4848_v8 = vrot.slane %v4729_v38, %v19310_v62  ;;  %v4858_v15 = vcombine.high %v4730_v32, %v4730_v32  ;;  %v4865_v3 = vrot.slane %v4730_v32, %v19310_v62  ;;  %v15776_v58 = vpop.f32.mrb[105].mxu0 }
 0x381   : > { %v15734_v16 = vadd.f32 %v15733_v9, %v15732_v7  ;;  %v15771_v34 = vadd.f32 %v15770_v0, %v15769_v48  ;;  %v15774_v31 = vadd.f32 %v15773_v2, %v15772_v20  ;;  %v15778_v57 = vpop.f32.mrb[106].mxu0  ;;  %v5026_v0 = vmax.f32 %v4840_v50, %v14295_v53 }
 0x382   : > { %v4855_v14 = vrot.slane %v4841_v51, %v19310_v62  ;;  %v4856_v49 = vcombine.high %v4848_v8, %v4848_v8  ;;  %v14296_v13 = vrot.slane %v4848_v8, 9  ;;  %v4872_v25 = vrot.slane %v4858_v15, %v19310_v62  ;;  %v15779_v9 = vpop.f32.mrb[107].mxu0  ;;  %v19860_v15 = vld [vmem:[#allocation3 + $0x50] sm:$0xff] }
 0x383   : > { %v15735_v61 = vpop.f32.mrb[128].mxu1  ;;  %v4873_v63 = vcombine.high %v4865_v3, %v4865_v3  ;;  %v14300_v60 = vrot.slane %v4865_v3, 9  ;;  %v5890_v42 = vadd.f32 %v15734_v16, %v19834_v35  ;;  %v19854_v29 = vadd.f32 %v15771_v34, %v5887_v55 }
 0x384   : > { %v15736_v41 = vpop.f32.mrb[129].mxu1  ;;  %v4857_v23 = vcombine.high %v4855_v14, %v4855_v14  ;;  %v14297_v10 = vrot.slane %v4856_v49, 9  ;;  %v14298_v4 = vrot.slane %v4855_v14, 9  ;;  %v5027_v11 = vmax.f32 %v4848_v8, %v14296_v13 }
 0x385   : > { %v15738_v47 = vpop.f32.mrb[130].mxu1  ;;  %v4874_v30 = vcombine.high %v4872_v25, %v4872_v25  ;;  %v14301_v59 = vrot.slane %v4873_v63, 9  ;;  %v14302_v43 = vrot.slane %v4872_v25, 9  ;;  %v5031_v24 = vmax.f32 %v4865_v3, %v14300_v60 }
 0x386   : > { %v15739_v44 = vpop.f32.mrb[131].mxu1  ;;  %v14299_v37 = vrot.slane %v4857_v23, 9  ;;  %v5028_v52 = vmax.f32 %v4856_v49, %v14297_v10  ;;  %v5029_v56 = vmax.f32 %v4855_v14, %v14298_v4  ;;  %v5043_v21 = vmax.f32 %v19818_v46, %v5027_v11 }
 0x387   : > { %v14303_v7 = vrot.slane %v4874_v30, 9  ;;  %v5032_v48 = vmax.f32 %v4873_v63, %v14301_v59  ;;  %v5033_v40 = vmax.f32 %v4872_v25, %v14302_v43  ;;  %v5047_v19 = vmax.f32 %v5023_v1, %v5031_v24 }
 0x388   : > { %v5030_v38 = vmax.f32 %v4857_v23, %v14299_v37  ;;  %v5044_v32 = vmax.f32 %v19825_v6, %v5028_v52  ;;  %v5045_v20 = vmax.f32 %v19827_v12, %v5029_v56  ;;  %v5102_v55 = vrot.slane %v5043_v21, %v19322_v36 }
 0x389   : > { %v5034_v2 = vmax.f32 %v4874_v30, %v14303_v7  ;;  %v5048_v51 = vmax.f32 %v5024_v26, %v5032_v48  ;;  %v5049_v8 = vmax.f32 %v5025_v39, %v5033_v40  ;;  %v19865_v16 = vadd.f32 %v15774_v31, %v5890_v42  ;;  %v15781_v42 = vpop.f32.mrb[108].mxu0 }
 0x38a   : > { %v5046_v46 = vmax.f32 %v19842_v45, %v5030_v38  ;;  %v5106_v3 = vrot.slane %v5044_v32, %v19322_v36  ;;  %v5110_v1 = vrot.slane %v5045_v20, %v19322_v36  ;;  %v5118_v6 = vrot.slane %v5047_v19, %v19322_v36  ;;  %v15782_v11 = vpop.f32.mrb[109].mxu0 }
 0x38b   : > { %v15741_v50 = vpop.f32.mrb[132].mxu1  ;;  %v5050_v53 = vmax.f32 %v5026_v0, %v5034_v2  ;;  %v5122_v12 = vrot.slane %v5048_v51, %v19322_v36  ;;  %v6672_v26 = vpack.c.bf16 %v19823_v17, %v19724_v22  ;;  %v6660_v14 = vpack.c.bf16 %v19860_v15, %v19737_v54  ;;  %v15784_v59 = vpop.f32.mrb[110].mxu0 }
 0x38c   : > { %v15742_v39 = vpop.f32.mrb[133].mxu1  ;;  %v5114_v34 = vrot.slane %v5046_v46, %v19322_v36  ;;  %v5138_v45 = vsel %vm2232_vm0, %v5106_v3, %v5102_v55  ;;  %v15737_v49 = vadd.f32 %v15736_v41, %v15735_v61  ;;  %v5126_v25 = vrot.slane %v5049_v8, %v19322_v36  ;;  %v6679_v55 = vld [vmem:[#allocation3 + $0x52] sm:$0xff] }
 0x38d   : > { %v15744_v31 = vpop.f32.mrb[134].mxu1  ;;  %v5139_v13 = vsel %vm2234_vm1, %v5110_v1, %v5138_v45  ;;  %7390 = vmatprep.mubr.bf16.mxu0 %v6672_v26  ;;  %v15740_v63 = vadd.f32 %v15739_v44, %v15738_v47  ;;  %v15777_v60 = vadd.f32 %v15776_v58, %v15775_v27  ;;  %v15780_v10 = vadd.f32 %v15779_v9, %v15778_v57  ;;  %v15785_v44 = vpop.f32.mrb[111].mxu0 }
 0x38e   : > { %v15745_v23 = vpop.f32.mrb[135].mxu1  ;;  %v5140_v22 = vsel %vm2236_vm2, %v5114_v34, %v5139_v13  ;;  %7391 = vmatmul.mubr.bf16.gmra.mrb[136].mxu0 %v6660_v14  ;;  %v5895_v17 = vadd.f32 %v15737_v49, %v19834_v35  ;;  %v15743_v4 = vadd.f32 %v15742_v39, %v15741_v50  ;;  %v15783_v30 = vadd.f32 %v15782_v11, %v15781_v42 }
 0x38f   : > { %v5141_v54 = vsel %vm2238_vm3, %v5118_v6, %v5140_v22  ;;  %v5898_v61 = vadd.f32 %v15740_v63, %v19834_v35  ;;  %v15746_v41 = vadd.f32 %v15745_v23, %v15744_v31  ;;  %v5130_v47 = vrot.slane %v5050_v53, %v19322_v36  ;;  %v19898_v53 = vld [vmem:[#allocation3 + $0x42] sm:$0xff] }
 0x390   : > { %v5142_v27 = vsel %vm2240_vm4, %v5122_v12, %v5141_v54  ;;  %v5960_v43 = vadd.f32 %v15777_v60, %v5895_v17  ;;  %v5903_v24 = vadd.f32 %v15743_v4, %v19834_v35  ;;  %v15786_v56 = vadd.f32 %v15785_v44, %v15784_v59  ;;  %v15843_v0 = vpop.f32.mrb[112].mxu0 }
 0x391   : > { %v5143_v58 = vsel %vm2242_vm5, %v5126_v25, %v5142_v27  ;;  %v5963_v37 = vadd.f32 %v15780_v10, %v5898_v61  ;;  %v5906_v52 = vadd.f32 %v15746_v41, %v19834_v35  ;;  %v15844_v35 = vpop.f32.mrb[113].mxu0  ;;  %v19903_v39 = vpack.c.bf16 %v6679_v55, %v19898_v53 }
 0x392   : > { %v19887_v21 = vsel %vm2244_vm6, %v5130_v47, %v5143_v58  ;;  %v19889_v57 = vadd.f32 %v15783_v30, %v5903_v24  ;;  %v15845_v2 = vadd.f32 %v15844_v35, %v15843_v0  ;;  %v15846_v51 = vpop.f32.mrb[114].mxu0 }
 0x393   : > { %v15803_v7 = vpop.f32.mrb[136].mxu1  ;;  %5149 = vst [vmem:[#allocation3 + $0x61] sm:$0xff] %v19887_v21  ;;  %v19892_v48 = vadd.f32 %v15786_v56, %v5906_v52  ;;  %v15847_v46 = vpop.f32.mrb[115].mxu0 }
 0x394   : > { %v15804_v40 = vpop.f32.mrb[137].mxu1  ;;  %v15848_v3 = vadd.f32 %v15847_v46, %v15846_v51 }
 0x395   : > { %v15805_v19 = vadd.f32 %v15804_v40, %v15803_v7  ;;  %v15806_v9 = vpop.f32.mrb[138].mxu1 }
 0x396   : > { %v15807_v38 = vpop.f32.mrb[139].mxu1 }
 0x397   : > { %v6009_v32 = vadd.f32 %v15805_v19, %v19844_v28  ;;  %v15808_v20 = vadd.f32 %v15807_v38, %v15806_v9 }
 0x399   : > { %v6012_v8 = vadd.f32 %v15808_v20, %v19846_v18  ;;  %v6074_v1 = vadd.f32 %v15845_v2, %v6009_v32  ;;  %v15849_v18 = vpop.f32.mrb[116].mxu0 }
 0x39a   : > { %v19896_v50 = vld [vmem:[#allocation3 + $0x60] sm:$0xff]  ;;  %v15850_v13 = vpop.f32.mrb[117].mxu0 }
 0x39b   : > { %v15809_v6 = vpop.f32.mrb[140].mxu1  ;;  %v6696_v12 = vpack.c.bf16 %v19896_v50, %v19860_v15  ;;  %v6077_v28 = vadd.f32 %v15848_v3, %v6012_v8  ;;  %v15851_v25 = vadd.f32 %v15850_v13, %v15849_v18  ;;  %v15852_v63 = vpop.f32.mrb[118].mxu0 }
 0x39c   : > { %v15810_v26 = vpop.f32.mrb[141].mxu1  ;;  %v15853_v60 = vpop.f32.mrb[119].mxu0 }
 0x39d   : > { %v15811_v34 = vadd.f32 %v15810_v26, %v15809_v6  ;;  %v15812_v45 = vpop.f32.mrb[142].mxu1  ;;  %7455 = vmatprep.mubr.bf16.mxu1 %v6696_v12  ;;  %v15854_v42 = vadd.f32 %v15853_v60, %v15852_v63 }
 0x39e   : > { %v15813_v14 = vpop.f32.mrb[143].mxu1  ;;  %7456 = vmatmul.mubr.bf16.gmra.mrb[168].mxu1 %v19903_v39 }
 0x39f   : > { %v6017_v49 = vadd.f32 %v15811_v34, %v19854_v29  ;;  %v15814_v31 = vadd.f32 %v15813_v14, %v15812_v45 }
 0x3a0   : > { %v15855_v54 = vpop.f32.mrb[120].mxu0 }
 0x3a1   : > { %v6020_v15 = vadd.f32 %v15814_v31, %v19865_v16  ;;  %v6082_v23 = vadd.f32 %v15851_v25, %v6017_v49  ;;  %v15856_v59 = vpop.f32.mrb[121].mxu0 }
 0x3a2   : > { %v15857_v29 = vadd.f32 %v15856_v59, %v15855_v54  ;;  %v15858_v47 = vpop.f32.mrb[122].mxu0 }
 0x3a3   : > { %v15815_v22 = vpop.f32.mrb[144].mxu1  ;;  %v6085_v10 = vadd.f32 %v15854_v42, %v6020_v15  ;;  %v15859_v24 = vpop.f32.mrb[123].mxu0 }
 0x3a4   : > { %v15816_v17 = vpop.f32.mrb[145].mxu1  ;;  %v15860_v44 = vadd.f32 %v15859_v24, %v15858_v47 }
 0x3a5   : > { %v15817_v4 = vadd.f32 %v15816_v17, %v15815_v22  ;;  %v15818_v11 = vpop.f32.mrb[146].mxu1 }
 0x3a6   : > { %v15819_v61 = vpop.f32.mrb[147].mxu1 }
 0x3a7   : > { %v6025_v41 = vadd.f32 %v15817_v4, %v5960_v43  ;;  %v15820_v30 = vadd.f32 %v15819_v61, %v15818_v11 }
 0x3a9   : > { %v6028_v27 = vadd.f32 %v15820_v30, %v5963_v37  ;;  %v19908_v58 = vadd.f32 %v15857_v29, %v6025_v41 }
 0x3ab   : > { %v19910_v16 = vadd.f32 %v15860_v44, %v6028_v27 }
 0x3b1   : > { %v15821_v52 = vpop.f32.mrb[148].mxu1 }
 0x3b2   : > { %v15822_v56 = vpop.f32.mrb[149].mxu1 }
 0x3b3   : > { %v15823_v7 = vadd.f32 %v15822_v56, %v15821_v52  ;;  %v15824_v40 = vpop.f32.mrb[150].mxu1 }
 0x3b4   : > { %v15825_v19 = vpop.f32.mrb[151].mxu1 }
 0x3b5   : > { %v6033_v9 = vadd.f32 %v15823_v7, %v19889_v57  ;;  %v15826_v0 = vadd.f32 %v15825_v19, %v15824_v40  ;;  %v15861_v43 = vpop.f32.mrb[124].mxu0 }
 0x3b6   : > { %v15862_v32 = vpop.f32.mrb[125].mxu0 }
 0x3b7   : > { %v6036_v38 = vadd.f32 %v15826_v0, %v19892_v48  ;;  %v15863_v20 = vadd.f32 %v15862_v32, %v15861_v43  ;;  %v15864_v37 = vpop.f32.mrb[126].mxu0 }
 0x3b8   : > { %v15865_v35 = vpop.f32.mrb[127].mxu0 }
 0x3b9   : > { %v16269_v55 = vpop.f32.mrb[152].mxu1  ;;  %v15866_v2 = vadd.f32 %v15865_v35, %v15864_v37  ;;  %v19914_v46 = vadd.f32 %v15863_v20, %v6033_v9 }
 0x3ba   : > { %v6147_v51 = vadd.f32 %v16269_v55, %v6082_v23  ;;  %v6138_v8 = vpop.f32.mrb[153].mxu1 }
 0x3bb   : > { %v6139_v3 = vadd.f32 %v6138_v8, %v6074_v1  ;;  %v16270_v6 = vpop.f32.mrb[154].mxu1  ;;  %v19916_v57 = vadd.f32 %v15866_v2, %v6036_v38 }
 0x3bc   : > { %v6171_v12 = vmax.f32 %v6147_v51, 0.0  ;;  %v6150_v26 = vadd.f32 %v16270_v6, %v6085_v10  ;;  %v6141_v34 = vpop.f32.mrb[155].mxu1 }
 0x3bd   : > { %v6169_v45 = vmax.f32 %v6139_v3, 0.0  ;;  %v6142_v18 = vadd.f32 %v6141_v34, %v6077_v28  ;;  %v19925_v34 = vld [vmem:[#allocation11] ss:$0 sm:$0xff] }
 0x3be   : > { %v6219_v48 = vcombine.high %v6171_v12, %v6171_v12  ;;  %v6226_v14 = vrot.slane %v6171_v12, %v19310_v62  ;;  %v6172_v49 = vmax.f32 %v6150_v26, 0.0 }
 0x3bf   : > { %v6185_v31 = vcombine.high %v6169_v45, %v6169_v45  ;;  %v6192_v13 = vrot.slane %v6169_v45, %v19310_v62  ;;  %v6170_v25 = vmax.f32 %v6142_v18, 0.0 }
 0x3c0   : > { %v6233_v63 = vrot.slane %v6219_v48, %v19310_v62  ;;  %v6234_v15 = vcombine.high %v6226_v14, %v6226_v14  ;;  %v14385_v1 = vrot.slane %v6226_v14, 9  ;;  %v6236_v60 = vcombine.high %v6172_v49, %v6172_v49 }
 0x3c1   : > { %v6199_v42 = vrot.slane %v6185_v31, %v19310_v62  ;;  %v6200_v23 = vcombine.high %v6192_v13, %v6192_v13  ;;  %v14377_v22 = vrot.slane %v6192_v13, 9  ;;  %v6243_v17 = vrot.slane %v6172_v49, %v19310_v62 }
 0x3c2   : > { %v6235_v28 = vcombine.high %v6233_v63, %v6233_v63  ;;  %v14386_v10 = vrot.slane %v6234_v15, 9  ;;  %v14387_v4 = vrot.slane %v6233_v63, 9  ;;  %v6457_v11 = vmax.f32 %v6226_v14, %v14385_v1 }
 0x3c3   : > { %v6201_v54 = vcombine.high %v6199_v42, %v6199_v42  ;;  %v14378_v61 = vrot.slane %v6200_v23, 9  ;;  %v14379_v41 = vrot.slane %v6199_v42, 9  ;;  %v6449_v30 = vmax.f32 %v6192_v13, %v14377_v22  ;;  %v15895_v59 = vpop.f32.mrb[128].mxu0 }
 0x3c4   : > { %v14388_v29 = vrot.slane %v6235_v28, 9  ;;  %v6458_v47 = vmax.f32 %v6234_v15, %v14386_v10  ;;  %v6459_v27 = vmax.f32 %v6233_v63, %v14387_v4  ;;  %v6250_v24 = vrot.slane %v6236_v60, %v19310_v62  ;;  %v15896_v44 = vpop.f32.mrb[129].mxu0  ;;  %v16273_v9 = vpop.f32.mrb[156].mxu1 }
 0x3c5   : > { %v14380_v52 = vrot.slane %v6201_v54, 9  ;;  %v6450_v56 = vmax.f32 %v6200_v23, %v14378_v61  ;;  %v6451_v7 = vmax.f32 %v6199_v42, %v14379_v41  ;;  %v6481_v40 = vmax.f32 %v6449_v30, %v6457_v11  ;;  %v15898_v19 = vpop.f32.mrb[130].mxu0  ;;  %v6154_v37 = vpop.f32.mrb[157].mxu1 }
 0x3c6   : > { %v6460_v0 = vmax.f32 %v6235_v28, %v14388_v29  ;;  %v6251_v43 = vcombine.high %v6243_v17, %v6243_v17  ;;  %v6252_v38 = vcombine.high %v6250_v24, %v6250_v24  ;;  %v14389_v32 = vrot.slane %v6243_v17, 9  ;;  %v15899_v20 = vpop.f32.mrb[131].mxu0  ;;  %v16274_v8 = vpop.f32.mrb[158].mxu1 }
 0x3c7   : > { %v6452_v35 = vmax.f32 %v6201_v54, %v14380_v52  ;;  %v6482_v55 = vmax.f32 %v6450_v56, %v6458_v47  ;;  %v6483_v2 = vmax.f32 %v6451_v7, %v6459_v27  ;;  %v6516_v51 = vrot.slane %v6481_v40, %v19322_v36  ;;  %v6157_v45 = vpop.f32.mrb[159].mxu1 }
 0x3c8   : > { %v14390_v3 = vrot.slane %v6251_v43, 9  ;;  %v14391_v6 = vrot.slane %v6250_v24, 9  ;;  %v14392_v12 = vrot.slane %v6252_v38, 9  ;;  %v6461_v26 = vmax.f32 %v6243_v17, %v14389_v32 }
 0x3c9   : > { %v6484_v18 = vmax.f32 %v6452_v35, %v6460_v0  ;;  %v6520_v48 = vrot.slane %v6482_v55, %v19322_v36  ;;  %v6524_v14 = vrot.slane %v6483_v2, %v19322_v36  ;;  %v6202_v49 = vcombine.high %v6170_v25, %v6170_v25 }
 0x3ca   : > { %v6462_v31 = vmax.f32 %v6251_v43, %v14390_v3  ;;  %v6463_v13 = vmax.f32 %v6250_v24, %v14391_v6  ;;  %v6464_v63 = vmax.f32 %v6252_v38, %v14392_v12  ;;  %v6209_v15 = vrot.slane %v6170_v25, %v19310_v62 }
 0x3cb   : > { %v6528_v1 = vrot.slane %v6484_v18, %v19322_v36  ;;  %v6577_v60 = vsel %vm2232_vm0, %v6520_v48, %v6516_v51  ;;  %v6216_v42 = vrot.slane %v6202_v49, %v19310_v62  ;;  %v15897_v23 = vadd.f32 %v15896_v44, %v15895_v59 }
 0x3cc   : > { %v6578_v22 = vsel %vm2234_vm1, %v6524_v14, %v6577_v60  ;;  %v6217_v17 = vcombine.high %v6209_v15, %v6209_v15  ;;  %v14381_v28 = vrot.slane %v6209_v15, 9  ;;  %v15900_v10 = vadd.f32 %v15899_v20, %v15898_v19 }
 0x3cd   : > { %v6218_v4 = vcombine.high %v6216_v42, %v6216_v42  ;;  %v14383_v11 = vrot.slane %v6216_v42, 9  ;;  %v6579_v54 = vsel %vm2236_vm2, %v6528_v1, %v6578_v22  ;;  %v19936_v61 = vadd.f32 %v15897_v23, %v19925_v34 }
 0x3ce   : > { %v14382_v25 = vrot.slane %v6217_v17, 9  ;;  %v6453_v41 = vmax.f32 %v6209_v15, %v14381_v28  ;;  %v19939_v30 = vadd.f32 %v15900_v10, %v19925_v34  ;;  %v6163_v29 = vadd.f32 %v16273_v9, %v19914_v46 }
 0x3cf   : > { %v14384_v59 = vrot.slane %v6218_v4, 9  ;;  %v6455_v47 = vmax.f32 %v6216_v42, %v14383_v11  ;;  %v6155_v27 = vadd.f32 %v6154_v37, %v19908_v58  ;;  %v6166_v24 = vadd.f32 %v16274_v8, %v19916_v57 }
 0x3d0   : > { %v6454_v44 = vmax.f32 %v6217_v17, %v14382_v25  ;;  %v6485_v52 = vmax.f32 %v6453_v41, %v6461_v26  ;;  %v6175_v56 = vmax.f32 %v6163_v29, 0.0  ;;  %v6158_v7 = vadd.f32 %v6157_v45, %v19910_v16 }
 0x3d1   : > { %v6456_v40 = vmax.f32 %v6218_v4, %v14384_v59  ;;  %v6487_v19 = vmax.f32 %v6455_v47, %v6463_v13  ;;  %v6173_v0 = vmax.f32 %v6155_v27, 0.0  ;;  %v6176_v43 = vmax.f32 %v6166_v24, 0.0 }
 0x3d2   : > { %v6486_v38 = vmax.f32 %v6454_v44, %v6462_v31  ;;  %v6532_v32 = vrot.slane %v6485_v52, %v19322_v36  ;;  %v6287_v20 = vcombine.high %v6175_v56, %v6175_v56  ;;  %v6294_v46 = vrot.slane %v6175_v56, %v19310_v62 }
 0x3d3   : > { %v6488_v9 = vmax.f32 %v6456_v40, %v6464_v63  ;;  %v6540_v58 = vrot.slane %v6487_v19, %v19322_v36  ;;  %v6253_v37 = vcombine.high %v6173_v0, %v6173_v0  ;;  %v6260_v57 = vrot.slane %v6173_v0, %v19310_v62 }
 0x3d4   : > { %v6536_v35 = vrot.slane %v6486_v38, %v19322_v36  ;;  %v6580_v16 = vsel %vm2238_vm3, %v6532_v32, %v6579_v54  ;;  %v6301_v55 = vrot.slane %v6287_v20, %v19310_v62  ;;  %v6302_v2 = vcombine.high %v6294_v46, %v6294_v46 }
 0x3d5   : > { %v6544_v51 = vrot.slane %v6488_v9, %v19322_v36  ;;  %v14401_v8 = vrot.slane %v6294_v46, 9  ;;  %v6267_v3 = vrot.slane %v6253_v37, %v19310_v62  ;;  %v6268_v6 = vcombine.high %v6260_v57, %v6260_v57 }
 0x3d6   : > { %v6581_v12 = vsel %vm2240_vm4, %v6536_v35, %v6580_v16  ;;  %v6303_v26 = vcombine.high %v6301_v55, %v6301_v55  ;;  %v14402_v45 = vrot.slane %v6302_v2, 9  ;;  %v14403_v18 = vrot.slane %v6301_v55, 9 }
 0x3d7   : > { %v6582_v48 = vsel %vm2242_vm5, %v6540_v58, %v6581_v12  ;;  %v6473_v14 = vmax.f32 %v6294_v46, %v14401_v8  ;;  %v6269_v49 = vcombine.high %v6267_v3, %v6267_v3  ;;  %v14393_v31 = vrot.slane %v6260_v57, 9  ;;  %v19971_v12 = vld [vmem:[#allocation3 + $0x22] sm:$0xff] }
 0x3d8   : > { %v19957_v13 = vsel %vm2244_vm6, %v6544_v51, %v6582_v48  ;;  %v14404_v63 = vrot.slane %v6303_v26, 9  ;;  %v6474_v15 = vmax.f32 %v6302_v2, %v14402_v45  ;;  %v6475_v1 = vmax.f32 %v6301_v55, %v14403_v18 }
 0x3d9   : > { %6594 = vst [vmem:[#allocation3 + $0x71] sm:$0xff] %v19957_v13  ;;  %v14394_v60 = vrot.slane %v6268_v6, 9  ;;  %v14395_v42 = vrot.slane %v6267_v3, 9  ;;  %v14396_v23 = vrot.slane %v6269_v49, 9  ;;  %v6465_v22 = vmax.f32 %v6260_v57, %v14393_v31 }
 0x3da   : > { %v6476_v17 = vmax.f32 %v6303_v26, %v14404_v63  ;;  %v6304_v28 = vcombine.high %v6176_v43, %v6176_v43  ;;  %v6311_v10 = vrot.slane %v6176_v43, %v19310_v62  ;;  %v6174_v4 = vmax.f32 %v6158_v7, 0.0  ;;  %v15935_v11 = vpop.f32.mrb[160].mxu1 }
 0x3db   : > { %v6466_v54 = vmax.f32 %v6268_v6, %v14394_v60  ;;  %v6467_v25 = vmax.f32 %v6267_v3, %v14395_v42  ;;  %v6468_v41 = vmax.f32 %v6269_v49, %v14396_v23  ;;  %v6489_v29 = vmax.f32 %v6465_v22, %v6473_v14  ;;  %v15936_v59 = vpop.f32.mrb[161].mxu1 }
 0x3dc   : > { %v6318_v47 = vrot.slane %v6304_v28, %v19310_v62  ;;  %v6319_v27 = vcombine.high %v6311_v10, %v6311_v10  ;;  %v14405_v24 = vrot.slane %v6311_v10, 9  ;;  %v6270_v44 = vcombine.high %v6174_v4, %v6174_v4  ;;  %v15938_v52 = vpop.f32.mrb[162].mxu1 }
 0x3dd   : > { %v6490_v56 = vmax.f32 %v6466_v54, %v6474_v15  ;;  %v6491_v40 = vmax.f32 %v6467_v25, %v6475_v1  ;;  %v6492_v19 = vmax.f32 %v6468_v41, %v6476_v17  ;;  %v6548_v0 = vrot.slane %v6489_v29, %v19322_v36  ;;  %v15939_v38 = vpop.f32.mrb[163].mxu1  ;;  %v6710_v15 = vld [vmem:[#allocation3 + $0x12] sm:$0xff]  ;;  %v6699_v41 = vld [vmem:[#allocation3 + $0x21] sm:$0xff] }
 0x3de   : > { %v6320_v43 = vcombine.high %v6318_v47, %v6318_v47  ;;  %v14406_v7 = vrot.slane %v6319_v27, 9  ;;  %v14407_v32 = vrot.slane %v6318_v47, 9  ;;  %v6477_v20 = vmax.f32 %v6311_v10, %v14405_v24  ;;  %v19995_v24 = vld [vmem:[#allocation3 + $0x32] sm:$0xff] }
 0x3df   : > { %v6552_v46 = vrot.slane %v6490_v56, %v19322_v36  ;;  %v6556_v9 = vrot.slane %v6491_v40, %v19322_v36  ;;  %v6560_v58 = vrot.slane %v6492_v19, %v19322_v36  ;;  %v6277_v37 = vrot.slane %v6174_v4, %v19310_v62 }
 0x3e0   : > { %v14408_v57 = vrot.slane %v6320_v43, 9  ;;  %v6478_v35 = vmax.f32 %v6319_v27, %v14406_v7  ;;  %v6479_v16 = vmax.f32 %v6318_v47, %v14407_v32  ;;  %v6284_v55 = vrot.slane %v6270_v44, %v19310_v62  ;;  %v19968_v2 = vld [vmem:[#allocation3 + $0x70] sm:$0xff]  ;;  %v16937_v44 = vld [vmem:[#allocation10 + $0x208] sm:$0xff]   ;;  %v6680_v32 = vld [vmem:[#allocation3 + $0x62] sm:$0xff] }
 0x3e1   : > { %v6584_v51 = vsel %vm2232_vm0, %v6552_v46, %v6548_v0  ;;  %v6285_v8 = vcombine.high %v6277_v37, %v6277_v37  ;;  %v14397_v3 = vrot.slane %v6277_v37, 9  ;;  %v15937_v6 = vadd.f32 %v15936_v59, %v15935_v11  ;;  %v6698_v47 = vld [vmem:[#allocation3 + $0x11] sm:$0xff]  ;;  %v6701_v7 = vld [vmem:[#allocation3 + $0x41] sm:$0xff] }
 0x3e2   : > { %v6585_v26 = vsel %vm2234_vm1, %v6556_v9, %v6584_v51  ;;  %v6480_v45 = vmax.f32 %v6320_v43, %v14408_v57  ;;  %v6286_v18 = vcombine.high %v6284_v55, %v6284_v55  ;;  %v14399_v48 = vrot.slane %v6284_v55, 9  ;;  %v17931_v43 = vld [vmem:[#allocation10 + $0x200] sm:$0xff]   ;;  %v6703_v51 = vld [vmem:[#allocation3 + $0x61] sm:$0xff] }
 0x3e3   : > { %v14398_v14 = vrot.slane %v6285_v8, 9  ;;  %v6469_v49 = vmax.f32 %v6277_v37, %v14397_v3  ;;  %v6586_v31 = vsel %vm2236_vm2, %v6560_v58, %v6585_v26  ;;  %v19976_v63 = vadd.f32 %v15937_v6, %v19936_v61  ;;  %v6736_v46 = vld [vmem:[#allocation3 + $0x31] sm:$0xff] }
 0x3e4   : > { %v14400_v1 = vrot.slane %v6286_v18, 9  ;;  %v6471_v60 = vmax.f32 %v6284_v55, %v14399_v48  ;;  %v6673_v42 = vpack.c.bf16 %v19957_v13, %v19887_v21  ;;  %v15940_v23 = vadd.f32 %v15939_v38, %v15938_v52  ;;  %v16939_v38 = vld [vmem:[#allocation10 + $0x210] sm:$0xff]   ;;  %v16940_v37 = vld [vmem:[#allocation10 + $0x218] sm:$0xff]   ;;  %v17932_v57 = vld [vmem:[#allocation3 + $0x52] sm:$0xff] }
 0x3e5   : > { %v6470_v22 = vmax.f32 %v6285_v8, %v14398_v14  ;;  %v6493_v17 = vmax.f32 %v6469_v49, %v6477_v20  ;;  %v19982_v28 = vpack.c.bf16 %v19968_v2, %v19896_v50  ;;  %v6718_v61 = vpack.c.bf16 %v19971_v12, %v6710_v15  ;;  %v6681_v20 = vld [vmem:[#allocation3 + $0x72] sm:$0xff]  ;;  %v6725_v15 = vld [vmem:[#allocation3 + $0x40] sm:$0xff] }
 0x3e6   : > { %v6472_v10 = vmax.f32 %v6286_v18, %v14400_v1  ;;  %v6495_v4 = vmax.f32 %v6471_v60, %v6479_v16  ;;  %7398 = vmatprep.mubr.bf16.mxu0 %v6673_v42  ;;  %v19985_v11 = vadd.f32 %v15940_v23, %v19939_v30  ;;  %v6706_v40 = vpack.c.bf16 %v6699_v41, %v6698_v47  ;;  %v16941_v8 = vld [vmem:[#allocation10 + $0x220] sm:$0xff]   ;;  %v16942_v18 = vld [vmem:[#allocation10 + $0x228] sm:$0xff]   ;;  %v16944_v1 = vld [vmem:[#allocation10 + $0x238] sm:$0xff]  }
 0x3e7   : > { %v6494_v54 = vmax.f32 %v6470_v22, %v6478_v35  ;;  %v6564_v25 = vrot.slane %v6493_v17, %v19322_v36  ;;  %7399 = vmatmul.mubr.bf16.gmra.mrb[140].mxu0 %v19982_v28  ;;  %v6719_v19 = vpack.c.bf16 %v19898_v53, %v19995_v24  ;;  %v6707_v58 = vpack.c.bf16 %v6701_v7, %v6736_v46  ;;  %v6724_v6 = vld [vmem:[#allocation3 + $0x30] sm:$0xff] }
 0x3e8   : > { %v6496_v21 = vmax.f32 %v6472_v10, %v6480_v45  ;;  %7504 = vmatprep.mubr.bf16.mxu0 %v6718_v61  ;;  %v6572_v59 = vrot.slane %v6495_v4, %v19322_v36  ;;  %v6720_v35 = vpack.c.bf16 %v6680_v32, %v17932_v57  ;;  %v6685_v16 = vpack.c.bf16 %v6681_v20, %v6680_v32  ;;  %v6738_v26 = vld [vmem:[#allocation3 + $0x51] sm:$0xff]  ;;  %v6723_v45 = vld [vmem:[#allocation3 + $0x20] sm:$0xff] }
 0x3e9   : > { %v6568_v29 = vrot.slane %v6494_v54, %v19322_v36  ;;  %v6587_v50 = vsel %vm2238_vm3, %v6564_v25, %v6586_v31  ;;  %v6743_v55 = vpack.c.bf16 %v6736_v46, %v6699_v41  ;;  %v6731_v14 = vpack.c.bf16 %v6724_v6, %v6723_v45  ;;  %v16943_v31 = vld [vmem:[#allocation10 + $0x230] sm:$0xff]   ;;  %v17933_v42 = vld [vmem:[#allocation3 + $0x50] sm:$0xff] }
 0x3ea   : > { %v6576_v30 = vrot.slane %v6496_v21, %v19322_v36  ;;  %v6744_v49 = vpack.c.bf16 %v6738_v26, %v6701_v7  ;;  %v6755_v60 = vpack.c.bf16 %v19995_v24, %v19971_v12  ;;  %v6732_v23 = vpack.c.bf16 %v17933_v42, %v6725_v15  ;;  %v6742_v17 = vld [vmem:[#allocation3 + $0x91] sm:$0xff]  ;;  %v17934_v61 = vld [vmem:[#allocation3] sm:$0xff] }
 0x3eb   : > { %v6588_v27 = vsel %vm2240_vm4, %v6568_v29, %v6587_v50  ;;  %v6745_v22 = vpack.c.bf16 %v19957_v13, %v6703_v51  ;;  %v6754_v12 = vld [vmem:[#allocation3 + $0x92] sm:$0xff]  ;;  %v16949_v6 = vld [vmem:[#allocation13 + $0x48] sm:$0xff]  }
 0x3ec   : > { %v6589_v52 = vsel %vm2242_vm5, %v6572_v59, %v6588_v27  ;;  %v20014_v24 = vld [vmem:[#allocation11] ss:$0 sm:$0xff]  ;;  %v16951_v45 = vld [vmem:[#allocation13 + $0x8] sm:$0xff]   ;;  %v16961_v42 = vld [vmem:[#allocation13 + $0x60] sm:$0xff]  }
 0x3ed   : > { %v19999_v56 = vsel %vm2244_vm6, %v6576_v30, %v6589_v52  ;;  %v16958_v15 = vld [vmem:[#allocation13 + $0xd8] sm:$0xff]  }
 0x3ee   : > { %6595 = vst [vmem:[#allocation3 + $0x81] sm:$0xff] %v19999_v56  ;;  %v6709_v0 = vpack.c.bf16 %v19999_v56, %v19957_v13  ;;  %v6746_v10 = vpack.c.bf16 %v6742_v17, %v19999_v56  ;;  %v16964_v17 = vld [vmem:[#allocation13 + $0xa0] sm:$0xff]  }
 0x3ef   : > { %7505 = vmatmul.mubr.bf16.vlgmr.msra.gmra.mrb[144].mxu0 %v6706_v40 }
 0x3f0   : > { %7512 = vmatprep.mubr.bf16.mxu0 %v6719_v19  ;;  %16276 = vmatpush3.bf16.msra.mxu0 %v17931_v43 }
 0x3f1   : > { %16277 = vmatprep.subr.bf16.mxu0 %v16937_v44 }
 0x3f4   : > { %16278 = vmatpush3.bf16.msra.mxu0 %v16937_v44 }
 0x3f5   : > { %v6693_v9 = vld [vmem:[#allocation3 + $0x80] sm:$0xff]  ;;  %16279 = vmatprep.subr.bf16.mxu0 %v16939_v38 }
 0x3f6   : > { %v6697_v53 = vpack.c.bf16 %v6693_v9, %v19968_v2  ;;  %v6717_v3 = vld [vmem:[#allocation3 + $0x82] sm:$0xff]  ;;  %v6708_v2 = vpack.c.bf16 %v6703_v51, %v6738_v26  ;;  %v6734_v54 = vpack.c.bf16 %v17934_v61, %v6693_v9  ;;  %v16946_v51 = vld [vmem:[#allocation13 + $0xc0] sm:$0xff]  }
 0x3f7   : > { %7513 = vmatmul.mubr.bf16.gmra.mrb[148].mxu0 %v6707_v58  ;;  %v6721_v48 = vpack.c.bf16 %v6717_v3, %v6681_v20  ;;  %v6758_v4 = vpack.c.bf16 %v6754_v12, %v6717_v3  ;;  %v16948_v3 = vld [vmem:[#allocation13 + $0x80] sm:$0xff]   ;;  %v16950_v26 = vld [vmem:[#allocation13 + $0xc8] sm:$0xff]  }
 0x3f8   : > { %7463 = vmatprep.mubr.bf16.mxu1 %v6697_v53  ;;  %7520 = vmatprep.mubr.bf16.mxu0 %v6720_v35  ;;  %v16966_v12 = vld [vmem:[#allocation13 + $0xe8] sm:$0xff]  }
 0x3f9   : > { %7464 = vmatmul.mubr.bf16.gmra.mrb[172].mxu1 %v6685_v16  ;;  %16280 = vmatpush3.bf16.msra.mxu0 %v16939_v38  ;;  %v16968_v61 = vld [vmem:[#allocation13 + $0xa8] sm:$0xff]  }
 0x3fa   : > { %7569 = vmatprep.mubr.bf16.mxu1 %v6743_v55  ;;  %16281 = vmatprep.subr.bf16.mxu0 %v16940_v37  ;;  %v16945_v55 = vld [vmem:[#allocation13 + $0x40] sm:$0xff]  }
 0x3fb   : > { %16051 = vmatprep.subr.bf16.mxu1 %v16945_v55 }
 0x3fd   : > { %16282 = vmatpush3.bf16.msra.mxu0 %v16940_v37 }
 0x3fe   : > { %16283 = vmatprep.subr.bf16.mxu0 %v16941_v8 }
 0x3ff   : > { %7521 = vmatmul.mubr.bf16.gmra.mrb[152].mxu0 %v6708_v2  ;;  %v16953_v2 = vld [vmem:[#allocation13 + $0x50] sm:$0xff]  }
 0x400   : > { %7528 = vmatprep.mubr.bf16.mxu0 %v6721_v48  ;;  %v16954_v48 = vld [vmem:[#allocation13 + $0xd0] sm:$0xff]  }
 0x401   : > { %7570 = vmatmul.mubr.bf16.vlgmr.msra.gmra.mrb[176].mxu1 %v6731_v14  ;;  %16284 = vmatpush3.bf16.msra.mxu0 %v16941_v8  ;;  %v16947_v8 = vld [vmem:[#allocation13] sm:$0xff]   ;;  %v16955_v14 = vld [vmem:[#allocation13 + $0x10] sm:$0xff]  }
 0x402   : > { %7577 = vmatprep.mubr.bf16.mxu1 %v6744_v49  ;;  %16285 = vmatprep.subr.bf16.mxu0 %v16942_v18  ;;  %v16956_v49 = vld [vmem:[#allocation13 + $0x90] sm:$0xff]  }
 0x403   : > { %16052 = vmatpush3.bf16.msra.mxu1 %v16947_v8 }
 0x404   : > { %16053 = vmatprep.subr.bf16.mxu1 %v16949_v6 }
 0x405   : > { %16286 = vmatpush3.bf16.msra.mxu0 %v16942_v18  ;;  %v16952_v18 = vld [vmem:[#allocation13 + $0x88] sm:$0xff]  }
 0x406   : > { %16287 = vmatprep.subr.bf16.mxu0 %v16943_v31 }
 0x407   : > { %7529 = vmatmul.mubr.bf16.gmra.mrb[156].mxu0 %v6709_v0  ;;  %16054 = vmatpush3.bf16.msra.mxu1 %v16951_v45 }
 0x408   : > { %16291 = vmatprep.mubr.bf16.mxu0 %v6755_v60  ;;  %16055 = vmatprep.subr.bf16.mxu1 %v16953_v2  ;;  %v16960_v60 = vld [vmem:[#allocation13 + $0x98] sm:$0xff]  }
 0x409   : > { %7578 = vmatmul.mubr.bf16.gmra.mrb[180].mxu1 %v6732_v23  ;;  %16288 = vmatpush3.bf16.msra.mxu0 %v16943_v31  ;;  %v16957_v31 = vld [vmem:[#allocation13 + $0x58] sm:$0xff]   ;;  %v16962_v23 = vld [vmem:[#allocation13 + $0xe0] sm:$0xff]  }
 0x40a   : > { %7585 = vmatprep.mubr.bf16.mxu1 %v6745_v22  ;;  %16289 = vmatprep.subr.bf16.mxu0 %v16944_v1  ;;  %v16963_v22 = vld [vmem:[#allocation13 + $0x20] sm:$0xff]  }
 0x40b   : > { %16056 = vmatpush3.bf16.msra.mxu1 %v16955_v14 }
 0x40c   : > { %16057 = vmatprep.subr.bf16.mxu1 %v16957_v31 }
 0x40d   : > { %16290 = vmatpush3.bf16.msra.mxu0 %v16944_v1  ;;  %v16959_v1 = vld [vmem:[#allocation13 + $0x18] sm:$0xff]  }
 0x40e   : > { %16073 = vmatprep.subr.bf16.mxu0 %v16946_v51 }
 0x40f   : > { %16058 = vmatpush3.bf16.msra.mxu1 %v16959_v1 }
 0x410   : > { %16292 = vmatmul.mubr.bf16.vlgmr.msra.gmra.mrb[160].mxu0 %v19903_v39  ;;  %16059 = vmatprep.subr.bf16.mxu1 %v16961_v42 }
 0x411   : > { %7586 = vmatmul.mubr.bf16.gmra.mrb[184].mxu1 %v19982_v28  ;;  %16295 = vmatprep.mubr.bf16.mxu0 %v6685_v16 }
 0x412   : > { %7593 = vmatprep.mubr.bf16.mxu1 %v6746_v10  ;;  %16074 = vmatpush3.bf16.msra.mxu0 %v16948_v3  ;;  %v16965_v10 = vld [vmem:[#allocation13 + $0x68] sm:$0xff]  }
 0x413   : > { %16075 = vmatprep.subr.bf16.mxu0 %v16950_v26  ;;  %16060 = vmatpush3.bf16.msra.mxu1 %v16963_v22 }
 0x414   : > { %16061 = vmatprep.subr.bf16.mxu1 %v16965_v10 }
 0x416   : > { %16076 = vmatpush3.bf16.msra.mxu0 %v16952_v18 }
 0x417   : > { %16077 = vmatprep.subr.bf16.mxu0 %v16954_v48 }
 0x418   : > { %16296 = vmatmul.mubr.bf16.gmra.mrb[164].mxu0 %v6758_v4  ;;  %v15901_v13 = vpop.f32.mrb[132].mxu0  ;;  %v16967_v4 = vld [vmem:[#allocation13 + $0x28] sm:$0xff]  }
 0x419   : > { %7594 = vmatmul.mubr.bf16.gmra.mrb[188].mxu1 %v6734_v54  ;;  %v15902_v25 = vpop.f32.mrb[133].mxu0  ;;  %v16969_v54 = vld [vmem:[#allocation13 + $0x70] sm:$0xff]  }
 0x41a   : > { %v15903_v21 = vadd.f32 %v15902_v25, %v15901_v13  ;;  %v15904_v41 = vpop.f32.mrb[134].mxu0  ;;  %16078 = vmatpush3.bf16.msra.mxu0 %v16956_v49  ;;  %v16970_v13 = vld [vmem:[#allocation13 + $0xf0] sm:$0xff]   ;;  %16062 = vmatpush3.bf16.msra.mxu1 %v16967_v4 }
 0x41b   : > { %v15905_v29 = vpop.f32.mrb[135].mxu0  ;;  %16079 = vmatprep.subr.bf16.mxu0 %v16958_v15  ;;  %v16971_v25 = vld [vmem:[#allocation13 + $0x30] sm:$0xff]   ;;  %16063 = vmatprep.subr.bf16.mxu1 %v16969_v54 }
 0x41c   : > { %v15906_v50 = vadd.f32 %v15905_v29, %v15904_v41  ;;  %v7385_v39 = vadd.f32 %v15903_v21, %v19925_v34  ;;  %v16972_v21 = vld [vmem:[#allocation13 + $0xb0] sm:$0xff]   ;;  %v16973_v41 = vld [vmem:[#allocation13 + $0x78] sm:$0xff]  }
 0x41d   : > { %v16974_v29 = vld [vmem:[#allocation13 + $0xf8] sm:$0xff]  }
 0x41e   : > { %v7388_v44 = vadd.f32 %v20014_v24, %v15906_v50  ;;  %16080 = vmatpush3.bf16.msra.mxu0 %v16960_v60  ;;  %16064 = vmatpush3.bf16.msra.mxu1 %v16971_v25  ;;  %v16975_v50 = vld [vmem:[#allocation13 + $0x38] sm:$0xff]  }
 0x41f   : > { %16081 = vmatprep.subr.bf16.mxu0 %v16962_v23  ;;  %16065 = vmatprep.subr.bf16.mxu1 %v16973_v41 }
 0x422   : > { %16082 = vmatpush3.bf16.msra.mxu0 %v16964_v17  ;;  %16066 = vmatpush3.bf16.msra.mxu1 %v16975_v50 }
 0x423   : > { %16083 = vmatprep.subr.bf16.mxu0 %v16966_v12 }
 0x426   : > { %v15941_v59 = vpop.f32.mrb[164].mxu1  ;;  %16084 = vmatpush3.bf16.msra.mxu0 %v16968_v61 }
 0x427   : > { %v15942_v47 = vpop.f32.mrb[165].mxu1  ;;  %16085 = vmatprep.subr.bf16.mxu0 %v16970_v13 }
 0x428   : > { %v15943_v30 = vadd.f32 %v15942_v47, %v15941_v59  ;;  %v15944_v28 = vpop.f32.mrb[166].mxu1  ;;  %v16976_v59 = vld [vmem:[#allocation13 + $0xb8] sm:$0xff]   ;;  %v16981_v47 = vld [vmem:[#allocation13 + $0x140] sm:$0xff]  }
 0x429   : > { %v15945_v27 = vpop.f32.mrb[167].mxu1  ;;  %16095 = vmatprep.subr.bf16.mxu1 %v16981_v47 }
 0x42a   : > { %v20017_v52 = vadd.f32 %v15943_v30, %v7385_v39  ;;  %v15946_v56 = vadd.f32 %v15945_v27, %v15944_v28  ;;  %16086 = vmatpush3.bf16.msra.mxu0 %v16972_v21  ;;  %v16982_v39 = vld [vmem:[#allocation13 + $0x1c0] sm:$0xff]  }
 0x42b   : > { %16087 = vmatprep.subr.bf16.mxu0 %v16974_v29 }
 0x42c   : > { %v20019_v40 = vadd.f32 %v15946_v56, %v7388_v44 }
 0x42e   : > { %16088 = vmatpush3.bf16.msra.mxu0 %v16976_v59 }
 0x42f   : > { %16117 = vmatprep.subr.bf16.mxu0 %v16982_v39 }
 0x461   : > { %v15907_v19 = vpop.f32.mrb[136].mxu0 }
 0x462   : > { %v15908_v0 = vpop.f32.mrb[137].mxu0 }
 0x463   : > { %v15909_v38 = vadd.f32 %v15908_v0, %v15907_v19  ;;  %v15910_v43 = vpop.f32.mrb[138].mxu0 }
 0x464   : > { %v15911_v7 = vpop.f32.mrb[139].mxu0 }
 0x465   : > { %v15912_v32 = vadd.f32 %v15911_v7, %v15910_v43  ;;  %v7393_v46 = vadd.f32 %v20014_v24, %v15909_v38 }
 0x467   : > { %v7396_v53 = vadd.f32 %v20014_v24, %v15912_v32 }
 0x471   : > { %v15947_v20 = vpop.f32.mrb[168].mxu1 }
 0x472   : > { %v15948_v34 = vpop.f32.mrb[169].mxu1 }
 0x473   : > { %v15949_v9 = vadd.f32 %v15948_v34, %v15947_v20  ;;  %v15950_v58 = vpop.f32.mrb[170].mxu1 }
 0x474   : > { %v15951_v37 = vpop.f32.mrb[171].mxu1 }
 0x475   : > { %v20023_v57 = vadd.f32 %v15949_v9, %v7393_v46  ;;  %v15952_v35 = vadd.f32 %v15951_v37, %v15950_v58 }
 0x477   : > { %v20025_v16 = vadd.f32 %v15952_v35, %v7396_v53 }
 0x4ba   : > { %v15913_v30 = vpop.f32.mrb[140].mxu0 }
 0x4bb   : > { %v15914_v28 = vpop.f32.mrb[141].mxu0 }
 0x4bc   : > { %v15915_v27 = vadd.f32 %v15914_v28, %v15913_v30  ;;  %v15916_v44 = vpop.f32.mrb[142].mxu0 }
 0x4bd   : > { %v15917_v56 = vpop.f32.mrb[143].mxu0 }
 0x4be   : > { %v15918_v19 = vadd.f32 %v15917_v56, %v15916_v44  ;;  %v7401_v8 = vadd.f32 %v20014_v24, %v15915_v27 }
 0x4c2   : > { %v15975_v0 = vpop.f32.mrb[144].mxu0 }
 0x4c3   : > { %v15976_v38 = vpop.f32.mrb[145].mxu0 }
 0x4c4   : > { %v15977_v43 = vadd.f32 %v15976_v38, %v15975_v0  ;;  %v15978_v7 = vpop.f32.mrb[146].mxu0 }
 0x4c5   : > { %v15979_v32 = vpop.f32.mrb[147].mxu0 }
 0x4c6   : > { %v7507_v20 = vadd.f32 %v15977_v43, %v19976_v63  ;;  %v15980_v34 = vadd.f32 %v15979_v32, %v15978_v7  ;;  %v7404_v63 = vadd.f32 %v20014_v24, %v15918_v19 }
 0x4c8   : > { %v7510_v46 = vadd.f32 %v15980_v34, %v19985_v11 }
 0x4ca   : > { %v15981_v9 = vpop.f32.mrb[148].mxu0 }
 0x4cb   : > { %v15982_v58 = vpop.f32.mrb[149].mxu0 }
 0x4cc   : > { %v15953_v37 = vpop.f32.mrb[172].mxu1  ;;  %v15983_v53 = vadd.f32 %v15982_v58, %v15981_v9  ;;  %v15984_v35 = vpop.f32.mrb[150].mxu0 }
 0x4cd   : > { %v15954_v55 = vpop.f32.mrb[173].mxu1  ;;  %v15985_v51 = vpop.f32.mrb[151].mxu0 }
 0x4ce   : > { %v15955_v3 = vadd.f32 %v15954_v55, %v15953_v37  ;;  %v15956_v6 = vpop.f32.mrb[174].mxu1  ;;  %v7515_v26 = vadd.f32 %v15983_v53, %v20017_v52  ;;  %v15986_v45 = vadd.f32 %v15985_v51, %v15984_v35 }
 0x4cf   : > { %v15957_v18 = vpop.f32.mrb[175].mxu1 }
 0x4d0   : > { %v7466_v2 = vadd.f32 %v15955_v3, %v7401_v8  ;;  %v15958_v48 = vadd.f32 %v15957_v18, %v15956_v6  ;;  %v7518_v11 = vadd.f32 %v15986_v45, %v20019_v40 }
 0x4d2   : > { %v7469_v14 = vadd.f32 %v15958_v48, %v7404_v63  ;;  %v15987_v49 = vpop.f32.mrb[152].mxu0 }
 0x4d3   : > { %v15988_v31 = vpop.f32.mrb[153].mxu0 }
 0x4d4   : > { %v16015_v15 = vpop.f32.mrb[176].mxu1  ;;  %v15989_v1 = vadd.f32 %v15988_v31, %v15987_v49  ;;  %v15990_v60 = vpop.f32.mrb[154].mxu0 }
 0x4d5   : > { %v16016_v42 = vpop.f32.mrb[177].mxu1  ;;  %v15991_v23 = vpop.f32.mrb[155].mxu0 }
 0x4d6   : > { %v16017_v22 = vadd.f32 %v16016_v42, %v16015_v15  ;;  %v16018_v17 = vpop.f32.mrb[178].mxu1  ;;  %v7523_v52 = vadd.f32 %v15989_v1, %v20023_v57  ;;  %v15992_v10 = vadd.f32 %v15991_v23, %v15990_v60 }
 0x4d7   : > { %v16019_v12 = vpop.f32.mrb[179].mxu1 }
 0x4d8   : > { %v16020_v4 = vadd.f32 %v16019_v12, %v16018_v17  ;;  %v20035_v24 = vadd.f32 %v15992_v10, %v20025_v16  ;;  %v7572_v61 = vadd.f32 %v16017_v22, %v7507_v20 }
 0x4da   : > { %v15993_v40 = vpop.f32.mrb[156].mxu0  ;;  %v7575_v54 = vadd.f32 %v16020_v4, %v7510_v46 }
 0x4db   : > { %v15994_v13 = vpop.f32.mrb[157].mxu0 }
 0x4dc   : > { %v16021_v25 = vpop.f32.mrb[180].mxu1  ;;  %v15995_v21 = vadd.f32 %v15994_v13, %v15993_v40  ;;  %v15996_v41 = vpop.f32.mrb[158].mxu0 }
 0x4dd   : > { %v16022_v29 = vpop.f32.mrb[181].mxu1  ;;  %v15997_v50 = vpop.f32.mrb[159].mxu0 }
 0x4de   : > { %v16023_v59 = vadd.f32 %v16022_v29, %v16021_v25  ;;  %v16024_v47 = vpop.f32.mrb[182].mxu1  ;;  %v20037_v39 = vadd.f32 %v15995_v21, %v7466_v2  ;;  %v15998_v57 = vadd.f32 %v15997_v50, %v15996_v41 }
 0x4df   : > { %v16025_v30 = vpop.f32.mrb[183].mxu1 }
 0x4e0   : > { %v16026_v28 = vadd.f32 %v16025_v30, %v16024_v47  ;;  %v20039_v27 = vadd.f32 %v15998_v57, %v7469_v14  ;;  %v7580_v16 = vadd.f32 %v16023_v59, %v7515_v26 }
 0x4e2   : > { %v7583_v44 = vadd.f32 %v16026_v28, %v7518_v11 }
 0x4e3   : > { %v16293_v56 = vpop.f32.mrb[160].mxu0 }
 0x4e4   : > { %v16027_v19 = vpop.f32.mrb[184].mxu1  ;;  %v7645_v0 = vadd.f32 %v16293_v56, %v7580_v16  ;;  %v7636_v38 = vpop.f32.mrb[161].mxu0 }
 0x4e5   : > { %v16028_v43 = vpop.f32.mrb[185].mxu1  ;;  %v7637_v7 = vadd.f32 %v7636_v38, %v7572_v61  ;;  %v16294_v32 = vpop.f32.mrb[162].mxu0 }
 0x4e6   : > { %v16029_v20 = vadd.f32 %v16028_v43, %v16027_v19  ;;  %v16030_v34 = vpop.f32.mrb[186].mxu1  ;;  %v7669_v46 = vmax.f32 %v7645_v0, 0.0  ;;  %v7648_v9 = vadd.f32 %v16294_v32, %v7583_v44  ;;  %v7639_v58 = vpop.f32.mrb[163].mxu0 }
 0x4e7   : > { %v16031_v37 = vpop.f32.mrb[187].mxu1  ;;  %v7667_v53 = vmax.f32 %v7637_v7, 0.0  ;;  %v7640_v35 = vadd.f32 %v7639_v58, %v7575_v54 }
 0x4e8   : > { %v20041_v55 = vadd.f32 %v16031_v37, %v16030_v34  ;;  %v7717_v51 = vcombine.high %v7669_v46, %v7669_v46  ;;  %v7724_v8 = vrot.slane %v7669_v46, %v19310_v62  ;;  %v7670_v3 = vmax.f32 %v7648_v9, 0.0 }
 0x4e9   : > { %v7683_v6 = vcombine.high %v7667_v53, %v7667_v53  ;;  %v7690_v26 = vrot.slane %v7667_v53, %v19310_v62  ;;  %v7668_v45 = vmax.f32 %v7640_v35, 0.0  ;;  %v7588_v18 = vadd.f32 %v16029_v20, %v7523_v52 }
 0x4ea   : > { %v7731_v63 = vrot.slane %v7717_v51, %v19310_v62  ;;  %v7732_v2 = vcombine.high %v7724_v8, %v7724_v8  ;;  %v14490_v48 = vrot.slane %v7724_v8, 9  ;;  %v7734_v11 = vcombine.high %v7670_v3, %v7670_v3 }
 0x4eb   : > { %v7697_v14 = vrot.slane %v7683_v6, %v19310_v62  ;;  %v7698_v49 = vcombine.high %v7690_v26, %v7690_v26  ;;  %v14482_v31 = vrot.slane %v7690_v26, 9  ;;  %v7741_v15 = vrot.slane %v7670_v3, %v19310_v62  ;;  %v16297_v1 = vpop.f32.mrb[164].mxu0 }
 0x4ec   : > { %v16033_v60 = vpop.f32.mrb[188].mxu1  ;;  %v7733_v42 = vcombine.high %v7731_v63, %v7731_v63  ;;  %v14491_v23 = vrot.slane %v7732_v2, 9  ;;  %v14492_v22 = vrot.slane %v7731_v63, 9  ;;  %v7955_v17 = vmax.f32 %v7724_v8, %v14490_v48  ;;  %v7652_v10 = vpop.f32.mrb[165].mxu0 }
 0x4ed   : > { %v16034_v12 = vpop.f32.mrb[189].mxu1  ;;  %v7699_v52 = vcombine.high %v7697_v14, %v7697_v14  ;;  %v14483_v4 = vrot.slane %v7698_v49, 9  ;;  %v14484_v61 = vrot.slane %v7697_v14, 9  ;;  %v7947_v40 = vmax.f32 %v7690_v26, %v14482_v31  ;;  %v20048_v54 = vpop.f32.mrb[166].mxu0 }
 0x4ee   : > { %v14493_v13 = vrot.slane %v7733_v42, 9  ;;  %v7956_v25 = vmax.f32 %v7732_v2, %v14491_v23  ;;  %v7957_v21 = vmax.f32 %v7731_v63, %v14492_v22  ;;  %v16035_v41 = vadd.f32 %v16034_v12, %v16033_v60  ;;  %v16036_v29 = vpop.f32.mrb[190].mxu1  ;;  %v20050_v50 = vpop.f32.mrb[167].mxu0 }
 0x4ef   : > { %v14485_v59 = vrot.slane %v7699_v52, 9  ;;  %v7948_v47 = vmax.f32 %v7698_v49, %v14483_v4  ;;  %v7949_v57 = vmax.f32 %v7697_v14, %v14484_v61  ;;  %v7748_v30 = vrot.slane %v7734_v11, %v19310_v62  ;;  %v16037_v28 = vpop.f32.mrb[191].mxu1 }
 0x4f0   : > { %v7958_v16 = vmax.f32 %v7733_v42, %v14493_v13  ;;  %v7749_v44 = vcombine.high %v7741_v15, %v7741_v15  ;;  %v14494_v56 = vrot.slane %v7741_v15, 9  ;;  %v16038_v19 = vadd.f32 %v16037_v28, %v16036_v29 }
 0x4f1   : > { %v7950_v0 = vmax.f32 %v7699_v52, %v14485_v59  ;;  %v7750_v38 = vcombine.high %v7748_v30, %v7748_v30  ;;  %v14496_v43 = vrot.slane %v7748_v30, 9  ;;  %v7700_v7 = vcombine.high %v7668_v45, %v7668_v45 }
 0x4f2   : > { %v14495_v32 = vrot.slane %v7749_v44, 9  ;;  %v7959_v20 = vmax.f32 %v7741_v15, %v14494_v56  ;;  %v7707_v34 = vrot.slane %v7668_v45, %v19310_v62  ;;  %v7596_v46 = vadd.f32 %v16035_v41, %v20037_v39 }
 0x4f3   : > { %v14497_v9 = vrot.slane %v7750_v38, 9  ;;  %v7961_v58 = vmax.f32 %v7748_v30, %v14496_v43  ;;  %v7714_v37 = vrot.slane %v7700_v7, %v19310_v62  ;;  %v7653_v53 = vadd.f32 %v7652_v10, %v7588_v18 }
 0x4f4   : > { %v7960_v35 = vmax.f32 %v7749_v44, %v14495_v32  ;;  %v7983_v51 = vmax.f32 %v7955_v17, %v7959_v20  ;;  %v7715_v8 = vcombine.high %v7707_v34, %v7707_v34  ;;  %v14486_v3 = vrot.slane %v7707_v34, 9 }
 0x4f5   : > { %v7962_v6 = vmax.f32 %v7750_v38, %v14497_v9  ;;  %v7985_v26 = vmax.f32 %v7957_v21, %v7961_v58  ;;  %v7716_v63 = vcombine.high %v7714_v37, %v7714_v37  ;;  %v14488_v2 = vrot.slane %v7714_v37, 9 }
 0x4f6   : > { %v7984_v48 = vmax.f32 %v7956_v25, %v7960_v35  ;;  %v8030_v11 = vrot.slane %v7983_v51, %v19322_v36  ;;  %v14487_v14 = vrot.slane %v7715_v8, 9  ;;  %v7951_v45 = vmax.f32 %v7707_v34, %v14486_v3 }
 0x4f7   : > { %v7986_v49 = vmax.f32 %v7958_v16, %v7962_v6  ;;  %v8038_v39 = vrot.slane %v7985_v26, %v19322_v36  ;;  %v14489_v31 = vrot.slane %v7716_v63, 9  ;;  %v7953_v15 = vmax.f32 %v7714_v37, %v14488_v2 }
 0x4f8   : > { %v8034_v18 = vrot.slane %v7984_v48, %v19322_v36  ;;  %v7952_v60 = vmax.f32 %v7715_v8, %v14487_v14  ;;  %v7979_v42 = vmax.f32 %v7947_v40, %v7951_v45  ;;  %v7661_v23 = vadd.f32 %v16297_v1, %v7596_v46 }
 0x4f9   : > { %v8042_v22 = vrot.slane %v7986_v49, %v19322_v36  ;;  %v7954_v17 = vmax.f32 %v7716_v63, %v14489_v31  ;;  %v7981_v10 = vmax.f32 %v7949_v57, %v7953_v15  ;;  %v7671_v12 = vmax.f32 %v7653_v53, 0.0 }
 0x4fa   : > { %v8078_v52 = vsel %vm2232_vm0, %v8034_v18, %v8030_v11  ;;  %v7980_v4 = vmax.f32 %v7948_v47, %v7952_v60  ;;  %v8014_v61 = vrot.slane %v7979_v42, %v19322_v36  ;;  %v7673_v13 = vmax.f32 %v7661_v23, 0.0 }
 0x4fb   : > { %v8079_v25 = vsel %vm2234_vm1, %v8038_v39, %v8078_v52  ;;  %v7982_v21 = vmax.f32 %v7950_v0, %v7954_v17  ;;  %v8022_v41 = vrot.slane %v7981_v10, %v19322_v36  ;;  %v7751_v29 = vcombine.high %v7671_v12, %v7671_v12 }
 0x4fc   : > { %v8080_v40 = vsel %vm2236_vm2, %v8042_v22, %v8079_v25  ;;  %v8018_v1 = vrot.slane %v7980_v4, %v19322_v36  ;;  %v7785_v59 = vcombine.high %v7673_v13, %v7673_v13  ;;  %v7792_v57 = vrot.slane %v7673_v13, %v19310_v62 }
 0x4fd   : > { %8092 = vst [vmem:[#allocation2 + $0x31] sm:$0xf] %v8080_v40  ;;  %v8026_v30 = vrot.slane %v7982_v21, %v19322_v36  ;;  %v7758_v47 = vrot.slane %v7671_v12, %v19310_v62  ;;  %v7599_v28 = vadd.f32 %v16038_v19, %v20039_v27  ;;  %v7765_v43 = vrot.slane %v7751_v29, %v19310_v62 }
 0x4fe   : > { %v8075_v16 = vsel %vm2232_vm0, %v8018_v1, %v8014_v61  ;;  %v7799_v56 = vrot.slane %v7785_v59, %v19310_v62  ;;  %v7800_v0 = vcombine.high %v7792_v57, %v7792_v57  ;;  %v14506_v32 = vrot.slane %v7792_v57, 9 }
 0x4ff   : > { %v8076_v44 = vsel %vm2234_vm1, %v8022_v41, %v8075_v16  ;;  %v7766_v7 = vcombine.high %v7758_v47, %v7758_v47  ;;  %v14498_v46 = vrot.slane %v7758_v47, 9  ;;  %v7664_v9 = vadd.f32 %v20048_v54, %v7599_v28 }
 0x500   : > { %v8077_v38 = vsel %vm2236_vm2, %v8026_v30, %v8076_v44  ;;  %v14507_v20 = vrot.slane %v7800_v0, 9  ;;  %v14508_v34 = vrot.slane %v7799_v56, 9  ;;  %v7801_v27 = vcombine.high %v7799_v56, %v7799_v56 }
 0x501   : > { %8091 = vst [vmem:[#allocation2 + $0x19] sm:$0xf] %v8077_v38  ;;  %v7767_v19 = vcombine.high %v7765_v43, %v7765_v43  ;;  %v7591_v58 = vadd.f32 %v20041_v55, %v20035_v24  ;;  %v14499_v37 = vrot.slane %v7766_v7, 9  ;;  %v7674_v53 = vmax.f32 %v7664_v9, 0.0 }
 0x502   : > { %v7971_v51 = vmax.f32 %v7792_v57, %v14506_v32  ;;  %v14500_v8 = vrot.slane %v7765_v43, 9  ;;  %v14509_v26 = vrot.slane %v7801_v27, 9  ;;  %v7972_v63 = vmax.f32 %v7800_v0, %v14507_v20 }
 0x503   : > { %v7656_v35 = vadd.f32 %v20050_v50, %v7591_v58  ;;  %v7802_v3 = vcombine.high %v7674_v53, %v7674_v53  ;;  %v7809_v6 = vrot.slane %v7674_v53, %v19310_v62  ;;  %v14501_v2 = vrot.slane %v7767_v19, 9 }
 0x504   : > { %v7973_v11 = vmax.f32 %v7799_v56, %v14508_v34  ;;  %v7963_v49 = vmax.f32 %v7758_v47, %v14498_v46  ;;  %v7964_v24 = vmax.f32 %v7766_v7, %v14499_v37  ;;  %v7965_v60 = vmax.f32 %v7765_v43, %v14500_v8 }
 0x505   : > { %v7672_v48 = vmax.f32 %v7656_v35, 0.0  ;;  %v7816_v54 = vrot.slane %v7802_v3, %v19310_v62  ;;  %v7817_v14 = vcombine.high %v7809_v6, %v7809_v6  ;;  %v14510_v45 = vrot.slane %v7809_v6, 9 }
 0x506   : > { %v7974_v21 = vmax.f32 %v7801_v27, %v14509_v26  ;;  %v7966_v44 = vmax.f32 %v7767_v19, %v14501_v2  ;;  %v16987_v26 = vld [vmem:[#allocation13 + $0x100] sm:$0xff]  }
 0x507   : > { %v7768_v55 = vcombine.high %v7672_v48, %v7672_v48  ;;  %v7775_v39 = vrot.slane %v7672_v48, %v19310_v62  ;;  %v7818_v50 = vcombine.high %v7816_v54, %v7816_v54  ;;  %v14511_v31 = vrot.slane %v7817_v14, 9 }
 0x508   : > { %v14512_v15 = vrot.slane %v7816_v54, 9  ;;  %v7975_v18 = vmax.f32 %v7809_v6, %v14510_v45  ;;  %v16977_v35 = vld [vmem:[#allocation2 + $0x1] ss:$24 sps:$4 sm:$0xff]  }
 0x509   : > { %v7782_v42 = vrot.slane %v7768_v55, %v19310_v62  ;;  %v7783_v23 = vcombine.high %v7775_v39, %v7775_v39  ;;  %v14502_v22 = vrot.slane %v7775_v39, 9  ;;  %v14513_v17 = vrot.slane %v7818_v50, 9  ;;  %v16983_v8 = vld [vmem:[#allocation2] ss:$24 sps:$4 sm:$0xff]  }
 0x50a   : > { %v7976_v10 = vmax.f32 %v7817_v14, %v14511_v31  ;;  %v7977_v12 = vmax.f32 %v7816_v54, %v14512_v15  ;;  %v7991_v52 = vmax.f32 %v7971_v51, %v7975_v18  ;;  %v16979_v51 = vld [vmem:[#allocation2 + $0x18] ss:$24 sps:$4 sm:$0xff]  }
 0x50b   : > { %v7784_v4 = vcombine.high %v7782_v42, %v7782_v42  ;;  %v14503_v61 = vrot.slane %v7783_v23, 9  ;;  %v14504_v13 = vrot.slane %v7782_v42, 9  ;;  %v7967_v25 = vmax.f32 %v7775_v39, %v14502_v22  ;;  %v16985_v6 = vld [vmem:[#allocation2 + $0x2] ss:$24 sps:$4 sm:$0xff]   ;;  %v16993_v31 = vld [vmem:[#allocation13 + $0x148] sm:$0xff]  }
 0x50c   : > { %v7978_v41 = vmax.f32 %v7818_v50, %v14513_v17  ;;  %v7992_v29 = vmax.f32 %v7972_v63, %v7976_v10  ;;  %v7993_v40 = vmax.f32 %v7973_v11, %v7977_v12  ;;  %v8062_v62 = vrot.slane %v7991_v52, %v19322_v36  ;;  %v16988_v11 = vld [vmem:[#allocation13 + $0x180] sm:$0xff]   ;;  %v16989_v54 = vld [vmem:[#allocation2 + $0x1a] ss:$24 sps:$4 sm:$0xff]  }
 0x50d   : > { %v14505_v1 = vrot.slane %v7784_v4, 9  ;;  %v7968_v59 = vmax.f32 %v7783_v23, %v14503_v61  ;;  %v7969_v57 = vmax.f32 %v7782_v42, %v14504_v13  ;;  %v7987_v30 = vmax.f32 %v7963_v49, %v7967_v25  ;;  %v16994_v18 = vld [vmem:[#allocation13 + $0x1c8] sm:$0xff]   ;;  %v16997_v22 = vld [vmem:[#allocation13 + $0x150] sm:$0xff]   ;;  %v17001_v52 = vld [vmem:[#allocation13 + $0x158] sm:$0xff]  }
 0x50e   : > { %v7994_v47 = vmax.f32 %v7974_v21, %v7978_v41  ;;  %v8066_v28 = vrot.slane %v7992_v29, %v19322_v36  ;;  %v8070_v16 = vrot.slane %v7993_v40, %v19322_v36  ;;  %v16995_v42 = vld [vmem:[#allocation13 + $0x108] sm:$0xff]   ;;  %v16998_v17 = vld [vmem:[#allocation13 + $0x1d0] sm:$0xff]   ;;  %v17003_v61 = vld [vmem:[#allocation13 + $0x118] sm:$0xff]  }
 0x50f   : > { %v7970_v56 = vmax.f32 %v7784_v4, %v14505_v1  ;;  %v7988_v0 = vmax.f32 %v7964_v24, %v7968_v59  ;;  %v7989_v38 = vmax.f32 %v7965_v60, %v7969_v57  ;;  %v8046_v32 = vrot.slane %v7987_v30, %v19322_v36  ;;  %v16996_v23 = vld [vmem:[#allocation13 + $0x188] sm:$0xff]   ;;  %v16999_v10 = vld [vmem:[#allocation13 + $0x110] sm:$0xff]   ;;  %v17002_v4 = vld [vmem:[#allocation13 + $0x1d8] sm:$0xff]  }
 0x510   : > { %v8074_v43 = vrot.slane %v7994_v47, %v19322_v36  ;;  %v8084_v7 = vsel %vm2232_vm0, %v8066_v28, %v8062_v62  ;;  %v17000_v12 = vld [vmem:[#allocation13 + $0x190] sm:$0xff]   ;;  %v17004_v13 = vld [vmem:[#allocation13 + $0x198] sm:$0xff]   ;;  %v17005_v25 = vld [vmem:[#allocation13 + $0x160] sm:$0xff]  }
 0x511   : > { %v8085_v20 = vsel %vm2234_vm1, %v8070_v16, %v8084_v7  ;;  %v7990_v34 = vmax.f32 %v7966_v44, %v7970_v56  ;;  %v8050_v46 = vrot.slane %v7988_v0, %v19322_v36  ;;  %v8054_v9 = vrot.slane %v7989_v38, %v19322_v36  ;;  %v17006_v21 = vld [vmem:[#allocation13 + $0x1e0] sm:$0xff]   ;;  %v17009_v40 = vld [vmem:[#allocation13 + $0x168] sm:$0xff]   ;;  %v17013_v30 = vld [vmem:[#allocation13 + $0x170] sm:$0xff]  }
 0x512   : > { %v8086_v27 = vsel %vm2236_vm2, %v8074_v43, %v8085_v20  ;;  %v17007_v41 = vld [vmem:[#allocation13 + $0x120] sm:$0xff]   ;;  %v17010_v1 = vld [vmem:[#allocation13 + $0x1e8] sm:$0xff]   ;;  %v17014_v47 = vld [vmem:[#allocation13 + $0x1f0] sm:$0xff]  }
 0x513   : > { %8094 = vst [vmem:[#allocation2 + $0x61] sm:$0xf] %v8086_v27  ;;  %v8058_v19 = vrot.slane %v7990_v34, %v19322_v36  ;;  %v8081_v58 = vsel %vm2232_vm0, %v8050_v46, %v8046_v32  ;;  %v17008_v29 = vld [vmem:[#allocation13 + $0x1a0] sm:$0xff]   ;;  %v17011_v59 = vld [vmem:[#allocation13 + $0x128] sm:$0xff]   ;;  %v17015_v62 = vld [vmem:[#allocation13 + $0x130] sm:$0xff]  }
 0x514   : > { %v8082_v37 = vsel %vm2234_vm1, %v8054_v9, %v8081_v58  ;;  %v17012_v57 = vld [vmem:[#allocation13 + $0x1a8] sm:$0xff]   ;;  %v17016_v28 = vld [vmem:[#allocation13 + $0x1b0] sm:$0xff]   ;;  %v17017_v16 = vld [vmem:[#allocation13 + $0x178] sm:$0xff]  }
 0x515   : > { %v8083_v53 = vsel %vm2236_vm2, %v8058_v19, %v8082_v37  ;;  %v17018_v44 = vld [vmem:[#allocation13 + $0x1f8] sm:$0xff]   ;;  %v17025_v20 = vld [vmem:[#allocation13 + $0x200] sm:$0xff]   ;;  %v17936_v46 = vld [vmem:[#allocation3] sm:$0xff] }
 0x516   : > { %8093 = vst [vmem:[#allocation2 + $0x49] sm:$0xf] %v8083_v53  ;;  %v17019_v56 = vld [vmem:[#allocation13 + $0x138] sm:$0xff]   ;;  %v17026_v27 = vld [vmem:[#allocation13 + $0x208] sm:$0xff]   ;;  %v17027_v19 = vld [vmem:[#allocation13 + $0x210] sm:$0xff]  }
 0x517   : > { %v17020_v0 = vld [vmem:[#allocation13 + $0x1b8] sm:$0xff]   ;;  %v17029_v37 = vld [vmem:[#allocation13 + $0x220] sm:$0xff]   ;;  %v17030_v53 = vld [vmem:[#allocation13 + $0x228] sm:$0xff]  }
 0x518   : > { %v17021_v32 = vld [vmem:[#allocation2 + $0x19] ss:$24 sps:$4 sm:$0xff]  }
 0x519   : > { %v17028_v58 = vld [vmem:[#allocation13 + $0x218] sm:$0xff]  }
 0x51a   : > { %v16992_v63 = vld [vmem:[#allocation2 + $0x61] ss:$24 sps:$4 sm:$0xff]  }
 0x51b   : > { %v17024_v7 = vld [vmem:[#allocation2 + $0x60] ss:$24 sps:$4 sm:$0xff]  }
 0x51d   : > { %v16978_v3 = vld [vmem:[#allocation2 + $0x31] ss:$24 sps:$4 sm:$0xff]  }
 0x51e   : > { %v16980_v2 = vld [vmem:[#allocation2 + $0x48] ss:$24 sps:$4 sm:$0xff]   ;;  %v8120_v14 = vpack.c.bf16 %v16978_v3, %v16977_v35  ;;  %v17031_v35 = vld [vmem:[#allocation13 + $0x230] sm:$0xff]  }
 0x51f   : > { %v16984_v48 = vld [vmem:[#allocation2 + $0x30] ss:$24 sps:$4 sm:$0xff]   ;;  %v8146_v49 = vpack.c.bf16 %v16980_v2, %v16979_v51  ;;  %v17032_v51 = vld [vmem:[#allocation13 + $0x238] sm:$0xff]  }
 0x520   : > { %v16986_v45 = vld [vmem:[#allocation2 + $0x32] ss:$24 sps:$4 sm:$0xff]   ;;  %v8107_v24 = vpack.c.bf16 %v16984_v48, %v16983_v8  ;;  %8827 = vmatprep.mubr.bf16.mxu1 %v8120_v14  ;;  %v17034_v3 = vld [vmem:[#allocation2 + $0x62] ss:$24 sps:$4 sm:$0xff]   ;;  %v17038_v2 = vld [vmem:[#allocation16 + $0x8] ss:$16 sps:$4 sm:$0xff]  }
 0x521   : > { %v16990_v55 = vld [vmem:[#allocation2 + $0x4a] ss:$24 sps:$4 sm:$0xff]   ;;  %v8133_v50 = vpack.c.bf16 %v16986_v45, %v16985_v6  ;;  %8868 = vmatprep.mubr.bf16.mxu0 %v8146_v49  ;;  %v17041_v14 = vld [vmem:[#allocation16 + $0x20] ss:$16 sps:$4 sm:$0xff]   ;;  %v17044_v45 = vld [vmem:[#allocation16 + $0x28] ss:$16 sps:$4 sm:$0xff]  }
 0x522   : > { %v16991_v39 = vld [vmem:[#allocation2 + $0x31] ss:$24 sps:$4 sm:$0xff]   ;;  %8828 = vmatmul.mubr.bf16.vlgmr.msra.gmra.mrb[192].mxu1 %v8107_v24  ;;  %v8172_v15 = vpack.c.bf16 %v16990_v55, %v16989_v54 }
 0x523   : > { %8869 = vmatmul.mubr.bf16.vlgmr.msra.gmra.mrb[168].mxu0 %v8133_v50  ;;  %16096 = vmatpush3.bf16.msra.mxu1 %v16987_v26  ;;  %v8198_v60 = vpack.c.bf16 %v16992_v63, %v16991_v39  ;;  %v17022_v38 = vld [vmem:[#allocation2 + $0x49] ss:$24 sps:$4 sm:$0xff]  }
 0x524   : > { %16118 = vmatpush3.bf16.msra.mxu0 %v16988_v11  ;;  %8909 = vmatprep.mubr.bf16.mxu1 %v8172_v15  ;;  %v17023_v43 = vld [vmem:[#allocation2 + $0x30] ss:$24 sps:$4 sm:$0xff]   ;;  %v8159_v34 = vpack.c.bf16 %v17022_v38, %v17021_v32 }
 0x525   : > { %8950 = vmatprep.mubr.bf16.mxu0 %v8198_v60  ;;  %16097 = vmatprep.subr.bf16.mxu1 %v16993_v31  ;;  %v8185_v9 = vpack.c.bf16 %v17024_v7, %v17023_v43  ;;  %v17033_v8 = vld [vmem:[#allocation2 + $0x32] ss:$24 sps:$4 sm:$0xff]   ;;  %v17035_v26 = vld [vmem:[#allocation16] ss:$16 sps:$4 sm:$0xff]   ;;  %v17050_v55 = vld [vmem:[#allocation16 + $0x48] ss:$16 sps:$4 sm:$0xff]  }
 0x526   : > { %16119 = vmatprep.subr.bf16.mxu0 %v16994_v18  ;;  %v8211_v6 = vpack.c.bf16 %v17034_v3, %v17033_v8  ;;  %v17037_v63 = vld [vmem:[#allocation16 + $0x4] ss:$16 sps:$4 sm:$0xff]   ;;  %v17040_v48 = vld [vmem:[#allocation16 + $0xc] ss:$16 sps:$4 sm:$0xff]   ;;  %v17047_v49 = vld [vmem:[#allocation16 + $0x40] ss:$16 sps:$4 sm:$0xff]  }
 0x527   : > { %16098 = vmatpush3.bf16.msra.mxu1 %v16995_v42  ;;  %v17043_v11 = vld [vmem:[#allocation16 + $0x24] ss:$16 sps:$4 sm:$0xff]   ;;  %v17046_v54 = vld [vmem:[#allocation16 + $0x2c] ss:$16 sps:$4 sm:$0xff]   ;;  %v17053_v31 = vld [vmem:[#allocation16 + $0x60] ss:$16 sps:$4 sm:$0xff]  }
 0x528   : > { %16120 = vmatpush3.bf16.msra.mxu0 %v16996_v23  ;;  %16099 = vmatprep.subr.bf16.mxu1 %v16997_v22  ;;  %v17049_v24 = vld [vmem:[#allocation16 + $0x44] ss:$16 sps:$4 sm:$0xff]   ;;  %v17052_v39 = vld [vmem:[#allocation16 + $0x4c] ss:$16 sps:$4 sm:$0xff]   ;;  %v17056_v18 = vld [vmem:[#allocation16 + $0x68] ss:$16 sps:$4 sm:$0xff]  }
 0x529   : > { %16121 = vmatprep.subr.bf16.mxu0 %v16998_v17  ;;  %v17055_v50 = vld [vmem:[#allocation16 + $0x64] ss:$16 sps:$4 sm:$0xff]   ;;  %v17058_v15 = vld [vmem:[#allocation16 + $0x6c] ss:$16 sps:$4 sm:$0xff]   ;;  %v17059_v23 = vld [vmem:[#allocation16 + $0x80] ss:$16 sps:$4 sm:$0xff]  }
 0x52a   : > { %v17061_v60 = vld [vmem:[#allocation16 + $0x84] ss:$16 sps:$4 sm:$0xff]   ;;  %v17064_v42 = vld [vmem:[#allocation16 + $0x8c] ss:$16 sps:$4 sm:$0xff]   ;;  %v17062_v22 = vld [vmem:[#allocation16 + $0x88] ss:$16 sps:$4 sm:$0xff]  }
 0x52b   : > { %16100 = vmatpush3.bf16.msra.mxu1 %v16999_v10  ;;  %v17067_v17 = vld [vmem:[#allocation16 + $0xa4] ss:$16 sps:$4 sm:$0xff]   ;;  %v17070_v10 = vld [vmem:[#allocation16 + $0xac] ss:$16 sps:$4 sm:$0xff]   ;;  %v17098_v38 = vld [vmem:[#allocation16 + $0x148] ss:$16 sps:$4 sm:$0xff]  }
 0x52c   : > { %16122 = vmatpush3.bf16.msra.mxu0 %v17000_v12  ;;  %16101 = vmatprep.subr.bf16.mxu1 %v17001_v52  ;;  %v17065_v12 = vld [vmem:[#allocation16 + $0xa0] ss:$16 sps:$4 sm:$0xff]   ;;  %v17068_v52 = vld [vmem:[#allocation16 + $0xa8] ss:$16 sps:$4 sm:$0xff]   ;;  %v17103_v43 = vld [vmem:[#allocation16 + $0x164] ss:$16 sps:$4 sm:$0xff]  }
 0x52d   : > { %16123 = vmatprep.subr.bf16.mxu0 %v17002_v4  ;;  %v17073_v4 = vld [vmem:[#allocation16 + $0xc4] ss:$16 sps:$4 sm:$0xff]   ;;  %v17106_v7 = vld [vmem:[#allocation16 + $0x16c] ss:$16 sps:$4 sm:$0xff]   ;;  %v17101_v32 = vld [vmem:[#allocation16 + $0x160] ss:$16 sps:$4 sm:$0xff]  }
 0x52e   : > { %v17119_v8 = vld [vmem:[#allocation16 + $0x1c0] ss:$16 sps:$4 sm:$0xff]   ;;  %v17122_v3 = vld [vmem:[#allocation16 + $0x1c8] ss:$16 sps:$4 sm:$0xff]  }
 0x52f   : > { %16102 = vmatpush3.bf16.msra.mxu1 %v17003_v61  ;;  %v17076_v61 = vld [vmem:[#allocation16 + $0xcc] ss:$16 sps:$4 sm:$0xff]  }
 0x530   : > { %16124 = vmatpush3.bf16.msra.mxu0 %v17004_v13  ;;  %16103 = vmatprep.subr.bf16.mxu1 %v17005_v25  ;;  %v17071_v13 = vld [vmem:[#allocation16 + $0xc0] ss:$16 sps:$4 sm:$0xff]   ;;  %v17074_v25 = vld [vmem:[#allocation16 + $0xc8] ss:$16 sps:$4 sm:$0xff]  }
 0x531   : > { %16125 = vmatprep.subr.bf16.mxu0 %v17006_v21  ;;  %v17079_v21 = vld [vmem:[#allocation16 + $0xe4] ss:$16 sps:$4 sm:$0xff]  }
 0x533   : > { %16104 = vmatpush3.bf16.msra.mxu1 %v17007_v41  ;;  %v17082_v41 = vld [vmem:[#allocation16 + $0xec] ss:$16 sps:$4 sm:$0xff]  }
 0x534   : > { %16126 = vmatpush3.bf16.msra.mxu0 %v17008_v29  ;;  %16105 = vmatprep.subr.bf16.mxu1 %v17009_v40  ;;  %v17077_v29 = vld [vmem:[#allocation16 + $0xe0] ss:$16 sps:$4 sm:$0xff]   ;;  %v17080_v40 = vld [vmem:[#allocation16 + $0xe8] ss:$16 sps:$4 sm:$0xff]  }
 0x535   : > { %16127 = vmatprep.subr.bf16.mxu0 %v17010_v1  ;;  %v17085_v1 = vld [vmem:[#allocation16 + $0x104] ss:$16 sps:$4 sm:$0xff]  }
 0x537   : > { %16106 = vmatpush3.bf16.msra.mxu1 %v17011_v59  ;;  %v17088_v59 = vld [vmem:[#allocation16 + $0x10c] ss:$16 sps:$4 sm:$0xff]  }
 0x538   : > { %16128 = vmatpush3.bf16.msra.mxu0 %v17012_v57  ;;  %16107 = vmatprep.subr.bf16.mxu1 %v17013_v30  ;;  %v17083_v57 = vld [vmem:[#allocation16 + $0x100] ss:$16 sps:$4 sm:$0xff]   ;;  %v17086_v30 = vld [vmem:[#allocation16 + $0x108] ss:$16 sps:$4 sm:$0xff]  }
 0x539   : > { %16129 = vmatprep.subr.bf16.mxu0 %v17014_v47  ;;  %v17091_v47 = vld [vmem:[#allocation16 + $0x124] ss:$16 sps:$4 sm:$0xff]  }
 0x53b   : > { %16108 = vmatpush3.bf16.msra.mxu1 %v17015_v62  ;;  %v17094_v62 = vld [vmem:[#allocation16 + $0x12c] ss:$16 sps:$4 sm:$0xff]  }
 0x53c   : > { %16130 = vmatpush3.bf16.msra.mxu0 %v17016_v28  ;;  %16109 = vmatprep.subr.bf16.mxu1 %v17017_v16  ;;  %v17089_v28 = vld [vmem:[#allocation16 + $0x120] ss:$16 sps:$4 sm:$0xff]   ;;  %v17092_v16 = vld [vmem:[#allocation16 + $0x128] ss:$16 sps:$4 sm:$0xff]  }
 0x53d   : > { %16131 = vmatprep.subr.bf16.mxu0 %v17018_v44  ;;  %v17097_v44 = vld [vmem:[#allocation16 + $0x144] ss:$16 sps:$4 sm:$0xff]  }
 0x53f   : > { %16110 = vmatpush3.bf16.msra.mxu1 %v17019_v56  ;;  %v17100_v56 = vld [vmem:[#allocation16 + $0x14c] ss:$16 sps:$4 sm:$0xff]  }
 0x540   : > { %16132 = vmatpush3.bf16.msra.mxu0 %v17020_v0  ;;  %16299 = vmatprep.subr.bf16.mxu1 %v17936_v46  ;;  %v17095_v0 = vld [vmem:[#allocation16 + $0x140] ss:$16 sps:$4 sm:$0xff]  }
 0x541   : > { %12328 = vmatprep.subr.bf16.mxu0 %v17037_v63  ;;  %v17125_v63 = vld [vmem:[#allocation16 + $0x1e0] ss:$16 sps:$4 sm:$0xff]  }
 0x542   : > { %8910 = vmatmul.mubr.bf16.vlgmr.msra.gmra.mrb[196].mxu1 %v8159_v34  ;;  %v17107_v34 = vld [vmem:[#allocation16 + $0x180] ss:$16 sps:$4 sm:$0xff]  }
 0x543   : > { %8951 = vmatmul.mubr.bf16.vlgmr.msra.gmra.mrb[172].mxu0 %v8185_v9  ;;  %16300 = vmatpush3.bf16.msra.mxu1 %v17025_v20  ;;  %v17104_v20 = vld [vmem:[#allocation16 + $0x168] ss:$16 sps:$4 sm:$0xff]  }
 0x544   : > { %16301 = vmatprep.subr.bf16.mxu1 %v17936_v46  ;;  %16315 = vmatprep.mubr.msk.bf16.mxu1 %vm18417_vm7, %v17936_v46  ;;  %v17110_v9 = vld [vmem:[#allocation16 + $0x188] ss:$16 sps:$4 sm:$0xff]  }
 0x545   : > { %12329 = vmatpush1.bf16.msra.mxu0 %v17035_v26  ;;  %v17130_v26 = vld [vmem:[#allocation16 + $0x1ec] ss:$16 sps:$4 sm:$0xff]  }
 0x546   : > { %12330 = vmatprep.subr.bf16.mxu0 %v17043_v11  ;;  %v17136_v11 = vld [vmem:[#allocation16 + $0x20c] ss:$16 sps:$4 sm:$0xff]  }
 0x547   : > { %16302 = vmatpush3.bf16.msra.mxu1 %v17026_v27  ;;  %v17112_v27 = vld [vmem:[#allocation16 + $0x18c] ss:$16 sps:$4 sm:$0xff]  }
 0x548   : > { %16303 = vmatprep.subr.bf16.mxu1 %v17936_v46 }
 0x549   : > { %12331 = vmatpush1.bf16.msra.mxu0 %v17041_v14 }
 0x54a   : > { %12332 = vmatprep.subr.bf16.mxu0 %v17049_v24 }
 0x54b   : > { %16304 = vmatpush3.bf16.msra.mxu1 %v17027_v19  ;;  %v17115_v19 = vld [vmem:[#allocation16 + $0x1a4] ss:$16 sps:$4 sm:$0xff]  }
 0x54c   : > { %16305 = vmatprep.subr.bf16.mxu1 %v17936_v46 }
 0x54d   : > { %12333 = vmatpush1.bf16.msra.mxu0 %v17047_v49 }
 0x54e   : > { %12334 = vmatprep.subr.bf16.mxu0 %v17055_v50 }
 0x54f   : > { %16306 = vmatpush3.bf16.msra.mxu1 %v17028_v58  ;;  %v17118_v58 = vld [vmem:[#allocation16 + $0x1ac] ss:$16 sps:$4 sm:$0xff]  }
 0x550   : > { %16307 = vmatprep.subr.bf16.mxu1 %v17936_v46 }
 0x551   : > { %12335 = vmatpush1.bf16.msra.mxu0 %v17053_v31 }
 0x552   : > { %12336 = vmatprep.subr.bf16.mxu0 %v17061_v60 }
 0x553   : > { %16308 = vmatpush3.bf16.msra.mxu1 %v17029_v37  ;;  %v17113_v37 = vld [vmem:[#allocation16 + $0x1a0] ss:$16 sps:$4 sm:$0xff]  }
 0x554   : > { %16309 = vmatprep.subr.bf16.mxu1 %v17936_v46 }
 0x555   : > { %12337 = vmatpush1.bf16.msra.mxu0 %v17059_v23 }
 0x556   : > { %12338 = vmatprep.subr.bf16.mxu0 %v17067_v17 }
 0x557   : > { %16310 = vmatpush3.bf16.msra.mxu1 %v17030_v53  ;;  %v17116_v53 = vld [vmem:[#allocation16 + $0x1a8] ss:$16 sps:$4 sm:$0xff]  }
 0x558   : > { %16311 = vmatprep.subr.bf16.mxu1 %v17936_v46 }
 0x559   : > { %12339 = vmatpush1.bf16.msra.mxu0 %v17065_v12 }
 0x55a   : > { %12340 = vmatprep.subr.bf16.mxu0 %v17073_v4 }
 0x55b   : > { %16312 = vmatpush3.bf16.msra.mxu1 %v17031_v35  ;;  %v17121_v35 = vld [vmem:[#allocation16 + $0x1c4] ss:$16 sps:$4 sm:$0xff]  }
 0x55c   : > { %16313 = vmatprep.subr.bf16.mxu1 %v17936_v46  ;;  %v17109_v46 = vld [vmem:[#allocation16 + $0x184] ss:$16 sps:$4 sm:$0xff]  }
 0x55d   : > { %12341 = vmatpush1.bf16.msra.mxu0 %v17071_v13 }
 0x55e   : > { %12342 = vmatprep.subr.bf16.mxu0 %v17079_v21 }
 0x55f   : > { %16314 = vmatpush3.bf16.msra.mxu1 %v17032_v51  ;;  %v17124_v51 = vld [vmem:[#allocation16 + $0x1cc] ss:$16 sps:$4 sm:$0xff]  }
 0x560   : > { %12656 = vmatprep.subr.bf16.mxu1 %v17040_v48  ;;  %v17133_v48 = vld [vmem:[#allocation16 + $0x204] ss:$16 sps:$4 sm:$0xff]  }
 0x561   : > { %12343 = vmatpush1.bf16.msra.mxu0 %v17077_v29 }
 0x562   : > { %16316 = vmatmul.mubr.bf16.vlgmr.msra.gmra.mrb[200].mxu1 %v8211_v6  ;;  %12344 = vmatprep.subr.bf16.mxu0 %v17085_v1  ;;  %v17127_v6 = vld [vmem:[#allocation16 + $0x1e4] ss:$16 sps:$4 sm:$0xff]  }
 0x563   : > { %12657 = vmatpush1.bf16.msra.mxu1 %v17038_v2  ;;  %v17128_v2 = vld [vmem:[#allocation16 + $0x1e8] ss:$16 sps:$4 sm:$0xff]  }
 0x564   : > { %12658 = vmatprep.subr.bf16.mxu1 %v17046_v54 }
 0x565   : > { %12345 = vmatpush1.bf16.msra.mxu0 %v17083_v57 }
 0x566   : > { %12346 = vmatprep.subr.bf16.mxu0 %v17091_v47 }
 0x567   : > { %12659 = vmatpush1.bf16.msra.mxu1 %v17044_v45  ;;  %v14514_v45 = vld [vmem:[#allocation14] ss:$0 sm:$0xff] }
 0x568   : > { %12660 = vmatprep.subr.bf16.mxu1 %v17052_v39 }
 0x569   : > { %12347 = vmatpush1.bf16.msra.mxu0 %v17089_v28  ;;  %v18418_v28 = vmov 1966171168  }
 0x56a   : > { %12348 = vmatprep.subr.bf16.mxu0 %v17097_v44 }
 0x56b   : > { %12661 = vmatpush1.bf16.msra.mxu1 %v17050_v55 }
 0x56c   : > { %12662 = vmatprep.subr.bf16.mxu1 %v17058_v15 }
 0x56d   : > { %12349 = vmatpush1.bf16.msra.mxu0 %v17095_v0 }
 0x56e   : > { %12350 = vmatprep.subr.bf16.mxu0 %v17103_v43 }
 0x56f   : > { %12663 = vmatpush1.bf16.msra.mxu1 %v17056_v18 }
 0x570   : > { %12664 = vmatprep.subr.bf16.mxu1 %v17064_v42 }
 0x571   : > { %12351 = vmatpush1.bf16.msra.mxu0 %v17101_v32 }
 0x572   : > { %12352 = vmatprep.subr.bf16.mxu0 %v17109_v46 }
 0x573   : > { %12665 = vmatpush1.bf16.msra.mxu1 %v17062_v22 }
 0x574   : > { %12666 = vmatprep.subr.bf16.mxu1 %v17070_v10 }
 0x575   : > { %12353 = vmatpush1.bf16.msra.mxu0 %v17107_v34 }
 0x576   : > { %12354 = vmatprep.subr.bf16.mxu0 %v17115_v19 }
 0x577   : > { %12667 = vmatpush1.bf16.msra.mxu1 %v17068_v52 }
 0x578   : > { %12668 = vmatprep.subr.bf16.mxu1 %v17076_v61 }
 0x579   : > { %12355 = vmatpush1.bf16.msra.mxu0 %v17113_v37 }
 0x57a   : > { %12356 = vmatprep.subr.bf16.mxu0 %v17121_v35 }
 0x57b   : > { %12669 = vmatpush1.bf16.msra.mxu1 %v17074_v25 }
 0x57c   : > { %12670 = vmatprep.subr.bf16.mxu1 %v17082_v41 }
 0x57d   : > { %12357 = vmatpush1.bf16.msra.mxu0 %v17119_v8 }
 0x57e   : > { %12358 = vmatprep.subr.bf16.mxu0 %v17127_v6 }
 0x57f   : > { %12671 = vmatpush1.bf16.msra.mxu1 %v17080_v40 }
 0x580   : > { %12672 = vmatprep.subr.bf16.mxu1 %v17088_v59 }
 0x581   : > { %12359 = vmatpush1.bf16.msra.mxu0 %v17125_v63 }
 0x582   : > { %12369 = vmatprep.subr.bf16.mxu0 %v17133_v48 }
 0x583   : > { %12673 = vmatpush1.bf16.msra.mxu1 %v17086_v30 }
 0x584   : > { %12674 = vmatprep.subr.bf16.mxu1 %v17094_v62 }
 0x587   : > { %12675 = vmatpush1.bf16.msra.mxu1 %v17092_v16  ;;  %v9007_v16 = vunpack.c.l.s4 %v18418_v28 }
 0x588   : > { %12676 = vmatprep.subr.bf16.mxu1 %v17100_v56 }
 0x589   : > { %v9008_v44 = vunpack.c.0.s8 %v9007_v16  ;;  %v17143_v16 = vld [vmem:[#allocation16 + $0x240] ss:$16 sps:$4 sm:$0xff]  }
 0x58b   : > { %12677 = vmatpush1.bf16.msra.mxu1 %v17098_v38  ;;  %v9011_v56 = vsub.s32 %v9008_v44, %v19290_v33  ;;  %v17146_v44 = vld [vmem:[#allocation16 + $0x248] ss:$16 sps:$4 sm:$0xff]   ;;  %v17149_v38 = vld [vmem:[#allocation16 + $0x260] ss:$16 sps:$4 sm:$0xff]  }
 0x58c   : > { %12678 = vmatprep.subr.bf16.mxu1 %v17106_v7 }
 0x58f   : > { %12679 = vmatpush1.bf16.msra.mxu1 %v17104_v20 }
 0x590   : > { %12680 = vmatprep.subr.bf16.mxu1 %v17112_v27 }
 0x593   : > { %12681 = vmatpush1.bf16.msra.mxu1 %v17110_v9 }
 0x594   : > { %12682 = vmatprep.subr.bf16.mxu1 %v17118_v58 }
 0x597   : > { %12683 = vmatpush1.bf16.msra.mxu1 %v17116_v53 }
 0x598   : > { %12684 = vmatprep.subr.bf16.mxu1 %v17124_v51 }
 0x59b   : > { %12685 = vmatpush1.bf16.msra.mxu1 %v17122_v3 }
 0x59c   : > { %12686 = vmatprep.subr.bf16.mxu1 %v17130_v26 }
 0x59f   : > { %12687 = vmatpush1.bf16.msra.mxu1 %v17128_v2 }
 0x5a0   : > { %12697 = vmatprep.subr.bf16.mxu1 %v17136_v11 }
 0x5f5   : > { %v16067_v54 = vpop.f32.mrb[192].mxu1 }
 0x5f6   : > { %v16089_v14 = vpop.f32.mrb[168].mxu0  ;;  %v16068_v49 = vpop.f32.mrb[193].mxu1 }
 0x5f7   : > { %v16069_v24 = vadd.f32 %v16068_v49, %v16067_v54  ;;  %v16090_v55 = vpop.f32.mrb[169].mxu0  ;;  %v16070_v39 = vpop.f32.mrb[194].mxu1 }
 0x5f8   : > { %v16091_v50 = vadd.f32 %v16090_v55, %v16089_v14  ;;  %v16092_v31 = vpop.f32.mrb[170].mxu0  ;;  %v16071_v15 = vpop.f32.mrb[195].mxu1 }
 0x5f9   : > { %v8830_v18 = vadd.f32 %v16069_v24, %v14514_v45  ;;  %v16072_v60 = vadd.f32 %v16071_v15, %v16070_v39  ;;  %v16093_v42 = vpop.f32.mrb[171].mxu0  ;;  %v20140_v15 = vsub.s32 3, %v19290_v33 }
 0x5fa   : > { %v16094_v23 = vadd.f32 %v16093_v42, %v16092_v31  ;;  %v20137_v31 = vsub.s32 1, %v19290_v33 }
 0x5fb   : > { %v8871_v22 = vadd.f32 %v16091_v50, %v8830_v18  ;;  %v8833_v17 = vadd.f32 %v16072_v60, %v14514_v45 }
 0x5fd   : > { %v8874_v10 = vadd.f32 %v16094_v23, %v8833_v17  ;;  %v17131_v17 = vld [vmem:[#allocation16 + $0x200] ss:$16 sps:$4 sm:$0xff]  }
 0x615   : > { %v16111_v12 = vpop.f32.mrb[196].mxu1 }
 0x616   : > { %v16133_v52 = vpop.f32.mrb[172].mxu0  ;;  %v16112_v4 = vpop.f32.mrb[197].mxu1 }
 0x617   : > { %v16113_v61 = vadd.f32 %v16112_v4, %v16111_v12  ;;  %v16134_v13 = vpop.f32.mrb[173].mxu0  ;;  %v16114_v25 = vpop.f32.mrb[198].mxu1  ;;  %v9160_v4 = vsub.s32 5, %v19290_v33 }
 0x618   : > { %v16135_v21 = vadd.f32 %v16134_v13, %v16133_v52  ;;  %v16136_v41 = vpop.f32.mrb[174].mxu0  ;;  %v16115_v29 = vpop.f32.mrb[199].mxu1  ;;  %v17139_v13 = vld [vmem:[#allocation16 + $0x224] ss:$16 sps:$4 sm:$0xff]  }
 0x619   : > { %v8912_v40 = vadd.f32 %v16113_v61, %v8871_v22  ;;  %v16116_v1 = vadd.f32 %v16115_v29, %v16114_v25  ;;  %v16137_v59 = vpop.f32.mrb[175].mxu0  ;;  %v9156_v61 = vsub.s32 4, %v19290_v33  ;;  %v17142_v25 = vld [vmem:[#allocation16 + $0x22c] ss:$16 sps:$4 sm:$0xff]  }
 0x61a   : > { %v16138_v57 = vadd.f32 %v16137_v59, %v16136_v41  ;;  %v9168_v59 = vsub.s32 7, %v19290_v33 }
 0x61b   : > { %v8915_v30 = vadd.f32 %v16116_v1, %v8874_v10  ;;  %v8953_v47 = vadd.f32 %v16135_v21, %v8912_v40  ;;  %v17134_v10 = vld [vmem:[#allocation16 + $0x208] ss:$16 sps:$4 sm:$0xff]   ;;  %v17137_v40 = vld [vmem:[#allocation16 + $0x220] ss:$16 sps:$4 sm:$0xff]  }
 0x61c   : > { %v17140_v1 = vld [vmem:[#allocation16 + $0x228] ss:$16 sps:$4 sm:$0xff]  }
 0x61d   : > { %v8956_v62 = vadd.f32 %v16138_v57, %v8915_v30  ;;  %v9164_v57 = vsub.s32 6, %v19290_v33  ;;  %v17145_v30 = vld [vmem:[#allocation16 + $0x244] ss:$16 sps:$4 sm:$0xff]  }
 0x635   : > { %v8993_v0 = vpop.f32.mrb[200].mxu1 }
 0x636   : > { %v8994_v43 = vadd.f32 %v8993_v0, %v8953_v47  ;;  %v16317_v7 = vpop.f32.mrb[201].mxu1  ;;  %v17148_v47 = vld [vmem:[#allocation16 + $0x24c] ss:$16 sps:$4 sm:$0xff]  }
 0x637   : > { %v8996_v32 = vpop.f32.mrb[202].mxu1  ;;  %v17154_v0 = vld [vmem:[#allocation16 + $0x26c] ss:$16 sps:$4 sm:$0xff]   ;;  %v17157_v7 = vld [vmem:[#allocation16 + $0x284] ss:$16 sps:$4 sm:$0xff]  }
 0x638   : > { %9004 = vst.msk [vmem:[#allocation4] sm:$0x1] %vm20100_vm8, %v8994_v43  ;;  %v9012_v20 = vrot.slane %v8994_v43, %v9011_v56  ;;  %v9036_v34 = vcombine.high %v8994_v43, %v8994_v43  ;;  %v8997_v46 = vadd.f32 %v8996_v32, %v8956_v62  ;;  %v16318_v9 = vpop.f32.mrb[203].mxu1  ;;  %v17152_v43 = vld [vmem:[#allocation16 + $0x268] ss:$16 sps:$4 sm:$0xff]  }
 0x639   : > { %v17160_v32 = vld [vmem:[#allocation16 + $0x28c] ss:$16 sps:$4 sm:$0xff]  }
 0x63a   : > { %v9013_v27 = vcombine.high %v9012_v20, %v9012_v20  ;;  %v9020_v19 = vrot.slane %v9012_v20, %v9011_v56  ;;  %v9043_v58 = vrot.slane %v9036_v34, %v9011_v56  ;;  %9069 = vst.msk [vmem:[#allocation4 + $0x8] sm:$0x1] %vm20100_vm8, %v8997_v46  ;;  %v9077_v5 = vrot.slane %v8997_v46, %v9011_v56  ;;  %v17155_v20 = vld [vmem:[#allocation16 + $0x280] ss:$16 sps:$4 sm:$0xff]   ;;  %v17158_v34 = vld [vmem:[#allocation16 + $0x288] ss:$16 sps:$4 sm:$0xff]  }
 0x63b   : > { %v9101_v37 = vcombine.high %v8997_v46, %v8997_v46  ;;  %v17163_v46 = vld [vmem:[#allocation16 + $0x2a4] ss:$16 sps:$4 sm:$0xff]   ;;  %v17166_v9 = vld [vmem:[#allocation16 + $0x2ac] ss:$16 sps:$4 sm:$0xff]  }
 0x63c   : > { %v9027_v53 = vrot.slane %v9013_v27, %v9011_v56  ;;  %v9030_v35 = vcombine.high %v9020_v19, %v9020_v19  ;;  %v9050_v51 = vrot.slane %v9043_v58, %v9011_v56  ;;  %v9053_v8 = vcombine.high %v9043_v58, %v9043_v58  ;;  %v17161_v27 = vld [vmem:[#allocation16 + $0x2a0] ss:$16 sps:$4 sm:$0xff]   ;;  %v17164_v19 = vld [vmem:[#allocation16 + $0x2a8] ss:$16 sps:$4 sm:$0xff]   ;;  %v17169_v58 = vld [vmem:[#allocation16 + $0x2c4] ss:$16 sps:$4 sm:$0xff]  }
 0x63d   : > { %v9078_v3 = vcombine.high %v9077_v5, %v9077_v5  ;;  %v9085_v6 = vrot.slane %v9077_v5, %v9011_v56  ;;  %v9108_v26 = vrot.slane %v9101_v37, %v9011_v56  ;;  %v17172_v5 = vld [vmem:[#allocation16 + $0x2cc] ss:$16 sps:$4 sm:$0xff]   ;;  %v17167_v37 = vld [vmem:[#allocation16 + $0x2c0] ss:$16 sps:$4 sm:$0xff]  }
 0x63e   : > { %9029 = vst.msk [vmem:[#allocation4 + $0x1] sm:$0x1] %vm20100_vm8, %v9027_v53  ;;  %9032 = vst.msk [vmem:[#allocation4 + $0x2] sm:$0x1] %vm20100_vm8, %v9030_v35  ;;  %v9033_v63 = vcombine.high %v9027_v53, %v9027_v53  ;;  %v9060_v2 = vrot.slane %v9053_v8, %v9011_v56  ;;  %v9063_v48 = vcombine.high %v9050_v51, %v9050_v51  ;;  %v17170_v53 = vld [vmem:[#allocation16 + $0x2c8] ss:$16 sps:$4 sm:$0xff]  }
 0x63f   : > { %9052 = vst.msk [vmem:[#allocation4 + $0x4] sm:$0x1] %vm20100_vm8, %v9050_v51  ;;  %v9092_v11 = vrot.slane %v9078_v3, %v9011_v56  ;;  %v9095_v54 = vcombine.high %v9085_v6, %v9085_v6  ;;  %v9115_v14 = vrot.slane %v9108_v26, %v9011_v56  ;;  %v9118_v45 = vcombine.high %v9108_v26, %v9108_v26  ;;  %v17175_v35 = vld [vmem:[#allocation16 + $0x2e4] ss:$16 sps:$4 sm:$0xff]   ;;  %v17178_v51 = vld [vmem:[#allocation16 + $0x2ec] ss:$16 sps:$4 sm:$0xff]  }
 0x640   : > { %9035 = vst.msk [vmem:[#allocation4 + $0x3] sm:$0x1] %vm20100_vm8, %v9033_v63  ;;  %9062 = vst.msk [vmem:[#allocation4 + $0x5] sm:$0x1] %vm20100_vm8, %v9060_v2  ;;  %v9066_v49 = vcombine.high %v9060_v2, %v9060_v2  ;;  %v17173_v8 = vld [vmem:[#allocation16 + $0x2e0] ss:$16 sps:$4 sm:$0xff]  }
 0x641   : > { %9065 = vst.msk [vmem:[#allocation4 + $0x6] sm:$0x1] %vm20100_vm8, %v9063_v48  ;;  %9094 = vst.msk [vmem:[#allocation4 + $0x9] sm:$0x1] %vm20100_vm8, %v9092_v11  ;;  %v9098_v24 = vcombine.high %v9092_v11, %v9092_v11  ;;  %v9125_v55 = vrot.slane %v9118_v45, %v9011_v56  ;;  %v9128_v39 = vcombine.high %v9115_v14, %v9115_v14  ;;  %v17151_v56 = vld [vmem:[#allocation16 + $0x264] ss:$16 sps:$4 sm:$0xff]  }
 0x642   : > { %9097 = vst.msk [vmem:[#allocation4 + $0xa] sm:$0x1] %vm20100_vm8, %v9095_v54  ;;  %9117 = vst.msk [vmem:[#allocation4 + $0xc] sm:$0x1] %vm20100_vm8, %v9115_v14  ;;  %v17176_v3 = vld [vmem:[#allocation16 + $0x2e8] ss:$16 sps:$4 sm:$0xff]  }
 0x643   : > { %9068 = vst.msk [vmem:[#allocation4 + $0x7] sm:$0x1] %vm20100_vm8, %v9066_v49  ;;  %9100 = vst.msk [vmem:[#allocation4 + $0xb] sm:$0x1] %vm20100_vm8, %v9098_v24  ;;  %v9131_v50 = vcombine.high %v9125_v55, %v9125_v55  ;;  %v17181_v6 = vld [vmem:[#allocation16 + $0x304] ss:$16 sps:$4 sm:$0xff]  }
 0x644   : > { %9127 = vst.msk [vmem:[#allocation4 + $0xd] sm:$0x1] %vm20100_vm8, %v9125_v55  ;;  %9130 = vst.msk [vmem:[#allocation4 + $0xe] sm:$0x1] %vm20100_vm8, %v9128_v39  ;;  %v17184_v26 = vld [vmem:[#allocation16 + $0x30c] ss:$16 sps:$4 sm:$0xff]  }
 0x645   : > { %9133 = vst.msk [vmem:[#allocation4 + $0xf] sm:$0x1] %vm20100_vm8, %v9131_v50  ;;  %v17179_v63 = vld [vmem:[#allocation16 + $0x300] ss:$16 sps:$4 sm:$0xff]   ;;  %v17182_v2 = vld [vmem:[#allocation16 + $0x308] ss:$16 sps:$4 sm:$0xff]  }
 0x646   : > { %v17187_v48 = vld [vmem:[#allocation16 + $0x324] ss:$16 sps:$4 sm:$0xff]   ;;  %v17190_v11 = vld [vmem:[#allocation16 + $0x32c] ss:$16 sps:$4 sm:$0xff]   ;;  %v17185_v54 = vld [vmem:[#allocation16 + $0x320] ss:$16 sps:$4 sm:$0xff]  }
 0x647   : > { %v17188_v14 = vld [vmem:[#allocation16 + $0x328] ss:$16 sps:$4 sm:$0xff]   ;;  %v17193_v45 = vld [vmem:[#allocation16 + $0x344] ss:$16 sps:$4 sm:$0xff]   ;;  %v17196_v49 = vld [vmem:[#allocation16 + $0x34c] ss:$16 sps:$4 sm:$0xff]  }
 0x648   : > { %v17191_v24 = vld [vmem:[#allocation16 + $0x340] ss:$16 sps:$4 sm:$0xff]   ;;  %v17194_v55 = vld [vmem:[#allocation16 + $0x348] ss:$16 sps:$4 sm:$0xff]   ;;  %v17199_v39 = vld [vmem:[#allocation16 + $0x364] ss:$16 sps:$4 sm:$0xff]  }
 0x649   : > { %v17202_v50 = vld [vmem:[#allocation16 + $0x36c] ss:$16 sps:$4 sm:$0xff]  }
 0x64a   : > { %v20142_v18 = vld [vmem:[#allocation4] sm:$0xff] }
 0x64b   : > { %v9145_v60 = vrot.slane %v20142_v18, %v20137_v31  ;;  %v9141_v42 = vrot.slane %v20142_v18, %v19322_v36  ;;  %v9153_v23 = vrot.slane %v20142_v18, %v20140_v15 }
 0x64c   : > { %v20150_v52 = vld [vmem:[#allocation4 + $0x8] sm:$0xff] }
 0x64d   : > { %v9219_v22 = vpack.c.bf16 %v9145_v60, %v9145_v60  ;;  %v9218_v12 = vpack.c.bf16 %v9141_v42, %v9141_v42  ;;  %v9221_v21 = vpack.c.bf16 %v9153_v23, %v9153_v23  ;;  %v20157_v41 = vrot.slane %v20150_v52, %v9160_v4  ;;  %v17197_v60 = vld [vmem:[#allocation16 + $0x360] ss:$16 sps:$4 sm:$0xff]   ;;  %v17200_v42 = vld [vmem:[#allocation16 + $0x368] ss:$16 sps:$4 sm:$0xff]   ;;  %v17205_v23 = vld [vmem:[#allocation16 + $0x384] ss:$16 sps:$4 sm:$0xff]  }
 0x64e   : > { %v20162_v29 = vrot.slane %v20150_v52, %v9156_v61  ;;  %v20169_v62 = vrot.slane %v20150_v52, %v9168_v59  ;;  %v20174_v28 = vrot.slane %v20150_v52, %v9164_v57 }
 0x64f   : > { %12360 = vmatprep.mubr.bf16.mxu0 %v9219_v22  ;;  %12688 = vmatprep.mubr.bf16.mxu1 %v9219_v22  ;;  %v17208_v22 = vld [vmem:[#allocation16 + $0x38c] ss:$16 sps:$4 sm:$0xff]  }
 0x650   : > { %12361 = vmatmul.mubr.bf16.vlgmr.msra.gmra.mrb[176].mxu0 %v9218_v12  ;;  %12689 = vmatmul.mubr.bf16.vlgmr.msra.gmra.mrb[204].mxu1 %v9218_v12  ;;  %v17211_v12 = vld [vmem:[#allocation16 + $0x3a4] ss:$16 sps:$4 sm:$0xff]  }
 0x651   : > { %12370 = vmatpush1.bf16.msra.mxu0 %v17131_v17  ;;  %12698 = vmatpush1.bf16.msra.mxu1 %v17134_v10  ;;  %v17203_v17 = vld [vmem:[#allocation16 + $0x380] ss:$16 sps:$4 sm:$0xff]   ;;  %v17206_v10 = vld [vmem:[#allocation16 + $0x388] ss:$16 sps:$4 sm:$0xff]  }
 0x652   : > { %12401 = vmatprep.mubr.bf16.mxu0 %v9221_v21  ;;  %12729 = vmatprep.mubr.bf16.mxu1 %v9221_v21  ;;  %v17212_v21 = vld [vmem:[#allocation16 + $0x3a8] ss:$16 sps:$4 sm:$0xff]  }
 0x653   : > { %12371 = vmatprep.subr.bf16.mxu0 %v17139_v13  ;;  %12699 = vmatprep.subr.bf16.mxu1 %v17142_v25  ;;  %v17214_v13 = vld [vmem:[#allocation16 + $0x3ac] ss:$16 sps:$4 sm:$0xff]   ;;  %v17209_v25 = vld [vmem:[#allocation16 + $0x3a0] ss:$16 sps:$4 sm:$0xff]  }
 0x655   : > { %12372 = vmatpush1.bf16.msra.mxu0 %v17137_v40  ;;  %12700 = vmatpush1.bf16.msra.mxu1 %v17140_v1  ;;  %v17217_v40 = vld [vmem:[#allocation16 + $0x3c4] ss:$16 sps:$4 sm:$0xff]   ;;  %v17220_v1 = vld [vmem:[#allocation16 + $0x3cc] ss:$16 sps:$4 sm:$0xff]  }
 0x656   : > { %12373 = vmatprep.subr.bf16.mxu0 %v17145_v30  ;;  %12701 = vmatprep.subr.bf16.mxu1 %v17148_v47  ;;  %v17215_v30 = vld [vmem:[#allocation16 + $0x3c0] ss:$16 sps:$4 sm:$0xff]   ;;  %v17218_v47 = vld [vmem:[#allocation16 + $0x3c8] ss:$16 sps:$4 sm:$0xff]  }
 0x659   : > { %12374 = vmatpush1.bf16.msra.mxu0 %v17143_v16  ;;  %12702 = vmatpush1.bf16.msra.mxu1 %v17146_v44  ;;  %v17223_v16 = vld [vmem:[#allocation16 + $0x3e4] ss:$16 sps:$4 sm:$0xff]   ;;  %v17226_v44 = vld [vmem:[#allocation16 + $0x3ec] ss:$16 sps:$4 sm:$0xff]  }
 0x65a   : > { %12375 = vmatprep.subr.bf16.mxu0 %v17151_v56  ;;  %12703 = vmatprep.subr.bf16.mxu1 %v17154_v0  ;;  %v20177_v56 = vsub.s32 2, %v19290_v33  ;;  %v17221_v0 = vld [vmem:[#allocation16 + $0x3e0] ss:$16 sps:$4 sm:$0xff]  }
 0x65b   : > { %v17425_v33 = vld [vmem:[#allocation16 + $0x820] ss:$16 sps:$4 sm:$0xff]  }
 0x65d   : > { %12376 = vmatpush1.bf16.msra.mxu0 %v17149_v38  ;;  %12704 = vmatpush1.bf16.msra.mxu1 %v17152_v43  ;;  %v17224_v38 = vld [vmem:[#allocation16 + $0x3e8] ss:$16 sps:$4 sm:$0xff]   ;;  %v9149_v43 = vrot.slane %v20142_v18, %v20177_v56 }
 0x65e   : > { %12377 = vmatprep.subr.bf16.mxu0 %v17157_v7  ;;  %12705 = vmatprep.subr.bf16.mxu1 %v17160_v32  ;;  %v17229_v7 = vld [vmem:[#allocation16 + $0x404] ss:$16 sps:$4 sm:$0xff]   ;;  %v17232_v32 = vld [vmem:[#allocation16 + $0x40c] ss:$16 sps:$4 sm:$0xff]  }
 0x661   : > { %12378 = vmatpush1.bf16.msra.mxu0 %v17155_v20  ;;  %12706 = vmatpush1.bf16.msra.mxu1 %v17158_v34  ;;  %v9161_v20 = vrot.slane %v20142_v18, %v9160_v4  ;;  %v17227_v34 = vld [vmem:[#allocation16 + $0x400] ss:$16 sps:$4 sm:$0xff]   ;;  %v17244_v4 = vld [vmem:[#allocation16 + $0x44c] ss:$16 sps:$4 sm:$0xff]  }
 0x662   : > { %12379 = vmatprep.subr.bf16.mxu0 %v17163_v46  ;;  %12707 = vmatprep.subr.bf16.mxu1 %v17166_v9  ;;  %v9220_v46 = vpack.c.bf16 %v9149_v43, %v9149_v43  ;;  %v17230_v9 = vld [vmem:[#allocation16 + $0x408] ss:$16 sps:$4 sm:$0xff]   ;;  %v17293_v43 = vld [vmem:[#allocation16 + $0x560] ss:$16 sps:$4 sm:$0xff]  }
 0x665   : > { %12380 = vmatpush1.bf16.msra.mxu0 %v17161_v27  ;;  %12708 = vmatpush1.bf16.msra.mxu1 %v17164_v19  ;;  %v9223_v27 = vpack.c.bf16 %v9161_v20, %v9161_v20  ;;  %v17235_v19 = vld [vmem:[#allocation16 + $0x424] ss:$16 sps:$4 sm:$0xff]   ;;  %v17304_v20 = vld [vmem:[#allocation16 + $0x58c] ss:$16 sps:$4 sm:$0xff]  }
 0x666   : > { %12381 = vmatprep.subr.bf16.mxu0 %v17169_v58  ;;  %12709 = vmatprep.subr.bf16.mxu1 %v17172_v5  ;;  %v17238_v58 = vld [vmem:[#allocation16 + $0x42c] ss:$16 sps:$4 sm:$0xff]   ;;  %v17233_v5 = vld [vmem:[#allocation16 + $0x420] ss:$16 sps:$4 sm:$0xff]  }
 0x669   : > { %12382 = vmatpush1.bf16.msra.mxu0 %v17167_v37  ;;  %12710 = vmatpush1.bf16.msra.mxu1 %v17170_v53  ;;  %v17236_v37 = vld [vmem:[#allocation16 + $0x428] ss:$16 sps:$4 sm:$0xff]   ;;  %v17241_v53 = vld [vmem:[#allocation16 + $0x444] ss:$16 sps:$4 sm:$0xff]  }
 0x66a   : > { %12383 = vmatprep.subr.bf16.mxu0 %v17175_v35  ;;  %12711 = vmatprep.subr.bf16.mxu1 %v17178_v51  ;;  %v17239_v35 = vld [vmem:[#allocation16 + $0x440] ss:$16 sps:$4 sm:$0xff]   ;;  %v17242_v51 = vld [vmem:[#allocation16 + $0x448] ss:$16 sps:$4 sm:$0xff]  }
 0x66d   : > { %12384 = vmatpush1.bf16.msra.mxu0 %v17173_v8  ;;  %12712 = vmatpush1.bf16.msra.mxu1 %v17176_v3  ;;  %v17247_v8 = vld [vmem:[#allocation16 + $0x464] ss:$16 sps:$4 sm:$0xff]   ;;  %v17250_v3 = vld [vmem:[#allocation16 + $0x46c] ss:$16 sps:$4 sm:$0xff]  }
 0x66e   : > { %12385 = vmatprep.subr.bf16.mxu0 %v17181_v6  ;;  %12713 = vmatprep.subr.bf16.mxu1 %v17184_v26  ;;  %v17245_v6 = vld [vmem:[#allocation16 + $0x460] ss:$16 sps:$4 sm:$0xff]   ;;  %v17248_v26 = vld [vmem:[#allocation16 + $0x468] ss:$16 sps:$4 sm:$0xff]  }
 0x671   : > { %12386 = vmatpush1.bf16.msra.mxu0 %v17179_v63  ;;  %12714 = vmatpush1.bf16.msra.mxu1 %v17182_v2  ;;  %v17253_v63 = vld [vmem:[#allocation16 + $0x484] ss:$16 sps:$4 sm:$0xff]   ;;  %v17256_v2 = vld [vmem:[#allocation16 + $0x48c] ss:$16 sps:$4 sm:$0xff]  }
 0x672   : > { %12387 = vmatprep.subr.bf16.mxu0 %v17187_v48  ;;  %12715 = vmatprep.subr.bf16.mxu1 %v17190_v11  ;;  %v17251_v48 = vld [vmem:[#allocation16 + $0x480] ss:$16 sps:$4 sm:$0xff]   ;;  %v17254_v11 = vld [vmem:[#allocation16 + $0x488] ss:$16 sps:$4 sm:$0xff]  }
 0x675   : > { %12388 = vmatpush1.bf16.msra.mxu0 %v17185_v54  ;;  %12716 = vmatpush1.bf16.msra.mxu1 %v17188_v14  ;;  %v17259_v54 = vld [vmem:[#allocation16 + $0x4a4] ss:$16 sps:$4 sm:$0xff]   ;;  %v17262_v14 = vld [vmem:[#allocation16 + $0x4ac] ss:$16 sps:$4 sm:$0xff]  }
 0x676   : > { %12389 = vmatprep.subr.bf16.mxu0 %v17193_v45  ;;  %12717 = vmatprep.subr.bf16.mxu1 %v17196_v49  ;;  %v17257_v45 = vld [vmem:[#allocation16 + $0x4a0] ss:$16 sps:$4 sm:$0xff]   ;;  %v17260_v49 = vld [vmem:[#allocation16 + $0x4a8] ss:$16 sps:$4 sm:$0xff]  }
 0x679   : > { %12390 = vmatpush1.bf16.msra.mxu0 %v17191_v24  ;;  %12718 = vmatpush1.bf16.msra.mxu1 %v17194_v55  ;;  %v17265_v24 = vld [vmem:[#allocation16 + $0x4c4] ss:$16 sps:$4 sm:$0xff]   ;;  %v17268_v55 = vld [vmem:[#allocation16 + $0x4cc] ss:$16 sps:$4 sm:$0xff]  }
 0x67a   : > { %12391 = vmatprep.subr.bf16.mxu0 %v17199_v39  ;;  %12719 = vmatprep.subr.bf16.mxu1 %v17202_v50  ;;  %v17263_v39 = vld [vmem:[#allocation16 + $0x4c0] ss:$16 sps:$4 sm:$0xff]   ;;  %v17266_v50 = vld [vmem:[#allocation16 + $0x4c8] ss:$16 sps:$4 sm:$0xff]  }
 0x67d   : > { %12392 = vmatpush1.bf16.msra.mxu0 %v17197_v60  ;;  %12720 = vmatpush1.bf16.msra.mxu1 %v17200_v42  ;;  %v17271_v60 = vld [vmem:[#allocation16 + $0x4e4] ss:$16 sps:$4 sm:$0xff]   ;;  %v17274_v42 = vld [vmem:[#allocation16 + $0x4ec] ss:$16 sps:$4 sm:$0xff]  }
 0x67e   : > { %12393 = vmatprep.subr.bf16.mxu0 %v17205_v23  ;;  %12721 = vmatprep.subr.bf16.mxu1 %v17208_v22  ;;  %v17269_v23 = vld [vmem:[#allocation16 + $0x4e0] ss:$16 sps:$4 sm:$0xff]   ;;  %v17272_v22 = vld [vmem:[#allocation16 + $0x4e8] ss:$16 sps:$4 sm:$0xff]  }
 0x681   : > { %12394 = vmatpush1.bf16.msra.mxu0 %v17203_v17  ;;  %12722 = vmatpush1.bf16.msra.mxu1 %v17206_v10  ;;  %v17277_v17 = vld [vmem:[#allocation16 + $0x504] ss:$16 sps:$4 sm:$0xff]   ;;  %v17280_v10 = vld [vmem:[#allocation16 + $0x50c] ss:$16 sps:$4 sm:$0xff]  }
 0x682   : > { %12395 = vmatprep.subr.bf16.mxu0 %v17211_v12  ;;  %12723 = vmatprep.subr.bf16.mxu1 %v17214_v13  ;;  %v17275_v12 = vld [vmem:[#allocation16 + $0x500] ss:$16 sps:$4 sm:$0xff]   ;;  %v17278_v13 = vld [vmem:[#allocation16 + $0x508] ss:$16 sps:$4 sm:$0xff]  }
 0x685   : > { %12396 = vmatpush1.bf16.msra.mxu0 %v17209_v25  ;;  %12724 = vmatpush1.bf16.msra.mxu1 %v17212_v21  ;;  %v17283_v25 = vld [vmem:[#allocation16 + $0x524] ss:$16 sps:$4 sm:$0xff]   ;;  %v17286_v21 = vld [vmem:[#allocation16 + $0x52c] ss:$16 sps:$4 sm:$0xff]  }
 0x686   : > { %12397 = vmatprep.subr.bf16.mxu0 %v17217_v40  ;;  %12725 = vmatprep.subr.bf16.mxu1 %v17220_v1  ;;  %v17281_v40 = vld [vmem:[#allocation16 + $0x520] ss:$16 sps:$4 sm:$0xff]   ;;  %v17284_v1 = vld [vmem:[#allocation16 + $0x528] ss:$16 sps:$4 sm:$0xff]  }
 0x689   : > { %12398 = vmatpush1.bf16.msra.mxu0 %v17215_v30  ;;  %12726 = vmatpush1.bf16.msra.mxu1 %v17218_v47  ;;  %v17289_v30 = vld [vmem:[#allocation16 + $0x544] ss:$16 sps:$4 sm:$0xff]   ;;  %v17292_v47 = vld [vmem:[#allocation16 + $0x54c] ss:$16 sps:$4 sm:$0xff]  }
 0x68a   : > { %12399 = vmatprep.subr.bf16.mxu0 %v17223_v16  ;;  %12727 = vmatprep.subr.bf16.mxu1 %v17226_v44  ;;  %v17287_v16 = vld [vmem:[#allocation16 + $0x540] ss:$16 sps:$4 sm:$0xff]   ;;  %v17290_v44 = vld [vmem:[#allocation16 + $0x548] ss:$16 sps:$4 sm:$0xff]  }
 0x68d   : > { %12400 = vmatpush1.bf16.msra.mxu0 %v17221_v0  ;;  %12728 = vmatpush1.bf16.msra.mxu1 %v17224_v38  ;;  %v17295_v0 = vld [vmem:[#allocation16 + $0x564] ss:$16 sps:$4 sm:$0xff]   ;;  %v17298_v38 = vld [vmem:[#allocation16 + $0x56c] ss:$16 sps:$4 sm:$0xff]  }
 0x68e   : > { %12410 = vmatprep.subr.bf16.mxu0 %v17229_v7  ;;  %12738 = vmatprep.subr.bf16.mxu1 %v17232_v32  ;;  %v17296_v7 = vld [vmem:[#allocation16 + $0x568] ss:$16 sps:$4 sm:$0xff]   ;;  %v17301_v32 = vld [vmem:[#allocation16 + $0x584] ss:$16 sps:$4 sm:$0xff]  }
 0x690   : > { %12402 = vmatmul.mubr.bf16.vlgmr.msra.gmra.mrb[176].mxu0 %v9220_v46  ;;  %12730 = vmatmul.mubr.bf16.vlgmr.msra.gmra.mrb[204].mxu1 %v9220_v46  ;;  %v17302_v46 = vld [vmem:[#allocation16 + $0x588] ss:$16 sps:$4 sm:$0xff]  }
 0x691   : > { %12411 = vmatpush1.bf16.msra.mxu0 %v17227_v34  ;;  %12442 = vmatprep.mubr.bf16.mxu0 %v9223_v27  ;;  %v17299_v34 = vld [vmem:[#allocation16 + $0x580] ss:$16 sps:$4 sm:$0xff]  }
 0x692   : > { %12739 = vmatpush1.bf16.msra.mxu1 %v17230_v9  ;;  %12770 = vmatprep.mubr.bf16.mxu1 %v9223_v27  ;;  %v17307_v9 = vld [vmem:[#allocation16 + $0x5a4] ss:$16 sps:$4 sm:$0xff]   ;;  %v17310_v27 = vld [vmem:[#allocation16 + $0x5ac] ss:$16 sps:$4 sm:$0xff]  }
 0x693   : > { %12412 = vmatprep.subr.bf16.mxu0 %v17235_v19  ;;  %12740 = vmatprep.subr.bf16.mxu1 %v17238_v58  ;;  %v17305_v19 = vld [vmem:[#allocation16 + $0x5a0] ss:$16 sps:$4 sm:$0xff]   ;;  %v17308_v58 = vld [vmem:[#allocation16 + $0x5a8] ss:$16 sps:$4 sm:$0xff]  }
 0x695   : > { %12413 = vmatpush1.bf16.msra.mxu0 %v17233_v5  ;;  %v17313_v5 = vld [vmem:[#allocation16 + $0x5c4] ss:$16 sps:$4 sm:$0xff]  }
 0x696   : > { %12741 = vmatpush1.bf16.msra.mxu1 %v17236_v37  ;;  %12414 = vmatprep.subr.bf16.mxu0 %v17241_v53  ;;  %v17316_v37 = vld [vmem:[#allocation16 + $0x5cc] ss:$16 sps:$4 sm:$0xff]   ;;  %v17311_v53 = vld [vmem:[#allocation16 + $0x5c0] ss:$16 sps:$4 sm:$0xff]  }
 0x697   : > { %12742 = vmatprep.subr.bf16.mxu1 %v17244_v4  ;;  %v17314_v4 = vld [vmem:[#allocation16 + $0x5c8] ss:$16 sps:$4 sm:$0xff]  }
 0x699   : > { %12415 = vmatpush1.bf16.msra.mxu0 %v17239_v35  ;;  %v17319_v35 = vld [vmem:[#allocation16 + $0x5e4] ss:$16 sps:$4 sm:$0xff]  }
 0x69a   : > { %12743 = vmatpush1.bf16.msra.mxu1 %v17242_v51  ;;  %12416 = vmatprep.subr.bf16.mxu0 %v17247_v8  ;;  %v17322_v51 = vld [vmem:[#allocation16 + $0x5ec] ss:$16 sps:$4 sm:$0xff]   ;;  %v17317_v8 = vld [vmem:[#allocation16 + $0x5e0] ss:$16 sps:$4 sm:$0xff]  }
 0x69b   : > { %12744 = vmatprep.subr.bf16.mxu1 %v17250_v3  ;;  %v17320_v3 = vld [vmem:[#allocation16 + $0x5e8] ss:$16 sps:$4 sm:$0xff]  }
 0x69d   : > { %12417 = vmatpush1.bf16.msra.mxu0 %v17245_v6  ;;  %v9157_v6 = vrot.slane %v20142_v18, %v9156_v61  ;;  %v17329_v61 = vld [vmem:[#allocation16 + $0x620] ss:$16 sps:$4 sm:$0xff]  }
 0x69e   : > { %12745 = vmatpush1.bf16.msra.mxu1 %v17248_v26  ;;  %12418 = vmatprep.subr.bf16.mxu0 %v17253_v63  ;;  %v17325_v26 = vld [vmem:[#allocation16 + $0x604] ss:$16 sps:$4 sm:$0xff]   ;;  %v17328_v63 = vld [vmem:[#allocation16 + $0x60c] ss:$16 sps:$4 sm:$0xff]  }
 0x69f   : > { %12746 = vmatprep.subr.bf16.mxu1 %v17256_v2  ;;  %v9169_v2 = vrot.slane %v20142_v18, %v9168_v59  ;;  %v17340_v59 = vld [vmem:[#allocation16 + $0x64c] ss:$16 sps:$4 sm:$0xff]  }
 0x6a1   : > { %12419 = vmatpush1.bf16.msra.mxu0 %v17251_v48  ;;  %v17323_v48 = vld [vmem:[#allocation16 + $0x600] ss:$16 sps:$4 sm:$0xff]  }
 0x6a2   : > { %12747 = vmatpush1.bf16.msra.mxu1 %v17254_v11  ;;  %12420 = vmatprep.subr.bf16.mxu0 %v17259_v54  ;;  %v9222_v11 = vpack.c.bf16 %v9157_v6, %v9157_v6  ;;  %v17326_v54 = vld [vmem:[#allocation16 + $0x608] ss:$16 sps:$4 sm:$0xff]   ;;  %v17397_v6 = vld [vmem:[#allocation16 + $0x784] ss:$16 sps:$4 sm:$0xff]  }
 0x6a3   : > { %12748 = vmatprep.subr.bf16.mxu1 %v17262_v14  ;;  %v17331_v14 = vld [vmem:[#allocation16 + $0x624] ss:$16 sps:$4 sm:$0xff]  }
 0x6a5   : > { %12421 = vmatpush1.bf16.msra.mxu0 %v17257_v45  ;;  %v9225_v45 = vpack.c.bf16 %v9169_v2, %v9169_v2  ;;  %v17398_v2 = vld [vmem:[#allocation16 + $0x788] ss:$16 sps:$4 sm:$0xff]  }
 0x6a6   : > { %12749 = vmatpush1.bf16.msra.mxu1 %v17260_v49  ;;  %12422 = vmatprep.subr.bf16.mxu0 %v17265_v24  ;;  %v17334_v49 = vld [vmem:[#allocation16 + $0x62c] ss:$16 sps:$4 sm:$0xff]   ;;  %v17332_v24 = vld [vmem:[#allocation16 + $0x628] ss:$16 sps:$4 sm:$0xff]  }
 0x6a7   : > { %12750 = vmatprep.subr.bf16.mxu1 %v17268_v55  ;;  %v17337_v55 = vld [vmem:[#allocation16 + $0x644] ss:$16 sps:$4 sm:$0xff]  }
 0x6a9   : > { %12423 = vmatpush1.bf16.msra.mxu0 %v17263_v39  ;;  %v17335_v39 = vld [vmem:[#allocation16 + $0x640] ss:$16 sps:$4 sm:$0xff]  }
 0x6aa   : > { %12751 = vmatpush1.bf16.msra.mxu1 %v17266_v50  ;;  %12424 = vmatprep.subr.bf16.mxu0 %v17271_v60  ;;  %v17338_v50 = vld [vmem:[#allocation16 + $0x648] ss:$16 sps:$4 sm:$0xff]   ;;  %v17343_v60 = vld [vmem:[#allocation16 + $0x664] ss:$16 sps:$4 sm:$0xff]  }
 0x6ab   : > { %12752 = vmatprep.subr.bf16.mxu1 %v17274_v42  ;;  %v17346_v42 = vld [vmem:[#allocation16 + $0x66c] ss:$16 sps:$4 sm:$0xff]  }
 0x6ad   : > { %12425 = vmatpush1.bf16.msra.mxu0 %v17269_v23  ;;  %v17341_v23 = vld [vmem:[#allocation16 + $0x660] ss:$16 sps:$4 sm:$0xff]  }
 0x6ae   : > { %12753 = vmatpush1.bf16.msra.mxu1 %v17272_v22  ;;  %12426 = vmatprep.subr.bf16.mxu0 %v17277_v17  ;;  %v17344_v22 = vld [vmem:[#allocation16 + $0x668] ss:$16 sps:$4 sm:$0xff]   ;;  %v17349_v17 = vld [vmem:[#allocation16 + $0x684] ss:$16 sps:$4 sm:$0xff]  }
 0x6af   : > { %12754 = vmatprep.subr.bf16.mxu1 %v17280_v10  ;;  %v17352_v10 = vld [vmem:[#allocation16 + $0x68c] ss:$16 sps:$4 sm:$0xff]  }
 0x6b1   : > { %12427 = vmatpush1.bf16.msra.mxu0 %v17275_v12  ;;  %v17347_v12 = vld [vmem:[#allocation16 + $0x680] ss:$16 sps:$4 sm:$0xff]  }
 0x6b2   : > { %12755 = vmatpush1.bf16.msra.mxu1 %v17278_v13  ;;  %12428 = vmatprep.subr.bf16.mxu0 %v17283_v25  ;;  %v17350_v13 = vld [vmem:[#allocation16 + $0x688] ss:$16 sps:$4 sm:$0xff]   ;;  %v17355_v25 = vld [vmem:[#allocation16 + $0x6a4] ss:$16 sps:$4 sm:$0xff]  }
 0x6b3   : > { %12756 = vmatprep.subr.bf16.mxu1 %v17286_v21  ;;  %v17358_v21 = vld [vmem:[#allocation16 + $0x6ac] ss:$16 sps:$4 sm:$0xff]  }
 0x6b5   : > { %12429 = vmatpush1.bf16.msra.mxu0 %v17281_v40  ;;  %v17353_v40 = vld [vmem:[#allocation16 + $0x6a0] ss:$16 sps:$4 sm:$0xff]  }
 0x6b6   : > { %12757 = vmatpush1.bf16.msra.mxu1 %v17284_v1  ;;  %12430 = vmatprep.subr.bf16.mxu0 %v17289_v30  ;;  %v17356_v1 = vld [vmem:[#allocation16 + $0x6a8] ss:$16 sps:$4 sm:$0xff]   ;;  %v17361_v30 = vld [vmem:[#allocation16 + $0x6c4] ss:$16 sps:$4 sm:$0xff]  }
 0x6b7   : > { %12758 = vmatprep.subr.bf16.mxu1 %v17292_v47  ;;  %v17364_v47 = vld [vmem:[#allocation16 + $0x6cc] ss:$16 sps:$4 sm:$0xff]  }
 0x6b9   : > { %12431 = vmatpush1.bf16.msra.mxu0 %v17287_v16  ;;  %v17359_v16 = vld [vmem:[#allocation16 + $0x6c0] ss:$16 sps:$4 sm:$0xff]  }
 0x6ba   : > { %12759 = vmatpush1.bf16.msra.mxu1 %v17290_v44  ;;  %12432 = vmatprep.subr.bf16.mxu0 %v17295_v0  ;;  %v17362_v44 = vld [vmem:[#allocation16 + $0x6c8] ss:$16 sps:$4 sm:$0xff]   ;;  %v17367_v0 = vld [vmem:[#allocation16 + $0x6e4] ss:$16 sps:$4 sm:$0xff]  }
 0x6bb   : > { %12760 = vmatprep.subr.bf16.mxu1 %v17298_v38  ;;  %v17370_v38 = vld [vmem:[#allocation16 + $0x6ec] ss:$16 sps:$4 sm:$0xff]  }
 0x6bd   : > { %12433 = vmatpush1.bf16.msra.mxu0 %v17293_v43  ;;  %v17365_v43 = vld [vmem:[#allocation16 + $0x6e0] ss:$16 sps:$4 sm:$0xff]  }
 0x6be   : > { %12761 = vmatpush1.bf16.msra.mxu1 %v17296_v7  ;;  %12434 = vmatprep.subr.bf16.mxu0 %v17301_v32  ;;  %v17368_v7 = vld [vmem:[#allocation16 + $0x6e8] ss:$16 sps:$4 sm:$0xff]   ;;  %v17373_v32 = vld [vmem:[#allocation16 + $0x704] ss:$16 sps:$4 sm:$0xff]  }
 0x6bf   : > { %12762 = vmatprep.subr.bf16.mxu1 %v17304_v20  ;;  %v17376_v20 = vld [vmem:[#allocation16 + $0x70c] ss:$16 sps:$4 sm:$0xff]  }
 0x6c1   : > { %12435 = vmatpush1.bf16.msra.mxu0 %v17299_v34  ;;  %v17371_v34 = vld [vmem:[#allocation16 + $0x700] ss:$16 sps:$4 sm:$0xff]  }
 0x6c2   : > { %12763 = vmatpush1.bf16.msra.mxu1 %v17302_v46  ;;  %12436 = vmatprep.subr.bf16.mxu0 %v17307_v9  ;;  %v17374_v46 = vld [vmem:[#allocation16 + $0x708] ss:$16 sps:$4 sm:$0xff]   ;;  %v17379_v9 = vld [vmem:[#allocation16 + $0x724] ss:$16 sps:$4 sm:$0xff]  }
 0x6c3   : > { %12764 = vmatprep.subr.bf16.mxu1 %v17310_v27  ;;  %v17382_v27 = vld [vmem:[#allocation16 + $0x72c] ss:$16 sps:$4 sm:$0xff]  }
 0x6c5   : > { %12437 = vmatpush1.bf16.msra.mxu0 %v17305_v19  ;;  %v17377_v19 = vld [vmem:[#allocation16 + $0x720] ss:$16 sps:$4 sm:$0xff]  }
 0x6c6   : > { %12765 = vmatpush1.bf16.msra.mxu1 %v17308_v58  ;;  %12438 = vmatprep.subr.bf16.mxu0 %v17313_v5  ;;  %v17380_v58 = vld [vmem:[#allocation16 + $0x728] ss:$16 sps:$4 sm:$0xff]   ;;  %v17385_v5 = vld [vmem:[#allocation16 + $0x744] ss:$16 sps:$4 sm:$0xff]  }
 0x6c7   : > { %12766 = vmatprep.subr.bf16.mxu1 %v17316_v37  ;;  %v17388_v37 = vld [vmem:[#allocation16 + $0x74c] ss:$16 sps:$4 sm:$0xff]  }
 0x6c9   : > { %12439 = vmatpush1.bf16.msra.mxu0 %v17311_v53  ;;  %v17383_v53 = vld [vmem:[#allocation16 + $0x740] ss:$16 sps:$4 sm:$0xff]  }
 0x6ca   : > { %12767 = vmatpush1.bf16.msra.mxu1 %v17314_v4  ;;  %12440 = vmatprep.subr.bf16.mxu0 %v17319_v35  ;;  %v17386_v4 = vld [vmem:[#allocation16 + $0x748] ss:$16 sps:$4 sm:$0xff]   ;;  %v17391_v35 = vld [vmem:[#allocation16 + $0x764] ss:$16 sps:$4 sm:$0xff]  }
 0x6cb   : > { %12768 = vmatprep.subr.bf16.mxu1 %v17322_v51  ;;  %v17394_v51 = vld [vmem:[#allocation16 + $0x76c] ss:$16 sps:$4 sm:$0xff]  }
 0x6cd   : > { %12441 = vmatpush1.bf16.msra.mxu0 %v17317_v8  ;;  %v17389_v8 = vld [vmem:[#allocation16 + $0x760] ss:$16 sps:$4 sm:$0xff]  }
 0x6ce   : > { %12769 = vmatpush1.bf16.msra.mxu1 %v17320_v3  ;;  %12451 = vmatprep.subr.bf16.mxu0 %v17325_v26  ;;  %v17392_v3 = vld [vmem:[#allocation16 + $0x768] ss:$16 sps:$4 sm:$0xff]   ;;  %v17400_v26 = vld [vmem:[#allocation16 + $0x78c] ss:$16 sps:$4 sm:$0xff]  }
 0x6cf   : > { %12779 = vmatprep.subr.bf16.mxu1 %v17328_v63  ;;  %v17395_v63 = vld [vmem:[#allocation16 + $0x780] ss:$16 sps:$4 sm:$0xff]  }
 0x6d0   : > { %12443 = vmatmul.mubr.bf16.vlgmr.msra.gmra.mrb[176].mxu0 %v9222_v11 }
 0x6d1   : > { %12771 = vmatmul.mubr.bf16.vlgmr.msra.gmra.mrb[204].mxu1 %v9222_v11  ;;  %12452 = vmatpush1.bf16.msra.mxu0 %v17323_v48  ;;  %v17403_v48 = vld [vmem:[#allocation16 + $0x7a4] ss:$16 sps:$4 sm:$0xff]   ;;  %v17406_v11 = vld [vmem:[#allocation16 + $0x7ac] ss:$16 sps:$4 sm:$0xff]  }
 0x6d2   : > { %12483 = vmatprep.mubr.bf16.mxu0 %v9225_v45  ;;  %12780 = vmatpush1.bf16.msra.mxu1 %v17326_v54  ;;  %v17401_v54 = vld [vmem:[#allocation16 + $0x7a0] ss:$16 sps:$4 sm:$0xff]  }
 0x6d3   : > { %12811 = vmatprep.mubr.bf16.mxu1 %v9225_v45  ;;  %12453 = vmatprep.subr.bf16.mxu0 %v17331_v14  ;;  %v17404_v14 = vld [vmem:[#allocation16 + $0x7a8] ss:$16 sps:$4 sm:$0xff]   ;;  %v17409_v45 = vld [vmem:[#allocation16 + $0x7c4] ss:$16 sps:$4 sm:$0xff]  }
 0x6d4   : > { %12781 = vmatprep.subr.bf16.mxu1 %v17334_v49  ;;  %v17412_v49 = vld [vmem:[#allocation16 + $0x7cc] ss:$16 sps:$4 sm:$0xff]  }
 0x6d5   : > { %12454 = vmatpush1.bf16.msra.mxu0 %v17329_v61  ;;  %v17407_v61 = vld [vmem:[#allocation16 + $0x7c0] ss:$16 sps:$4 sm:$0xff]  }
 0x6d6   : > { %12782 = vmatpush1.bf16.msra.mxu1 %v17332_v24  ;;  %12455 = vmatprep.subr.bf16.mxu0 %v17337_v55  ;;  %v17410_v24 = vld [vmem:[#allocation16 + $0x7c8] ss:$16 sps:$4 sm:$0xff]   ;;  %v17415_v55 = vld [vmem:[#allocation16 + $0x7e4] ss:$16 sps:$4 sm:$0xff]  }
 0x6d7   : > { %12783 = vmatprep.subr.bf16.mxu1 %v17340_v59  ;;  %v17418_v59 = vld [vmem:[#allocation16 + $0x7ec] ss:$16 sps:$4 sm:$0xff]  }
 0x6d9   : > { %12456 = vmatpush1.bf16.msra.mxu0 %v17335_v39  ;;  %v17413_v39 = vld [vmem:[#allocation16 + $0x7e0] ss:$16 sps:$4 sm:$0xff]  }
 0x6da   : > { %12784 = vmatpush1.bf16.msra.mxu1 %v17338_v50  ;;  %12457 = vmatprep.subr.bf16.mxu0 %v17343_v60  ;;  %v17416_v50 = vld [vmem:[#allocation16 + $0x7e8] ss:$16 sps:$4 sm:$0xff]   ;;  %v9165_v60 = vrot.slane %v20142_v18, %v9164_v57  ;;  %v17433_v57 = vld [vmem:[#allocation16 + $0x844] ss:$16 sps:$4 sm:$0xff]  }
 0x6db   : > { %12785 = vmatprep.subr.bf16.mxu1 %v17346_v42  ;;  %v17421_v42 = vld [vmem:[#allocation16 + $0x804] ss:$16 sps:$4 sm:$0xff]   ;;  %v17428_v18 = vld [vmem:[#allocation16 + $0x828] ss:$16 sps:$4 sm:$0xff]  }
 0x6dd   : > { %12458 = vmatpush1.bf16.msra.mxu0 %v17341_v23  ;;  %v17424_v23 = vld [vmem:[#allocation16 + $0x80c] ss:$16 sps:$4 sm:$0xff]  }
 0x6de   : > { %12786 = vmatpush1.bf16.msra.mxu1 %v17344_v22  ;;  %12459 = vmatprep.subr.bf16.mxu0 %v17349_v17  ;;  %v9177_v22 = vrot.slane %v20150_v52, %v20137_v31  ;;  %v17419_v17 = vld [vmem:[#allocation16 + $0x800] ss:$16 sps:$4 sm:$0xff]   ;;  %v17436_v52 = vld [vmem:[#allocation16 + $0x84c] ss:$16 sps:$4 sm:$0xff]  }
 0x6df   : > { %12787 = vmatprep.subr.bf16.mxu1 %v17352_v10  ;;  %v9224_v10 = vpack.c.bf16 %v9165_v60, %v9165_v60  ;;  %v17499_v60 = vld [vmem:[#allocation16 + $0x9a4] ss:$16 sps:$4 sm:$0xff]  }
 0x6e1   : > { %12460 = vmatpush1.bf16.msra.mxu0 %v17347_v12  ;;  %v17422_v12 = vld [vmem:[#allocation16 + $0x808] ss:$16 sps:$4 sm:$0xff]  }
 0x6e2   : > { %12788 = vmatpush1.bf16.msra.mxu1 %v17350_v13  ;;  %12461 = vmatprep.subr.bf16.mxu0 %v17355_v25  ;;  %v17427_v13 = vld [vmem:[#allocation16 + $0x824] ss:$16 sps:$4 sm:$0xff]   ;;  %v9227_v25 = vpack.c.bf16 %v9177_v22, %v9177_v22  ;;  %v17500_v22 = vld [vmem:[#allocation16 + $0x9a8] ss:$16 sps:$4 sm:$0xff]  }
 0x6e3   : > { %12789 = vmatprep.subr.bf16.mxu1 %v17358_v21  ;;  %v17430_v21 = vld [vmem:[#allocation16 + $0x82c] ss:$16 sps:$4 sm:$0xff]  }
 0x6e5   : > { %12462 = vmatpush1.bf16.msra.mxu0 %v17353_v40  ;;  %v17431_v40 = vld [vmem:[#allocation16 + $0x840] ss:$16 sps:$4 sm:$0xff]  }
 0x6e6   : > { %12790 = vmatpush1.bf16.msra.mxu1 %v17356_v1  ;;  %12463 = vmatprep.subr.bf16.mxu0 %v17361_v30  ;;  %v17434_v1 = vld [vmem:[#allocation16 + $0x848] ss:$16 sps:$4 sm:$0xff]   ;;  %v17439_v30 = vld [vmem:[#allocation16 + $0x864] ss:$16 sps:$4 sm:$0xff]  }
 0x6e7   : > { %12791 = vmatprep.subr.bf16.mxu1 %v17364_v47  ;;  %v17442_v47 = vld [vmem:[#allocation16 + $0x86c] ss:$16 sps:$4 sm:$0xff]  }
 0x6e9   : > { %12464 = vmatpush1.bf16.msra.mxu0 %v17359_v16  ;;  %v17437_v16 = vld [vmem:[#allocation16 + $0x860] ss:$16 sps:$4 sm:$0xff]  }
 0x6ea   : > { %12792 = vmatpush1.bf16.msra.mxu1 %v17362_v44  ;;  %12465 = vmatprep.subr.bf16.mxu0 %v17367_v0  ;;  %v17440_v44 = vld [vmem:[#allocation16 + $0x868] ss:$16 sps:$4 sm:$0xff]   ;;  %v17445_v0 = vld [vmem:[#allocation16 + $0x884] ss:$16 sps:$4 sm:$0xff]  }
 0x6eb   : > { %12793 = vmatprep.subr.bf16.mxu1 %v17370_v38  ;;  %v17448_v38 = vld [vmem:[#allocation16 + $0x88c] ss:$16 sps:$4 sm:$0xff]  }
 0x6ed   : > { %12466 = vmatpush1.bf16.msra.mxu0 %v17365_v43  ;;  %v17443_v43 = vld [vmem:[#allocation16 + $0x880] ss:$16 sps:$4 sm:$0xff]  }
 0x6ee   : > { %12794 = vmatpush1.bf16.msra.mxu1 %v17368_v7  ;;  %12467 = vmatprep.subr.bf16.mxu0 %v17373_v32  ;;  %v17446_v7 = vld [vmem:[#allocation16 + $0x888] ss:$16 sps:$4 sm:$0xff]   ;;  %v17451_v32 = vld [vmem:[#allocation16 + $0x8a4] ss:$16 sps:$4 sm:$0xff]  }
 0x6ef   : > { %12795 = vmatprep.subr.bf16.mxu1 %v17376_v20  ;;  %v17454_v20 = vld [vmem:[#allocation16 + $0x8ac] ss:$16 sps:$4 sm:$0xff]  }
 0x6f1   : > { %12468 = vmatpush1.bf16.msra.mxu0 %v17371_v34  ;;  %v17449_v34 = vld [vmem:[#allocation16 + $0x8a0] ss:$16 sps:$4 sm:$0xff]  }
 0x6f2   : > { %12796 = vmatpush1.bf16.msra.mxu1 %v17374_v46  ;;  %12469 = vmatprep.subr.bf16.mxu0 %v17379_v9  ;;  %v17452_v46 = vld [vmem:[#allocation16 + $0x8a8] ss:$16 sps:$4 sm:$0xff]   ;;  %v17457_v9 = vld [vmem:[#allocation16 + $0x8c4] ss:$16 sps:$4 sm:$0xff]  }
 0x6f3   : > { %12797 = vmatprep.subr.bf16.mxu1 %v17382_v27  ;;  %v17460_v27 = vld [vmem:[#allocation16 + $0x8cc] ss:$16 sps:$4 sm:$0xff]  }
 0x6f5   : > { %12470 = vmatpush1.bf16.msra.mxu0 %v17377_v19  ;;  %v17455_v19 = vld [vmem:[#allocation16 + $0x8c0] ss:$16 sps:$4 sm:$0xff]  }
 0x6f6   : > { %12798 = vmatpush1.bf16.msra.mxu1 %v17380_v58  ;;  %12471 = vmatprep.subr.bf16.mxu0 %v17385_v5  ;;  %v17458_v58 = vld [vmem:[#allocation16 + $0x8c8] ss:$16 sps:$4 sm:$0xff]   ;;  %v17463_v5 = vld [vmem:[#allocation16 + $0x8e4] ss:$16 sps:$4 sm:$0xff]  }
 0x6f7   : > { %12799 = vmatprep.subr.bf16.mxu1 %v17388_v37  ;;  %v17466_v37 = vld [vmem:[#allocation16 + $0x8ec] ss:$16 sps:$4 sm:$0xff]  }
 0x6f9   : > { %12472 = vmatpush1.bf16.msra.mxu0 %v17383_v53  ;;  %v17461_v53 = vld [vmem:[#allocation16 + $0x8e0] ss:$16 sps:$4 sm:$0xff]  }
 0x6fa   : > { %12800 = vmatpush1.bf16.msra.mxu1 %v17386_v4  ;;  %12473 = vmatprep.subr.bf16.mxu0 %v17391_v35  ;;  %v17464_v4 = vld [vmem:[#allocation16 + $0x8e8] ss:$16 sps:$4 sm:$0xff]   ;;  %v17469_v35 = vld [vmem:[#allocation16 + $0x904] ss:$16 sps:$4 sm:$0xff]  }
 0x6fb   : > { %12801 = vmatprep.subr.bf16.mxu1 %v17394_v51  ;;  %v17472_v51 = vld [vmem:[#allocation16 + $0x90c] ss:$16 sps:$4 sm:$0xff]  }
 0x6fd   : > { %12474 = vmatpush1.bf16.msra.mxu0 %v17389_v8  ;;  %v17467_v8 = vld [vmem:[#allocation16 + $0x900] ss:$16 sps:$4 sm:$0xff]  }
 0x6fe   : > { %12802 = vmatpush1.bf16.msra.mxu1 %v17392_v3  ;;  %12475 = vmatprep.subr.bf16.mxu0 %v17397_v6  ;;  %v17470_v3 = vld [vmem:[#allocation16 + $0x908] ss:$16 sps:$4 sm:$0xff]   ;;  %v17475_v6 = vld [vmem:[#allocation16 + $0x924] ss:$16 sps:$4 sm:$0xff]  }
 0x6ff   : > { %12803 = vmatprep.subr.bf16.mxu1 %v17400_v26  ;;  %v17478_v26 = vld [vmem:[#allocation16 + $0x92c] ss:$16 sps:$4 sm:$0xff]  }
 0x701   : > { %12476 = vmatpush1.bf16.msra.mxu0 %v17395_v63  ;;  %v17473_v63 = vld [vmem:[#allocation16 + $0x920] ss:$16 sps:$4 sm:$0xff]  }
 0x702   : > { %12804 = vmatpush1.bf16.msra.mxu1 %v17398_v2  ;;  %12477 = vmatprep.subr.bf16.mxu0 %v17403_v48  ;;  %v17476_v2 = vld [vmem:[#allocation16 + $0x928] ss:$16 sps:$4 sm:$0xff]   ;;  %v17481_v48 = vld [vmem:[#allocation16 + $0x944] ss:$16 sps:$4 sm:$0xff]  }
 0x703   : > { %12805 = vmatprep.subr.bf16.mxu1 %v17406_v11  ;;  %v17484_v11 = vld [vmem:[#allocation16 + $0x94c] ss:$16 sps:$4 sm:$0xff]  }
 0x705   : > { %12478 = vmatpush1.bf16.msra.mxu0 %v17401_v54  ;;  %v17479_v54 = vld [vmem:[#allocation16 + $0x940] ss:$16 sps:$4 sm:$0xff]  }
 0x706   : > { %12806 = vmatpush1.bf16.msra.mxu1 %v17404_v14  ;;  %12479 = vmatprep.subr.bf16.mxu0 %v17409_v45  ;;  %v17482_v14 = vld [vmem:[#allocation16 + $0x948] ss:$16 sps:$4 sm:$0xff]   ;;  %v17487_v45 = vld [vmem:[#allocation16 + $0x964] ss:$16 sps:$4 sm:$0xff]  }
 0x707   : > { %12807 = vmatprep.subr.bf16.mxu1 %v17412_v49  ;;  %v17490_v49 = vld [vmem:[#allocation16 + $0x96c] ss:$16 sps:$4 sm:$0xff]  }
 0x709   : > { %12480 = vmatpush1.bf16.msra.mxu0 %v17407_v61  ;;  %v17485_v61 = vld [vmem:[#allocation16 + $0x960] ss:$16 sps:$4 sm:$0xff]  }
 0x70a   : > { %12808 = vmatpush1.bf16.msra.mxu1 %v17410_v24  ;;  %12481 = vmatprep.subr.bf16.mxu0 %v17415_v55  ;;  %v17488_v24 = vld [vmem:[#allocation16 + $0x968] ss:$16 sps:$4 sm:$0xff]   ;;  %v17493_v55 = vld [vmem:[#allocation16 + $0x984] ss:$16 sps:$4 sm:$0xff]  }
 0x70b   : > { %12809 = vmatprep.subr.bf16.mxu1 %v17418_v59  ;;  %v17496_v59 = vld [vmem:[#allocation16 + $0x98c] ss:$16 sps:$4 sm:$0xff]  }
 0x70d   : > { %12482 = vmatpush1.bf16.msra.mxu0 %v17413_v39  ;;  %v17491_v39 = vld [vmem:[#allocation16 + $0x980] ss:$16 sps:$4 sm:$0xff]  }
 0x70e   : > { %12810 = vmatpush1.bf16.msra.mxu1 %v17416_v50  ;;  %12492 = vmatprep.subr.bf16.mxu0 %v17421_v42  ;;  %v17494_v50 = vld [vmem:[#allocation16 + $0x988] ss:$16 sps:$4 sm:$0xff]   ;;  %v17502_v42 = vld [vmem:[#allocation16 + $0x9ac] ss:$16 sps:$4 sm:$0xff]  }
 0x70f   : > { %12820 = vmatprep.subr.bf16.mxu1 %v17424_v23  ;;  %v17497_v23 = vld [vmem:[#allocation16 + $0x9a0] ss:$16 sps:$4 sm:$0xff]  }
 0x710   : > { %12484 = vmatmul.mubr.bf16.vlgmr.msra.gmra.mrb[176].mxu0 %v9224_v10 }
 0x711   : > { %12812 = vmatmul.mubr.bf16.vlgmr.msra.gmra.mrb[204].mxu1 %v9224_v10  ;;  %12493 = vmatpush1.bf16.msra.mxu0 %v17419_v17  ;;  %v17505_v17 = vld [vmem:[#allocation16 + $0x9c4] ss:$16 sps:$4 sm:$0xff]   ;;  %v17508_v10 = vld [vmem:[#allocation16 + $0x9cc] ss:$16 sps:$4 sm:$0xff]  }
 0x712   : > { %12524 = vmatprep.mubr.bf16.mxu0 %v9227_v25  ;;  %12821 = vmatpush1.bf16.msra.mxu1 %v17422_v12  ;;  %v17503_v12 = vld [vmem:[#allocation16 + $0x9c0] ss:$16 sps:$4 sm:$0xff]  }
 0x713   : > { %12852 = vmatprep.mubr.bf16.mxu1 %v9227_v25  ;;  %12494 = vmatprep.subr.bf16.mxu0 %v17427_v13  ;;  %v17506_v13 = vld [vmem:[#allocation16 + $0x9c8] ss:$16 sps:$4 sm:$0xff]   ;;  %v17511_v25 = vld [vmem:[#allocation16 + $0x9e4] ss:$16 sps:$4 sm:$0xff]  }
 0x714   : > { %12822 = vmatprep.subr.bf16.mxu1 %v17430_v21  ;;  %v17514_v21 = vld [vmem:[#allocation16 + $0x9ec] ss:$16 sps:$4 sm:$0xff]  }
 0x715   : > { %12495 = vmatpush1.bf16.msra.mxu0 %v17425_v33  ;;  %v17509_v33 = vld [vmem:[#allocation16 + $0x9e0] ss:$16 sps:$4 sm:$0xff]  }
 0x716   : > { %12823 = vmatpush1.bf16.msra.mxu1 %v17428_v18  ;;  %12496 = vmatprep.subr.bf16.mxu0 %v17433_v57  ;;  %v17512_v18 = vld [vmem:[#allocation16 + $0x9e8] ss:$16 sps:$4 sm:$0xff]  }
 0x717   : > { %12824 = vmatprep.subr.bf16.mxu1 %v17436_v52  ;;  %v20195_v57 = vld [vmem:[#allocation4 + $0x8] sm:$0xff] }
 0x718   : > { %v9173_v52 = vrot.slane %v20195_v57, %v19322_v36 }
 0x719   : > { %12497 = vmatpush1.bf16.msra.mxu0 %v17431_v40  ;;  %v17517_v40 = vld [vmem:[#allocation16 + $0xa04] ss:$16 sps:$4 sm:$0xff]  }
 0x71a   : > { %12825 = vmatpush1.bf16.msra.mxu1 %v17434_v1  ;;  %12498 = vmatprep.subr.bf16.mxu0 %v17439_v30  ;;  %v17520_v1 = vld [vmem:[#allocation16 + $0xa0c] ss:$16 sps:$4 sm:$0xff]   ;;  %v9185_v30 = vrot.slane %v20195_v57, %v20140_v15 }
 0x71b   : > { %12826 = vmatprep.subr.bf16.mxu1 %v17442_v47  ;;  %v17515_v47 = vld [vmem:[#allocation16 + $0xa00] ss:$16 sps:$4 sm:$0xff]  }
 0x71d   : > { %12499 = vmatpush1.bf16.msra.mxu0 %v17437_v16  ;;  %v9226_v16 = vpack.c.bf16 %v9173_v52, %v9173_v52  ;;  %v17590_v52 = vld [vmem:[#allocation16 + $0xb88] ss:$16 sps:$4 sm:$0xff]  }
 0x71e   : > { %12827 = vmatpush1.bf16.msra.mxu1 %v17440_v44  ;;  %12500 = vmatprep.subr.bf16.mxu0 %v17445_v0  ;;  %v17518_v44 = vld [vmem:[#allocation16 + $0xa08] ss:$16 sps:$4 sm:$0xff]   ;;  %v17523_v0 = vld [vmem:[#allocation16 + $0xa24] ss:$16 sps:$4 sm:$0xff]  }
 0x71f   : > { %12828 = vmatprep.subr.bf16.mxu1 %v17448_v38  ;;  %v9229_v38 = vpack.c.bf16 %v9185_v30, %v9185_v30  ;;  %v17593_v30 = vld [vmem:[#allocation16 + $0xba0] ss:$16 sps:$4 sm:$0xff]  }
 0x721   : > { %12501 = vmatpush1.bf16.msra.mxu0 %v17443_v43  ;;  %v17526_v43 = vld [vmem:[#allocation16 + $0xa2c] ss:$16 sps:$4 sm:$0xff]  }
 0x722   : > { %12829 = vmatpush1.bf16.msra.mxu1 %v17446_v7  ;;  %12502 = vmatprep.subr.bf16.mxu0 %v17451_v32  ;;  %v17521_v7 = vld [vmem:[#allocation16 + $0xa20] ss:$16 sps:$4 sm:$0xff]   ;;  %v17524_v32 = vld [vmem:[#allocation16 + $0xa28] ss:$16 sps:$4 sm:$0xff]  }
 0x723   : > { %12830 = vmatprep.subr.bf16.mxu1 %v17454_v20  ;;  %v17529_v20 = vld [vmem:[#allocation16 + $0xa44] ss:$16 sps:$4 sm:$0xff]  }
 0x725   : > { %12503 = vmatpush1.bf16.msra.mxu0 %v17449_v34  ;;  %v17532_v34 = vld [vmem:[#allocation16 + $0xa4c] ss:$16 sps:$4 sm:$0xff]  }
 0x726   : > { %12831 = vmatpush1.bf16.msra.mxu1 %v17452_v46  ;;  %12504 = vmatprep.subr.bf16.mxu0 %v17457_v9  ;;  %v17527_v46 = vld [vmem:[#allocation16 + $0xa40] ss:$16 sps:$4 sm:$0xff]   ;;  %v17530_v9 = vld [vmem:[#allocation16 + $0xa48] ss:$16 sps:$4 sm:$0xff]  }
 0x727   : > { %12832 = vmatprep.subr.bf16.mxu1 %v17460_v27  ;;  %v17535_v27 = vld [vmem:[#allocation16 + $0xa64] ss:$16 sps:$4 sm:$0xff]  }
 0x729   : > { %12505 = vmatpush1.bf16.msra.mxu0 %v17455_v19  ;;  %v17538_v19 = vld [vmem:[#allocation16 + $0xa6c] ss:$16 sps:$4 sm:$0xff]  }
 0x72a   : > { %12833 = vmatpush1.bf16.msra.mxu1 %v17458_v58  ;;  %12506 = vmatprep.subr.bf16.mxu0 %v17463_v5  ;;  %v17533_v58 = vld [vmem:[#allocation16 + $0xa60] ss:$16 sps:$4 sm:$0xff]   ;;  %v17536_v5 = vld [vmem:[#allocation16 + $0xa68] ss:$16 sps:$4 sm:$0xff]  }
 0x72b   : > { %12834 = vmatprep.subr.bf16.mxu1 %v17466_v37  ;;  %v17541_v37 = vld [vmem:[#allocation16 + $0xa84] ss:$16 sps:$4 sm:$0xff]  }
 0x72d   : > { %12507 = vmatpush1.bf16.msra.mxu0 %v17461_v53  ;;  %v17544_v53 = vld [vmem:[#allocation16 + $0xa8c] ss:$16 sps:$4 sm:$0xff]  }
 0x72e   : > { %12835 = vmatpush1.bf16.msra.mxu1 %v17464_v4  ;;  %12508 = vmatprep.subr.bf16.mxu0 %v17469_v35  ;;  %v17539_v4 = vld [vmem:[#allocation16 + $0xa80] ss:$16 sps:$4 sm:$0xff]   ;;  %v17542_v35 = vld [vmem:[#allocation16 + $0xa88] ss:$16 sps:$4 sm:$0xff]  }
 0x72f   : > { %12836 = vmatprep.subr.bf16.mxu1 %v17472_v51  ;;  %v17547_v51 = vld [vmem:[#allocation16 + $0xaa4] ss:$16 sps:$4 sm:$0xff]  }
 0x731   : > { %12509 = vmatpush1.bf16.msra.mxu0 %v17467_v8  ;;  %v17550_v8 = vld [vmem:[#allocation16 + $0xaac] ss:$16 sps:$4 sm:$0xff]  }
 0x732   : > { %12837 = vmatpush1.bf16.msra.mxu1 %v17470_v3  ;;  %12510 = vmatprep.subr.bf16.mxu0 %v17475_v6  ;;  %v17545_v3 = vld [vmem:[#allocation16 + $0xaa0] ss:$16 sps:$4 sm:$0xff]   ;;  %v17548_v6 = vld [vmem:[#allocation16 + $0xaa8] ss:$16 sps:$4 sm:$0xff]  }
 0x733   : > { %12838 = vmatprep.subr.bf16.mxu1 %v17478_v26  ;;  %v17553_v26 = vld [vmem:[#allocation16 + $0xac4] ss:$16 sps:$4 sm:$0xff]  }
 0x735   : > { %12511 = vmatpush1.bf16.msra.mxu0 %v17473_v63  ;;  %v17556_v63 = vld [vmem:[#allocation16 + $0xacc] ss:$16 sps:$4 sm:$0xff]  }
 0x736   : > { %12839 = vmatpush1.bf16.msra.mxu1 %v17476_v2  ;;  %12512 = vmatprep.subr.bf16.mxu0 %v17481_v48  ;;  %v17551_v2 = vld [vmem:[#allocation16 + $0xac0] ss:$16 sps:$4 sm:$0xff]   ;;  %v17554_v48 = vld [vmem:[#allocation16 + $0xac8] ss:$16 sps:$4 sm:$0xff]  }
 0x737   : > { %12840 = vmatprep.subr.bf16.mxu1 %v17484_v11  ;;  %v17559_v11 = vld [vmem:[#allocation16 + $0xae4] ss:$16 sps:$4 sm:$0xff]  }
 0x739   : > { %12513 = vmatpush1.bf16.msra.mxu0 %v17479_v54  ;;  %v17562_v54 = vld [vmem:[#allocation16 + $0xaec] ss:$16 sps:$4 sm:$0xff]  }
 0x73a   : > { %12841 = vmatpush1.bf16.msra.mxu1 %v17482_v14  ;;  %12514 = vmatprep.subr.bf16.mxu0 %v17487_v45  ;;  %v17557_v14 = vld [vmem:[#allocation16 + $0xae0] ss:$16 sps:$4 sm:$0xff]   ;;  %v17560_v45 = vld [vmem:[#allocation16 + $0xae8] ss:$16 sps:$4 sm:$0xff]  }
 0x73b   : > { %12842 = vmatprep.subr.bf16.mxu1 %v17490_v49  ;;  %v17565_v49 = vld [vmem:[#allocation16 + $0xb04] ss:$16 sps:$4 sm:$0xff]  }
 0x73d   : > { %12515 = vmatpush1.bf16.msra.mxu0 %v17485_v61  ;;  %v17568_v61 = vld [vmem:[#allocation16 + $0xb0c] ss:$16 sps:$4 sm:$0xff]  }
 0x73e   : > { %12843 = vmatpush1.bf16.msra.mxu1 %v17488_v24  ;;  %12516 = vmatprep.subr.bf16.mxu0 %v17493_v55  ;;  %v17563_v24 = vld [vmem:[#allocation16 + $0xb00] ss:$16 sps:$4 sm:$0xff]   ;;  %v17566_v55 = vld [vmem:[#allocation16 + $0xb08] ss:$16 sps:$4 sm:$0xff]  }
 0x73f   : > { %12844 = vmatprep.subr.bf16.mxu1 %v17496_v59  ;;  %v17571_v59 = vld [vmem:[#allocation16 + $0xb24] ss:$16 sps:$4 sm:$0xff]  }
 0x741   : > { %12517 = vmatpush1.bf16.msra.mxu0 %v17491_v39  ;;  %v17574_v39 = vld [vmem:[#allocation16 + $0xb2c] ss:$16 sps:$4 sm:$0xff]  }
 0x742   : > { %12845 = vmatpush1.bf16.msra.mxu1 %v17494_v50  ;;  %12518 = vmatprep.subr.bf16.mxu0 %v17499_v60  ;;  %v17569_v50 = vld [vmem:[#allocation16 + $0xb20] ss:$16 sps:$4 sm:$0xff]   ;;  %v17572_v60 = vld [vmem:[#allocation16 + $0xb28] ss:$16 sps:$4 sm:$0xff]  }
 0x743   : > { %12846 = vmatprep.subr.bf16.mxu1 %v17502_v42  ;;  %v17577_v42 = vld [vmem:[#allocation16 + $0xb44] ss:$16 sps:$4 sm:$0xff]  }
 0x745   : > { %12519 = vmatpush1.bf16.msra.mxu0 %v17497_v23  ;;  %v17580_v23 = vld [vmem:[#allocation16 + $0xb4c] ss:$16 sps:$4 sm:$0xff]  }
 0x746   : > { %12847 = vmatpush1.bf16.msra.mxu1 %v17500_v22  ;;  %12520 = vmatprep.subr.bf16.mxu0 %v17505_v17  ;;  %v17575_v22 = vld [vmem:[#allocation16 + $0xb40] ss:$16 sps:$4 sm:$0xff]   ;;  %v17578_v17 = vld [vmem:[#allocation16 + $0xb48] ss:$16 sps:$4 sm:$0xff]  }
 0x747   : > { %12848 = vmatprep.subr.bf16.mxu1 %v17508_v10  ;;  %v17583_v10 = vld [vmem:[#allocation16 + $0xb64] ss:$16 sps:$4 sm:$0xff]  }
 0x749   : > { %12521 = vmatpush1.bf16.msra.mxu0 %v17503_v12  ;;  %v17586_v12 = vld [vmem:[#allocation16 + $0xb6c] ss:$16 sps:$4 sm:$0xff]  }
 0x74a   : > { %12849 = vmatpush1.bf16.msra.mxu1 %v17506_v13  ;;  %12522 = vmatprep.subr.bf16.mxu0 %v17511_v25  ;;  %v17581_v13 = vld [vmem:[#allocation16 + $0xb60] ss:$16 sps:$4 sm:$0xff]   ;;  %v17584_v25 = vld [vmem:[#allocation16 + $0xb68] ss:$16 sps:$4 sm:$0xff]  }
 0x74b   : > { %12850 = vmatprep.subr.bf16.mxu1 %v17514_v21  ;;  %v17589_v21 = vld [vmem:[#allocation16 + $0xb84] ss:$16 sps:$4 sm:$0xff]  }
 0x74d   : > { %12523 = vmatpush1.bf16.msra.mxu0 %v17509_v33  ;;  %v17592_v33 = vld [vmem:[#allocation16 + $0xb8c] ss:$16 sps:$4 sm:$0xff]  }
 0x74e   : > { %12851 = vmatpush1.bf16.msra.mxu1 %v17512_v18  ;;  %12533 = vmatprep.subr.bf16.mxu0 %v17517_v40  ;;  %v17587_v18 = vld [vmem:[#allocation16 + $0xb80] ss:$16 sps:$4 sm:$0xff]   ;;  %v17595_v40 = vld [vmem:[#allocation16 + $0xba4] ss:$16 sps:$4 sm:$0xff]  }
 0x74f   : > { %12861 = vmatprep.subr.bf16.mxu1 %v17520_v1  ;;  %v17598_v1 = vld [vmem:[#allocation16 + $0xbac] ss:$16 sps:$4 sm:$0xff]  }
 0x750   : > { %12525 = vmatmul.mubr.bf16.vlgmr.msra.gmra.mrb[176].mxu0 %v9226_v16 }
 0x751   : > { %12853 = vmatmul.mubr.bf16.vlgmr.msra.gmra.mrb[204].mxu1 %v9226_v16  ;;  %12534 = vmatpush1.bf16.msra.mxu0 %v17515_v47  ;;  %v17596_v47 = vld [vmem:[#allocation16 + $0xba8] ss:$16 sps:$4 sm:$0xff]   ;;  %v17601_v16 = vld [vmem:[#allocation16 + $0xbc4] ss:$16 sps:$4 sm:$0xff]  }
 0x752   : > { %12565 = vmatprep.mubr.bf16.mxu0 %v9229_v38  ;;  %12862 = vmatpush1.bf16.msra.mxu1 %v17518_v44  ;;  %v17604_v44 = vld [vmem:[#allocation16 + $0xbcc] ss:$16 sps:$4 sm:$0xff]  }
 0x753   : > { %12893 = vmatprep.mubr.bf16.mxu1 %v9229_v38  ;;  %12535 = vmatprep.subr.bf16.mxu0 %v17523_v0  ;;  %v17599_v0 = vld [vmem:[#allocation16 + $0xbc0] ss:$16 sps:$4 sm:$0xff]   ;;  %v17602_v38 = vld [vmem:[#allocation16 + $0xbc8] ss:$16 sps:$4 sm:$0xff]  }
 0x754   : > { %12863 = vmatprep.subr.bf16.mxu1 %v17526_v43  ;;  %v17607_v43 = vld [vmem:[#allocation16 + $0xbe4] ss:$16 sps:$4 sm:$0xff]  }
 0x755   : > { %12536 = vmatpush1.bf16.msra.mxu0 %v17521_v7  ;;  %v17610_v7 = vld [vmem:[#allocation16 + $0xbec] ss:$16 sps:$4 sm:$0xff]  }
 0x756   : > { %12864 = vmatpush1.bf16.msra.mxu1 %v17524_v32  ;;  %12537 = vmatprep.subr.bf16.mxu0 %v17529_v20  ;;  %v17605_v32 = vld [vmem:[#allocation16 + $0xbe0] ss:$16 sps:$4 sm:$0xff]   ;;  %v17608_v20 = vld [vmem:[#allocation16 + $0xbe8] ss:$16 sps:$4 sm:$0xff]  }
 0x757   : > { %12865 = vmatprep.subr.bf16.mxu1 %v17532_v34  ;;  %v9181_v34 = vrot.slane %v20195_v57, %v20177_v56  ;;  %v17620_v57 = vld [vmem:[#allocation16 + $0xc28] ss:$16 sps:$4 sm:$0xff]  }
 0x759   : > { %12538 = vmatpush1.bf16.msra.mxu0 %v17527_v46  ;;  %v17613_v46 = vld [vmem:[#allocation16 + $0xc04] ss:$16 sps:$4 sm:$0xff]  }
 0x75a   : > { %12866 = vmatpush1.bf16.msra.mxu1 %v17530_v9  ;;  %12539 = vmatprep.subr.bf16.mxu0 %v17535_v27  ;;  %v17616_v9 = vld [vmem:[#allocation16 + $0xc0c] ss:$16 sps:$4 sm:$0xff]   ;;  %v17611_v27 = vld [vmem:[#allocation16 + $0xc00] ss:$16 sps:$4 sm:$0xff]  }
 0x75b   : > { %12867 = vmatprep.subr.bf16.mxu1 %v17538_v19  ;;  %v9228_v19 = vpack.c.bf16 %v9181_v34, %v9181_v34  ;;  %v17689_v34 = vld [vmem:[#allocation16 + $0xda0] ss:$16 sps:$4 sm:$0xff]  }
 0x75d   : > { %12540 = vmatpush1.bf16.msra.mxu0 %v17533_v58  ;;  %v17614_v58 = vld [vmem:[#allocation16 + $0xc08] ss:$16 sps:$4 sm:$0xff]  }
 0x75e   : > { %12868 = vmatpush1.bf16.msra.mxu1 %v17536_v5  ;;  %12541 = vmatprep.subr.bf16.mxu0 %v17541_v37  ;;  %v17619_v5 = vld [vmem:[#allocation16 + $0xc24] ss:$16 sps:$4 sm:$0xff]   ;;  %v9231_v37 = vpack.c.bf16 %v20157_v41, %v20157_v41  ;;  %v17634_v41 = vld [vmem:[#allocation16 + $0xc6c] ss:$16 sps:$4 sm:$0xff]  }
 0x75f   : > { %12869 = vmatprep.subr.bf16.mxu1 %v17544_v53  ;;  %v17622_v53 = vld [vmem:[#allocation16 + $0xc2c] ss:$16 sps:$4 sm:$0xff]  }
 0x761   : > { %12542 = vmatpush1.bf16.msra.mxu0 %v17539_v4  ;;  %v17617_v4 = vld [vmem:[#allocation16 + $0xc20] ss:$16 sps:$4 sm:$0xff]  }
 0x762   : > { %12870 = vmatpush1.bf16.msra.mxu1 %v17542_v35  ;;  %12543 = vmatprep.subr.bf16.mxu0 %v17547_v51  ;;  %v17625_v35 = vld [vmem:[#allocation16 + $0xc44] ss:$16 sps:$4 sm:$0xff]   ;;  %v17628_v51 = vld [vmem:[#allocation16 + $0xc4c] ss:$16 sps:$4 sm:$0xff]  }
 0x763   : > { %12871 = vmatprep.subr.bf16.mxu1 %v17550_v8  ;;  %v17623_v8 = vld [vmem:[#allocation16 + $0xc40] ss:$16 sps:$4 sm:$0xff]  }
 0x765   : > { %12544 = vmatpush1.bf16.msra.mxu0 %v17545_v3  ;;  %v17626_v3 = vld [vmem:[#allocation16 + $0xc48] ss:$16 sps:$4 sm:$0xff]  }
 0x766   : > { %12872 = vmatpush1.bf16.msra.mxu1 %v17548_v6  ;;  %12545 = vmatprep.subr.bf16.mxu0 %v17553_v26  ;;  %v17631_v6 = vld [vmem:[#allocation16 + $0xc64] ss:$16 sps:$4 sm:$0xff]   ;;  %v17629_v26 = vld [vmem:[#allocation16 + $0xc60] ss:$16 sps:$4 sm:$0xff]  }
 0x767   : > { %12873 = vmatprep.subr.bf16.mxu1 %v17556_v63  ;;  %v17632_v63 = vld [vmem:[#allocation16 + $0xc68] ss:$16 sps:$4 sm:$0xff]  }
 0x769   : > { %12546 = vmatpush1.bf16.msra.mxu0 %v17551_v2  ;;  %v17637_v2 = vld [vmem:[#allocation16 + $0xc84] ss:$16 sps:$4 sm:$0xff]  }
 0x76a   : > { %12874 = vmatpush1.bf16.msra.mxu1 %v17554_v48  ;;  %12547 = vmatprep.subr.bf16.mxu0 %v17559_v11  ;;  %v17640_v48 = vld [vmem:[#allocation16 + $0xc8c] ss:$16 sps:$4 sm:$0xff]   ;;  %v17635_v11 = vld [vmem:[#allocation16 + $0xc80] ss:$16 sps:$4 sm:$0xff]  }
 0x76b   : > { %12875 = vmatprep.subr.bf16.mxu1 %v17562_v54  ;;  %v17638_v54 = vld [vmem:[#allocation16 + $0xc88] ss:$16 sps:$4 sm:$0xff]  }
 0x76d   : > { %12548 = vmatpush1.bf16.msra.mxu0 %v17557_v14  ;;  %v17643_v14 = vld [vmem:[#allocation16 + $0xca4] ss:$16 sps:$4 sm:$0xff]  }
 0x76e   : > { %12876 = vmatpush1.bf16.msra.mxu1 %v17560_v45  ;;  %12549 = vmatprep.subr.bf16.mxu0 %v17565_v49  ;;  %v17646_v45 = vld [vmem:[#allocation16 + $0xcac] ss:$16 sps:$4 sm:$0xff]   ;;  %v17641_v49 = vld [vmem:[#allocation16 + $0xca0] ss:$16 sps:$4 sm:$0xff]  }
 0x76f   : > { %12877 = vmatprep.subr.bf16.mxu1 %v17568_v61  ;;  %v17644_v61 = vld [vmem:[#allocation16 + $0xca8] ss:$16 sps:$4 sm:$0xff]  }
 0x771   : > { %12550 = vmatpush1.bf16.msra.mxu0 %v17563_v24  ;;  %v17649_v24 = vld [vmem:[#allocation16 + $0xcc4] ss:$16 sps:$4 sm:$0xff]  }
 0x772   : > { %12878 = vmatpush1.bf16.msra.mxu1 %v17566_v55  ;;  %12551 = vmatprep.subr.bf16.mxu0 %v17571_v59  ;;  %v17652_v55 = vld [vmem:[#allocation16 + $0xccc] ss:$16 sps:$4 sm:$0xff]   ;;  %v17647_v59 = vld [vmem:[#allocation16 + $0xcc0] ss:$16 sps:$4 sm:$0xff]  }
 0x773   : > { %12879 = vmatprep.subr.bf16.mxu1 %v17574_v39  ;;  %v17650_v39 = vld [vmem:[#allocation16 + $0xcc8] ss:$16 sps:$4 sm:$0xff]  }
 0x775   : > { %12552 = vmatpush1.bf16.msra.mxu0 %v17569_v50  ;;  %v17655_v50 = vld [vmem:[#allocation16 + $0xce4] ss:$16 sps:$4 sm:$0xff]  }
 0x776   : > { %12880 = vmatpush1.bf16.msra.mxu1 %v17572_v60  ;;  %12553 = vmatprep.subr.bf16.mxu0 %v17577_v42  ;;  %v17658_v60 = vld [vmem:[#allocation16 + $0xcec] ss:$16 sps:$4 sm:$0xff]   ;;  %v17653_v42 = vld [vmem:[#allocation16 + $0xce0] ss:$16 sps:$4 sm:$0xff]  }
 0x777   : > { %12881 = vmatprep.subr.bf16.mxu1 %v17580_v23  ;;  %v17656_v23 = vld [vmem:[#allocation16 + $0xce8] ss:$16 sps:$4 sm:$0xff]  }
 0x779   : > { %12554 = vmatpush1.bf16.msra.mxu0 %v17575_v22  ;;  %v17661_v22 = vld [vmem:[#allocation16 + $0xd04] ss:$16 sps:$4 sm:$0xff]  }
 0x77a   : > { %12882 = vmatpush1.bf16.msra.mxu1 %v17578_v17  ;;  %12555 = vmatprep.subr.bf16.mxu0 %v17583_v10  ;;  %v17664_v17 = vld [vmem:[#allocation16 + $0xd0c] ss:$16 sps:$4 sm:$0xff]   ;;  %v17659_v10 = vld [vmem:[#allocation16 + $0xd00] ss:$16 sps:$4 sm:$0xff]  }
 0x77b   : > { %12883 = vmatprep.subr.bf16.mxu1 %v17586_v12  ;;  %v17662_v12 = vld [vmem:[#allocation16 + $0xd08] ss:$16 sps:$4 sm:$0xff]  }
 0x77d   : > { %12556 = vmatpush1.bf16.msra.mxu0 %v17581_v13  ;;  %v17667_v13 = vld [vmem:[#allocation16 + $0xd24] ss:$16 sps:$4 sm:$0xff]  }
 0x77e   : > { %12884 = vmatpush1.bf16.msra.mxu1 %v17584_v25  ;;  %12557 = vmatprep.subr.bf16.mxu0 %v17589_v21  ;;  %v17670_v25 = vld [vmem:[#allocation16 + $0xd2c] ss:$16 sps:$4 sm:$0xff]   ;;  %v17665_v21 = vld [vmem:[#allocation16 + $0xd20] ss:$16 sps:$4 sm:$0xff]  }
 0x77f   : > { %12885 = vmatprep.subr.bf16.mxu1 %v17592_v33  ;;  %v17668_v33 = vld [vmem:[#allocation16 + $0xd28] ss:$16 sps:$4 sm:$0xff]  }
 0x781   : > { %12558 = vmatpush1.bf16.msra.mxu0 %v17587_v18  ;;  %v17673_v18 = vld [vmem:[#allocation16 + $0xd44] ss:$16 sps:$4 sm:$0xff]  }
 0x782   : > { %12886 = vmatpush1.bf16.msra.mxu1 %v17590_v52  ;;  %12559 = vmatprep.subr.bf16.mxu0 %v17595_v40  ;;  %v17676_v52 = vld [vmem:[#allocation16 + $0xd4c] ss:$16 sps:$4 sm:$0xff]   ;;  %v17671_v40 = vld [vmem:[#allocation16 + $0xd40] ss:$16 sps:$4 sm:$0xff]  }
 0x783   : > { %12887 = vmatprep.subr.bf16.mxu1 %v17598_v1  ;;  %v17674_v1 = vld [vmem:[#allocation16 + $0xd48] ss:$16 sps:$4 sm:$0xff]  }
 0x785   : > { %12560 = vmatpush1.bf16.msra.mxu0 %v17593_v30  ;;  %v17679_v30 = vld [vmem:[#allocation16 + $0xd64] ss:$16 sps:$4 sm:$0xff]  }
 0x786   : > { %12888 = vmatpush1.bf16.msra.mxu1 %v17596_v47  ;;  %12561 = vmatprep.subr.bf16.mxu0 %v17601_v16  ;;  %v17682_v47 = vld [vmem:[#allocation16 + $0xd6c] ss:$16 sps:$4 sm:$0xff]   ;;  %v17677_v16 = vld [vmem:[#allocation16 + $0xd60] ss:$16 sps:$4 sm:$0xff]  }
 0x787   : > { %12889 = vmatprep.subr.bf16.mxu1 %v17604_v44  ;;  %v17680_v44 = vld [vmem:[#allocation16 + $0xd68] ss:$16 sps:$4 sm:$0xff]  }
 0x789   : > { %12562 = vmatpush1.bf16.msra.mxu0 %v17599_v0  ;;  %v17685_v0 = vld [vmem:[#allocation16 + $0xd84] ss:$16 sps:$4 sm:$0xff]  }
 0x78a   : > { %12890 = vmatpush1.bf16.msra.mxu1 %v17602_v38  ;;  %12563 = vmatprep.subr.bf16.mxu0 %v17607_v43  ;;  %v17688_v38 = vld [vmem:[#allocation16 + $0xd8c] ss:$16 sps:$4 sm:$0xff]   ;;  %v17683_v43 = vld [vmem:[#allocation16 + $0xd80] ss:$16 sps:$4 sm:$0xff]  }
 0x78b   : > { %12891 = vmatprep.subr.bf16.mxu1 %v17610_v7  ;;  %v17686_v7 = vld [vmem:[#allocation16 + $0xd88] ss:$16 sps:$4 sm:$0xff]  }
 0x78d   : > { %12564 = vmatpush1.bf16.msra.mxu0 %v17605_v32  ;;  %v17691_v32 = vld [vmem:[#allocation16 + $0xda4] ss:$16 sps:$4 sm:$0xff]  }
 0x78e   : > { %12892 = vmatpush1.bf16.msra.mxu1 %v17608_v20  ;;  %12574 = vmatprep.subr.bf16.mxu0 %v17613_v46  ;;  %v17694_v20 = vld [vmem:[#allocation16 + $0xdac] ss:$16 sps:$4 sm:$0xff]   ;;  %v17692_v46 = vld [vmem:[#allocation16 + $0xda8] ss:$16 sps:$4 sm:$0xff]  }
 0x78f   : > { %12902 = vmatprep.subr.bf16.mxu1 %v17616_v9  ;;  %v17697_v9 = vld [vmem:[#allocation16 + $0xdc4] ss:$16 sps:$4 sm:$0xff]  }
 0x790   : > { %12566 = vmatmul.mubr.bf16.vlgmr.msra.gmra.mrb[176].mxu0 %v9228_v19 }
 0x791   : > { %12894 = vmatmul.mubr.bf16.vlgmr.msra.gmra.mrb[204].mxu1 %v9228_v19  ;;  %12575 = vmatpush1.bf16.msra.mxu0 %v17611_v27  ;;  %v17700_v27 = vld [vmem:[#allocation16 + $0xdcc] ss:$16 sps:$4 sm:$0xff]   ;;  %v17695_v19 = vld [vmem:[#allocation16 + $0xdc0] ss:$16 sps:$4 sm:$0xff]  }
 0x792   : > { %12606 = vmatprep.mubr.bf16.mxu0 %v9231_v37  ;;  %12903 = vmatpush1.bf16.msra.mxu1 %v17614_v58  ;;  %v17698_v58 = vld [vmem:[#allocation16 + $0xdc8] ss:$16 sps:$4 sm:$0xff]  }
 0x793   : > { %12934 = vmatprep.mubr.bf16.mxu1 %v9231_v37  ;;  %12576 = vmatprep.subr.bf16.mxu0 %v17619_v5  ;;  %v17703_v5 = vld [vmem:[#allocation16 + $0xde4] ss:$16 sps:$4 sm:$0xff]   ;;  %v17706_v37 = vld [vmem:[#allocation16 + $0xdec] ss:$16 sps:$4 sm:$0xff]  }
 0x794   : > { %12904 = vmatprep.subr.bf16.mxu1 %v17622_v53  ;;  %v17701_v53 = vld [vmem:[#allocation16 + $0xde0] ss:$16 sps:$4 sm:$0xff]  }
 0x795   : > { %12577 = vmatpush1.bf16.msra.mxu0 %v17617_v4  ;;  %v17704_v4 = vld [vmem:[#allocation16 + $0xde8] ss:$16 sps:$4 sm:$0xff]  }
 0x796   : > { %12905 = vmatpush1.bf16.msra.mxu1 %v17620_v57  ;;  %12578 = vmatprep.subr.bf16.mxu0 %v17625_v35  ;;  %v17709_v57 = vld [vmem:[#allocation16 + $0xe04] ss:$16 sps:$4 sm:$0xff]   ;;  %v17712_v35 = vld [vmem:[#allocation16 + $0xe0c] ss:$16 sps:$4 sm:$0xff]  }
 0x797   : > { %12906 = vmatprep.subr.bf16.mxu1 %v17628_v51  ;;  %v17707_v51 = vld [vmem:[#allocation16 + $0xe00] ss:$16 sps:$4 sm:$0xff]  }
 0x799   : > { %12579 = vmatpush1.bf16.msra.mxu0 %v17623_v8  ;;  %v9230_v8 = vpack.c.bf16 %v20162_v29, %v20162_v29  ;;  %v17719_v29 = vld [vmem:[#allocation16 + $0xe40] ss:$16 sps:$4 sm:$0xff]  }
 0x79a   : > { %12907 = vmatpush1.bf16.msra.mxu1 %v17626_v3  ;;  %12580 = vmatprep.subr.bf16.mxu0 %v17631_v6  ;;  %v17710_v3 = vld [vmem:[#allocation16 + $0xe08] ss:$16 sps:$4 sm:$0xff]   ;;  %v17715_v6 = vld [vmem:[#allocation16 + $0xe24] ss:$16 sps:$4 sm:$0xff]  }
 0x79b   : > { %12908 = vmatprep.subr.bf16.mxu1 %v17634_v41  ;;  %v9233_v41 = vpack.c.bf16 %v20169_v62, %v20169_v62  ;;  %v17730_v62 = vld [vmem:[#allocation16 + $0xe6c] ss:$16 sps:$4 sm:$0xff]  }
 0x79d   : > { %12581 = vmatpush1.bf16.msra.mxu0 %v17629_v26  ;;  %v17718_v26 = vld [vmem:[#allocation16 + $0xe2c] ss:$16 sps:$4 sm:$0xff]  }
 0x79e   : > { %12909 = vmatpush1.bf16.msra.mxu1 %v17632_v63  ;;  %12582 = vmatprep.subr.bf16.mxu0 %v17637_v2  ;;  %v17713_v63 = vld [vmem:[#allocation16 + $0xe20] ss:$16 sps:$4 sm:$0xff]   ;;  %v17716_v2 = vld [vmem:[#allocation16 + $0xe28] ss:$16 sps:$4 sm:$0xff]  }
 0x79f   : > { %12910 = vmatprep.subr.bf16.mxu1 %v17640_v48  ;;  %v17721_v48 = vld [vmem:[#allocation16 + $0xe44] ss:$16 sps:$4 sm:$0xff]  }
 0x7a1   : > { %12583 = vmatpush1.bf16.msra.mxu0 %v17635_v11  ;;  %v17724_v11 = vld [vmem:[#allocation16 + $0xe4c] ss:$16 sps:$4 sm:$0xff]  }
 0x7a2   : > { %12911 = vmatpush1.bf16.msra.mxu1 %v17638_v54  ;;  %12584 = vmatprep.subr.bf16.mxu0 %v17643_v14  ;;  %v17722_v54 = vld [vmem:[#allocation16 + $0xe48] ss:$16 sps:$4 sm:$0xff]   ;;  %v17727_v14 = vld [vmem:[#allocation16 + $0xe64] ss:$16 sps:$4 sm:$0xff]  }
 0x7a3   : > { %12912 = vmatprep.subr.bf16.mxu1 %v17646_v45  ;;  %v17725_v45 = vld [vmem:[#allocation16 + $0xe60] ss:$16 sps:$4 sm:$0xff]  }
 0x7a5   : > { %12585 = vmatpush1.bf16.msra.mxu0 %v17641_v49  ;;  %v17728_v49 = vld [vmem:[#allocation16 + $0xe68] ss:$16 sps:$4 sm:$0xff]  }
 0x7a6   : > { %12913 = vmatpush1.bf16.msra.mxu1 %v17644_v61  ;;  %12586 = vmatprep.subr.bf16.mxu0 %v17649_v24  ;;  %v17733_v61 = vld [vmem:[#allocation16 + $0xe84] ss:$16 sps:$4 sm:$0xff]   ;;  %v17736_v24 = vld [vmem:[#allocation16 + $0xe8c] ss:$16 sps:$4 sm:$0xff]  }
 0x7a7   : > { %12914 = vmatprep.subr.bf16.mxu1 %v17652_v55  ;;  %v17731_v55 = vld [vmem:[#allocation16 + $0xe80] ss:$16 sps:$4 sm:$0xff]  }
 0x7a9   : > { %12587 = vmatpush1.bf16.msra.mxu0 %v17647_v59  ;;  %v17734_v59 = vld [vmem:[#allocation16 + $0xe88] ss:$16 sps:$4 sm:$0xff]  }
 0x7aa   : > { %12915 = vmatpush1.bf16.msra.mxu1 %v17650_v39  ;;  %12588 = vmatprep.subr.bf16.mxu0 %v17655_v50  ;;  %v17739_v39 = vld [vmem:[#allocation16 + $0xea4] ss:$16 sps:$4 sm:$0xff]   ;;  %v17742_v50 = vld [vmem:[#allocation16 + $0xeac] ss:$16 sps:$4 sm:$0xff]  }
 0x7ab   : > { %12916 = vmatprep.subr.bf16.mxu1 %v17658_v60  ;;  %v17737_v60 = vld [vmem:[#allocation16 + $0xea0] ss:$16 sps:$4 sm:$0xff]  }
 0x7ad   : > { %12589 = vmatpush1.bf16.msra.mxu0 %v17653_v42  ;;  %v17740_v42 = vld [vmem:[#allocation16 + $0xea8] ss:$16 sps:$4 sm:$0xff]  }
 0x7ae   : > { %12917 = vmatpush1.bf16.msra.mxu1 %v17656_v23  ;;  %12590 = vmatprep.subr.bf16.mxu0 %v17661_v22  ;;  %v17745_v23 = vld [vmem:[#allocation16 + $0xec4] ss:$16 sps:$4 sm:$0xff]   ;;  %v17748_v22 = vld [vmem:[#allocation16 + $0xecc] ss:$16 sps:$4 sm:$0xff]  }
 0x7af   : > { %12918 = vmatprep.subr.bf16.mxu1 %v17664_v17  ;;  %v17743_v17 = vld [vmem:[#allocation16 + $0xec0] ss:$16 sps:$4 sm:$0xff]  }
 0x7b1   : > { %12591 = vmatpush1.bf16.msra.mxu0 %v17659_v10  ;;  %v17746_v10 = vld [vmem:[#allocation16 + $0xec8] ss:$16 sps:$4 sm:$0xff]  }
 0x7b2   : > { %12919 = vmatpush1.bf16.msra.mxu1 %v17662_v12  ;;  %12592 = vmatprep.subr.bf16.mxu0 %v17667_v13  ;;  %v17751_v12 = vld [vmem:[#allocation16 + $0xee4] ss:$16 sps:$4 sm:$0xff]   ;;  %v17754_v13 = vld [vmem:[#allocation16 + $0xeec] ss:$16 sps:$4 sm:$0xff]  }
 0x7b3   : > { %12920 = vmatprep.subr.bf16.mxu1 %v17670_v25  ;;  %v17749_v25 = vld [vmem:[#allocation16 + $0xee0] ss:$16 sps:$4 sm:$0xff]  }
 0x7b5   : > { %12593 = vmatpush1.bf16.msra.mxu0 %v17665_v21  ;;  %v17752_v21 = vld [vmem:[#allocation16 + $0xee8] ss:$16 sps:$4 sm:$0xff]  }
 0x7b6   : > { %12921 = vmatpush1.bf16.msra.mxu1 %v17668_v33  ;;  %12594 = vmatprep.subr.bf16.mxu0 %v17673_v18  ;;  %v17757_v33 = vld [vmem:[#allocation16 + $0xf04] ss:$16 sps:$4 sm:$0xff]   ;;  %v17760_v18 = vld [vmem:[#allocation16 + $0xf0c] ss:$16 sps:$4 sm:$0xff]  }
 0x7b7   : > { %12922 = vmatprep.subr.bf16.mxu1 %v17676_v52  ;;  %v17755_v52 = vld [vmem:[#allocation16 + $0xf00] ss:$16 sps:$4 sm:$0xff]  }
 0x7b9   : > { %12595 = vmatpush1.bf16.msra.mxu0 %v17671_v40  ;;  %v17758_v40 = vld [vmem:[#allocation16 + $0xf08] ss:$16 sps:$4 sm:$0xff]  }
 0x7ba   : > { %12923 = vmatpush1.bf16.msra.mxu1 %v17674_v1  ;;  %12596 = vmatprep.subr.bf16.mxu0 %v17679_v30  ;;  %v17763_v1 = vld [vmem:[#allocation16 + $0xf24] ss:$16 sps:$4 sm:$0xff]   ;;  %v17766_v30 = vld [vmem:[#allocation16 + $0xf2c] ss:$16 sps:$4 sm:$0xff]  }
 0x7bb   : > { %12924 = vmatprep.subr.bf16.mxu1 %v17682_v47  ;;  %v17761_v47 = vld [vmem:[#allocation16 + $0xf20] ss:$16 sps:$4 sm:$0xff]  }
 0x7bd   : > { %12597 = vmatpush1.bf16.msra.mxu0 %v17677_v16  ;;  %v17764_v16 = vld [vmem:[#allocation16 + $0xf28] ss:$16 sps:$4 sm:$0xff]  }
 0x7be   : > { %12925 = vmatpush1.bf16.msra.mxu1 %v17680_v44  ;;  %12598 = vmatprep.subr.bf16.mxu0 %v17685_v0  ;;  %v17769_v44 = vld [vmem:[#allocation16 + $0xf44] ss:$16 sps:$4 sm:$0xff]   ;;  %v17772_v0 = vld [vmem:[#allocation16 + $0xf4c] ss:$16 sps:$4 sm:$0xff]  }
 0x7bf   : > { %12926 = vmatprep.subr.bf16.mxu1 %v17688_v38  ;;  %v17767_v38 = vld [vmem:[#allocation16 + $0xf40] ss:$16 sps:$4 sm:$0xff]  }
 0x7c1   : > { %12599 = vmatpush1.bf16.msra.mxu0 %v17683_v43  ;;  %v17770_v43 = vld [vmem:[#allocation16 + $0xf48] ss:$16 sps:$4 sm:$0xff]  }
 0x7c2   : > { %12927 = vmatpush1.bf16.msra.mxu1 %v17686_v7  ;;  %12600 = vmatprep.subr.bf16.mxu0 %v17691_v32  ;;  %v17775_v7 = vld [vmem:[#allocation16 + $0xf64] ss:$16 sps:$4 sm:$0xff]   ;;  %v17778_v32 = vld [vmem:[#allocation16 + $0xf6c] ss:$16 sps:$4 sm:$0xff]  }
 0x7c3   : > { %12928 = vmatprep.subr.bf16.mxu1 %v17694_v20  ;;  %v17773_v20 = vld [vmem:[#allocation16 + $0xf60] ss:$16 sps:$4 sm:$0xff]  }
 0x7c5   : > { %12601 = vmatpush1.bf16.msra.mxu0 %v17689_v34  ;;  %v17776_v34 = vld [vmem:[#allocation16 + $0xf68] ss:$16 sps:$4 sm:$0xff]  }
 0x7c6   : > { %12929 = vmatpush1.bf16.msra.mxu1 %v17692_v46  ;;  %12602 = vmatprep.subr.bf16.mxu0 %v17697_v9  ;;  %v17781_v46 = vld [vmem:[#allocation16 + $0xf84] ss:$16 sps:$4 sm:$0xff]   ;;  %v17784_v9 = vld [vmem:[#allocation16 + $0xf8c] ss:$16 sps:$4 sm:$0xff]  }
 0x7c7   : > { %12930 = vmatprep.subr.bf16.mxu1 %v17700_v27  ;;  %v17779_v27 = vld [vmem:[#allocation16 + $0xf80] ss:$16 sps:$4 sm:$0xff]  }
 0x7c9   : > { %12603 = vmatpush1.bf16.msra.mxu0 %v17695_v19  ;;  %v17782_v19 = vld [vmem:[#allocation16 + $0xf88] ss:$16 sps:$4 sm:$0xff]  }
 0x7ca   : > { %12931 = vmatpush1.bf16.msra.mxu1 %v17698_v58  ;;  %12604 = vmatprep.subr.bf16.mxu0 %v17703_v5  ;;  %v17787_v58 = vld [vmem:[#allocation16 + $0xfa4] ss:$16 sps:$4 sm:$0xff]   ;;  %v17790_v5 = vld [vmem:[#allocation16 + $0xfac] ss:$16 sps:$4 sm:$0xff]  }
 0x7cb   : > { %12932 = vmatprep.subr.bf16.mxu1 %v17706_v37  ;;  %v17785_v37 = vld [vmem:[#allocation16 + $0xfa0] ss:$16 sps:$4 sm:$0xff]  }
 0x7cd   : > { %12605 = vmatpush1.bf16.msra.mxu0 %v17701_v53  ;;  %v17788_v53 = vld [vmem:[#allocation16 + $0xfa8] ss:$16 sps:$4 sm:$0xff]  }
 0x7ce   : > { %12933 = vmatpush1.bf16.msra.mxu1 %v17704_v4  ;;  %12615 = vmatprep.subr.bf16.mxu0 %v17709_v57  ;;  %v17793_v4 = vld [vmem:[#allocation16 + $0xfc4] ss:$16 sps:$4 sm:$0xff]   ;;  %v17796_v57 = vld [vmem:[#allocation16 + $0xfcc] ss:$16 sps:$4 sm:$0xff]  }
 0x7cf   : > { %12943 = vmatprep.subr.bf16.mxu1 %v17712_v35  ;;  %v17791_v35 = vld [vmem:[#allocation16 + $0xfc0] ss:$16 sps:$4 sm:$0xff]  }
 0x7d0   : > { %12607 = vmatmul.mubr.bf16.vlgmr.msra.gmra.mrb[176].mxu0 %v9230_v8 }
 0x7d1   : > { %12935 = vmatmul.mubr.bf16.vlgmr.msra.gmra.mrb[204].mxu1 %v9230_v8  ;;  %12616 = vmatpush1.bf16.msra.mxu0 %v17707_v51  ;;  %v17794_v51 = vld [vmem:[#allocation16 + $0xfc8] ss:$16 sps:$4 sm:$0xff]   ;;  %v17799_v8 = vld [vmem:[#allocation16 + $0xfe4] ss:$16 sps:$4 sm:$0xff]  }
 0x7d2   : > { %12647 = vmatprep.mubr.bf16.mxu0 %v9233_v41  ;;  %12944 = vmatpush1.bf16.msra.mxu1 %v17710_v3  ;;  %v17802_v3 = vld [vmem:[#allocation16 + $0xfec] ss:$16 sps:$4 sm:$0xff]  }
 0x7d3   : > { %12975 = vmatprep.mubr.bf16.mxu1 %v9233_v41  ;;  %12617 = vmatprep.subr.bf16.mxu0 %v17715_v6  ;;  %v17797_v6 = vld [vmem:[#allocation16 + $0xfe0] ss:$16 sps:$4 sm:$0xff]   ;;  %v17800_v41 = vld [vmem:[#allocation16 + $0xfe8] ss:$16 sps:$4 sm:$0xff]  }
 0x7d4   : > { %12945 = vmatprep.subr.bf16.mxu1 %v17718_v26  ;;  %v17805_v26 = vld [vmem:[#allocation19 + $0x4] ss:$8 sps:$4 sm:$0xff]  }
 0x7d5   : > { %12618 = vmatpush1.bf16.msra.mxu0 %v17713_v63  ;;  %v17803_v63 = vld [vmem:[#allocation19] ss:$8 sps:$4 sm:$0xff]  }
 0x7d6   : > { %12946 = vmatpush1.bf16.msra.mxu1 %v17716_v2  ;;  %12619 = vmatprep.subr.bf16.mxu0 %v17721_v48  ;;  %v9232_v2 = vpack.c.bf16 %v20174_v28, %v20174_v28  ;;  %v17808_v48 = vld [vmem:[#allocation19 + $0x14] ss:$8 sps:$4 sm:$0xff]  }
 0x7d7   : > { %12947 = vmatprep.subr.bf16.mxu1 %v17724_v11  ;;  %v17806_v11 = vld [vmem:[#allocation19 + $0x10] ss:$8 sps:$4 sm:$0xff]   ;;  %v17820_v28 = vld [vmem:[#allocation19 + $0x54] ss:$8 sps:$4 sm:$0xff]  }
 0x7d9   : > { %12620 = vmatpush1.bf16.msra.mxu0 %v17719_v29  ;;  %v17811_v29 = vld [vmem:[#allocation19 + $0x24] ss:$8 sps:$4 sm:$0xff]  }
 0x7da   : > { %12948 = vmatpush1.bf16.msra.mxu1 %v17722_v54  ;;  %12621 = vmatprep.subr.bf16.mxu0 %v17727_v14  ;;  %v17809_v54 = vld [vmem:[#allocation19 + $0x20] ss:$8 sps:$4 sm:$0xff]   ;;  %v17814_v14 = vld [vmem:[#allocation19 + $0x34] ss:$8 sps:$4 sm:$0xff]  }
 0x7db   : > { %12949 = vmatprep.subr.bf16.mxu1 %v17730_v62  ;;  %v17812_v62 = vld [vmem:[#allocation19 + $0x30] ss:$8 sps:$4 sm:$0xff]  }
 0x7dd   : > { %12622 = vmatpush1.bf16.msra.mxu0 %v17725_v45  ;;  %v17817_v45 = vld [vmem:[#allocation19 + $0x44] ss:$8 sps:$4 sm:$0xff]  }
 0x7de   : > { %12950 = vmatpush1.bf16.msra.mxu1 %v17728_v49  ;;  %12623 = vmatprep.subr.bf16.mxu0 %v17733_v61  ;;  %v17815_v49 = vld [vmem:[#allocation19 + $0x40] ss:$8 sps:$4 sm:$0xff]   ;;  %v17818_v61 = vld [vmem:[#allocation19 + $0x50] ss:$8 sps:$4 sm:$0xff]  }
 0x7df   : > { %12951 = vmatprep.subr.bf16.mxu1 %v17736_v24  ;;  %v17823_v24 = vld [vmem:[#allocation19 + $0x64] ss:$8 sps:$4 sm:$0xff]  }
 0x7e1   : > { %12624 = vmatpush1.bf16.msra.mxu0 %v17731_v55  ;;  %v17821_v55 = vld [vmem:[#allocation19 + $0x60] ss:$8 sps:$4 sm:$0xff]  }
 0x7e2   : > { %12952 = vmatpush1.bf16.msra.mxu1 %v17734_v59  ;;  %12625 = vmatprep.subr.bf16.mxu0 %v17739_v39  ;;  %v17826_v59 = vld [vmem:[#allocation19 + $0x74] ss:$8 sps:$4 sm:$0xff]   ;;  %v17824_v39 = vld [vmem:[#allocation19 + $0x70] ss:$8 sps:$4 sm:$0xff]  }
 0x7e3   : > { %12953 = vmatprep.subr.bf16.mxu1 %v17742_v50  ;;  %v17829_v50 = vld [vmem:[#allocation19 + $0x84] ss:$8 sps:$4 sm:$0xff]  }
 0x7e5   : > { %12626 = vmatpush1.bf16.msra.mxu0 %v17737_v60  ;;  %v17827_v60 = vld [vmem:[#allocation19 + $0x80] ss:$8 sps:$4 sm:$0xff]  }
 0x7e6   : > { %12954 = vmatpush1.bf16.msra.mxu1 %v17740_v42  ;;  %12627 = vmatprep.subr.bf16.mxu0 %v17745_v23  ;;  %v17832_v42 = vld [vmem:[#allocation19 + $0x94] ss:$8 sps:$4 sm:$0xff]   ;;  %v17830_v23 = vld [vmem:[#allocation19 + $0x90] ss:$8 sps:$4 sm:$0xff]  }
 0x7e7   : > { %12955 = vmatprep.subr.bf16.mxu1 %v17748_v22  ;;  %v17835_v22 = vld [vmem:[#allocation19 + $0xa4] ss:$8 sps:$4 sm:$0xff]  }
 0x7e9   : > { %12628 = vmatpush1.bf16.msra.mxu0 %v17743_v17  ;;  %v17833_v17 = vld [vmem:[#allocation19 + $0xa0] ss:$8 sps:$4 sm:$0xff]  }
 0x7ea   : > { %12956 = vmatpush1.bf16.msra.mxu1 %v17746_v10  ;;  %12629 = vmatprep.subr.bf16.mxu0 %v17751_v12  ;;  %v17838_v10 = vld [vmem:[#allocation19 + $0xb4] ss:$8 sps:$4 sm:$0xff]   ;;  %v17836_v12 = vld [vmem:[#allocation19 + $0xb0] ss:$8 sps:$4 sm:$0xff]  }
 0x7eb   : > { %12957 = vmatprep.subr.bf16.mxu1 %v17754_v13  ;;  %v17841_v13 = vld [vmem:[#allocation19 + $0xc4] ss:$8 sps:$4 sm:$0xff]  }
 0x7ed   : > { %12630 = vmatpush1.bf16.msra.mxu0 %v17749_v25  ;;  %v17839_v25 = vld [vmem:[#allocation19 + $0xc0] ss:$8 sps:$4 sm:$0xff]  }
 0x7ee   : > { %12958 = vmatpush1.bf16.msra.mxu1 %v17752_v21  ;;  %12631 = vmatprep.subr.bf16.mxu0 %v17757_v33  ;;  %v17844_v21 = vld [vmem:[#allocation19 + $0xd4] ss:$8 sps:$4 sm:$0xff]   ;;  %v17842_v33 = vld [vmem:[#allocation19 + $0xd0] ss:$8 sps:$4 sm:$0xff]  }
 0x7ef   : > { %12959 = vmatprep.subr.bf16.mxu1 %v17760_v18  ;;  %v17845_v18 = vld [vmem:[#allocation19 + $0xe0] ss:$8 sps:$4 sm:$0xff]  }
 0x7f1   : > { %12632 = vmatpush1.bf16.msra.mxu0 %v17755_v52  ;;  %v17847_v52 = vld [vmem:[#allocation19 + $0xe4] ss:$8 sps:$4 sm:$0xff]  }
 0x7f2   : > { %12960 = vmatpush1.bf16.msra.mxu1 %v17758_v40  ;;  %12633 = vmatprep.subr.bf16.mxu0 %v17763_v1  ;;  %v17850_v40 = vld [vmem:[#allocation19 + $0xf4] ss:$8 sps:$4 sm:$0xff]   ;;  %v17848_v1 = vld [vmem:[#allocation19 + $0xf0] ss:$8 sps:$4 sm:$0xff]  }
 0x7f3   : > { %12961 = vmatprep.subr.bf16.mxu1 %v17766_v30  ;;  %v17853_v30 = vld [vmem:[#allocation19 + $0x104] ss:$8 sps:$4 sm:$0xff]  }
 0x7f5   : > { %12634 = vmatpush1.bf16.msra.mxu0 %v17761_v47  ;;  %v17899_v47 = vld [vmem:[#allocation22 + $0x40] sm:$0xff]  }
 0x7f6   : > { %12962 = vmatpush1.bf16.msra.mxu1 %v17764_v16  ;;  %12635 = vmatprep.subr.bf16.mxu0 %v17769_v44  ;;  %v17900_v16 = vld [vmem:[#allocation22] sm:$0xff]   ;;  %v17901_v44 = vld [vmem:[#allocation22 + $0x48] sm:$0xff]  }
 0x7f7   : > { %12963 = vmatprep.subr.bf16.mxu1 %v17772_v0  ;;  %v17902_v0 = vld [vmem:[#allocation22 + $0x8] sm:$0xff]  }
 0x7f9   : > { %12636 = vmatpush1.bf16.msra.mxu0 %v17767_v38  ;;  %v17903_v38 = vld [vmem:[#allocation22 + $0x50] sm:$0xff]  }
 0x7fa   : > { %12964 = vmatpush1.bf16.msra.mxu1 %v17770_v43  ;;  %12637 = vmatprep.subr.bf16.mxu0 %v17775_v7  ;;  %v17904_v43 = vld [vmem:[#allocation22 + $0x10] sm:$0xff]   ;;  %v17905_v7 = vld [vmem:[#allocation22 + $0x58] sm:$0xff]  }
 0x7fb   : > { %12965 = vmatprep.subr.bf16.mxu1 %v17778_v32  ;;  %v17906_v32 = vld [vmem:[#allocation22 + $0x18] sm:$0xff]  }
 0x7fd   : > { %12638 = vmatpush1.bf16.msra.mxu0 %v17773_v20  ;;  %v17907_v20 = vld [vmem:[#allocation22 + $0x60] sm:$0xff]  }
 0x7fe   : > { %12966 = vmatpush1.bf16.msra.mxu1 %v17776_v34  ;;  %12639 = vmatprep.subr.bf16.mxu0 %v17781_v46  ;;  %v17908_v34 = vld [vmem:[#allocation22 + $0x20] sm:$0xff]   ;;  %v17909_v46 = vld [vmem:[#allocation22 + $0x68] sm:$0xff]  }
 0x7ff   : > { %12967 = vmatprep.subr.bf16.mxu1 %v17784_v9  ;;  %v17910_v9 = vld [vmem:[#allocation22 + $0x28] sm:$0xff]  }
 0x801   : > { %12640 = vmatpush1.bf16.msra.mxu0 %v17779_v27  ;;  %v20211_v27 = vld [vmem:[#allocation17] sm:$0xf] }
 0x802   : > { %12968 = vmatpush1.bf16.msra.mxu1 %v17782_v19  ;;  %12641 = vmatprep.subr.bf16.mxu0 %v17787_v58  ;;  %v12311_v19 = vrot.slane %v20211_v27, %v19322_v36  ;;  %v12315_v58 = vrot.slane %v20211_v27, %v20137_v31 }
 0x803   : > { %12969 = vmatprep.subr.bf16.mxu1 %v17790_v5  ;;  %v12323_v5 = vrot.slane %v20211_v27, %v20140_v15 }
 0x805   : > { %12642 = vmatpush1.bf16.msra.mxu0 %v17785_v37 }
 0x806   : > { %12970 = vmatpush1.bf16.msra.mxu1 %v17788_v53  ;;  %12643 = vmatprep.subr.bf16.mxu0 %v17793_v4 }
 0x807   : > { %12971 = vmatprep.subr.bf16.mxu1 %v17796_v57 }
 0x809   : > { %12644 = vmatpush1.bf16.msra.mxu0 %v17791_v35 }
 0x80a   : > { %12972 = vmatpush1.bf16.msra.mxu1 %v17794_v51  ;;  %12645 = vmatprep.subr.bf16.mxu0 %v17799_v8 }
 0x80b   : > { %12973 = vmatprep.subr.bf16.mxu1 %v17802_v3 }
 0x80d   : > { %12646 = vmatpush1.bf16.msra.mxu0 %v17797_v6 }
 0x80e   : > { %12974 = vmatpush1.bf16.msra.mxu1 %v17800_v41  ;;  %13388 = vmatprep.subr.bf16.mxu0 %v17805_v26 }
 0x80f   : > { %16148 = vmatprep.subr.bf16.mxu1 %v17899_v47  ;;  %v17895_v47 = vld [vmem:[#allocation19 + $0x1e4] ss:$8 sps:$4 sm:$0xff]  }
 0x810   : > { %12648 = vmatmul.mubr.bf16.vlgmr.msra.gmra.mrb[176].mxu0 %v9232_v2 }
 0x811   : > { %12976 = vmatmul.mubr.bf16.vlgmr.msra.gmra.mrb[204].mxu1 %v9232_v2  ;;  %13389 = vmatpush1.bf16.msra.mxu0 %v17803_v63 }
 0x812   : > { %13390 = vmatprep.subr.bf16.mxu0 %v17808_v48  ;;  %16149 = vmatpush3.bf16.msra.mxu1 %v17900_v16  ;;  %v17893_v16 = vld [vmem:[#allocation19 + $0x1e0] ss:$8 sps:$4 sm:$0xff]  }
 0x813   : > { %16150 = vmatprep.subr.bf16.mxu1 %v17901_v44 }
 0x815   : > { %13391 = vmatpush1.bf16.msra.mxu0 %v17806_v11 }
 0x816   : > { %13392 = vmatprep.subr.bf16.mxu0 %v17811_v29  ;;  %16151 = vmatpush3.bf16.msra.mxu1 %v17902_v0  ;;  %v17851_v29 = vld [vmem:[#allocation19 + $0x100] ss:$8 sps:$4 sm:$0xff]   ;;  %v17898_v0 = vld [vmem:[#allocation19 + $0x1f4] ss:$8 sps:$4 sm:$0xff]  }
 0x817   : > { %16152 = vmatprep.subr.bf16.mxu1 %v17903_v38  ;;  %v17896_v38 = vld [vmem:[#allocation19 + $0x1f0] ss:$8 sps:$4 sm:$0xff]  }
 0x819   : > { %13393 = vmatpush1.bf16.msra.mxu0 %v17809_v54 }
 0x81a   : > { %13394 = vmatprep.subr.bf16.mxu0 %v17814_v14  ;;  %16153 = vmatpush3.bf16.msra.mxu1 %v17904_v43  ;;  %v17856_v14 = vld [vmem:[#allocation19 + $0x114] ss:$8 sps:$4 sm:$0xff]  }
 0x81b   : > { %16154 = vmatprep.subr.bf16.mxu1 %v17905_v7 }
 0x81d   : > { %13395 = vmatpush1.bf16.msra.mxu0 %v17812_v62  ;;  %v17854_v62 = vld [vmem:[#allocation19 + $0x110] ss:$8 sps:$4 sm:$0xff]  }
 0x81e   : > { %13396 = vmatprep.subr.bf16.mxu0 %v17817_v45  ;;  %16155 = vmatpush3.bf16.msra.mxu1 %v17906_v32  ;;  %v17859_v45 = vld [vmem:[#allocation19 + $0x124] ss:$8 sps:$4 sm:$0xff]   ;;  %v17911_v32 = vld [vmem:[#allocation22 + $0x70] sm:$0xff]  }
 0x81f   : > { %16156 = vmatprep.subr.bf16.mxu1 %v17907_v20  ;;  %v17912_v20 = vld [vmem:[#allocation22 + $0x30] sm:$0xff]  }
 0x821   : > { %13397 = vmatpush1.bf16.msra.mxu0 %v17815_v49  ;;  %v17857_v49 = vld [vmem:[#allocation19 + $0x120] ss:$8 sps:$4 sm:$0xff]  }
 0x822   : > { %13398 = vmatprep.subr.bf16.mxu0 %v17820_v28  ;;  %16157 = vmatpush3.bf16.msra.mxu1 %v17908_v34  ;;  %v17862_v28 = vld [vmem:[#allocation19 + $0x134] ss:$8 sps:$4 sm:$0xff]  }
 0x823   : > { %16158 = vmatprep.subr.bf16.mxu1 %v17909_v46  ;;  %v17913_v34 = vld [vmem:[#allocation22 + $0x78] sm:$0xff]   ;;  %v17938_v46 = vld [vmem:[#allocation3] sm:$0xff] }
 0x825   : > { %13399 = vmatpush1.bf16.msra.mxu0 %v17818_v61  ;;  %v17860_v61 = vld [vmem:[#allocation19 + $0x130] ss:$8 sps:$4 sm:$0xff]  }
 0x826   : > { %13400 = vmatprep.subr.bf16.mxu0 %v17823_v24  ;;  %16159 = vmatpush3.bf16.msra.mxu1 %v17910_v9  ;;  %v17865_v24 = vld [vmem:[#allocation19 + $0x144] ss:$8 sps:$4 sm:$0xff]   ;;  %v13056_v9 = vld [vmem:[#allocation20] sm:$0x3] }
 0x827   : > { %16160 = vmatprep.subr.bf16.mxu1 %v17911_v32 }
 0x829   : > { %13401 = vmatpush1.bf16.msra.mxu0 %v17821_v55  ;;  %v17863_v55 = vld [vmem:[#allocation19 + $0x140] ss:$8 sps:$4 sm:$0xff]  }
 0x82a   : > { %13402 = vmatprep.subr.bf16.mxu0 %v17826_v59  ;;  %v17868_v59 = vld [vmem:[#allocation19 + $0x154] ss:$8 sps:$4 sm:$0xff]   ;;  %16161 = vmatpush3.bf16.msra.mxu1 %v17912_v20 }
 0x82b   : > { %16162 = vmatprep.subr.bf16.mxu1 %v17913_v34 }
 0x82d   : > { %13403 = vmatpush1.bf16.msra.mxu0 %v17824_v39  ;;  %v17866_v39 = vld [vmem:[#allocation19 + $0x150] ss:$8 sps:$4 sm:$0xff]  }
 0x82e   : > { %13404 = vmatprep.subr.bf16.mxu0 %v17829_v50  ;;  %v17871_v50 = vld [vmem:[#allocation19 + $0x164] ss:$8 sps:$4 sm:$0xff]  }
 0x831   : > { %13405 = vmatpush1.bf16.msra.mxu0 %v17827_v60  ;;  %v17869_v60 = vld [vmem:[#allocation19 + $0x160] ss:$8 sps:$4 sm:$0xff]  }
 0x832   : > { %13406 = vmatprep.subr.bf16.mxu0 %v17832_v42  ;;  %v17874_v42 = vld [vmem:[#allocation19 + $0x174] ss:$8 sps:$4 sm:$0xff]  }
 0x835   : > { %13407 = vmatpush1.bf16.msra.mxu0 %v17830_v23  ;;  %v17872_v23 = vld [vmem:[#allocation19 + $0x170] ss:$8 sps:$4 sm:$0xff]  }
 0x836   : > { %13408 = vmatprep.subr.bf16.mxu0 %v17835_v22  ;;  %v17877_v22 = vld [vmem:[#allocation19 + $0x184] ss:$8 sps:$4 sm:$0xff]  }
 0x839   : > { %13409 = vmatpush1.bf16.msra.mxu0 %v17833_v17  ;;  %v17875_v17 = vld [vmem:[#allocation19 + $0x180] ss:$8 sps:$4 sm:$0xff]  }
 0x83a   : > { %13410 = vmatprep.subr.bf16.mxu0 %v17838_v10  ;;  %v17880_v10 = vld [vmem:[#allocation19 + $0x194] ss:$8 sps:$4 sm:$0xff]  }
 0x83d   : > { %13411 = vmatpush1.bf16.msra.mxu0 %v17836_v12  ;;  %v17878_v12 = vld [vmem:[#allocation19 + $0x190] ss:$8 sps:$4 sm:$0xff]  }
 0x83e   : > { %13412 = vmatprep.subr.bf16.mxu0 %v17841_v13  ;;  %v17883_v13 = vld [vmem:[#allocation19 + $0x1a4] ss:$8 sps:$4 sm:$0xff]  }
 0x841   : > { %13413 = vmatpush1.bf16.msra.mxu0 %v17839_v25  ;;  %v17881_v25 = vld [vmem:[#allocation19 + $0x1a0] ss:$8 sps:$4 sm:$0xff]  }
 0x842   : > { %13414 = vmatprep.subr.bf16.mxu0 %v17844_v21  ;;  %v17886_v21 = vld [vmem:[#allocation19 + $0x1b4] ss:$8 sps:$4 sm:$0xff]  }
 0x845   : > { %13415 = vmatpush1.bf16.msra.mxu0 %v17842_v33  ;;  %v17884_v33 = vld [vmem:[#allocation19 + $0x1b0] ss:$8 sps:$4 sm:$0xff]  }
 0x846   : > { %13416 = vmatprep.subr.bf16.mxu0 %v17847_v52  ;;  %v17887_v52 = vld [vmem:[#allocation19 + $0x1c0] ss:$8 sps:$4 sm:$0xff]  }
 0x849   : > { %13417 = vmatpush1.bf16.msra.mxu0 %v17845_v18  ;;  %v17889_v18 = vld [vmem:[#allocation19 + $0x1c4] ss:$8 sps:$4 sm:$0xff]  }
 0x84a   : > { %13418 = vmatprep.subr.bf16.mxu0 %v17850_v40  ;;  %v17892_v40 = vld [vmem:[#allocation19 + $0x1d4] ss:$8 sps:$4 sm:$0xff]  }
 0x84d   : > { %13419 = vmatpush1.bf16.msra.mxu0 %v17848_v1  ;;  %v17890_v1 = vld [vmem:[#allocation19 + $0x1d0] ss:$8 sps:$4 sm:$0xff]  }
 0x84e   : > { %13429 = vmatprep.subr.bf16.mxu0 %v17853_v30  ;;  %v12319_v30 = vrot.slane %v20211_v27, %v20177_v56  ;;  %v17914_v56 = vld [vmem:[#allocation22 + $0x38] sm:$0xff]   ;;  %v13381_v27 = vrot.slane %v13056_v9, %v19322_v36 }
 0x84f   : > { %16163 = vmatpush3.bf16.msra.mxu1 %v17914_v56  ;;  %v17916_v36 = vld [vmem:[%s20314_s13 + $0x8] sm:$0xff]  }
 0x850   : > { %16319 = vmatprep.subr.bf16.mxu1 %v17938_v46 }
 0x8e3   : > { %v12649_v37 = vpop.f32.mrb[176].mxu0 }
 0x8e4   : > { %v16339_v53 = vadd.f32 %v12649_v37, %v12311_v19  ;;  %v20219_v4 = vpop.f32.mrb[204].mxu1  ;;  %v12651_v57 = vpop.f32.mrb[177].mxu0  ;;  %v13385_v19 = vrot.slane %v13056_v9, %v20137_v31  ;;  %v17917_v31 = vld [vmem:[%s20314_s13 + $0x10] sm:$0xff]  }
 0x8e5   : > { %v16340_v35 = vadd.f32 %v12651_v57, %v12315_v58  ;;  %v12979_v51 = vpop.f32.mrb[205].mxu1  ;;  %v12653_v8 = vpop.f32.mrb[178].mxu0  ;;  %v16341_v44 = vadd.f32 %v20219_v4, %v12319_v30 }
 0x8e6   : > { %v12984_v3 = vmax.f32 %v16339_v53, 0.0  ;;  %v16342_v6 = vadd.f32 %v12979_v51, %v12323_v5  ;;  %v12981_v41 = vpop.f32.mrb[206].mxu1  ;;  %v12654_v26 = vpop.f32.mrb[179].mxu0 }
 0x8e7   : > { %v12985_v63 = vmax.f32 %v16340_v35, 0.0  ;;  %v12982_v2 = vpop.f32.mrb[207].mxu1  ;;  %v12986_v43 = vmax.f32 %v16341_v44, 0.0  ;;  %v17918_v41 = vld [vmem:[%s20314_s13 + $0x18] sm:$0xff]   ;;  %v17919_v26 = vld [vmem:[%s20314_s13 + $0x20] sm:$0xff]  }
 0x8e8   : > { %v12987_v48 = vmax.f32 %v16342_v6, 0.0  ;;  %v12988_v54 = vpack.c.bf16 %v12984_v3, %v12984_v3  ;;  %v17915_v3 = vld [vmem:[%s20314_s13] sm:$0xff]   ;;  %v17921_v2 = vld [vmem:[%s20314_s13 + $0x30] sm:$0xff]  }
 0x8e9   : > { %v12989_v11 = vpack.c.bf16 %v12985_v63, %v12985_v63  ;;  %v12990_v7 = vpack.c.bf16 %v12986_v43, %v12986_v43  ;;  %v17920_v63 = vld [vmem:[%s20314_s13 + $0x28] sm:$0xff]  }
 0x8ea   : > { %v12991_v15 = vpack.c.bf16 %v12987_v48, %v12987_v48  ;;  %v17922_v48 = vld [vmem:[%s20314_s13 + $0x38] sm:$0xff]  }
 0x8eb   : > { %13420 = vmatprep.mubr.bf16.mxu0 %v12989_v11 }
 0x8ec   : > { %13421 = vmatmul.mubr.bf16.vlgmr.msra.gmra.mrb[180].mxu0 %v12988_v54 }
 0x8ed   : > { %13430 = vmatpush1.bf16.msra.mxu0 %v17851_v29  ;;  %13461 = vmatprep.mubr.bf16.mxu0 %v12991_v15  ;;  %v13506_v29 = vld [vmem:[#allocation23] sm:$0x1] }
 0x8ee   : > { %13431 = vmatprep.subr.bf16.mxu0 %v17856_v14 }
 0x8f1   : > { %13432 = vmatpush1.bf16.msra.mxu0 %v17854_v62 }
 0x8f2   : > { %13433 = vmatprep.subr.bf16.mxu0 %v17859_v45 }
 0x8f5   : > { %13434 = vmatpush1.bf16.msra.mxu0 %v17857_v49 }
 0x8f6   : > { %13435 = vmatprep.subr.bf16.mxu0 %v17862_v28 }
 0x8f9   : > { %13436 = vmatpush1.bf16.msra.mxu0 %v17860_v61  ;;  %v13661_v61 = vld [vmem:[#allocation25] sm:$0x1] }
 0x8fa   : > { %13437 = vmatprep.subr.bf16.mxu0 %v17865_v24 }
 0x8fd   : > { %13438 = vmatpush1.bf16.msra.mxu0 %v17863_v55 }
 0x8fe   : > { %13439 = vmatprep.subr.bf16.mxu0 %v17868_v59 }
 0x901   : > { %13440 = vmatpush1.bf16.msra.mxu0 %v17866_v39 }
 0x902   : > { %13441 = vmatprep.subr.bf16.mxu0 %v17871_v50 }
 0x905   : > { %13442 = vmatpush1.bf16.msra.mxu0 %v17869_v60 }
 0x906   : > { %13443 = vmatprep.subr.bf16.mxu0 %v17874_v42 }
 0x909   : > { %13444 = vmatpush1.bf16.msra.mxu0 %v17872_v23 }
 0x90a   : > { %13445 = vmatprep.subr.bf16.mxu0 %v17877_v22 }
 0x90d   : > { %13446 = vmatpush1.bf16.msra.mxu0 %v17875_v17 }
 0x90e   : > { %13447 = vmatprep.subr.bf16.mxu0 %v17880_v10 }
 0x911   : > { %13448 = vmatpush1.bf16.msra.mxu0 %v17878_v12 }
 0x912   : > { %13449 = vmatprep.subr.bf16.mxu0 %v17883_v13 }
 0x915   : > { %13450 = vmatpush1.bf16.msra.mxu0 %v17881_v25 }
 0x916   : > { %13451 = vmatprep.subr.bf16.mxu0 %v17886_v21 }
 0x919   : > { %13452 = vmatpush1.bf16.msra.mxu0 %v17884_v33 }
 0x91a   : > { %13453 = vmatprep.subr.bf16.mxu0 %v17889_v18 }
 0x91d   : > { %13454 = vmatpush1.bf16.msra.mxu0 %v17887_v52 }
 0x91e   : > { %13455 = vmatprep.subr.bf16.mxu0 %v17892_v40 }
 0x921   : > { %13456 = vmatpush1.bf16.msra.mxu0 %v17890_v1 }
 0x922   : > { %13457 = vmatprep.subr.bf16.mxu0 %v17895_v47 }
 0x925   : > { %13458 = vmatpush1.bf16.msra.mxu0 %v17893_v16 }
 0x926   : > { %13459 = vmatprep.subr.bf16.mxu0 %v17898_v0 }
 0x929   : > { %13460 = vmatpush1.bf16.msra.mxu0 %v17896_v38 }
 0x92c   : > { %13462 = vmatmul.mubr.bf16.vlgmr.msra.gmra.mrb[180].mxu0 %v12990_v7 }
 0x9ff   : > { %v13463_v58 = vpop.f32.mrb[180].mxu0 }
 0xa00   : > { %v16343_v5 = vadd.f32 %v13463_v58, %v13381_v27  ;;  %v13465_v37 = vpop.f32.mrb[181].mxu0 }
 0xa01   : > { %v16344_v53 = vadd.f32 %v13465_v37, %v13385_v19  ;;  %v13467_v4 = vpop.f32.mrb[182].mxu0 }
 0xa02   : > { %v13470_v57 = vmax.f32 %v16343_v5, 0.0  ;;  %v13468_v35 = vpop.f32.mrb[183].mxu0 }
 0xa03   : > { %v13471_v51 = vmax.f32 %v16344_v53, 0.0 }
 0xa04   : > { %v13472_v6 = vpack.c.bf16 %v13470_v57, %v13470_v57 }
 0xa05   : > { %v13473_v8 = vpack.c.bf16 %v13471_v51, %v13471_v51 }
 0xa07   : > { %13635 = vmatprep.mubr.bf16.mxu1 %v13473_v8 }
 0xa08   : > { %13636 = vmatmul.mubr.bf16.vlgmr.msra.gmra.mrb[208].mxu1 %v13472_v6 }
 0xa09   : > { %16320 = vmatpush3.bf16.msra.mxu1 %v17915_v3  ;;  %16335 = vmatprep.mubr.msk.bf16.mxu1 %vm18417_vm7, %v17938_v46 }
 0xa0a   : > { %16321 = vmatprep.subr.bf16.mxu1 %v17938_v46 }
 0xa0d   : > { %16322 = vmatpush3.bf16.msra.mxu1 %v17916_v36 }
 0xa0e   : > { %16323 = vmatprep.subr.bf16.mxu1 %v17938_v46 }
 0xa11   : > { %16324 = vmatpush3.bf16.msra.mxu1 %v17917_v31 }
 0xa12   : > { %16325 = vmatprep.subr.bf16.mxu1 %v17938_v46 }
 0xa15   : > { %16326 = vmatpush3.bf16.msra.mxu1 %v17918_v41 }
 0xa16   : > { %16327 = vmatprep.subr.bf16.mxu1 %v17938_v46 }
 0xa19   : > { %16328 = vmatpush3.bf16.msra.mxu1 %v17919_v26 }
 0xa1a   : > { %16329 = vmatprep.subr.bf16.mxu1 %v17938_v46 }
 0xa1d   : > { %16330 = vmatpush3.bf16.msra.mxu1 %v17920_v63 }
 0xa1e   : > { %16331 = vmatprep.subr.bf16.mxu1 %v17938_v46 }
 0xa21   : > { %16332 = vmatpush3.bf16.msra.mxu1 %v17921_v2 }
 0xa22   : > { %16333 = vmatprep.subr.bf16.mxu1 %v17938_v46 }
 0xa25   : > { %16334 = vmatpush3.bf16.msra.mxu1 %v17922_v48 }
 0xadb   : > { %v16164_v11 = vpop.f32.mrb[208].mxu1 }
 0xadc   : > { %v16165_v54 = vpop.f32.mrb[209].mxu1 }
 0xadd   : > { %v16166_v14 = vadd.f32 %v16165_v54, %v16164_v11  ;;  %v16167_v15 = vpop.f32.mrb[210].mxu1 }
 0xade   : > { %v16168_v62 = vpop.f32.mrb[211].mxu1 }
 0xadf   : > { %v13638_v45 = vadd.f32 %v16166_v14, %v13506_v29 }
 0xae1   : > { %v13643_v49 = vmax.f32 %v13638_v45, 0.0 }
 0xae3   : > { %v13644_v28 = vpack.c.bf16 %v13643_v49, %v13643_v49 }
 0xae5   : > { %16336 = vmatmul.mubr.bf16.vlgmr.msra.gmra.mrb[212].mxu1 %v13644_v28 }
 0xbb8   : > { %v13744_v24 = vpop.f32.mrb[212].mxu1 }
 0xbb9   : > { %v13745_v55 = vadd.f32 %v13744_v24, %v13661_v61  ;;  %v16337_v59 = vpop.f32.mrb[213].mxu1 }
 0xbba   : > { %v13747_v39 = vpop.f32.mrb[214].mxu1 }
 0xbbb   : > { %v16338_v50 = vpop.f32.mrb[215].mxu1  ;;  %v13751_v60 = vsel %vm13750_vm9, %v13745_v55, -inf }
 0xbbc   : > { %13752 = vmax.xlane.f32.xlu0 %v13751_v60 }
 0xc49   : > { %v13753_v42 = vpop.xlane.xlu0 %13752 }
 0xc4a   : > { %v13754_v23 = vsub.f32 %v13745_v55, %v13753_v42 }
 0xc4c   : > { %v13755_v22 = vmul.f32 1.442695, %v13754_v23 }
 0xc4e   : > { %17923 = vpow2.f32 %v13755_v22 }
 0xc58   : > { %v17924_v17 = vpop.eup %17923 }
 0xc59   : > { %v13757_v10 = vsel %vm13750_vm9, %v17924_v17, 0.0 }
 0xc5a   : > { %13758 = vadd.xlane.f32.xlu0 %v13757_v10 }
 0xce7   : > { %v13759_v12 = vpop.xlane.xlu0 %13758 }
 0xce8   : > { %17925 = vrcp.f32 %v13759_v12 }
 0xcf2   : > { %v17926_v13 = vpop.eup %17925 }
 0xcf3   : > { %v13761_v25 = vmul.f32 %v17926_v13, %v17924_v17 }
 0xcf5   : > { %13762 = vst.msk [vmem:[%s661_s29] sm:$0x1] %vm13750_vm9, %v13761_v25 }
 0xcf6   : > { %18316 = shalt.err (!%p18313_p3)
}
 0xcf7   : > { %s18317_s8 = scalar_lea.hbm %s20258_s21, 16  ;;  %s18321_s30 = scalar_lea.hbm %s20375_s16, 32 }
 0xcf8   : > { %p18318_p4 = scmp.ne.s32.totalorder %s20258_s21, %s18317_s8  ;;  %p18322_p11 = scmp.lt.u32.totalorder %s20258_s21, %s20375_s16 }
 0xcf9   : > { %p18323_p13 = scmp.lt.u32.totalorder %s18321_s30, %s18317_s8  ;;  %p18325_p0 = scmp.lt.u32.totalorder %s18317_s8, %s20258_s21 }
 0xcfa   : > { %p18319_p7 = pnand %p18318_p4, %p20376_p6 }
 0xcfb   : > { %p18324_p1 = por %p18323_p13, %p18322_p11 }
 0xcfc   : > { %p18320_p8 = pneg %p18319_p7 }
 0xcfd   : > { %p18326_p5 = por %p18325_p0, %p18324_p1 }
 0xcff   : > { %p18327_p9 = pnand %p18326_p5, %p18320_p8 }
 0xd01   : > { %18330 = shalt.err (!%p18327_p9)
}
 0xd02   : > { %16457 = dma.vmem_to_hbm [thread:$0]  (%p20376_p6), %s20260_s20, 16, %s20258_s21, %s13764_s24  }
 0xd03 PF: > { %s20377_s28 = sld [smem:[#allocation38_spill]]  ;;  %s20378_s15 = sld [smem:[#allocation35_spill]] }
 0xd04   : > { %s20379_s29 = sld [smem:[#allocation42_spill]] }
 0xd09   : > { %p16529_p12 = scmp.ge.s32.totalorder %s20377_s28, 2  ;;  %s13788_s18 = sand.u32 1, %s20378_s15  }
 0xd0a   : > { %p20380_p10 = scmp.ne.s32.totalorder %s20379_s29, 0  ;;  %s13789_s27 = scalar_lea.sflag [#allocation7], %s13788_s18 }
 0xd0c   : > { %p16500_p2 = pnand %p16529_p12, %p20380_p10 }
 0xd0e   : > { %18376 = dma.done.wait (!%p16500_p2), %s13789_s27, 16  }
 0xd0f   : > { %18378 = vsyncadd (!%p16500_p2), %s13789_s27, 4294967280  ;;  %s20381_s21 = sld [smem:[#allocation39_spill]]  ;;  %s20382_s18 = sld [smem:[#allocation36_spill]] }
 0xd10   : > { %s20383_s19 = sld [smem:[#allocation37_spill]]  ;;  %s20384_s20 = sld [smem:[#allocation40_spill]] }
 0xd15   : > { %p32_p3 = scmp.ge.s32.totalorder %s20381_s21, 4  }
 0xd17   :  { %34 = sbr.rel (!%p32_p3) target bundleno = 16 (0x10), region = 184 }
 0xd1e   :  { %13793 = vsyncpa [#allocation6], 1 }
 0xd1f   :  { %13795 = vsyncpa [#allocation6 + $0x1], 1 }
 0xd20   :  { %13796 = vsyncpa [#allocation9], 1 }
 0xd21   :  { %13797 = vsyncpa [#allocation12], 1 }
 0xd22   :  { %13798 = vsyncpa [#allocation15], 1 }
 0xd23   :  { %13799 = vsyncpa [#allocation18], 1 }
 0xd24   :  { %13800 = vsyncpa [#allocation21], 1 }
 0xd25   :  { %13801 = vsyncpa [#allocation24], 1 }
 0xd26   :  { %13802 = vsyncpa [#allocation7], 1 }
 0xd27   :  { %13804 = vsyncpa [#allocation7 + $0x1], 1 }

</bundles_post_ra>
